<compile_context>
chip_gen: v6e
topology: v6e:2x2x1
jax: 0.10.0
libtpu: 0.0.40
codegen_flags: <defaults>
</compile_context>

<pallas_src>
import jax
import jax.numpy as jnp
from jax import lax
from jax.experimental import pallas as pl
from jax.experimental.pallas import tpu as pltpu


_INV_SQRT2 = 0.7071067811865476
_CP = 128  # lane-dense padded output-channel count carried between conv stages


def _round_up(x, m):
    return (x + m - 1) // m * m


# ----------------------------------------------------------------------------
# Pallas kernel: out = gelu(x @ w + b).  Full K per invocation (weights resident
# in VMEM), grid over (M tiles, N tiles), both "parallel".  bf16 matmul inputs,
# f32 MXU accumulation, f32 epilogue, lane-dense store.
# ----------------------------------------------------------------------------
def _mm_bias_gelu_kernel(x_ref, w_ref, b_ref, o_ref):
    acc = jnp.dot(x_ref[...], w_ref[...], preferred_element_type=jnp.float32)
    acc = acc + b_ref[...]                         # (tm, tn) + (1, tn) broadcast
    # F.gelu default ("none" approximation): 0.5 * x * (1 + erf(x / sqrt(2))).
    o_ref[...] = (0.5 * acc * (1.0 + lax.erf(acc * _INV_SQRT2))).astype(o_ref.dtype)


def matmul_bias_gelu(x, w, b, *, out_dtype=jnp.bfloat16, tm_cap=512):
    """gelu(x @ w + b): x (M, K), w (K, N), b (N,).  Requires N % 128 == 0.

    Full-K blocks (no K grid axis / accumulator scratch), grid = (M tiles, N tiles)
    both marked "parallel".  bf16 inputs, f32 accumulation + epilogue.
    """
    M, K = x.shape
    K2, N = w.shape
    assert K == K2 and N % 128 == 0, (K, N)

    x = x.astype(jnp.bfloat16)
    w = w.astype(jnp.bfloat16)
    b2 = b.reshape(1, N).astype(jnp.float32)

    # N tiling: 256-wide tiles when possible (fills MXU N on v6e/v7x and gives the
    # 512-wide Linear two parallel tiles); conv layers keep a single 128-wide tile.
    tn = N if N <= 128 else (256 if N % 256 == 0 else 128)
    n_tiles = N // tn

    # M tiling: fixed cap with pad-up (no divisor search).  When N contributes only
    # one tile, split M in two (when big enough) so both v7x TensorCores get work.
    # For v5e/v6e at large batch, tm_cap can be raised (e.g. 1024) to amortize the
    # per-grid-step overhead; 512 stays well inside v7x's 64 MiB physical VMEM.
    tm = min(tm_cap, _round_up(M, 16))
    if n_tiles < 2:
        tm = min(tm, max(_round_up(pl.cdiv(M, 2), 16), 16))
    Mp = _round_up(M, tm)
    if Mp != M:
        x = jnp.pad(x, ((0, Mp - M), (0, 0)))
    grid = (Mp // tm, n_tiles)

    out_itemsize = jnp.dtype(out_dtype).itemsize
    vmem_est = (2 * (tm * K + K * tn) * 2      # double-buffered bf16 x / w blocks
                + 2 * tm * tn * out_itemsize   # double-buffered output block
                + 2 * tn * 4)                  # bias
    vmem_limit = int(min(max(2 * vmem_est, 16 << 20), 48 << 20))

    cost = pl.CostEstimate(
        flops=2 * Mp * K * N,
        transcendentals=Mp * N,
        bytes_accessed=int(Mp * K * 2 + K * N * 2 + N * 4 + Mp * N * out_itemsize),
    )

    out = pl.pallas_call(
        _mm_bias_gelu_kernel,
        out_shape=jax.ShapeDtypeStruct((Mp, N), out_dtype),
        grid_spec=pltpu.PrefetchScalarGridSpec(
            num_scalar_prefetch=0,
            grid=grid,
            in_specs=[
                pl.BlockSpec((tm, K), lambda m, n: (m, 0)),   # x row block, full K
                pl.BlockSpec((K, tn), lambda m, n: (0, n)),   # weight, full K, VMEM-resident
                pl.BlockSpec((1, tn), lambda m, n: (0, n)),   # bias
            ],
            out_specs=pl.BlockSpec((tm, tn), lambda m, n: (m, n)),
        ),
        compiler_params=pltpu.CompilerParams(
            dimension_semantics=("parallel", "parallel"),
            vmem_limit_bytes=vmem_limit,
        ),
        cost_estimate=cost,
    )(x, w, b2)
    return out[:M] if Mp != M else out


# ----------------------------------------------------------------------------
# im2col in NHWC (data movement only).  Taps concatenated on the LAST axis so
# channels stay the lane dim; the true channel count `cin` is sliced here so the
# 128-wide output pad of the previous layer never enters K.
# Feature order along K: (kh, kw, cin) — matches the init-time weight reorder.
# ----------------------------------------------------------------------------
def im2col_nhwc(x, k, s, cin=None):
    B, H, W, C = x.shape
    cin = C if cin is None else cin
    OH = (H - k) // s + 1
    OW = (W - k) // s + 1
    taps = []
    for ki in range(k):
        for kj in range(k):
            taps.append(lax.slice(
                x,
                (0, ki, kj, 0),
                (B, ki + (OH - 1) * s + 1, kj + (OW - 1) * s + 1, cin),
                (1, s, s, 1)))                          # (B, OH, OW, cin)
    p = jnp.concatenate(taps, axis=-1)                  # (B, OH, OW, k*k*cin), lanes = channels
    return p.reshape(B * OH * OW, k * k * cin), OH, OW


# ----------------------------------------------------------------------------
# Deterministic parameter init (orthogonal, w_scale=1.0, bias=0), stored in the
# layout the kernels want: (K, Cout_padded) bf16 with rows ordered (kh, kw, cin).
# ----------------------------------------------------------------------------
def orthogonal(key, rows, cols, dtype=jnp.float32):
    n, m = max(rows, cols), min(rows, cols)
    a = jax.random.normal(key, (n, m), dtype)
    q, r = jnp.linalg.qr(a)
    d = jnp.diagonal(r)
    d = jnp.where(d == 0, 1.0, jnp.sign(d))
    q = q * d[None, :]
    if rows < cols:
        q = q.T
    return q[:rows, :cols]


def make_params(key, in_channels=4, feature_dim=512):
    k1, k2, k3, k4 = jax.random.split(key, 4)

    def conv_w(kkey, cout, cin, k):
        # PyTorch Conv2d weight: orthogonal over (cout, cin*k*k) with flatten order
        # (cin, kh, kw).  Reorder rows to (kh, kw, cin) to match the channels-last
        # im2col, transpose to (K, cout), lane-pad cout -> 128.
        w = orthogonal(kkey, cout, cin * k * k)
        w = w.reshape(cout, cin, k, k).transpose(0, 2, 3, 1)      # (cout, kh, kw, cin)
        w_mat = w.reshape(cout, k * k * cin).T                    # (K, cout)
        return jnp.pad(w_mat, ((0, 0), (0, _CP - cout))).astype(jnp.bfloat16)

    w1 = conv_w(k1, 32, in_channels, 8)     # (256, 128)
    w2 = conv_w(k2, 64, 32, 4)              # (512, 128)
    w3 = conv_w(k3, 64, 64, 3)              # (576, 128)

    # Linear(7*7*64, feature_dim): PyTorch flattens NCHW (c,h,w); our activations
    # flatten NHWC with 128 padded channels (h,w,c_pad).  Bake both the permutation
    # and the channel pad into w4 at init (zero rows for pad channels) so the
    # runtime flatten is a pure lane-dense reshape — no slice/pad copies.
    w4 = orthogonal(k4, feature_dim, 7 * 7 * 64)                          # (512, 3136), cols (c,h,w)
    w4 = w4.reshape(feature_dim, 64, 7, 7).transpose(0, 2, 3, 1)          # (512, 7, 7, 64)
    w4_full = jnp.zeros((feature_dim, 7, 7, _CP), jnp.float32).at[..., :64].set(w4)
    w4 = w4_full.reshape(feature_dim, 7 * 7 * _CP).T.astype(jnp.bfloat16) # (6272, 512)

    return {
        "w1": w1, "b1": jnp.zeros((_CP,), jnp.float32),
        "w2": w2, "b2": jnp.zeros((_CP,), jnp.float32),
        "w3": w3, "b3": jnp.zeros((_CP,), jnp.float32),
        "w4": w4, "b4": jnp.zeros((feature_dim,), jnp.float32),
    }


# ----------------------------------------------------------------------------
# Forward pass (NatureConvBody.forward)
# ----------------------------------------------------------------------------
def nature_conv_body(x_nchw, params):
    B = x_nchw.shape[0]
    # One-time NCHW -> NHWC; activations stay channels-last between stages with a
    # lane-dense 128-channel pad on the *output* side only (never fed into K).
    h = jnp.transpose(x_nchw, (0, 2, 3, 1)).astype(jnp.bfloat16)

    def conv_gelu(h, w, b, k, s, cin):
        p, OH, OW = im2col_nhwc(h, k, s, cin)
        y = matmul_bias_gelu(p, w, b, out_dtype=jnp.bfloat16)
        return y.reshape(B, OH, OW, _CP)               # NHWC, 128 lanes

    h = conv_gelu(h, params["w1"], params["b1"], 8, 4, 4)    # (B, 20, 20, 128), K=256
    h = conv_gelu(h, params["w2"], params["b2"], 4, 2, 32)   # (B,  9,  9, 128), K=512
    h = conv_gelu(h, params["w3"], params["b3"], 3, 1, 64)   # (B,  7,  7, 128), K=576

    h = h.reshape(B, 7 * 7 * _CP)                            # lane-dense flatten, K=6272
    return matmul_bias_gelu(h, params["w4"], params["b4"], out_dtype=jnp.float32)  # (B, 512)


# ----------------------------------------------------------------------------
# Pure-JAX reference (lax.conv, PyTorch semantics) mirroring the same bf16-input
# / f32-accumulate quantization, for correctness checking.
# ----------------------------------------------------------------------------
def reference(x_nchw, params):
    h = jnp.transpose(x_nchw, (0, 2, 3, 1)).astype(jnp.bfloat16)

    def conv(h, w_mat, b, cin, cout, k, s):
        w_hwio = w_mat[:, :cout].astype(jnp.bfloat16).reshape(k, k, cin, cout)
        y = lax.conv_general_dilated(
            h, w_hwio, window_strides=(s, s), padding="VALID",
            dimension_numbers=("NHWC", "HWIO", "NHWC"),
            preferred_element_type=jnp.float32)
        y = y + b[:cout]
        return jax.nn.gelu(y, approximate=False).astype(jnp.bfloat16)

    h = conv(h, params["w1"], params["b1"], 4, 32, 8, 4)
    h = conv(h, params["w2"], params["b2"], 32, 64, 4, 2)
    h = conv(h, params["w3"], params["b3"], 64, 64, 3, 1)    # (B, 7, 7, 64)

    # PyTorch flattens NCHW (c,h,w); rebuild the (3136, 512) weight in that row
    # order from the stored (h,w,c_pad) form and flatten the activations to match.
    h_nchw = jnp.transpose(h, (0, 3, 1, 2)).reshape(h.shape[0], -1)
    w4 = params["w4"].astype(jnp.float32).reshape(7, 7, _CP, -1)[:, :, :64, :]
    w4 = jnp.transpose(w4, (2, 0, 1, 3)).reshape(7 * 7 * 64, -1)
    y = jnp.dot(h_nchw.astype(jnp.bfloat16), w4.astype(jnp.bfloat16),
                preferred_element_type=jnp.float32)
    return jax.nn.gelu(y + params["b4"], approximate=False)


if __name__ == "__main__":
    key = jax.random.PRNGKey(0)
    kx, kp = jax.random.split(key)
    # 84x84 spatial is implied by Linear(7*7*64, 512); batch kept small for the demo.
    x = jax.random.normal(kx, (2, 4, 84, 84), jnp.float32)
    params = make_params(kp)

    fwd = jax.jit(nature_conv_body)
    out = jax.block_until_ready(fwd(x, params))
    assert out.shape == (2, 512), out.shape
    assert out.dtype == jnp.float32, out.dtype

    ref = jax.block_until_ready(reference(x, params))
    max_err = float(jnp.max(jnp.abs(out - ref)))
    assert jnp.allclose(out, ref, atol=2e-2, rtol=2e-2), max_err

    print("KERNEL_OK")
</pallas_src>

<mosaic_0001>
module attributes {stable_mosaic.version = 11 : i64} {
  func.func @_mm_bias_gelu_kernel(%arg0: i32, %arg1: i32, %arg2: memref<400x256xbf16, #tpu.memory_space<vmem>>, %arg3: memref<256x128xbf16, #tpu.memory_space<vmem>>, %arg4: memref<1x128xf32, #tpu.memory_space<vmem>>, %arg5: memref<400x128xbf16, #tpu.memory_space<vmem>>) attributes {dimension_semantics = [#tpu.dimension_semantics<parallel>, #tpu.dimension_semantics<parallel>], iteration_bounds = array<i64: 2, 1>, scalar_prefetch = 0 : i64, scratch_operands = 0 : i64, tpu.core_type = #tpu.core_type<tc>, window_params = [{transform_indices = @transform_0, window_bounds = array<i64: 400, 256>}, {transform_indices = @transform_1, window_bounds = array<i64: 256, 128>}, {transform_indices = @transform_2, window_bounds = array<i64: 1, 128>}, {transform_indices = @transform_3, window_bounds = array<i64: 400, 128>}]} {
    %c0 = arith.constant 0 : index
    %c0_0 = arith.constant 0 : index
    %0 = vector.load %arg2[%c0, %c0_0] : memref<400x256xbf16, #tpu.memory_space<vmem>>, vector<400x256xbf16>
    %c0_1 = arith.constant 0 : index
    %c0_2 = arith.constant 0 : index
    %1 = vector.load %arg3[%c0_1, %c0_2] : memref<256x128xbf16, #tpu.memory_space<vmem>>, vector<256x128xbf16>
    %cst = arith.constant dense<0.000000e+00> : vector<400x128xf32>
    %2 = tpu.matmul %0, %1, %cst {dimension_numbers = #tpu.dot_dimension_numbers<[1], [0], [0], [1], [0, 0, 1, 1], [], []>} : vector<400x256xbf16>, vector<256x128xbf16>, vector<400x128xf32> -> vector<400x128xf32>
    %c0_3 = arith.constant 0 : index
    %c0_4 = arith.constant 0 : index
    %3 = vector.load %arg4[%c0_3, %c0_4] : memref<1x128xf32, #tpu.memory_space<vmem>>, vector<1x128xf32>
    %4 = vector.broadcast %3 : vector<1x128xf32> to vector<400x128xf32>
    %5 = arith.addf %2, %4 : vector<400x128xf32>
    %cst_5 = arith.constant 5.000000e-01 : f32
    %6 = vector.broadcast %cst_5 : f32 to vector<400x128xf32>
    %7 = arith.mulf %6, %5 : vector<400x128xf32>
    %cst_6 = arith.constant 0.707106769 : f32
    %8 = vector.broadcast %cst_6 : f32 to vector<400x128xf32>
    %9 = arith.mulf %5, %8 : vector<400x128xf32>
    %10 = math.erf %9 : vector<400x128xf32>
    %cst_7 = arith.constant 1.000000e+00 : f32
    %11 = vector.broadcast %cst_7 : f32 to vector<400x128xf32>
    %12 = arith.addf %11, %10 : vector<400x128xf32>
    %13 = arith.mulf %7, %12 : vector<400x128xf32>
    %14 = arith.truncf %13 : vector<400x128xf32> to vector<400x128xbf16>
    %c0_8 = arith.constant 0 : index
    %c0_9 = arith.constant 0 : index
    %15 = vector.load %arg5[%c0_8, %c0_9] : memref<400x128xbf16, #tpu.memory_space<vmem>>, vector<400x128xbf16>
    tpu.vector_store %arg5[%c0_8, %c0_9], %14 {strides = array<i32>} : memref<400x128xbf16, #tpu.memory_space<vmem>>, vector<400x128xbf16>,
    return
  }
  func.func @transform_0(%arg0: i32, %arg1: i32) -> (i32, i32) {
    %c0_i32 = arith.constant 0 : i32
    %c0_i32_0 = arith.constant 0 : i32
    return %arg0, %c0_i32 : i32, i32
  }
  func.func @transform_1(%arg0: i32, %arg1: i32) -> (i32, i32) {
    %c0_i32 = arith.constant 0 : i32
    %c0_i32_0 = arith.constant 0 : i32
    return %c0_i32, %arg1 : i32, i32
  }
  func.func @transform_2(%arg0: i32, %arg1: i32) -> (i32, i32) {
    %c0_i32 = arith.constant 0 : i32
    %c0_i32_0 = arith.constant 0 : i32
    return %c0_i32, %arg1 : i32, i32
  }
  func.func @transform_3(%arg0: i32, %arg1: i32) -> (i32, i32) {
    %c0_i32 = arith.constant 0 : i32
    return %arg0, %arg1 : i32, i32
  }
}

module attributes {stable_mosaic.version = 11 : i64} {
  func.func @_mm_bias_gelu_kernel(%arg0: i32, %arg1: i32, %arg2: memref<96x512xbf16, #tpu.memory_space<vmem>>, %arg3: memref<512x128xbf16, #tpu.memory_space<vmem>>, %arg4: memref<1x128xf32, #tpu.memory_space<vmem>>, %arg5: memref<96x128xbf16, #tpu.memory_space<vmem>>) attributes {dimension_semantics = [#tpu.dimension_semantics<parallel>, #tpu.dimension_semantics<parallel>], iteration_bounds = array<i64: 2, 1>, scalar_prefetch = 0 : i64, scratch_operands = 0 : i64, tpu.core_type = #tpu.core_type<tc>, window_params = [{transform_indices = @transform_0, window_bounds = array<i64: 96, 512>}, {transform_indices = @transform_1, window_bounds = array<i64: 512, 128>}, {transform_indices = @transform_2, window_bounds = array<i64: 1, 128>}, {transform_indices = @transform_3, window_bounds = array<i64: 96, 128>}]} {
    %c0 = arith.constant 0 : index
    %c0_0 = arith.constant 0 : index
    %0 = vector.load %arg2[%c0, %c0_0] : memref<96x512xbf16, #tpu.memory_space<vmem>>, vector<96x512xbf16>
    %c0_1 = arith.constant 0 : index
    %c0_2 = arith.constant 0 : index
    %1 = vector.load %arg3[%c0_1, %c0_2] : memref<512x128xbf16, #tpu.memory_space<vmem>>, vector<512x128xbf16>
    %cst = arith.constant dense<0.000000e+00> : vector<96x128xf32>
    %2 = tpu.matmul %0, %1, %cst {dimension_numbers = #tpu.dot_dimension_numbers<[1], [0], [0], [1], [0, 0, 1, 1], [], []>} : vector<96x512xbf16>, vector<512x128xbf16>, vector<96x128xf32> -> vector<96x128xf32>
    %c0_3 = arith.constant 0 : index
    %c0_4 = arith.constant 0 : index
    %3 = vector.load %arg4[%c0_3, %c0_4] : memref<1x128xf32, #tpu.memory_space<vmem>>, vector<1x128xf32>
    %4 = vector.broadcast %3 : vector<1x128xf32> to vector<96x128xf32>
    %5 = arith.addf %2, %4 : vector<96x128xf32>
    %cst_5 = arith.constant 5.000000e-01 : f32
    %6 = vector.broadcast %cst_5 : f32 to vector<96x128xf32>
    %7 = arith.mulf %6, %5 : vector<96x128xf32>
    %cst_6 = arith.constant 0.707106769 : f32
    %8 = vector.broadcast %cst_6 : f32 to vector<96x128xf32>
    %9 = arith.mulf %5, %8 : vector<96x128xf32>
    %10 = math.erf %9 : vector<96x128xf32>
    %cst_7 = arith.constant 1.000000e+00 : f32
    %11 = vector.broadcast %cst_7 : f32 to vector<96x128xf32>
    %12 = arith.addf %11, %10 : vector<96x128xf32>
    %13 = arith.mulf %7, %12 : vector<96x128xf32>
    %14 = arith.truncf %13 : vector<96x128xf32> to vector<96x128xbf16>
    %c0_8 = arith.constant 0 : index
    %c0_9 = arith.constant 0 : index
    %15 = vector.load %arg5[%c0_8, %c0_9] : memref<96x128xbf16, #tpu.memory_space<vmem>>, vector<96x128xbf16>
    tpu.vector_store %arg5[%c0_8, %c0_9], %14 {strides = array<i32>} : memref<96x128xbf16, #tpu.memory_space<vmem>>, vector<96x128xbf16>,
    return
  }
  func.func @transform_0(%arg0: i32, %arg1: i32) -> (i32, i32) {
    %c0_i32 = arith.constant 0 : i32
    %c0_i32_0 = arith.constant 0 : i32
    return %arg0, %c0_i32 : i32, i32
  }
  func.func @transform_1(%arg0: i32, %arg1: i32) -> (i32, i32) {
    %c0_i32 = arith.constant 0 : i32
    %c0_i32_0 = arith.constant 0 : i32
    return %c0_i32, %arg1 : i32, i32
  }
  func.func @transform_2(%arg0: i32, %arg1: i32) -> (i32, i32) {
    %c0_i32 = arith.constant 0 : i32
    %c0_i32_0 = arith.constant 0 : i32
    return %c0_i32, %arg1 : i32, i32
  }
  func.func @transform_3(%arg0: i32, %arg1: i32) -> (i32, i32) {
    %c0_i32 = arith.constant 0 : i32
    return %arg0, %arg1 : i32, i32
  }
}

module attributes {stable_mosaic.version = 11 : i64} {
  func.func @_mm_bias_gelu_kernel(%arg0: i32, %arg1: i32, %arg2: memref<64x576xbf16, #tpu.memory_space<vmem>>, %arg3: memref<576x128xbf16, #tpu.memory_space<vmem>>, %arg4: memref<1x128xf32, #tpu.memory_space<vmem>>, %arg5: memref<64x128xbf16, #tpu.memory_space<vmem>>) attributes {dimension_semantics = [#tpu.dimension_semantics<parallel>, #tpu.dimension_semantics<parallel>], iteration_bounds = array<i64: 2, 1>, scalar_prefetch = 0 : i64, scratch_operands = 0 : i64, tpu.core_type = #tpu.core_type<tc>, window_params = [{transform_indices = @transform_0, window_bounds = array<i64: 64, 576>}, {transform_indices = @transform_1, window_bounds = array<i64: 576, 128>}, {transform_indices = @transform_2, window_bounds = array<i64: 1, 128>}, {transform_indices = @transform_3, window_bounds = array<i64: 64, 128>}]} {
    %c0 = arith.constant 0 : index
    %c0_0 = arith.constant 0 : index
    %0 = vector.load %arg2[%c0, %c0_0] : memref<64x576xbf16, #tpu.memory_space<vmem>>, vector<64x576xbf16>
    %c0_1 = arith.constant 0 : index
    %c0_2 = arith.constant 0 : index
    %1 = vector.load %arg3[%c0_1, %c0_2] : memref<576x128xbf16, #tpu.memory_space<vmem>>, vector<576x128xbf16>
    %cst = arith.constant dense<0.000000e+00> : vector<64x128xf32>
    %2 = tpu.matmul %0, %1, %cst {dimension_numbers = #tpu.dot_dimension_numbers<[1], [0], [0], [1], [0, 0, 1, 1], [], []>} : vector<64x576xbf16>, vector<576x128xbf16>, vector<64x128xf32> -> vector<64x128xf32>
    %c0_3 = arith.constant 0 : index
    %c0_4 = arith.constant 0 : index
    %3 = vector.load %arg4[%c0_3, %c0_4] : memref<1x128xf32, #tpu.memory_space<vmem>>, vector<1x128xf32>
    %4 = vector.broadcast %3 : vector<1x128xf32> to vector<64x128xf32>
    %5 = arith.addf %2, %4 : vector<64x128xf32>
    %cst_5 = arith.constant 5.000000e-01 : f32
    %6 = vector.broadcast %cst_5 : f32 to vector<64x128xf32>
    %7 = arith.mulf %6, %5 : vector<64x128xf32>
    %cst_6 = arith.constant 0.707106769 : f32
    %8 = vector.broadcast %cst_6 : f32 to vector<64x128xf32>
    %9 = arith.mulf %5, %8 : vector<64x128xf32>
    %10 = math.erf %9 : vector<64x128xf32>
    %cst_7 = arith.constant 1.000000e+00 : f32
    %11 = vector.broadcast %cst_7 : f32 to vector<64x128xf32>
    %12 = arith.addf %11, %10 : vector<64x128xf32>
    %13 = arith.mulf %7, %12 : vector<64x128xf32>
    %14 = arith.truncf %13 : vector<64x128xf32> to vector<64x128xbf16>
    %c0_8 = arith.constant 0 : index
    %c0_9 = arith.constant 0 : index
    %15 = vector.load %arg5[%c0_8, %c0_9] : memref<64x128xbf16, #tpu.memory_space<vmem>>, vector<64x128xbf16>
    tpu.vector_store %arg5[%c0_8, %c0_9], %14 {strides = array<i32>} : memref<64x128xbf16, #tpu.memory_space<vmem>>, vector<64x128xbf16>,
    return
  }
  func.func @transform_0(%arg0: i32, %arg1: i32) -> (i32, i32) {
    %c0_i32 = arith.constant 0 : i32
    %c0_i32_0 = arith.constant 0 : i32
    return %arg0, %c0_i32 : i32, i32
  }
  func.func @transform_1(%arg0: i32, %arg1: i32) -> (i32, i32) {
    %c0_i32 = arith.constant 0 : i32
    %c0_i32_0 = arith.constant 0 : i32
    return %c0_i32, %arg1 : i32, i32
  }
  func.func @transform_2(%arg0: i32, %arg1: i32) -> (i32, i32) {
    %c0_i32 = arith.constant 0 : i32
    %c0_i32_0 = arith.constant 0 : i32
    return %c0_i32, %arg1 : i32, i32
  }
  func.func @transform_3(%arg0: i32, %arg1: i32) -> (i32, i32) {
    %c0_i32 = arith.constant 0 : i32
    return %arg0, %arg1 : i32, i32
  }
}

module attributes {stable_mosaic.version = 11 : i64} {
  func.func @_mm_bias_gelu_kernel(%arg0: i32, %arg1: i32, %arg2: memref<16x6272xbf16, #tpu.memory_space<vmem>>, %arg3: memref<6272x256xbf16, #tpu.memory_space<vmem>>, %arg4: memref<1x256xf32, #tpu.memory_space<vmem>>, %arg5: memref<16x256xf32, #tpu.memory_space<vmem>>) attributes {dimension_semantics = [#tpu.dimension_semantics<parallel>, #tpu.dimension_semantics<parallel>], iteration_bounds = array<i64: 1, 2>, scalar_prefetch = 0 : i64, scratch_operands = 0 : i64, tpu.core_type = #tpu.core_type<tc>, window_params = [{transform_indices = @transform_0, window_bounds = array<i64: 16, 6272>}, {transform_indices = @transform_1, window_bounds = array<i64: 6272, 256>}, {transform_indices = @transform_2, window_bounds = array<i64: 1, 256>}, {transform_indices = @transform_3, window_bounds = array<i64: 16, 256>}]} {
    %c0 = arith.constant 0 : index
    %c0_0 = arith.constant 0 : index
    %0 = vector.load %arg2[%c0, %c0_0] : memref<16x6272xbf16, #tpu.memory_space<vmem>>, vector<16x6272xbf16>
    %c0_1 = arith.constant 0 : index
    %c0_2 = arith.constant 0 : index
    %1 = vector.load %arg3[%c0_1, %c0_2] : memref<6272x256xbf16, #tpu.memory_space<vmem>>, vector<6272x256xbf16>
    %cst = arith.constant dense<0.000000e+00> : vector<16x256xf32>
    %2 = tpu.matmul %0, %1, %cst {dimension_numbers = #tpu.dot_dimension_numbers<[1], [0], [0], [1], [0, 0, 1, 1], [], []>} : vector<16x6272xbf16>, vector<6272x256xbf16>, vector<16x256xf32> -> vector<16x256xf32>
    %c0_3 = arith.constant 0 : index
    %c0_4 = arith.constant 0 : index
    %3 = vector.load %arg4[%c0_3, %c0_4] : memref<1x256xf32, #tpu.memory_space<vmem>>, vector<1x256xf32>
    %4 = vector.broadcast %3 : vector<1x256xf32> to vector<16x256xf32>
    %5 = arith.addf %2, %4 : vector<16x256xf32>
    %cst_5 = arith.constant 5.000000e-01 : f32
    %6 = vector.broadcast %cst_5 : f32 to vector<16x256xf32>
    %7 = arith.mulf %6, %5 : vector<16x256xf32>
    %cst_6 = arith.constant 0.707106769 : f32
    %8 = vector.broadcast %cst_6 : f32 to vector<16x256xf32>
    %9 = arith.mulf %5, %8 : vector<16x256xf32>
    %10 = math.erf %9 : vector<16x256xf32>
    %cst_7 = arith.constant 1.000000e+00 : f32
    %11 = vector.broadcast %cst_7 : f32 to vector<16x256xf32>
    %12 = arith.addf %11, %10 : vector<16x256xf32>
    %13 = arith.mulf %7, %12 : vector<16x256xf32>
    %c0_8 = arith.constant 0 : index
    %c0_9 = arith.constant 0 : index
    %14 = vector.load %arg5[%c0_8, %c0_9] : memref<16x256xf32, #tpu.memory_space<vmem>>, vector<16x256xf32>
    tpu.vector_store %arg5[%c0_8, %c0_9], %13 {strides = array<i32>} : memref<16x256xf32, #tpu.memory_space<vmem>>, vector<16x256xf32>,
    return
  }
  func.func @transform_0(%arg0: i32, %arg1: i32) -> (i32, i32) {
    %c0_i32 = arith.constant 0 : i32
    %c0_i32_0 = arith.constant 0 : i32
    return %arg0, %c0_i32 : i32, i32
  }
  func.func @transform_1(%arg0: i32, %arg1: i32) -> (i32, i32) {
    %c0_i32 = arith.constant 0 : i32
    %c0_i32_0 = arith.constant 0 : i32
    return %c0_i32, %arg1 : i32, i32
  }
  func.func @transform_2(%arg0: i32, %arg1: i32) -> (i32, i32) {
    %c0_i32 = arith.constant 0 : i32
    %c0_i32_0 = arith.constant 0 : i32
    return %c0_i32, %arg1 : i32, i32
  }
  func.func @transform_3(%arg0: i32, %arg1: i32) -> (i32, i32) {
    %c0_i32 = arith.constant 0 : i32
    return %arg0, %arg1 : i32, i32
  }
}

</mosaic_0001>

<bundles_post_ra>
// kernel: nature_conv_body.4
= control target key start
LH: loop header
LB: loop body
LE: loop exit
PB: predicated region body
PF: predicated region fallthrough
CT: control target
= control target key end

     0   :  { %s2121_s12 = smov 0   ;;  %s2123_s13 = smov 0   ;;  %s2548_s0 = inlined_call_operand.vmem [shape: bf16[800,256], index: 0, kind: input, shape index: {}]   ;;  %s2549_s1 = inlined_call_operand.vmem [shape: bf16[256,128], index: 1, kind: input, shape index: {}]   ;;  %s2550_s2 = inlined_call_operand.vmem [shape: f32[1,128], index: 2, kind: input, shape index: {}]   ;;  %s2551_s3 = inlined_call_operand.vmem [shape: bf16[800,128], index: 3, kind: output, shape index: {}]  }
   0x1   :  { %s2125_s14 = smov 0  }
   0x2 LB: > { %s25_s15 = sadd.s32 1, %s2094_s13  ;;  %p1505_p0 = scmp.ge.s32.totalorder %s2098_s14, 1  ;;  %s2098_s14 = sphi %s2125_s14, %s13_s14   ;;  %s2094_s13 = sphi %s2123_s13, %s2553_s13   ;;  %s2090_s12 = sphi %s2121_s12, %s2552_s12  }
   0x3   : > { %p27_p1 = scmp.ge.s32.totalorder %s25_s15, 2  ;;  %p170_p2 = scmp.lt.s32.totalorder %s2098_s14, 3 }
   0x5   : > { %s2555_s15 = smov (%p27_p1, %s25_s15), 0  ;;  %p171_p3 = pnand %p1505_p0, %p170_p2 }
   0x6   : > { %s205_s18 = smul.u32 (!%p171_p3), 50, %s2090_s12 }
   0x7   : > { %174 = sbr.rel (%p171_p3) target bundleno = 395 (0x18b), region = 32 }
   0x8   : > { %p206_p4 = scmp.lt.s32.totalorder (!%p171_p3), %s205_s18, 99 }
   0xc   : > { %v1885_v0 = vld [vmem:[%s2549_s1 + $0x38] sm:$0xff]   ;;  %v2100_v1 = vmov 0   ;;  %v1886_v2 = vld [vmem:[%s2549_s1 + $0x30] sm:$0xff]   ;;  %v1887_v3 = vld [vmem:[%s2549_s1 + $0x28] sm:$0xff]   ;;  %s2557_s18 = smov (!%p206_p4, %s205_s18), 99 }
   0xd   : > { %664 = vmatprep.subr.bf16.mxu0 %v2100_v1  ;;  %1828 = vmatprep.subr.bf16.mxu1 %v2100_v1  ;;  %v1888_v4 = vld [vmem:[%s2549_s1 + $0x20] sm:$0xff]   ;;  %s1628_s25 = sshll.u32 %s2557_s18, 3  ;;  %v1889_v5 = vld [vmem:[%s2549_s1 + $0x18] sm:$0xff]   ;;  %v1890_v7 = vld [vmem:[%s2549_s1 + $0x10] sm:$0xff]  }
   0xe   : > { %665 = vmatpush1.bf16.msra.mxu0 %v1885_v0  ;;  %1844 = vmatpush1.bf16.msra.mxu1 %v1885_v0  ;;  %s2168_s30 = scalar_lea.vmem %s2548_s0, %s1628_s25  ;;  %v1891_v9 = vld [vmem:[%s2549_s1 + $0x8] sm:$0xff]   ;;  %v1892_v10 = vld [vmem:[%s2549_s1] sm:$0xff]   ;;  %v1893_v11 = vld [vmem:[%s2549_s1 + $0x78] sm:$0xff]  }
   0xf   : > { %666 = vmatprep.subr.bf16.mxu0 %v2100_v1  ;;  %1829 = vmatprep.subr.bf16.mxu1 %v2100_v1  ;;  %v1903_v6 = vld [vmem:[%s2168_s30 + $0x4] ss:$8 sps:$4 sm:$0xff]   ;;  %v1906_v8 = vld [vmem:[%s2168_s30 + $0xd4] ss:$8 sps:$4 sm:$0xff]   ;;  %v1901_v19 = vld [vmem:[%s2168_s30] ss:$8 sps:$4 sm:$0xff]  }
  0x10   : > { %696 = vmatprep.mubr.bf16.mxu0 %v1903_v6  ;;  %800 = vmatprep.mubr.bf16.mxu1 %v1906_v8  ;;  %v1894_v12 = vld [vmem:[%s2549_s1 + $0x70] sm:$0xff]   ;;  %v1895_v13 = vld [vmem:[%s2549_s1 + $0x68] sm:$0xff]   ;;  %v1896_v14 = vld [vmem:[%s2549_s1 + $0x60] sm:$0xff]  }
  0x11   : > { %v1897_v15 = vld [vmem:[%s2549_s1 + $0x58] sm:$0xff]   ;;  %v1898_v16 = vld [vmem:[%s2549_s1 + $0x50] sm:$0xff]   ;;  %v1899_v17 = vld [vmem:[%s2549_s1 + $0x48] sm:$0xff]  }
  0x12   : > { %667 = vmatpush1.bf16.msra.mxu0 %v1886_v2  ;;  %1845 = vmatpush1.bf16.msra.mxu1 %v1886_v2  ;;  %v1900_v18 = vld [vmem:[%s2549_s1 + $0x40] sm:$0xff]   ;;  %v1904_v20 = vld [vmem:[%s2168_s30 + $0xd0] ss:$8 sps:$4 sm:$0xff]   ;;  %v1907_v21 = vld [vmem:[%s2168_s30 + $0x14] ss:$8 sps:$4 sm:$0xff]  }
  0x13   : > { %668 = vmatprep.subr.bf16.mxu0 %v2100_v1  ;;  %1830 = vmatprep.subr.bf16.mxu1 %v2100_v1  ;;  %v1909_v22 = vld [vmem:[%s2168_s30 + $0xe4] ss:$8 sps:$4 sm:$0xff]   ;;  %v1911_v23 = vld [vmem:[%s2168_s30 + $0x10] ss:$8 sps:$4 sm:$0xff]   ;;  %v1912_v24 = vld [vmem:[%s2168_s30 + $0xe0] ss:$8 sps:$4 sm:$0xff]  }
  0x14   : > { %v1913_v25 = vld [vmem:[%s2168_s30 + $0x24] ss:$8 sps:$4 sm:$0xff]   ;;  %v1915_v26 = vld [vmem:[%s2168_s30 + $0xf4] ss:$8 sps:$4 sm:$0xff]   ;;  %v1917_v27 = vld [vmem:[%s2168_s30 + $0x20] ss:$8 sps:$4 sm:$0xff]  }
  0x15   : > { %v1918_v28 = vld [vmem:[%s2168_s30 + $0xf0] ss:$8 sps:$4 sm:$0xff]   ;;  %v1919_v29 = vld [vmem:[%s2168_s30 + $0x34] ss:$8 sps:$4 sm:$0xff]   ;;  %v1921_v30 = vld [vmem:[%s2168_s30 + $0x104] ss:$8 sps:$4 sm:$0xff]  }
  0x16   : > { %669 = vmatpush1.bf16.msra.mxu0 %v1887_v3  ;;  %1846 = vmatpush1.bf16.msra.mxu1 %v1887_v3  ;;  %v1923_v31 = vld [vmem:[%s2168_s30 + $0x30] ss:$8 sps:$4 sm:$0xff]   ;;  %v1924_v32 = vld [vmem:[%s2168_s30 + $0x100] ss:$8 sps:$4 sm:$0xff]   ;;  %v1925_v33 = vld [vmem:[%s2168_s30 + $0x44] ss:$8 sps:$4 sm:$0xff]  }
  0x17   : > { %670 = vmatprep.subr.bf16.mxu0 %v2100_v1  ;;  %1831 = vmatprep.subr.bf16.mxu1 %v2100_v1  ;;  %v1927_v34 = vld [vmem:[%s2168_s30 + $0x114] ss:$8 sps:$4 sm:$0xff]   ;;  %v1929_v35 = vld [vmem:[%s2168_s30 + $0x40] ss:$8 sps:$4 sm:$0xff]   ;;  %v1930_v36 = vld [vmem:[%s2168_s30 + $0x110] ss:$8 sps:$4 sm:$0xff]  }
  0x18   : > { %v1931_v37 = vld [vmem:[%s2168_s30 + $0x54] ss:$8 sps:$4 sm:$0xff]   ;;  %v1933_v38 = vld [vmem:[%s2168_s30 + $0x124] ss:$8 sps:$4 sm:$0xff]   ;;  %v1935_v39 = vld [vmem:[%s2168_s30 + $0x50] ss:$8 sps:$4 sm:$0xff]  }
  0x19   : > { %v1936_v40 = vld [vmem:[%s2168_s30 + $0x120] ss:$8 sps:$4 sm:$0xff]   ;;  %v1937_v41 = vld [vmem:[%s2168_s30 + $0x64] ss:$8 sps:$4 sm:$0xff]   ;;  %v1939_v42 = vld [vmem:[%s2168_s30 + $0x134] ss:$8 sps:$4 sm:$0xff]  }
  0x1a   : > { %671 = vmatpush1.bf16.msra.mxu0 %v1888_v4  ;;  %1847 = vmatpush1.bf16.msra.mxu1 %v1888_v4  ;;  %v1941_v43 = vld [vmem:[%s2168_s30 + $0x60] ss:$8 sps:$4 sm:$0xff]   ;;  %v1942_v44 = vld [vmem:[%s2168_s30 + $0x130] ss:$8 sps:$4 sm:$0xff]   ;;  %v1943_v45 = vld [vmem:[%s2168_s30 + $0x74] ss:$8 sps:$4 sm:$0xff]  }
  0x1b   : > { %672 = vmatprep.subr.bf16.mxu0 %v2100_v1  ;;  %1832 = vmatprep.subr.bf16.mxu1 %v2100_v1  ;;  %v1945_v46 = vld [vmem:[%s2168_s30 + $0x144] ss:$8 sps:$4 sm:$0xff]   ;;  %v1947_v47 = vld [vmem:[%s2168_s30 + $0x70] ss:$8 sps:$4 sm:$0xff]   ;;  %v1948_v48 = vld [vmem:[%s2168_s30 + $0x140] ss:$8 sps:$4 sm:$0xff]  }
  0x1c   : > { %v1949_v49 = vld [vmem:[%s2168_s30 + $0x84] ss:$8 sps:$4 sm:$0xff]   ;;  %v1951_v50 = vld [vmem:[%s2168_s30 + $0x154] ss:$8 sps:$4 sm:$0xff]   ;;  %v1953_v51 = vld [vmem:[%s2168_s30 + $0x80] ss:$8 sps:$4 sm:$0xff]  }
  0x1d   : > { %v1954_v52 = vld [vmem:[%s2168_s30 + $0x150] ss:$8 sps:$4 sm:$0xff]   ;;  %v1955_v53 = vld [vmem:[%s2168_s30 + $0x94] ss:$8 sps:$4 sm:$0xff]   ;;  %v1957_v54 = vld [vmem:[%s2168_s30 + $0x164] ss:$8 sps:$4 sm:$0xff]  }
  0x1e   : > { %673 = vmatpush1.bf16.msra.mxu0 %v1889_v5  ;;  %1848 = vmatpush1.bf16.msra.mxu1 %v1889_v5  ;;  %v1959_v55 = vld [vmem:[%s2168_s30 + $0x90] ss:$8 sps:$4 sm:$0xff]   ;;  %v1960_v56 = vld [vmem:[%s2168_s30 + $0x160] ss:$8 sps:$4 sm:$0xff]   ;;  %v1961_v57 = vld [vmem:[%s2168_s30 + $0xa4] ss:$8 sps:$4 sm:$0xff]  }
  0x1f   : > { %674 = vmatprep.subr.bf16.mxu0 %v2100_v1  ;;  %1833 = vmatprep.subr.bf16.mxu1 %v2100_v1  ;;  %v1963_v58 = vld [vmem:[%s2168_s30 + $0x174] ss:$8 sps:$4 sm:$0xff]   ;;  %v1965_v59 = vld [vmem:[%s2168_s30 + $0xa0] ss:$8 sps:$4 sm:$0xff]   ;;  %v1966_v60 = vld [vmem:[%s2168_s30 + $0x170] ss:$8 sps:$4 sm:$0xff]  }
  0x20   : > { %v1967_v61 = vld [vmem:[%s2168_s30 + $0xb4] ss:$8 sps:$4 sm:$0xff]   ;;  %v1969_v62 = vld [vmem:[%s2168_s30 + $0x184] ss:$8 sps:$4 sm:$0xff]   ;;  %v1971_v63 = vld [vmem:[%s2168_s30 + $0xb0] ss:$8 sps:$4 sm:$0xff]  }
  0x21   : > { %v1972_v0 = vld [vmem:[%s2168_s30 + $0x180] ss:$8 sps:$4 sm:$0xff]  }
  0x22   : > { %675 = vmatpush1.bf16.msra.mxu0 %v1890_v7  ;;  %1849 = vmatpush1.bf16.msra.mxu1 %v1890_v7  ;;  %v1975_v2 = vld [vmem:[%s2168_s30 + $0xc0] ss:$8 sps:$4 sm:$0xff]  }
  0x23   : > { %676 = vmatprep.subr.bf16.mxu0 %v2100_v1  ;;  %1834 = vmatprep.subr.bf16.mxu1 %v2100_v1  ;;  %v2280_v3 = vld [vmem:[%s2550_s2] ss:$0 sm:$0xff] }
  0x26   : > { %677 = vmatpush1.bf16.msra.mxu0 %v1891_v9  ;;  %1850 = vmatpush1.bf16.msra.mxu1 %v1891_v9 }
  0x27   : > { %678 = vmatprep.subr.bf16.mxu0 %v2100_v1  ;;  %1835 = vmatprep.subr.bf16.mxu1 %v2100_v1 }
  0x2a   : > { %679 = vmatpush1.bf16.msra.mxu0 %v1892_v10  ;;  %1851 = vmatpush1.bf16.msra.mxu1 %v1892_v10 }
  0x2b   : > { %680 = vmatprep.subr.bf16.mxu0 %v2100_v1  ;;  %1836 = vmatprep.subr.bf16.mxu1 %v2100_v1 }
  0x2e   : > { %681 = vmatpush2.bf16.msra.mxu0 %v1893_v11  ;;  %1852 = vmatpush2.bf16.msra.mxu1 %v1893_v11 }
  0x2f   : > { %682 = vmatprep.subr.bf16.mxu0 %v2100_v1  ;;  %1837 = vmatprep.subr.bf16.mxu1 %v2100_v1 }
  0x32   : > { %683 = vmatpush2.bf16.msra.mxu0 %v1894_v12  ;;  %1853 = vmatpush2.bf16.msra.mxu1 %v1894_v12 }
  0x33   : > { %684 = vmatprep.subr.bf16.mxu0 %v2100_v1  ;;  %1838 = vmatprep.subr.bf16.mxu1 %v2100_v1 }
  0x36   : > { %685 = vmatpush2.bf16.msra.mxu0 %v1895_v13  ;;  %1854 = vmatpush2.bf16.msra.mxu1 %v1895_v13 }
  0x37   : > { %686 = vmatprep.subr.bf16.mxu0 %v2100_v1  ;;  %1839 = vmatprep.subr.bf16.mxu1 %v2100_v1 }
  0x3a   : > { %687 = vmatpush2.bf16.msra.mxu0 %v1896_v14  ;;  %1855 = vmatpush2.bf16.msra.mxu1 %v1896_v14 }
  0x3b   : > { %688 = vmatprep.subr.bf16.mxu0 %v2100_v1  ;;  %1840 = vmatprep.subr.bf16.mxu1 %v2100_v1 }
  0x3e   : > { %689 = vmatpush2.bf16.msra.mxu0 %v1897_v15  ;;  %1856 = vmatpush2.bf16.msra.mxu1 %v1897_v15 }
  0x3f   : > { %690 = vmatprep.subr.bf16.mxu0 %v2100_v1  ;;  %1841 = vmatprep.subr.bf16.mxu1 %v2100_v1 }
  0x42   : > { %691 = vmatpush2.bf16.msra.mxu0 %v1898_v16  ;;  %1857 = vmatpush2.bf16.msra.mxu1 %v1898_v16 }
  0x43   : > { %692 = vmatprep.subr.bf16.mxu0 %v2100_v1  ;;  %1842 = vmatprep.subr.bf16.mxu1 %v2100_v1 }
  0x46   : > { %693 = vmatpush2.bf16.msra.mxu0 %v1899_v17  ;;  %1858 = vmatpush2.bf16.msra.mxu1 %v1899_v17 }
  0x47   : > { %694 = vmatprep.subr.bf16.mxu0 %v2100_v1  ;;  %1843 = vmatprep.subr.bf16.mxu1 %v2100_v1  ;;  %v1973_v1 = vld [vmem:[%s2168_s30 + $0xc4] ss:$8 sps:$4 sm:$0xff]   ;;  %s1508_s30 = sshll.u32 %s2557_s18, 2 }
  0x48   : > { %s2328_s7 = scalar_lea.vmem %s2551_s3, %s1508_s30 }
  0x4a   : > { %695 = vmatpush2.bf16.msra.mxu0 %v1900_v18  ;;  %1859 = vmatpush2.bf16.msra.mxu1 %v1900_v18 }
  0x4d   : > { %697 = vmatmul.mubr.bf16.vlgmr.msra.gmra.mxu0 %v1901_v19  ;;  %801 = vmatmul.mubr.bf16.vlgmr.msra.gmra.mxu1 %v1904_v20 }
  0x4e   : > { %704 = vmatprep.mubr.bf16.mxu0 %v1907_v21  ;;  %808 = vmatprep.mubr.bf16.mxu1 %v1909_v22 }
  0x55   : > { %705 = vmatmul.mubr.bf16.gmra.mxu0 %v1911_v23  ;;  %809 = vmatmul.mubr.bf16.gmra.mxu1 %v1912_v24 }
  0x56   : > { %712 = vmatprep.mubr.bf16.mxu0 %v1913_v25  ;;  %816 = vmatprep.mubr.bf16.mxu1 %v1915_v26 }
  0x5d   : > { %713 = vmatmul.mubr.bf16.gmra.mxu0 %v1917_v27  ;;  %817 = vmatmul.mubr.bf16.gmra.mxu1 %v1918_v28 }
  0x5e   : > { %720 = vmatprep.mubr.bf16.mxu0 %v1919_v29  ;;  %824 = vmatprep.mubr.bf16.mxu1 %v1921_v30 }
  0x65   : > { %721 = vmatmul.mubr.bf16.gmra.mxu0 %v1923_v31  ;;  %825 = vmatmul.mubr.bf16.gmra.mxu1 %v1924_v32 }
  0x66   : > { %728 = vmatprep.mubr.bf16.mxu0 %v1925_v33  ;;  %832 = vmatprep.mubr.bf16.mxu1 %v1927_v34 }
  0x6d   : > { %729 = vmatmul.mubr.bf16.gmra.mxu0 %v1929_v35  ;;  %833 = vmatmul.mubr.bf16.gmra.mxu1 %v1930_v36 }
  0x6e   : > { %736 = vmatprep.mubr.bf16.mxu0 %v1931_v37  ;;  %840 = vmatprep.mubr.bf16.mxu1 %v1933_v38 }
  0x75   : > { %737 = vmatmul.mubr.bf16.gmra.mxu0 %v1935_v39  ;;  %841 = vmatmul.mubr.bf16.gmra.mxu1 %v1936_v40 }
  0x76   : > { %744 = vmatprep.mubr.bf16.mxu0 %v1937_v41  ;;  %848 = vmatprep.mubr.bf16.mxu1 %v1939_v42 }
  0x7d   : > { %745 = vmatmul.mubr.bf16.gmra.mxu0 %v1941_v43  ;;  %849 = vmatmul.mubr.bf16.gmra.mxu1 %v1942_v44 }
  0x7e   : > { %752 = vmatprep.mubr.bf16.mxu0 %v1943_v45  ;;  %856 = vmatprep.mubr.bf16.mxu1 %v1945_v46 }
  0x85   : > { %753 = vmatmul.mubr.bf16.gmra.mxu0 %v1947_v47  ;;  %857 = vmatmul.mubr.bf16.gmra.mxu1 %v1948_v48 }
  0x86   : > { %760 = vmatprep.mubr.bf16.mxu0 %v1949_v49  ;;  %864 = vmatprep.mubr.bf16.mxu1 %v1951_v50 }
  0x8d   : > { %761 = vmatmul.mubr.bf16.gmra.mxu0 %v1953_v51  ;;  %865 = vmatmul.mubr.bf16.gmra.mxu1 %v1954_v52 }
  0x8e   : > { %768 = vmatprep.mubr.bf16.mxu0 %v1955_v53  ;;  %872 = vmatprep.mubr.bf16.mxu1 %v1957_v54 }
  0x95   : > { %769 = vmatmul.mubr.bf16.gmra.mxu0 %v1959_v55  ;;  %873 = vmatmul.mubr.bf16.gmra.mxu1 %v1960_v56 }
  0x96   : > { %776 = vmatprep.mubr.bf16.mxu0 %v1961_v57  ;;  %880 = vmatprep.mubr.bf16.mxu1 %v1963_v58 }
  0x9d   : > { %777 = vmatmul.mubr.bf16.gmra.mxu0 %v1965_v59  ;;  %881 = vmatmul.mubr.bf16.gmra.mxu1 %v1966_v60 }
  0x9e   : > { %784 = vmatprep.mubr.bf16.mxu0 %v1967_v61  ;;  %888 = vmatprep.mubr.bf16.mxu1 %v1969_v62 }
  0xa5   : > { %785 = vmatmul.mubr.bf16.gmra.mxu0 %v1971_v63  ;;  %889 = vmatmul.mubr.bf16.gmra.mxu1 %v1972_v0 }
  0xa6   : > { %792 = vmatprep.mubr.bf16.mxu0 %v1973_v1 }
  0xad   : > { %793 = vmatmul.mubr.bf16.gmra.mxu0 %v1975_v2 }
 0x10d   : > { %v698_v4 = vpop.f32.mrf.mxu0  ;;  %v802_v5 = vpop.f32.mrf.mxu1 }
 0x10e   : > { %v699_v6 = vadd.f32 %v2280_v3, %v698_v4  ;;  %v803_v7 = vadd.f32 %v2280_v3, %v802_v5 }
 0x10f   : > { %v700_v8 = vpop.f32.mrf.mxu0  ;;  %v804_v9 = vpop.f32.mrf.mxu1 }
 0x110   : > { %v947_v10 = vmul.f32 0.70710677, %v699_v6  ;;  %v973_v11 = vmul.f32 0.70710677, %v803_v7  ;;  %v897_v52 = vmul.f32 0.5, %v699_v6  ;;  %v923_v57 = vmul.f32 0.5, %v803_v7 }
 0x111   : > { %v701_v12 = vpop.f32.mrf.mxu0  ;;  %v805_v13 = vpop.f32.mrf.mxu1 }
 0x112   : > { %1976 = verf.f32 %v947_v10  ;;  %v702_v14 = vadd.f32 %v2280_v3, %v701_v12  ;;  %v806_v15 = vadd.f32 %v2280_v3, %v805_v13 }
 0x113   : > { %1978 = verf.f32 %v973_v11  ;;  %v703_v16 = vpop.f32.mrf.mxu0  ;;  %v807_v17 = vpop.f32.mrf.mxu1 }
 0x114   : > { %v948_v18 = vmul.f32 0.70710677, %v702_v14  ;;  %v974_v19 = vmul.f32 0.70710677, %v806_v15  ;;  %v898_v58 = vmul.f32 0.5, %v702_v14  ;;  %v924_v62 = vmul.f32 0.5, %v806_v15 }
 0x115   : > { %v706_v20 = vpop.f32.mrf.mxu0  ;;  %v810_v21 = vpop.f32.mrf.mxu1 }
 0x116   : > { %1980 = verf.f32 %v948_v18  ;;  %v2287_v22 = vadd.f32 %v2280_v3, %v706_v20  ;;  %v2290_v23 = vadd.f32 %v2280_v3, %v810_v21 }
 0x117   : > { %1982 = verf.f32 %v974_v19  ;;  %v708_v24 = vpop.f32.mrf.mxu0  ;;  %v812_v25 = vpop.f32.mrf.mxu1 }
 0x118   : > { %v949_v26 = vmul.f32 0.70710677, %v2287_v22  ;;  %v975_v27 = vmul.f32 0.70710677, %v2290_v23  ;;  %v899_v25 = vmul.f32 0.5, %v2287_v22 }
 0x119   : > { %v709_v28 = vpop.f32.mrf.mxu0  ;;  %v813_v29 = vpop.f32.mrf.mxu1 }
 0x11a   : > { %1984 = verf.f32 %v949_v26  ;;  %v2295_v30 = vadd.f32 %v2280_v3, %v709_v28  ;;  %v2298_v31 = vadd.f32 %v2280_v3, %v813_v29 }
 0x11b   : > { %1986 = verf.f32 %v975_v27  ;;  %v711_v32 = vpop.f32.mrf.mxu0  ;;  %v815_v33 = vpop.f32.mrf.mxu1 }
 0x11c   : > { %v950_v34 = vmul.f32 0.70710677, %v2295_v30  ;;  %v976_v35 = vmul.f32 0.70710677, %v2298_v31  ;;  %v925_v32 = vmul.f32 0.5, %v2290_v23  ;;  %v900_v33 = vmul.f32 0.5, %v2295_v30 }
 0x11d   : > { %v714_v36 = vpop.f32.mrf.mxu0  ;;  %v818_v37 = vpop.f32.mrf.mxu1 }
 0x11e   : > { %1988 = verf.f32 %v950_v34  ;;  %v2303_v38 = vadd.f32 %v2280_v3, %v714_v36  ;;  %v2306_v39 = vadd.f32 %v2280_v3, %v818_v37  ;;  %v926_v37 = vmul.f32 0.5, %v2298_v31 }
 0x11f   : > { %v1977_v40 = vpop.eup %1976  ;;  %1990 = verf.f32 %v976_v35  ;;  %v716_v41 = vpop.f32.mrf.mxu0 }
 0x120   : > { %v820_v42 = vpop.f32.mrf.mxu1  ;;  %v1979_v43 = vpop.eup %1978  ;;  %v951_v44 = vmul.f32 0.70710677, %v2303_v38  ;;  %v1047_v45 = vadd.f32 1.0, %v1977_v40  ;;  %v977_v46 = vmul.f32 0.70710677, %v2306_v39 }
 0x121   : > { %v717_v47 = vpop.f32.mrf.mxu0  ;;  %v1073_v53 = vadd.f32 1.0, %v1979_v43 }
 0x122   : > { %v821_v48 = vpop.f32.mrf.mxu1  ;;  %1992 = verf.f32 %v951_v44  ;;  %v2311_v49 = vadd.f32 %v2280_v3, %v717_v47  ;;  %v1097_v61 = vmul.f32 %v1047_v45, %v897_v52 }
 0x123   : > { %v2314_v50 = vadd.f32 %v2280_v3, %v821_v48  ;;  %v1981_v51 = vpop.eup %1980  ;;  %1994 = verf.f32 %v977_v46  ;;  %v719_v54 = vpop.f32.mrf.mxu0  ;;  %v1123_v8 = vmul.f32 %v1073_v53, %v923_v57 }
 0x124   : > { %v823_v55 = vpop.f32.mrf.mxu1  ;;  %v1983_v56 = vpop.eup %1982  ;;  %v1048_v59 = vadd.f32 1.0, %v1981_v51  ;;  %v952_v60 = vmul.f32 0.70710677, %v2311_v49 }
 0x125   : > { %v1074_v63 = vadd.f32 1.0, %v1983_v56  ;;  %v978_v0 = vmul.f32 0.70710677, %v2314_v50  ;;  %v722_v1 = vpop.f32.mrf.mxu0 }
 0x126   : > { %v826_v2 = vpop.f32.mrf.mxu1  ;;  %v1098_v4 = vmul.f32 %v1048_v59, %v898_v58  ;;  %1996 = verf.f32 %v952_v60  ;;  %v2320_v5 = vadd.f32 %v2280_v3, %v722_v1 }
 0x127   : > { %v2323_v6 = vadd.f32 %v2280_v3, %v826_v2  ;;  %v1985_v7 = vpop.eup %1984  ;;  %v1124_v9 = vmul.f32 %v1074_v63, %v924_v62  ;;  %1998 = verf.f32 %v978_v0  ;;  %v724_v10 = vpop.f32.mrf.mxu0  ;;  %v927_v2 = vmul.f32 0.5, %v2306_v39 }
 0x128   : > { %v828_v11 = vpop.f32.mrf.mxu1  ;;  %v1987_v12 = vpop.eup %1986  ;;  %v1682_v13 = vpack.c.bf16 %v1098_v4, %v1097_v61  ;;  %v953_v14 = vmul.f32 0.70710677, %v2320_v5  ;;  %v1049_v16 = vadd.f32 1.0, %v1985_v7  ;;  %v901_v61 = vmul.f32 0.5, %v2303_v38 }
 0x129   : > { %v1747_v15 = vpack.c.bf16 %v1124_v9, %v1123_v8  ;;  %v979_v17 = vmul.f32 0.70710677, %v2323_v6  ;;  %v725_v18 = vpop.f32.mrf.mxu0  ;;  %v1075_v26 = vadd.f32 1.0, %v1987_v12  ;;  %v902_v4 = vmul.f32 0.5, %v2311_v49 }
 0x12a   : > { %v829_v19 = vpop.f32.mrf.mxu1  ;;  %1683 = vst [vmem:[%s2328_s7] sm:$0xff] %v1682_v13   ;;  %2000 = verf.f32 %v953_v14  ;;  %v2334_v20 = vadd.f32 %v2280_v3, %v725_v18  ;;  %v1099_v36 = vmul.f32 %v1049_v16, %v899_v25  ;;  %v928_v10 = vmul.f32 0.5, %v2314_v50 }
 0x12b   : > { %v2337_v21 = vadd.f32 %v2280_v3, %v829_v19  ;;  %v1989_v24 = vpop.eup %1988  ;;  %1816 = vst [vmem:[%s2328_s7 + $0x68] sm:$0xff] %v1747_v15   ;;  %2002 = verf.f32 %v979_v17  ;;  %v727_v27 = vpop.f32.mrf.mxu0  ;;  %v1125_v45 = vmul.f32 %v1075_v26, %v925_v32 }
 0x12c   : > { %v831_v28 = vpop.f32.mrf.mxu1  ;;  %v1991_v29 = vpop.eup %1990  ;;  %v1050_v34 = vadd.f32 1.0, %v1989_v24  ;;  %v954_v35 = vmul.f32 0.70710677, %v2334_v20 }
 0x12d   : > { %v1076_v40 = vadd.f32 1.0, %v1991_v29  ;;  %v980_v41 = vmul.f32 0.70710677, %v2337_v21  ;;  %v730_v42 = vpop.f32.mrf.mxu0 }
 0x12e   : > { %v834_v22 = vpop.f32.mrf.mxu1  ;;  %v1100_v43 = vmul.f32 %v1050_v34, %v900_v33  ;;  %2004 = verf.f32 %v954_v35  ;;  %v2347_v44 = vadd.f32 %v2280_v3, %v730_v42 }
 0x12f   : > { %v2350_v23 = vadd.f32 %v2280_v3, %v834_v22  ;;  %v1993_v30 = vpop.eup %1992  ;;  %v1126_v46 = vmul.f32 %v1076_v40, %v926_v37  ;;  %2006 = verf.f32 %v980_v41  ;;  %v732_v31 = vpop.f32.mrf.mxu0  ;;  %v929_v22 = vmul.f32 0.5, %v2323_v6 }
 0x130   : > { %v836_v47 = vpop.f32.mrf.mxu1  ;;  %v1995_v48 = vpop.eup %1994  ;;  %v1687_v51 = vpack.c.bf16 %v1100_v43, %v1099_v36  ;;  %v955_v52 = vmul.f32 0.70710677, %v2347_v44  ;;  %v1051_v54 = vadd.f32 1.0, %v1993_v30  ;;  %v903_v36 = vmul.f32 0.5, %v2320_v5 }
 0x131   : > { %v1752_v53 = vpack.c.bf16 %v1126_v46, %v1125_v45  ;;  %v981_v55 = vmul.f32 0.70710677, %v2350_v23  ;;  %v733_v56 = vpop.f32.mrf.mxu0  ;;  %v1077_v62 = vadd.f32 1.0, %v1995_v48  ;;  %v904_v43 = vmul.f32 0.5, %v2334_v20 }
 0x132   : > { %v837_v57 = vpop.f32.mrf.mxu1  ;;  %1804 = vst [vmem:[%s2328_s7 + $0x8] sm:$0xff] %v1687_v51   ;;  %2008 = verf.f32 %v955_v52  ;;  %v2356_v58 = vadd.f32 %v2280_v3, %v733_v56  ;;  %v1101_v9 = vmul.f32 %v1051_v54, %v901_v61  ;;  %v930_v31 = vmul.f32 0.5, %v2337_v21 }
 0x133   : > { %v2359_v59 = vadd.f32 %v2280_v3, %v837_v57  ;;  %v1997_v60 = vpop.eup %1996  ;;  %1817 = vst [vmem:[%s2328_s7 + $0x70] sm:$0xff] %v1752_v53   ;;  %2010 = verf.f32 %v981_v55  ;;  %v735_v63 = vpop.f32.mrf.mxu0  ;;  %v1127_v16 = vmul.f32 %v1077_v62, %v927_v2 }
 0x134   : > { %v839_v0 = vpop.f32.mrf.mxu1  ;;  %v1999_v1 = vpop.eup %1998  ;;  %v1052_v7 = vadd.f32 1.0, %v1997_v60  ;;  %v956_v8 = vmul.f32 0.70710677, %v2356_v58 }
 0x135   : > { %v1078_v11 = vadd.f32 1.0, %v1999_v1  ;;  %v982_v12 = vmul.f32 0.70710677, %v2359_v59  ;;  %v738_v13 = vpop.f32.mrf.mxu0 }
 0x136   : > { %v842_v38 = vpop.f32.mrf.mxu1  ;;  %v1102_v14 = vmul.f32 %v1052_v7, %v902_v4  ;;  %2012 = verf.f32 %v956_v8  ;;  %v2369_v15 = vadd.f32 %v2280_v3, %v738_v13 }
 0x137   : > { %v2372_v39 = vadd.f32 %v2280_v3, %v842_v38  ;;  %v2001_v49 = vpop.eup %2000  ;;  %v1128_v17 = vmul.f32 %v1078_v11, %v928_v10  ;;  %2014 = verf.f32 %v982_v12  ;;  %v740_v50 = vpop.f32.mrf.mxu0  ;;  %v931_v38 = vmul.f32 0.5, %v2350_v23 }
 0x138   : > { %v844_v18 = vpop.f32.mrf.mxu1  ;;  %v2003_v19 = vpop.eup %2002  ;;  %v1692_v24 = vpack.c.bf16 %v1102_v14, %v1101_v9  ;;  %v957_v25 = vmul.f32 0.70710677, %v2369_v15  ;;  %v1053_v27 = vadd.f32 1.0, %v2001_v49  ;;  %v905_v9 = vmul.f32 0.5, %v2347_v44 }
 0x139   : > { %v1757_v26 = vpack.c.bf16 %v1128_v17, %v1127_v16  ;;  %v983_v28 = vmul.f32 0.70710677, %v2372_v39  ;;  %v741_v29 = vpop.f32.mrf.mxu0  ;;  %v1079_v37 = vadd.f32 1.0, %v2003_v19  ;;  %v906_v14 = vmul.f32 0.5, %v2356_v58 }
 0x13a   : > { %v845_v32 = vpop.f32.mrf.mxu1  ;;  %1805 = vst [vmem:[%s2328_s7 + $0x10] sm:$0xff] %v1692_v24   ;;  %2016 = verf.f32 %v957_v25  ;;  %v2378_v33 = vadd.f32 %v2280_v3, %v741_v29  ;;  %v1103_v46 = vmul.f32 %v1053_v27, %v903_v36  ;;  %v932_v50 = vmul.f32 0.5, %v2359_v59 }
 0x13b   : > { %v2381_v34 = vadd.f32 %v2280_v3, %v845_v32  ;;  %v2005_v35 = vpop.eup %2004  ;;  %1818 = vst [vmem:[%s2328_s7 + $0x78] sm:$0xff] %v1757_v26   ;;  %2018 = verf.f32 %v983_v28  ;;  %v743_v40 = vpop.f32.mrf.mxu0  ;;  %v1129_v54 = vmul.f32 %v1079_v37, %v929_v22 }
 0x13c   : > { %v847_v41 = vpop.f32.mrf.mxu1  ;;  %v2007_v42 = vpop.eup %2006  ;;  %v1054_v30 = vadd.f32 1.0, %v2005_v35  ;;  %v958_v45 = vmul.f32 0.70710677, %v2378_v33 }
 0x13d   : > { %v1080_v47 = vadd.f32 1.0, %v2007_v42  ;;  %v984_v48 = vmul.f32 0.70710677, %v2381_v34  ;;  %v746_v51 = vpop.f32.mrf.mxu0 }
 0x13e   : > { %v850_v5 = vpop.f32.mrf.mxu1  ;;  %v1104_v52 = vmul.f32 %v1054_v30, %v904_v43  ;;  %2020 = verf.f32 %v958_v45  ;;  %v2391_v53 = vadd.f32 %v2280_v3, %v746_v51 }
 0x13f   : > { %v2394_v6 = vadd.f32 %v2280_v3, %v850_v5  ;;  %v2009_v20 = vpop.eup %2008  ;;  %v1130_v55 = vmul.f32 %v1080_v47, %v930_v31  ;;  %2022 = verf.f32 %v984_v48  ;;  %v748_v21 = vpop.f32.mrf.mxu0  ;;  %v933_v5 = vmul.f32 0.5, %v2372_v39 }
 0x140   : > { %v852_v56 = vpop.f32.mrf.mxu1  ;;  %v2011_v57 = vpop.eup %2010  ;;  %v1697_v60 = vpack.c.bf16 %v1104_v52, %v1103_v46  ;;  %v959_v61 = vmul.f32 0.70710677, %v2391_v53  ;;  %v1055_v63 = vadd.f32 1.0, %v2009_v20  ;;  %v907_v46 = vmul.f32 0.5, %v2369_v15 }
 0x141   : > { %v1762_v62 = vpack.c.bf16 %v1130_v55, %v1129_v54  ;;  %v985_v0 = vmul.f32 0.70710677, %v2394_v6  ;;  %v749_v1 = vpop.f32.mrf.mxu0  ;;  %v1081_v10 = vadd.f32 1.0, %v2011_v57  ;;  %v908_v52 = vmul.f32 0.5, %v2378_v33 }
 0x142   : > { %v853_v2 = vpop.f32.mrf.mxu1  ;;  %1806 = vst [vmem:[%s2328_s7 + $0x18] sm:$0xff] %v1697_v60   ;;  %2024 = verf.f32 %v959_v61  ;;  %v2400_v4 = vadd.f32 %v2280_v3, %v749_v1  ;;  %v1105_v17 = vmul.f32 %v1055_v63, %v905_v9  ;;  %v934_v21 = vmul.f32 0.5, %v2381_v34 }
 0x143   : > { %v2403_v7 = vadd.f32 %v2280_v3, %v853_v2  ;;  %v2013_v8 = vpop.eup %2012  ;;  %1819 = vst [vmem:[%s2328_s7 + $0x80] sm:$0xff] %v1762_v62   ;;  %2026 = verf.f32 %v985_v0  ;;  %v751_v11 = vpop.f32.mrf.mxu0  ;;  %v1131_v27 = vmul.f32 %v1081_v10, %v931_v38 }
 0x144   : > { %v855_v12 = vpop.f32.mrf.mxu1  ;;  %v2015_v13 = vpop.eup %2014  ;;  %v1056_v49 = vadd.f32 1.0, %v2013_v8  ;;  %v960_v16 = vmul.f32 0.70710677, %v2400_v4 }
 0x145   : > { %v1082_v18 = vadd.f32 1.0, %v2015_v13  ;;  %v986_v19 = vmul.f32 0.70710677, %v2403_v7  ;;  %v754_v24 = vpop.f32.mrf.mxu0 }
 0x146   : > { %v858_v44 = vpop.f32.mrf.mxu1  ;;  %v1106_v25 = vmul.f32 %v1056_v49, %v906_v14  ;;  %2028 = verf.f32 %v960_v16  ;;  %v2413_v26 = vadd.f32 %v2280_v3, %v754_v24 }
 0x147   : > { %v2416_v23 = vadd.f32 %v2280_v3, %v858_v44  ;;  %v2017_v58 = vpop.eup %2016  ;;  %v1132_v28 = vmul.f32 %v1082_v18, %v932_v50  ;;  %2030 = verf.f32 %v986_v19  ;;  %v756_v59 = vpop.f32.mrf.mxu0  ;;  %v935_v44 = vmul.f32 0.5, %v2394_v6 }
 0x148   : > { %v860_v29 = vpop.f32.mrf.mxu1  ;;  %v2019_v32 = vpop.eup %2018  ;;  %v1702_v35 = vpack.c.bf16 %v1106_v25, %v1105_v17  ;;  %v961_v36 = vmul.f32 0.70710677, %v2413_v26  ;;  %v1057_v40 = vadd.f32 1.0, %v2017_v58  ;;  %v909_v17 = vmul.f32 0.5, %v2391_v53 }
 0x149   : > { %v1767_v37 = vpack.c.bf16 %v1132_v28, %v1131_v27  ;;  %v987_v41 = vmul.f32 0.70710677, %v2416_v23  ;;  %v757_v42 = vpop.f32.mrf.mxu0  ;;  %v1083_v31 = vadd.f32 1.0, %v2019_v32  ;;  %v910_v25 = vmul.f32 0.5, %v2400_v4 }
 0x14a   : > { %v861_v22 = vpop.f32.mrf.mxu1  ;;  %1807 = vst [vmem:[%s2328_s7 + $0x20] sm:$0xff] %v1702_v35   ;;  %2032 = verf.f32 %v961_v36  ;;  %v2422_v43 = vadd.f32 %v2280_v3, %v757_v42  ;;  %v1107_v55 = vmul.f32 %v1057_v40, %v907_v46  ;;  %v936_v59 = vmul.f32 0.5, %v2403_v7 }
 0x14b   : > { %v2425_v30 = vadd.f32 %v2280_v3, %v861_v22  ;;  %v2021_v45 = vpop.eup %2020  ;;  %1820 = vst [vmem:[%s2328_s7 + $0x88] sm:$0xff] %v1767_v37   ;;  %2034 = verf.f32 %v987_v41  ;;  %v759_v47 = vpop.f32.mrf.mxu0  ;;  %v1133_v63 = vmul.f32 %v1083_v31, %v933_v5 }
 0x14c   : > { %v863_v48 = vpop.f32.mrf.mxu1  ;;  %v2023_v51 = vpop.eup %2022  ;;  %v1058_v20 = vadd.f32 1.0, %v2021_v45  ;;  %v962_v54 = vmul.f32 0.70710677, %v2422_v43 }
 0x14d   : > { %v1084_v56 = vadd.f32 1.0, %v2023_v51  ;;  %v988_v57 = vmul.f32 0.70710677, %v2425_v30  ;;  %v762_v60 = vpop.f32.mrf.mxu0 }
 0x14e   : > { %v866_v15 = vpop.f32.mrf.mxu1  ;;  %v1108_v61 = vmul.f32 %v1058_v20, %v908_v52  ;;  %2036 = verf.f32 %v962_v54  ;;  %v2435_v62 = vadd.f32 %v2280_v3, %v762_v60 }
 0x14f   : > { %v2438_v39 = vadd.f32 %v2280_v3, %v866_v15  ;;  %v2025_v33 = vpop.eup %2024  ;;  %v1134_v0 = vmul.f32 %v1084_v56, %v934_v21  ;;  %2038 = verf.f32 %v988_v57  ;;  %v764_v34 = vpop.f32.mrf.mxu0  ;;  %v937_v15 = vmul.f32 0.5, %v2416_v23 }
 0x150   : > { %v868_v1 = vpop.f32.mrf.mxu1  ;;  %v2027_v2 = vpop.eup %2026  ;;  %v1707_v8 = vpack.c.bf16 %v1108_v61, %v1107_v55  ;;  %v963_v9 = vmul.f32 0.70710677, %v2435_v62  ;;  %v1059_v11 = vadd.f32 1.0, %v2025_v33  ;;  %v911_v55 = vmul.f32 0.5, %v2413_v26 }
 0x151   : > { %v1772_v10 = vpack.c.bf16 %v1134_v0, %v1133_v63  ;;  %v989_v12 = vmul.f32 0.70710677, %v2438_v39  ;;  %v765_v13 = vpop.f32.mrf.mxu0  ;;  %v1085_v50 = vadd.f32 1.0, %v2027_v2  ;;  %v912_v61 = vmul.f32 0.5, %v2422_v43 }
 0x152   : > { %v869_v38 = vpop.f32.mrf.mxu1  ;;  %1808 = vst [vmem:[%s2328_s7 + $0x28] sm:$0xff] %v1707_v8   ;;  %2040 = verf.f32 %v963_v9  ;;  %v2444_v14 = vadd.f32 %v2280_v3, %v765_v13  ;;  %v1109_v28 = vmul.f32 %v1059_v11, %v909_v17  ;;  %v938_v34 = vmul.f32 0.5, %v2425_v30 }
 0x153   : > { %v2447_v49 = vadd.f32 %v2280_v3, %v869_v38  ;;  %v2029_v16 = vpop.eup %2028  ;;  %1821 = vst [vmem:[%s2328_s7 + $0x90] sm:$0xff] %v1772_v10   ;;  %2042 = verf.f32 %v989_v12  ;;  %v767_v18 = vpop.f32.mrf.mxu0  ;;  %v1135_v40 = vmul.f32 %v1085_v50, %v935_v44 }
 0x154   : > { %v871_v19 = vpop.f32.mrf.mxu1  ;;  %v2031_v24 = vpop.eup %2030  ;;  %v1060_v58 = vadd.f32 1.0, %v2029_v16  ;;  %v964_v27 = vmul.f32 0.70710677, %v2444_v14 }
 0x155   : > { %v1086_v29 = vadd.f32 1.0, %v2031_v24  ;;  %v990_v32 = vmul.f32 0.70710677, %v2447_v49  ;;  %v770_v35 = vpop.f32.mrf.mxu0 }
 0x156   : > { %v874_v53 = vpop.f32.mrf.mxu1  ;;  %v1110_v36 = vmul.f32 %v1060_v58, %v910_v25  ;;  %2044 = verf.f32 %v964_v27  ;;  %v2457_v37 = vadd.f32 %v2280_v3, %v770_v35 }
 0x157   : > { %v2460_v6 = vadd.f32 %v2280_v3, %v874_v53  ;;  %v2033_v4 = vpop.eup %2032  ;;  %v1136_v41 = vmul.f32 %v1086_v29, %v936_v59  ;;  %2046 = verf.f32 %v990_v32  ;;  %v772_v7 = vpop.f32.mrf.mxu0  ;;  %v939_v53 = vmul.f32 0.5, %v2438_v39 }
 0x158   : > { %v876_v42 = vpop.f32.mrf.mxu1  ;;  %v2035_v22 = vpop.eup %2034  ;;  %v1712_v45 = vpack.c.bf16 %v1110_v36, %v1109_v28  ;;  %v965_v46 = vmul.f32 0.70710677, %v2457_v37  ;;  %v1061_v47 = vadd.f32 1.0, %v2033_v4  ;;  %v913_v28 = vmul.f32 0.5, %v2435_v62 }
 0x159   : > { %v1777_v31 = vpack.c.bf16 %v1136_v41, %v1135_v40  ;;  %v991_v48 = vmul.f32 0.70710677, %v2460_v6  ;;  %v773_v51 = vpop.f32.mrf.mxu0  ;;  %v1087_v21 = vadd.f32 1.0, %v2035_v22  ;;  %v914_v36 = vmul.f32 0.5, %v2444_v14 }
 0x15a   : > { %v877_v5 = vpop.f32.mrf.mxu1  ;;  %1809 = vst [vmem:[%s2328_s7 + $0x30] sm:$0xff] %v1712_v45   ;;  %2048 = verf.f32 %v965_v46  ;;  %v2466_v52 = vadd.f32 %v2280_v3, %v773_v51  ;;  %v1111_v0 = vmul.f32 %v1061_v47, %v911_v55  ;;  %v940_v7 = vmul.f32 0.5, %v2447_v49 }
 0x15b   : > { %v2469_v20 = vadd.f32 %v2280_v3, %v877_v5  ;;  %v2037_v54 = vpop.eup %2036  ;;  %1822 = vst [vmem:[%s2328_s7 + $0x98] sm:$0xff] %v1777_v31   ;;  %2050 = verf.f32 %v991_v48  ;;  %v775_v56 = vpop.f32.mrf.mxu0  ;;  %v1137_v11 = vmul.f32 %v1087_v21, %v937_v15 }
 0x15c   : > { %v879_v57 = vpop.f32.mrf.mxu1  ;;  %v2039_v60 = vpop.eup %2038  ;;  %v1062_v33 = vadd.f32 1.0, %v2037_v54  ;;  %v966_v63 = vmul.f32 0.70710677, %v2466_v52 }
 0x15d   : > { %v1088_v1 = vadd.f32 1.0, %v2039_v60  ;;  %v992_v2 = vmul.f32 0.70710677, %v2469_v20  ;;  %v778_v8 = vpop.f32.mrf.mxu0 }
 0x15e   : > { %v882_v26 = vpop.f32.mrf.mxu1  ;;  %v1112_v9 = vmul.f32 %v1062_v33, %v912_v61  ;;  %2052 = verf.f32 %v966_v63  ;;  %v2479_v10 = vadd.f32 %v2280_v3, %v778_v8  ;;  %v915_v8 = vmul.f32 0.5, %v2457_v37 }
 0x15f   : > { %v2482_v23 = vadd.f32 %v2280_v3, %v882_v26  ;;  %v2041_v43 = vpop.eup %2040  ;;  %v1138_v12 = vmul.f32 %v1088_v1, %v938_v34  ;;  %2054 = verf.f32 %v992_v2  ;;  %v780_v30 = vpop.f32.mrf.mxu0  ;;  %v916_v26 = vmul.f32 0.5, %v2466_v52 }
 0x160   : > { %v884_v13 = vpop.f32.mrf.mxu1  ;;  %v2043_v38 = vpop.eup %2042  ;;  %v1717_v16 = vpack.c.bf16 %v1112_v9, %v1111_v0  ;;  %v967_v17 = vmul.f32 0.70710677, %v2479_v10  ;;  %v1063_v18 = vadd.f32 1.0, %v2041_v43 }
 0x161   : > { %v1782_v50 = vpack.c.bf16 %v1138_v12, %v1137_v11  ;;  %v993_v19 = vmul.f32 0.70710677, %v2482_v23  ;;  %v781_v24 = vpop.f32.mrf.mxu0  ;;  %v1089_v59 = vadd.f32 1.0, %v2043_v38  ;;  %v941_v11 = vmul.f32 0.5, %v2460_v6 }
 0x162   : > { %v885_v44 = vpop.f32.mrf.mxu1  ;;  %1810 = vst [vmem:[%s2328_s7 + $0x38] sm:$0xff] %v1717_v16   ;;  %2056 = verf.f32 %v967_v17  ;;  %v2488_v25 = vadd.f32 %v2280_v3, %v781_v24  ;;  %v1113_v41 = vmul.f32 %v1063_v18, %v913_v28  ;;  %v942_v12 = vmul.f32 0.5, %v2469_v20 }
 0x163   : > { %v2491_v58 = vadd.f32 %v2280_v3, %v885_v44  ;;  %v2045_v27 = vpop.eup %2044  ;;  %1823 = vst [vmem:[%s2328_s7 + $0xa0] sm:$0xff] %v1782_v50   ;;  %2058 = verf.f32 %v993_v19  ;;  %v783_v29 = vpop.f32.mrf.mxu0  ;;  %v1139_v47 = vmul.f32 %v1089_v59, %v939_v53 }
 0x164   : > { %v887_v32 = vpop.f32.mrf.mxu1  ;;  %v2047_v35 = vpop.eup %2046  ;;  %v1064_v4 = vadd.f32 1.0, %v2045_v27  ;;  %v968_v40 = vmul.f32 0.70710677, %v2488_v25 }
 0x165   : > { %v1090_v42 = vadd.f32 1.0, %v2047_v35  ;;  %v994_v22 = vmul.f32 0.70710677, %v2491_v58  ;;  %v786_v45 = vpop.f32.mrf.mxu0 }
 0x166   : > { %v890_v62 = vpop.f32.mrf.mxu1  ;;  %v1114_v46 = vmul.f32 %v1064_v4, %v914_v36  ;;  %2060 = verf.f32 %v968_v40  ;;  %v2501_v31 = vadd.f32 %v2280_v3, %v786_v45  ;;  %v917_v36 = vmul.f32 0.5, %v2479_v10 }
 0x167   : > { %v2504_v39 = vadd.f32 %v2280_v3, %v890_v62  ;;  %v2049_v14 = vpop.eup %2048  ;;  %v1140_v48 = vmul.f32 %v1090_v42, %v940_v7  ;;  %2062 = verf.f32 %v994_v22  ;;  %v788_v49 = vpop.f32.mrf.mxu0  ;;  %v918_v4 = vmul.f32 0.5, %v2488_v25 }
 0x168   : > { %v892_v51 = vpop.f32.mrf.mxu1  ;;  %v2051_v5 = vpop.eup %2050  ;;  %v1722_v54 = vpack.c.bf16 %v1114_v46, %v1113_v41  ;;  %v969_v55 = vmul.f32 0.70710677, %v2501_v31  ;;  %v1065_v15 = vadd.f32 1.0, %v2049_v14  ;;  %v943_v7 = vmul.f32 0.5, %v2482_v23 }
 0x169   : > { %v1787_v21 = vpack.c.bf16 %v1140_v48, %v1139_v47  ;;  %v995_v56 = vmul.f32 0.70710677, %v2504_v39  ;;  %v789_v57 = vpop.f32.mrf.mxu0  ;;  %v1091_v0 = vadd.f32 1.0, %v2051_v5  ;;  %v944_v42 = vmul.f32 0.5, %v2491_v58 }
 0x16a   : > { %v893_v60 = vpop.f32.mrf.mxu1  ;;  %1811 = vst [vmem:[%s2328_s7 + $0x40] sm:$0xff] %v1722_v54   ;;  %2064 = verf.f32 %v969_v55  ;;  %v2510_v61 = vadd.f32 %v2280_v3, %v789_v57  ;;  %v1115_v16 = vmul.f32 %v1065_v15, %v915_v8  ;;  %v919_v23 = vmul.f32 0.5, %v2501_v31 }
 0x16b   : > { %v2513_v33 = vadd.f32 %v2280_v3, %v893_v60  ;;  %v2053_v63 = vpop.eup %2052  ;;  %1824 = vst [vmem:[%s2328_s7 + $0xa8] sm:$0xff] %v1787_v21   ;;  %2066 = verf.f32 %v995_v56  ;;  %v791_v34 = vpop.f32.mrf.mxu0  ;;  %v1141_v52 = vmul.f32 %v1091_v0, %v941_v11  ;;  %v945_v55 = vmul.f32 0.5, %v2504_v39 }
 0x16c   : > { %v895_v1 = vpop.f32.mrf.mxu1  ;;  %v2055_v2 = vpop.eup %2054  ;;  %v1066_v9 = vadd.f32 1.0, %v2053_v63  ;;  %v970_v43 = vmul.f32 0.70710677, %v2510_v61  ;;  %v920_v58 = vmul.f32 0.5, %v2510_v61 }
 0x16d   : > { %v1092_v30 = vadd.f32 1.0, %v2055_v2  ;;  %v996_v13 = vmul.f32 0.70710677, %v2513_v33  ;;  %v794_v38 = vpop.f32.mrf.mxu0  ;;  %v946_v21 = vmul.f32 0.5, %v2513_v33 }
 0x16e   : > { %v1116_v17 = vmul.f32 %v1066_v9, %v916_v26  ;;  %2068 = verf.f32 %v970_v43  ;;  %v795_v50 = vadd.f32 %v2280_v3, %v794_v38 }
 0x16f   : > { %v2057_v37 = vpop.eup %2056  ;;  %v1142_v18 = vmul.f32 %v1092_v30, %v942_v12  ;;  %2070 = verf.f32 %v996_v13  ;;  %v796_v19 = vpop.f32.mrf.mxu0 }
 0x170   : > { %v2059_v24 = vpop.eup %2058  ;;  %v1727_v6 = vpack.c.bf16 %v1116_v17, %v1115_v16  ;;  %v971_v44 = vmul.f32 0.70710677, %v795_v50  ;;  %v1067_v28 = vadd.f32 1.0, %v2057_v37  ;;  %v921_v8 = vmul.f32 0.5, %v795_v50 }
 0x171   : > { %v1792_v20 = vpack.c.bf16 %v1142_v18, %v1141_v52  ;;  %v797_v27 = vpop.f32.mrf.mxu0  ;;  %v1093_v32 = vadd.f32 1.0, %v2059_v24 }
 0x172   : > { %1812 = vst [vmem:[%s2328_s7 + $0x48] sm:$0xff] %v1727_v6   ;;  %2072 = verf.f32 %v971_v44  ;;  %v798_v59 = vadd.f32 %v2280_v3, %v797_v27  ;;  %v1117_v45 = vmul.f32 %v1067_v28, %v917_v36 }
 0x173   : > { %v2061_v29 = vpop.eup %2060  ;;  %1825 = vst [vmem:[%s2328_s7 + $0xb0] sm:$0xff] %v1792_v20   ;;  %v799_v35 = vpop.f32.mrf.mxu0  ;;  %v1143_v46 = vmul.f32 %v1093_v32, %v943_v7 }
 0x174   : > { %v2063_v53 = vpop.eup %2062  ;;  %v1068_v40 = vadd.f32 1.0, %v2061_v29  ;;  %v972_v41 = vmul.f32 0.70710677, %v798_v59  ;;  %v922_v61 = vmul.f32 0.5, %v798_v59 }
 0x175   : > { %v1094_v22 = vadd.f32 1.0, %v2063_v53 }
 0x176   : > { %v1118_v3 = vmul.f32 %v1068_v40, %v918_v4  ;;  %2074 = verf.f32 %v972_v41 }
 0x177   : > { %v2065_v62 = vpop.eup %2064  ;;  %v1144_v14 = vmul.f32 %v1094_v22, %v944_v42 }
 0x178   : > { %v2067_v47 = vpop.eup %2066  ;;  %v1732_v48 = vpack.c.bf16 %v1118_v3, %v1117_v45  ;;  %v1069_v49 = vadd.f32 1.0, %v2065_v62 }
 0x179   : > { %v1797_v10 = vpack.c.bf16 %v1144_v14, %v1143_v46  ;;  %v1095_v51 = vadd.f32 1.0, %v2067_v47 }
 0x17a   : > { %1813 = vst [vmem:[%s2328_s7 + $0x50] sm:$0xff] %v1732_v48   ;;  %v1119_v57 = vmul.f32 %v1069_v49, %v919_v23 }
 0x17b   : > { %v2069_v25 = vpop.eup %2068  ;;  %1826 = vst [vmem:[%s2328_s7 + $0xb8] sm:$0xff] %v1797_v10   ;;  %v1145_v63 = vmul.f32 %v1095_v51, %v945_v55 }
 0x17c   : > { %v2071_v5 = vpop.eup %2070  ;;  %v1070_v54 = vadd.f32 1.0, %v2069_v25 }
 0x17d   : > { %v1096_v56 = vadd.f32 1.0, %v2071_v5 }
 0x17e   : > { %v1120_v60 = vmul.f32 %v1070_v54, %v920_v58 }
 0x17f   : > { %v2073_v15 = vpop.eup %2072  ;;  %v1146_v0 = vmul.f32 %v1096_v56, %v946_v21 }
 0x180   : > { %v1737_v34 = vpack.c.bf16 %v1120_v60, %v1119_v57  ;;  %v1071_v2 = vadd.f32 1.0, %v2073_v15 }
 0x181   : > { %v1802_v1 = vpack.c.bf16 %v1146_v0, %v1145_v63 }
 0x182   : > { %1814 = vst [vmem:[%s2328_s7 + $0x58] sm:$0xff] %v1737_v34   ;;  %v1121_v9 = vmul.f32 %v1071_v2, %v921_v8 }
 0x183   : > { %v2075_v31 = vpop.eup %2074  ;;  %1827 = vst [vmem:[%s2328_s7 + $0xc0] sm:$0xff] %v1802_v1  }
 0x184   : > { %v1072_v26 = vadd.f32 1.0, %v2075_v31 }
 0x186   : > { %v1122_v39 = vmul.f32 %v1072_v26, %v922_v61 }
 0x188   : > { %v1742_v43 = vpack.c.bf16 %v1122_v39, %v1121_v9 }
 0x18a   : > { %1815 = vst [vmem:[%s2328_s7 + $0x60] sm:$0xff] %v1742_v43  }
 0x18b PF: > { %s13_s14 = sadd.s32 1, %s2098_s14   ;;  %s2552_s12 = smov %s2094_s13 }
 0x18c   : > { %p10_p5 = scmp.ge.s32.totalorder %s13_s14, 4   ;;  %s2553_s13 = smov %s2555_s15 }
 0x18e   :  { %12 = sbr.rel (!%p10_p5) target bundleno = 2 (0x2), region = 68 }

// kernel: nature_conv_body.5
= control target key start
LH: loop header
LB: loop body
LE: loop exit
PB: predicated region body
PF: predicated region fallthrough
CT: control target
= control target key end

     0   :  { %s1413_s12 = smov 0   ;;  %s1415_s13 = smov 0   ;;  %s1616_s0 = inlined_call_operand.vmem [shape: bf16[192,512], index: 0, kind: input, shape index: {}]   ;;  %s1617_s1 = inlined_call_operand.vmem [shape: bf16[512,128], index: 1, kind: input, shape index: {}]   ;;  %s1618_s2 = inlined_call_operand.vmem [shape: f32[1,128], index: 2, kind: input, shape index: {}]   ;;  %s1619_s3 = inlined_call_operand.vmem [shape: bf16[192,128], index: 3, kind: output, shape index: {}]  }
   0x1   :  { %s1417_s14 = smov 0  }
   0x2 LB: > { %s25_s15 = sadd.s32 1, %s1387_s13  ;;  %p1026_p0 = scmp.ge.s32.totalorder %s1391_s14, 1  ;;  %s1391_s14 = sphi %s1417_s14, %s13_s14   ;;  %s1387_s13 = sphi %s1415_s13, %s1621_s13   ;;  %s1383_s12 = sphi %s1413_s12, %s1620_s12  }
   0x3   : > { %p27_p1 = scmp.ge.s32.totalorder %s25_s15, 2  ;;  %p170_p2 = scmp.lt.s32.totalorder %s1391_s14, 3 }
   0x5   : > { %s1623_s15 = smov (%p27_p1, %s25_s15), 0  ;;  %p171_p3 = pnand %p1026_p0, %p170_p2 }
   0x6   : > { %s205_s23 = smul.u32 (!%p171_p3), 12, %s1383_s12 }
   0x7   : > { %174 = sbr.rel (%p171_p3) target bundleno = 314 (0x13a), region = 32 }
   0x8   : > { %p206_p4 = scmp.lt.s32.totalorder (!%p171_p3), %s205_s23, 23 }
   0xc   : > { %v1277_v0 = vld [vmem:[%s1617_s1 + $0x78] sm:$0xff]   ;;  %v1281_v4 = vld [vmem:[%s1617_s1 + $0x70] sm:$0xff]   ;;  %v1285_v8 = vld [vmem:[%s1617_s1 + $0x68] sm:$0xff]   ;;  %s1625_s23 = smov (!%p206_p4, %s205_s23), 23 }
   0xd   : > { %v1278_v1 = vld [vmem:[%s1617_s1 + $0xf8] sm:$0xff]   ;;  %1149 = vmatprep.subr.bf16.mxu0 %v1277_v0  ;;  %v1282_v5 = vld [vmem:[%s1617_s1 + $0xf0] sm:$0xff]   ;;  %v1286_v9 = vld [vmem:[%s1617_s1 + $0xe8] sm:$0xff]   ;;  %s1101_s25 = sshll.u32 %s1625_s23, 4  ;;  %s1029_s17 = sshll.u32 %s1625_s23, 2 }
   0xe   : > { %v1279_v2 = vld [vmem:[%s1617_s1 + $0x38] sm:$0xff]   ;;  %1201 = vmatprep.subr.bf16.mxu1 %v1278_v1  ;;  %v1283_v6 = vld [vmem:[%s1617_s1 + $0x30] sm:$0xff]   ;;  %v1287_v10 = vld [vmem:[%s1617_s1 + $0x28] sm:$0xff]   ;;  %s1530_s6 = scalar_lea.vmem %s1616_s0, %s1101_s25  ;;  %s1589_s23 = scalar_lea.vmem %s1619_s3, %s1029_s17 }
   0xf   : > { %v1280_v3 = vld [vmem:[%s1617_s1 + $0xb8] sm:$0xff]   ;;  %1150 = vmatpush3.bf16.msra.mxu0 %v1279_v2  ;;  %v1284_v7 = vld [vmem:[%s1617_s1 + $0xb0] sm:$0xff]   ;;  %v1288_v11 = vld [vmem:[%s1617_s1 + $0xa8] sm:$0xff]  }
  0x10   : > { %1202 = vmatpush3.bf16.msra.mxu1 %v1280_v3  ;;  %1151 = vmatprep.subr.bf16.mxu0 %v1281_v4  ;;  %v1289_v12 = vld [vmem:[%s1617_s1 + $0x60] sm:$0xff]   ;;  %v1293_v16 = vld [vmem:[%s1617_s1 + $0x58] sm:$0xff]   ;;  %v1297_v20 = vld [vmem:[%s1617_s1 + $0x50] sm:$0xff]  }
  0x11   : > { %1203 = vmatprep.subr.bf16.mxu1 %v1282_v5  ;;  %v1290_v13 = vld [vmem:[%s1617_s1 + $0xe0] sm:$0xff]   ;;  %v1294_v17 = vld [vmem:[%s1617_s1 + $0xd8] sm:$0xff]   ;;  %v1298_v21 = vld [vmem:[%s1617_s1 + $0xd0] sm:$0xff]  }
  0x12   : > { %v1291_v14 = vld [vmem:[%s1617_s1 + $0x20] sm:$0xff]   ;;  %v1295_v18 = vld [vmem:[%s1617_s1 + $0x18] sm:$0xff]   ;;  %v1299_v22 = vld [vmem:[%s1617_s1 + $0x10] sm:$0xff]  }
  0x13   : > { %1152 = vmatpush3.bf16.msra.mxu0 %v1283_v6  ;;  %v1292_v15 = vld [vmem:[%s1617_s1 + $0xa0] sm:$0xff]   ;;  %v1296_v19 = vld [vmem:[%s1617_s1 + $0x98] sm:$0xff]   ;;  %v1300_v23 = vld [vmem:[%s1617_s1 + $0x90] sm:$0xff]  }
  0x14   : > { %1204 = vmatpush3.bf16.msra.mxu1 %v1284_v7  ;;  %1153 = vmatprep.subr.bf16.mxu0 %v1285_v8  ;;  %v1301_v24 = vld [vmem:[%s1617_s1 + $0x48] sm:$0xff]   ;;  %v1305_v28 = vld [vmem:[%s1617_s1 + $0x40] sm:$0xff]  }
  0x15   : > { %1205 = vmatprep.subr.bf16.mxu1 %v1286_v9  ;;  %v1302_v25 = vld [vmem:[%s1617_s1 + $0xc8] sm:$0xff]   ;;  %v1306_v29 = vld [vmem:[%s1617_s1 + $0xc0] sm:$0xff]  }
  0x16   : > { %v1303_v26 = vld [vmem:[%s1617_s1 + $0x8] sm:$0xff]   ;;  %v1307_v30 = vld [vmem:[%s1617_s1] sm:$0xff]  }
  0x17   : > { %1154 = vmatpush3.bf16.msra.mxu0 %v1287_v10  ;;  %v1304_v27 = vld [vmem:[%s1617_s1 + $0x88] sm:$0xff]   ;;  %v1308_v31 = vld [vmem:[%s1617_s1 + $0x80] sm:$0xff]  }
  0x18   : > { %1206 = vmatpush3.bf16.msra.mxu1 %v1288_v11  ;;  %1155 = vmatprep.subr.bf16.mxu0 %v1289_v12  ;;  %v1309_v32 = vld [vmem:[%s1530_s6] ss:$16 sps:$4 sm:$0xff]   ;;  %v1311_v33 = vld [vmem:[%s1530_s6 + $0x4] ss:$16 sps:$4 sm:$0xff]   ;;  %v1312_v34 = vld [vmem:[%s1530_s6 + $0x8] ss:$16 sps:$4 sm:$0xff]  }
  0x19   : > { %1207 = vmatprep.subr.bf16.mxu1 %v1290_v13  ;;  %v1314_v35 = vld [vmem:[%s1530_s6 + $0xc] ss:$16 sps:$4 sm:$0xff]   ;;  %668 = vmatprep.mubr.bf16.mxu0 %v1311_v33  ;;  %v1315_v36 = vld [vmem:[%s1530_s6 + $0x24] ss:$16 sps:$4 sm:$0xff]   ;;  %v1319_v38 = vld [vmem:[%s1530_s6 + $0x20] ss:$16 sps:$4 sm:$0xff]  }
  0x1a   : > { %749 = vmatprep.mubr.bf16.mxu1 %v1314_v35  ;;  %v1317_v37 = vld [vmem:[%s1530_s6 + $0x2c] ss:$16 sps:$4 sm:$0xff]   ;;  %v1320_v39 = vld [vmem:[%s1530_s6 + $0x28] ss:$16 sps:$4 sm:$0xff]   ;;  %v1321_v40 = vld [vmem:[%s1530_s6 + $0x44] ss:$16 sps:$4 sm:$0xff]  }
  0x1b   : > { %1156 = vmatpush3.bf16.msra.mxu0 %v1291_v14  ;;  %v1323_v41 = vld [vmem:[%s1530_s6 + $0x4c] ss:$16 sps:$4 sm:$0xff]   ;;  %v1325_v42 = vld [vmem:[%s1530_s6 + $0x40] ss:$16 sps:$4 sm:$0xff]   ;;  %v1326_v43 = vld [vmem:[%s1530_s6 + $0x48] ss:$16 sps:$4 sm:$0xff]  }
  0x1c   : > { %1208 = vmatpush3.bf16.msra.mxu1 %v1292_v15  ;;  %1157 = vmatprep.subr.bf16.mxu0 %v1293_v16  ;;  %v1327_v44 = vld [vmem:[%s1530_s6 + $0x64] ss:$16 sps:$4 sm:$0xff]   ;;  %v1329_v45 = vld [vmem:[%s1530_s6 + $0x6c] ss:$16 sps:$4 sm:$0xff]   ;;  %v1331_v46 = vld [vmem:[%s1530_s6 + $0x60] ss:$16 sps:$4 sm:$0xff]  }
  0x1d   : > { %1209 = vmatprep.subr.bf16.mxu1 %v1294_v17  ;;  %v1332_v47 = vld [vmem:[%s1530_s6 + $0x68] ss:$16 sps:$4 sm:$0xff]   ;;  %v1333_v48 = vld [vmem:[%s1530_s6 + $0x84] ss:$16 sps:$4 sm:$0xff]   ;;  %v1335_v49 = vld [vmem:[%s1530_s6 + $0x8c] ss:$16 sps:$4 sm:$0xff]  }
  0x1e   : > { %v1337_v50 = vld [vmem:[%s1530_s6 + $0x80] ss:$16 sps:$4 sm:$0xff]   ;;  %v1338_v51 = vld [vmem:[%s1530_s6 + $0x88] ss:$16 sps:$4 sm:$0xff]   ;;  %v1339_v52 = vld [vmem:[%s1530_s6 + $0xa4] ss:$16 sps:$4 sm:$0xff]  }
  0x1f   : > { %1158 = vmatpush3.bf16.msra.mxu0 %v1295_v18  ;;  %v1341_v53 = vld [vmem:[%s1530_s6 + $0xac] ss:$16 sps:$4 sm:$0xff]   ;;  %v1343_v54 = vld [vmem:[%s1530_s6 + $0xa0] ss:$16 sps:$4 sm:$0xff]   ;;  %v1344_v55 = vld [vmem:[%s1530_s6 + $0xa8] ss:$16 sps:$4 sm:$0xff]  }
  0x20   : > { %1210 = vmatpush3.bf16.msra.mxu1 %v1296_v19  ;;  %1159 = vmatprep.subr.bf16.mxu0 %v1297_v20  ;;  %v1565_v58 = vld [vmem:[%s1618_s2] ss:$0 sm:$0xff] }
  0x21   : > { %1211 = vmatprep.subr.bf16.mxu1 %v1298_v21 }
  0x23   : > { %1160 = vmatpush3.bf16.msra.mxu0 %v1299_v22 }
  0x24   : > { %1212 = vmatpush3.bf16.msra.mxu1 %v1300_v23  ;;  %1161 = vmatprep.subr.bf16.mxu0 %v1301_v24 }
  0x25   : > { %1213 = vmatprep.subr.bf16.mxu1 %v1302_v25 }
  0x27   : > { %1162 = vmatpush3.bf16.msra.mxu0 %v1303_v26 }
  0x28   : > { %1214 = vmatpush3.bf16.msra.mxu1 %v1304_v27  ;;  %1163 = vmatprep.subr.bf16.mxu0 %v1305_v28 }
  0x29   : > { %1215 = vmatprep.subr.bf16.mxu1 %v1306_v29 }
  0x2b   : > { %1164 = vmatpush3.bf16.msra.mxu0 %v1307_v30 }
  0x2c   : > { %1216 = vmatpush3.bf16.msra.mxu1 %v1308_v31 }
  0x2e   : > { %669 = vmatmul.mubr.bf16.vlgmr.msra.gmra.mxu0 %v1309_v32 }
  0x2f   : > { %750 = vmatmul.mubr.bf16.vlgmr.msra.gmra.mxu1 %v1312_v34  ;;  %676 = vmatprep.mubr.bf16.mxu0 %v1315_v36 }
  0x30   : > { %757 = vmatprep.mubr.bf16.mxu1 %v1317_v37 }
  0x36   : > { %677 = vmatmul.mubr.bf16.gmra.mxu0 %v1319_v38 }
  0x37   : > { %758 = vmatmul.mubr.bf16.gmra.mxu1 %v1320_v39  ;;  %684 = vmatprep.mubr.bf16.mxu0 %v1321_v40 }
  0x38   : > { %765 = vmatprep.mubr.bf16.mxu1 %v1323_v41 }
  0x3e   : > { %685 = vmatmul.mubr.bf16.gmra.mxu0 %v1325_v42 }
  0x3f   : > { %766 = vmatmul.mubr.bf16.gmra.mxu1 %v1326_v43  ;;  %692 = vmatprep.mubr.bf16.mxu0 %v1327_v44 }
  0x40   : > { %773 = vmatprep.mubr.bf16.mxu1 %v1329_v45 }
  0x46   : > { %693 = vmatmul.mubr.bf16.gmra.mxu0 %v1331_v46 }
  0x47   : > { %774 = vmatmul.mubr.bf16.gmra.mxu1 %v1332_v47  ;;  %700 = vmatprep.mubr.bf16.mxu0 %v1333_v48 }
  0x48   : > { %781 = vmatprep.mubr.bf16.mxu1 %v1335_v49 }
  0x4e   : > { %701 = vmatmul.mubr.bf16.gmra.mxu0 %v1337_v50 }
  0x4f   : > { %782 = vmatmul.mubr.bf16.gmra.mxu1 %v1338_v51  ;;  %708 = vmatprep.mubr.bf16.mxu0 %v1339_v52 }
  0x50   : > { %789 = vmatprep.mubr.bf16.mxu1 %v1341_v53 }
  0x56   : > { %709 = vmatmul.mubr.bf16.gmra.mxu0 %v1343_v54 }
  0x57   : > { %790 = vmatmul.mubr.bf16.gmra.mxu1 %v1344_v55 }
  0xee   : > { %v1165_v56 = vpop.f32.mrf.mxu0 }
  0xef   : > { %v1217_v57 = vpop.f32.mrf.mxu1 }
  0xf0   : > { %v1166_v59 = vpop.f32.mrf.mxu0 }
  0xf1   : > { %v1167_v60 = vadd.f32 %v1166_v59, %v1165_v56  ;;  %v1218_v61 = vpop.f32.mrf.mxu1 }
  0xf2   : > { %v1168_v62 = vpop.f32.mrf.mxu0  ;;  %v1219_v0 = vadd.f32 %v1218_v61, %v1217_v57 }
  0xf3   : > { %v671_v63 = vadd.f32 %v1167_v60, %v1565_v58  ;;  %v1220_v1 = vpop.f32.mrf.mxu1 }
  0xf4   : > { %v1169_v2 = vpop.f32.mrf.mxu0 }
  0xf5   : > { %v752_v3 = vadd.f32 %v1219_v0, %v671_v63  ;;  %v1170_v4 = vadd.f32 %v1169_v2, %v1168_v62  ;;  %v1221_v5 = vpop.f32.mrf.mxu1 }
  0xf6   : > { %v1171_v6 = vpop.f32.mrf.mxu0  ;;  %v1222_v9 = vadd.f32 %v1221_v5, %v1220_v1 }
  0xf7   : > { %v810_v7 = vmul.f32 0.70710677, %v752_v3  ;;  %v674_v8 = vadd.f32 %v1170_v4, %v1565_v58  ;;  %v1223_v10 = vpop.f32.mrf.mxu1  ;;  %v798_v54 = vmul.f32 0.5, %v752_v3 }
  0xf8   : > { %v1172_v11 = vpop.f32.mrf.mxu0 }
  0xf9   : > { %1345 = verf.f32 %v810_v7  ;;  %v755_v12 = vadd.f32 %v1222_v9, %v674_v8  ;;  %v1173_v13 = vadd.f32 %v1172_v11, %v1171_v6  ;;  %v1224_v14 = vpop.f32.mrf.mxu1 }
  0xfa   : > { %v1174_v15 = vpop.f32.mrf.mxu0  ;;  %v1225_v18 = vadd.f32 %v1224_v14, %v1223_v10 }
  0xfb   : > { %v811_v16 = vmul.f32 0.70710677, %v755_v12  ;;  %v679_v17 = vadd.f32 %v1173_v13, %v1565_v58  ;;  %v1226_v19 = vpop.f32.mrf.mxu1  ;;  %v799_v55 = vmul.f32 0.5, %v755_v12 }
  0xfc   : > { %v1175_v20 = vpop.f32.mrf.mxu0 }
  0xfd   : > { %1347 = verf.f32 %v811_v16  ;;  %v1570_v21 = vadd.f32 %v1225_v18, %v679_v17  ;;  %v1176_v22 = vadd.f32 %v1175_v20, %v1174_v15  ;;  %v1227_v23 = vpop.f32.mrf.mxu1 }
  0xfe   : > { %v1177_v24 = vpop.f32.mrf.mxu0  ;;  %v1228_v27 = vadd.f32 %v1227_v23, %v1226_v19 }
  0xff   : > { %v812_v25 = vmul.f32 0.70710677, %v1570_v21  ;;  %v682_v26 = vadd.f32 %v1176_v22, %v1565_v58  ;;  %v1229_v28 = vpop.f32.mrf.mxu1  ;;  %v800_v17 = vmul.f32 0.5, %v1570_v21 }
 0x100   : > { %v1178_v29 = vpop.f32.mrf.mxu0 }
 0x101   : > { %1349 = verf.f32 %v812_v25  ;;  %v763_v30 = vadd.f32 %v1228_v27, %v682_v26  ;;  %v1179_v31 = vadd.f32 %v1178_v29, %v1177_v24  ;;  %v1230_v32 = vpop.f32.mrf.mxu1 }
 0x102   : > { %v1180_v33 = vpop.f32.mrf.mxu0  ;;  %v1231_v36 = vadd.f32 %v1230_v32, %v1229_v28 }
 0x103   : > { %v813_v34 = vmul.f32 0.70710677, %v763_v30  ;;  %v687_v35 = vadd.f32 %v1179_v31, %v1565_v58  ;;  %v1232_v37 = vpop.f32.mrf.mxu1  ;;  %v801_v20 = vmul.f32 0.5, %v763_v30 }
 0x104   : > { %v1181_v38 = vpop.f32.mrf.mxu0 }
 0x105   : > { %1351 = verf.f32 %v813_v34  ;;  %v1575_v39 = vadd.f32 %v1231_v36, %v687_v35  ;;  %v1182_v40 = vadd.f32 %v1181_v38, %v1180_v33  ;;  %v1233_v41 = vpop.f32.mrf.mxu1 }
 0x106   : > { %v1346_v42 = vpop.eup %1345  ;;  %v1183_v43 = vpop.f32.mrf.mxu0  ;;  %v1234_v46 = vadd.f32 %v1233_v41, %v1232_v37 }
 0x107   : > { %v814_v44 = vmul.f32 0.70710677, %v1575_v39  ;;  %v690_v45 = vadd.f32 %v1182_v40, %v1565_v58  ;;  %v1235_v47 = vpop.f32.mrf.mxu1  ;;  %v834_v48 = vadd.f32 1.0, %v1346_v42 }
 0x108   : > { %v1184_v49 = vpop.f32.mrf.mxu0 }
 0x109   : > { %1353 = verf.f32 %v814_v44  ;;  %v1579_v50 = vadd.f32 %v1234_v46, %v690_v45  ;;  %v1185_v51 = vadd.f32 %v1184_v49, %v1183_v43  ;;  %v1236_v52 = vpop.f32.mrf.mxu1  ;;  %v846_v63 = vmul.f32 %v834_v48, %v798_v54 }
 0x10a   : > { %v1348_v53 = vpop.eup %1347  ;;  %v1186_v56 = vpop.f32.mrf.mxu0  ;;  %v1237_v61 = vadd.f32 %v1236_v52, %v1235_v47  ;;  %v802_v45 = vmul.f32 0.5, %v1575_v39 }
 0x10b   : > { %v835_v57 = vadd.f32 1.0, %v1348_v53  ;;  %v815_v59 = vmul.f32 0.70710677, %v1579_v50  ;;  %v695_v60 = vadd.f32 %v1185_v51, %v1565_v58  ;;  %v1238_v62 = vpop.f32.mrf.mxu1  ;;  %v803_v48 = vmul.f32 0.5, %v1579_v50 }
 0x10c   : > { %v1187_v0 = vpop.f32.mrf.mxu0 }
 0x10d   : > { %v847_v1 = vmul.f32 %v835_v57, %v799_v55  ;;  %1355 = verf.f32 %v815_v59  ;;  %v1584_v2 = vadd.f32 %v1237_v61, %v695_v60  ;;  %v1188_v4 = vadd.f32 %v1187_v0, %v1186_v56  ;;  %v1239_v5 = vpop.f32.mrf.mxu1 }
 0x10e   : > { %v1350_v6 = vpop.eup %1349  ;;  %v1189_v3 = vpop.f32.mrf.mxu0  ;;  %v1240_v11 = vadd.f32 %v1239_v5, %v1238_v62 }
 0x10f   : > { %v1117_v7 = vpack.c.bf16 %v847_v1, %v846_v63  ;;  %v816_v8 = vmul.f32 0.70710677, %v1584_v2  ;;  %v1241_v9 = vpop.f32.mrf.mxu1  ;;  %v698_v10 = vadd.f32 %v1188_v4, %v1565_v58  ;;  %v836_v13 = vadd.f32 1.0, %v1350_v6 }
 0x110   : > { %v1190_v12 = vpop.f32.mrf.mxu0  ;;  %v804_v6 = vmul.f32 0.5, %v1584_v2 }
 0x111   : > { %1118 = vst [vmem:[%s1589_s23] sm:$0xff] %v1117_v7   ;;  %v1191_v14 = vadd.f32 %v1190_v12, %v1189_v3  ;;  %v1242_v15 = vpop.f32.mrf.mxu1  ;;  %1357 = verf.f32 %v816_v8  ;;  %v779_v18 = vadd.f32 %v1240_v11, %v698_v10  ;;  %v848_v28 = vmul.f32 %v836_v13, %v800_v17 }
 0x112   : > { %v1352_v16 = vpop.eup %1351  ;;  %v1192_v19 = vpop.f32.mrf.mxu0  ;;  %v1243_v24 = vadd.f32 %v1242_v15, %v1241_v9 }
 0x113   : > { %v837_v22 = vadd.f32 1.0, %v1352_v16  ;;  %v703_v23 = vadd.f32 %v1191_v14, %v1565_v58  ;;  %v1244_v25 = vpop.f32.mrf.mxu1  ;;  %v817_v26 = vmul.f32 0.70710677, %v779_v18  ;;  %v805_v3 = vmul.f32 0.5, %v779_v18 }
 0x114   : > { %v1193_v27 = vpop.f32.mrf.mxu0 }
 0x115   : > { %v849_v29 = vmul.f32 %v837_v22, %v801_v20  ;;  %v784_v31 = vadd.f32 %v1243_v24, %v703_v23  ;;  %v1194_v32 = vadd.f32 %v1193_v27, %v1192_v19  ;;  %v1245_v33 = vpop.f32.mrf.mxu1  ;;  %1359 = verf.f32 %v817_v26 }
 0x116   : > { %v1354_v34 = vpop.eup %1353  ;;  %v1195_v21 = vpop.f32.mrf.mxu0  ;;  %v1246_v38 = vadd.f32 %v1245_v33, %v1244_v25 }
 0x117   : > { %v1122_v35 = vpack.c.bf16 %v849_v29, %v848_v28  ;;  %v818_v36 = vmul.f32 0.70710677, %v784_v31  ;;  %v1247_v37 = vpop.f32.mrf.mxu1  ;;  %v706_v30 = vadd.f32 %v1194_v32, %v1565_v58  ;;  %v838_v41 = vadd.f32 1.0, %v1354_v34 }
 0x118   : > { %v1196_v40 = vpop.f32.mrf.mxu0  ;;  %v806_v14 = vmul.f32 0.5, %v784_v31 }
 0x119   : > { %1144 = vst [vmem:[%s1589_s23 + $0x8] sm:$0xff] %v1122_v35   ;;  %v1197_v42 = vadd.f32 %v1196_v40, %v1195_v21  ;;  %v1248_v43 = vpop.f32.mrf.mxu1  ;;  %1361 = verf.f32 %v818_v36  ;;  %v787_v46 = vadd.f32 %v1246_v38, %v706_v30  ;;  %v850_v56 = vmul.f32 %v838_v41, %v802_v45 }
 0x11a   : > { %v1356_v44 = vpop.eup %1355  ;;  %v1198_v47 = vpop.f32.mrf.mxu0  ;;  %v1249_v52 = vadd.f32 %v1248_v43, %v1247_v37 }
 0x11b   : > { %v839_v49 = vadd.f32 1.0, %v1356_v44  ;;  %v711_v51 = vadd.f32 %v1197_v42, %v1565_v58  ;;  %v1250_v53 = vpop.f32.mrf.mxu1  ;;  %v819_v54 = vmul.f32 0.70710677, %v787_v46  ;;  %v807_v15 = vmul.f32 0.5, %v787_v46 }
 0x11c   : > { %v1199_v55 = vpop.f32.mrf.mxu0 }
 0x11d   : > { %v851_v57 = vmul.f32 %v839_v49, %v803_v48  ;;  %v792_v59 = vadd.f32 %v1249_v52, %v711_v51  ;;  %v1200_v60 = vadd.f32 %v1199_v55, %v1198_v47  ;;  %v1251_v61 = vpop.f32.mrf.mxu1  ;;  %1363 = verf.f32 %v819_v54 }
 0x11e   : > { %v1358_v39 = vpop.eup %1357  ;;  %v1252_v50 = vadd.f32 %v1251_v61, %v1250_v53 }
 0x11f   : > { %v1127_v62 = vpack.c.bf16 %v851_v57, %v850_v56  ;;  %v820_v63 = vmul.f32 0.70710677, %v792_v59  ;;  %v714_v0 = vadd.f32 %v1200_v60, %v1565_v58  ;;  %v840_v1 = vadd.f32 1.0, %v1358_v39 }
 0x120   : > { %v808_v23 = vmul.f32 0.5, %v792_v59 }
 0x121   : > { %1145 = vst [vmem:[%s1589_s23 + $0x10] sm:$0xff] %v1127_v62   ;;  %1365 = verf.f32 %v820_v63  ;;  %v795_v4 = vadd.f32 %v1252_v50, %v714_v0  ;;  %v852_v9 = vmul.f32 %v840_v1, %v804_v6 }
 0x122   : > { %v1360_v5 = vpop.eup %1359 }
 0x123   : > { %v841_v7 = vadd.f32 1.0, %v1360_v5  ;;  %v821_v8 = vmul.f32 0.70710677, %v795_v4  ;;  %v809_v24 = vmul.f32 0.5, %v795_v4 }
 0x125   : > { %v853_v10 = vmul.f32 %v841_v7, %v805_v3  ;;  %1367 = verf.f32 %v821_v8 }
 0x126   : > { %v1362_v11 = vpop.eup %1361 }
 0x127   : > { %v1132_v12 = vpack.c.bf16 %v853_v10, %v852_v9  ;;  %v842_v58 = vadd.f32 1.0, %v1362_v11 }
 0x129   : > { %1146 = vst [vmem:[%s1589_s23 + $0x18] sm:$0xff] %v1132_v12   ;;  %v854_v17 = vmul.f32 %v842_v58, %v806_v14 }
 0x12a   : > { %v1364_v13 = vpop.eup %1363 }
 0x12b   : > { %v843_v16 = vadd.f32 1.0, %v1364_v13 }
 0x12d   : > { %v855_v19 = vmul.f32 %v843_v16, %v807_v15 }
 0x12e   : > { %v1366_v20 = vpop.eup %1365 }
 0x12f   : > { %v1137_v2 = vpack.c.bf16 %v855_v19, %v854_v17  ;;  %v844_v18 = vadd.f32 1.0, %v1366_v20 }
 0x131   : > { %1147 = vst [vmem:[%s1589_s23 + $0x20] sm:$0xff] %v1137_v2   ;;  %v856_v26 = vmul.f32 %v844_v18, %v808_v23 }
 0x132   : > { %v1368_v22 = vpop.eup %1367 }
 0x133   : > { %v845_v25 = vadd.f32 1.0, %v1368_v22 }
 0x135   : > { %v857_v27 = vmul.f32 %v845_v25, %v809_v24 }
 0x137   : > { %v1142_v28 = vpack.c.bf16 %v857_v27, %v856_v26 }
 0x139   : > { %1148 = vst [vmem:[%s1589_s23 + $0x28] sm:$0xff] %v1142_v28  }
 0x13a PF: > { %s13_s14 = sadd.s32 1, %s1391_s14   ;;  %s1620_s12 = smov %s1387_s13 }
 0x13b   : > { %p10_p5 = scmp.ge.s32.totalorder %s13_s14, 4   ;;  %s1621_s13 = smov %s1623_s15 }
 0x13d   :  { %12 = sbr.rel (!%p10_p5) target bundleno = 2 (0x2), region = 68 }

// kernel: nature_conv_body.6
= control target key start
LH: loop header
LB: loop body
LE: loop exit
PB: predicated region body
PF: predicated region fallthrough
CT: control target
= control target key end

     0   :  { %s1412_s12 = smov 0   ;;  %s1414_s13 = smov 0   ;;  %s1585_s0 = inlined_call_operand.vmem [shape: bf16[128,576], index: 0, kind: input, shape index: {}]   ;;  %s1586_s1 = inlined_call_operand.vmem [shape: bf16[576,128], index: 1, kind: input, shape index: {}]   ;;  %s1587_s2 = inlined_call_operand.vmem [shape: f32[1,128], index: 2, kind: input, shape index: {}]   ;;  %s1588_s3 = inlined_call_operand.vmem [shape: bf16[128,128], index: 3, kind: output, shape index: {}]  }
   0x1   :  { %s1416_s14 = smov 0  }
   0x2 LB: > { %s25_s15 = sadd.s32 1, %s1386_s13  ;;  %p1044_p0 = scmp.ge.s32.totalorder %s1390_s14, 1  ;;  %s1390_s14 = sphi %s1416_s14, %s13_s14   ;;  %s1386_s13 = sphi %s1414_s13, %s1590_s13   ;;  %s1382_s12 = sphi %s1412_s12, %s1589_s12  }
   0x3   : > { %p27_p1 = scmp.ge.s32.totalorder %s25_s15, 2  ;;  %p170_p2 = scmp.lt.s32.totalorder %s1390_s14, 3 }
   0x5   : > { %s1592_s15 = smov (%p27_p1, %s25_s15), 0  ;;  %p171_p3 = pnand %p1044_p0, %p170_p2 }
   0x6   : > { %s1045_s23 = sshll.u32 (!%p171_p3), %s1382_s12, 3 }
   0x7   : > { %174 = sbr.rel (%p171_p3) target bundleno = 303 (0x12f), region = 32  ;;  %p206_p4 = scmp.lt.s32.totalorder (!%p171_p3), %s1045_s23, 15 }
   0xc   : > { %v1288_v0 = vld [vmem:[%s1586_s1 + $0x78] sm:$0xff]   ;;  %v1292_v4 = vld [vmem:[%s1586_s1 + $0x70] sm:$0xff]   ;;  %v1296_v8 = vld [vmem:[%s1586_s1 + $0x68] sm:$0xff]   ;;  %s1594_s23 = smov (!%p206_p4, %s1045_s23), 15  ;;  %vm648_vm0 = vcmask 523264  }
   0xd   : > { %v1289_v1 = vld [vmem:[%s1586_s1 + $0xf8] sm:$0xff]   ;;  %1151 = vmatprep.subr.bf16.mxu0 %v1288_v0  ;;  %v1293_v5 = vld [vmem:[%s1586_s1 + $0xf0] sm:$0xff]   ;;  %v1297_v9 = vld [vmem:[%s1586_s1 + $0xe8] sm:$0xff]   ;;  %s1263_s22 = smul.u32 20, %s1594_s23  ;;  %s1048_s26 = sshll.u32 %s1594_s23, 2 }
   0xe   : > { %v1290_v2 = vld [vmem:[%s1586_s1 + $0x38] sm:$0xff]   ;;  %1191 = vmatprep.subr.bf16.mxu1 %v1289_v1  ;;  %v1294_v6 = vld [vmem:[%s1586_s1 + $0x30] sm:$0xff]   ;;  %v1298_v10 = vld [vmem:[%s1586_s1 + $0x28] sm:$0xff]   ;;  %s226_s29 = scalar_lea.vmem %s1588_s3, %s1048_s26 }
   0xf   : > { %v1291_v3 = vld [vmem:[%s1586_s1 + $0xb8] sm:$0xff]   ;;  %1152 = vmatpush3.bf16.msra.mxu0 %v1290_v2  ;;  %v1295_v7 = vld [vmem:[%s1586_s1 + $0xb0] sm:$0xff]   ;;  %v1299_v11 = vld [vmem:[%s1586_s1 + $0xa8] sm:$0xff]   ;;  %s1529_s6 = scalar_lea.vmem %s1585_s0, %s1263_s22 }
  0x10   : > { %1192 = vmatpush3.bf16.msra.mxu1 %v1291_v3  ;;  %1153 = vmatprep.subr.bf16.mxu0 %v1292_v4  ;;  %v1300_v12 = vld [vmem:[%s1586_s1 + $0x60] sm:$0xff]   ;;  %v1304_v16 = vld [vmem:[%s1586_s1 + $0x58] sm:$0xff]   ;;  %v1308_v20 = vld [vmem:[%s1586_s1 + $0x50] sm:$0xff]  }
  0x11   : > { %1193 = vmatprep.subr.bf16.mxu1 %v1293_v5  ;;  %v1301_v13 = vld [vmem:[%s1586_s1 + $0xe0] sm:$0xff]   ;;  %v1305_v17 = vld [vmem:[%s1586_s1 + $0xd8] sm:$0xff]   ;;  %v1309_v21 = vld [vmem:[%s1586_s1 + $0xd0] sm:$0xff]  }
  0x12   : > { %v1302_v14 = vld [vmem:[%s1586_s1 + $0x20] sm:$0xff]   ;;  %v1306_v18 = vld [vmem:[%s1586_s1 + $0x18] sm:$0xff]   ;;  %v1310_v22 = vld [vmem:[%s1586_s1 + $0x10] sm:$0xff]  }
  0x13   : > { %1154 = vmatpush3.bf16.msra.mxu0 %v1294_v6  ;;  %v1303_v15 = vld [vmem:[%s1586_s1 + $0xa0] sm:$0xff]   ;;  %v1307_v19 = vld [vmem:[%s1586_s1 + $0x98] sm:$0xff]   ;;  %v1311_v23 = vld [vmem:[%s1586_s1 + $0x90] sm:$0xff]  }
  0x14   : > { %1194 = vmatpush3.bf16.msra.mxu1 %v1295_v7  ;;  %1155 = vmatprep.subr.bf16.mxu0 %v1296_v8  ;;  %v1312_v24 = vld [vmem:[%s1586_s1 + $0x48] sm:$0xff]   ;;  %v1316_v28 = vld [vmem:[%s1586_s1 + $0x40] sm:$0xff]   ;;  %v1326_v36 = vld [vmem:[%s1586_s1 + $0x118] sm:$0xff]  }
  0x15   : > { %1195 = vmatprep.subr.bf16.mxu1 %v1297_v9  ;;  %v1313_v25 = vld [vmem:[%s1586_s1 + $0xc8] sm:$0xff]   ;;  %v1317_v29 = vld [vmem:[%s1586_s1 + $0xc0] sm:$0xff]   ;;  %v1333_v39 = vld [vmem:[%s1586_s1 + $0x110] sm:$0xff]  }
  0x16   : > { %v1314_v26 = vld [vmem:[%s1586_s1 + $0x8] sm:$0xff]   ;;  %v1318_v30 = vld [vmem:[%s1586_s1] sm:$0xff]   ;;  %v1336_v43 = vld [vmem:[%s1529_s6 + $0x5c] ss:$20 sps:$4 sm:$0xff]  }
  0x17   : > { %1156 = vmatpush3.bf16.msra.mxu0 %v1298_v10  ;;  %v1315_v27 = vld [vmem:[%s1586_s1 + $0x88] sm:$0xff]   ;;  %v1319_v31 = vld [vmem:[%s1586_s1 + $0x80] sm:$0xff]   ;;  %v1341_v48 = vld [vmem:[%s1529_s6 + $0x7c] ss:$20 sps:$4 sm:$0xff]  }
  0x18   : > { %1196 = vmatpush3.bf16.msra.mxu1 %v1299_v11  ;;  %1157 = vmatprep.subr.bf16.mxu0 %v1300_v12  ;;  %v1320_v32 = vld [vmem:[%s1529_s6] ss:$20 sps:$4 sm:$0xff]   ;;  %v1322_v33 = vld [vmem:[%s1529_s6 + $0x4] ss:$20 sps:$4 sm:$0xff]   ;;  %v1323_v34 = vld [vmem:[%s1529_s6 + $0x8] ss:$20 sps:$4 sm:$0xff]  }
  0x19   : > { %1197 = vmatprep.subr.bf16.mxu1 %v1301_v13  ;;  %v1325_v35 = vld [vmem:[%s1529_s6 + $0xc] ss:$20 sps:$4 sm:$0xff]   ;;  %693 = vmatprep.mubr.bf16.mxu0 %v1322_v33  ;;  %v1329_v38 = vld [vmem:[%s1529_s6 + $0x34] ss:$20 sps:$4 sm:$0xff]   ;;  %v1332_v41 = vld [vmem:[%s1529_s6 + $0x30] ss:$20 sps:$4 sm:$0xff]  }
  0x1a   : > { %758 = vmatprep.mubr.bf16.mxu1 %v1325_v35  ;;  %v1327_v37 = vld [vmem:[%s1529_s6 + $0x2c] ss:$20 sps:$4 sm:$0xff]   ;;  %v1331_v40 = vld [vmem:[%s1529_s6 + $0x28] ss:$20 sps:$4 sm:$0xff]   ;;  %v1338_v46 = vld [vmem:[%s1529_s6 + $0x50] ss:$20 sps:$4 sm:$0xff]  }
  0x1b   : > { %1158 = vmatpush3.bf16.msra.mxu0 %v1302_v14  ;;  %v1334_v42 = vld [vmem:[%s1529_s6 + $0x54] ss:$20 sps:$4 sm:$0xff]   ;;  %v1347_v45 = vld [vmem:[%s1586_s1 + $0x100] sm:$0xff]   ;;  %v1339_v47 = vld [vmem:[%s1529_s6 + $0x58] ss:$20 sps:$4 sm:$0xff]  }
  0x1c   : > { %1198 = vmatpush3.bf16.msra.mxu1 %v1303_v15  ;;  %1159 = vmatprep.subr.bf16.mxu0 %v1304_v16  ;;  %v1340_v44 = vld [vmem:[%s1586_s1 + $0x108] sm:$0xff]   ;;  %v1343_v49 = vld [vmem:[%s1529_s6 + $0x84] ss:$20 sps:$4 sm:$0xff]   ;;  %v1346_v51 = vld [vmem:[%s1529_s6 + $0x80] ss:$20 sps:$4 sm:$0xff]  }
  0x1d   : > { %1199 = vmatprep.subr.bf16.mxu1 %v1305_v17  ;;  %v1345_v50 = vld [vmem:[%s1529_s6 + $0x78] ss:$20 sps:$4 sm:$0xff]   ;;  %v1348_v52 = vld [vmem:[%s1529_s6 + $0x10] ss:$20 sps:$4 sm:$0xff]   ;;  %v1349_v53 = vld [vmem:[%s1529_s6 + $0x60] ss:$20 sps:$4 sm:$0xff]  }
  0x1e   : > { %v1350_v54 = vld [vmem:[%s1529_s6 + $0x38] ss:$20 sps:$4 sm:$0xff]   ;;  %v1351_v55 = vld [vmem:[%s1529_s6 + $0x88] ss:$20 sps:$4 sm:$0xff]  }
  0x1f   : > { %1160 = vmatpush3.bf16.msra.mxu0 %v1306_v18 }
  0x20   : > { %1200 = vmatpush3.bf16.msra.mxu1 %v1307_v19  ;;  %1161 = vmatprep.subr.bf16.mxu0 %v1308_v20  ;;  %v1049_v19 = vld [vmem:[%s1587_s2] ss:$0 sm:$0xff] }
  0x21   : > { %1201 = vmatprep.subr.bf16.mxu1 %v1309_v21 }
  0x23   : > { %1162 = vmatpush3.bf16.msra.mxu0 %v1310_v22 }
  0x24   : > { %1202 = vmatpush3.bf16.msra.mxu1 %v1311_v23  ;;  %1163 = vmatprep.subr.bf16.mxu0 %v1312_v24 }
  0x25   : > { %1203 = vmatprep.subr.bf16.mxu1 %v1313_v25 }
  0x27   : > { %1164 = vmatpush3.bf16.msra.mxu0 %v1314_v26 }
  0x28   : > { %1204 = vmatpush3.bf16.msra.mxu1 %v1315_v27  ;;  %1165 = vmatprep.subr.bf16.mxu0 %v1316_v28 }
  0x29   : > { %1205 = vmatprep.subr.bf16.mxu1 %v1317_v29 }
  0x2b   : > { %1166 = vmatpush3.bf16.msra.mxu0 %v1318_v30 }
  0x2c   : > { %1206 = vmatpush3.bf16.msra.mxu1 %v1319_v31  ;;  %1239 = vmatprep.subr.bf16.mxu0 %v1326_v36 }
  0x2d   : > { %1255 = vmatprep.subr.bf16.mxu1 %v1326_v36 }
  0x2e   : > { %694 = vmatmul.mubr.bf16.vlgmr.msra.gmra.mxu0 %v1320_v32 }
  0x2f   : > { %759 = vmatmul.mubr.bf16.vlgmr.msra.gmra.mxu1 %v1323_v34  ;;  %1240 = vmatpush3.bf16.msra.mxu0 %v1326_v36 }
  0x30   : > { %1259 = vmatpush3.bf16.msra.mxu1 %v1326_v36  ;;  %701 = vmatprep.mubr.bf16.mxu0 %v1327_v37 }
  0x31   : > { %766 = vmatprep.mubr.bf16.mxu1 %v1329_v38  ;;  %1241 = vmatprep.subr.bf16.mxu0 %v1333_v39 }
  0x32   : > { %1256 = vmatprep.subr.bf16.mxu1 %v1333_v39 }
  0x33   : > { %1242 = vmatpush3.bf16.msra.mxu0 %v1333_v39 }
  0x34   : > { %1260 = vmatpush3.bf16.msra.mxu1 %v1333_v39  ;;  %1243 = vmatprep.subr.bf16.mxu0 %v1340_v44 }
  0x35   : > { %1257 = vmatprep.subr.bf16.mxu1 %v1340_v44 }
  0x36   : > { %702 = vmatmul.mubr.bf16.gmra.mxu0 %v1331_v40 }
  0x37   : > { %767 = vmatmul.mubr.bf16.gmra.mxu1 %v1332_v41  ;;  %709 = vmatprep.mubr.bf16.mxu0 %v1334_v42 }
  0x38   : > { %774 = vmatprep.mubr.bf16.mxu1 %v1336_v43  ;;  %1244 = vmatpush3.bf16.msra.mxu0 %v1340_v44 }
  0x39   : > { %1261 = vmatpush3.bf16.msra.mxu1 %v1340_v44  ;;  %1245 = vmatprep.subr.bf16.mxu0 %v1347_v45 }
  0x3a   : > { %1258 = vmatprep.subr.bf16.mxu1 %v1347_v45 }
  0x3c   : > { %1246 = vmatpush3.bf16.msra.mxu0 %v1347_v45 }
  0x3d   : > { %1262 = vmatpush3.bf16.msra.mxu1 %v1347_v45 }
  0x3e   : > { %710 = vmatmul.mubr.bf16.gmra.mxu0 %v1338_v46 }
  0x3f   : > { %775 = vmatmul.mubr.bf16.gmra.mxu1 %v1339_v47  ;;  %717 = vmatprep.mubr.bf16.mxu0 %v1341_v48 }
  0x40   : > { %782 = vmatprep.mubr.bf16.mxu1 %v1343_v49 }
  0x46   : > { %718 = vmatmul.mubr.bf16.gmra.mxu0 %v1345_v50 }
  0x47   : > { %783 = vmatmul.mubr.bf16.gmra.mxu1 %v1346_v51  ;;  %1247 = vmatprep.mubr.msk.bf16.mxu0 %vm648_vm0, %v1348_v52 }
  0x48   : > { %1251 = vmatprep.mubr.msk.bf16.mxu1 %vm648_vm0, %v1349_v53 }
  0x4e   : > { %1248 = vmatmul.mubr.msk.bf16.vlgmr.msra.gmra.mxu0 %vm648_vm0, %v1350_v54 }
  0x4f   : > { %1252 = vmatmul.mubr.msk.bf16.vlgmr.msra.gmra.mxu1 %vm648_vm0, %v1351_v55 }
  0xee   : > { %v1167_v56 = vpop.f32.mrf.mxu0 }
  0xef   : > { %v1207_v57 = vpop.f32.mrf.mxu1 }
  0xf0   : > { %v1168_v58 = vpop.f32.mrf.mxu0 }
  0xf1   : > { %v1208_v59 = vpop.f32.mrf.mxu1  ;;  %v1169_v17 = vadd.f32 %v1168_v58, %v1167_v56 }
  0xf2   : > { %v1170_v60 = vpop.f32.mrf.mxu0  ;;  %v1209_v34 = vadd.f32 %v1208_v59, %v1207_v57 }
  0xf3   : > { %v1210_v61 = vpop.f32.mrf.mxu1  ;;  %v696_v27 = vadd.f32 %v1169_v17, %v1049_v19 }
  0xf4   : > { %v1171_v62 = vpop.f32.mrf.mxu0 }
  0xf5   : > { %v1211_v63 = vpop.f32.mrf.mxu1  ;;  %v1172_v28 = vadd.f32 %v1171_v62, %v1170_v60  ;;  %v761_v46 = vadd.f32 %v1209_v34, %v696_v27 }
  0xf6   : > { %v1173_v0 = vpop.f32.mrf.mxu0  ;;  %v1212_v52 = vadd.f32 %v1211_v63, %v1210_v61 }
  0xf7   : > { %v1213_v1 = vpop.f32.mrf.mxu1  ;;  %v699_v43 = vadd.f32 %v1172_v28, %v1049_v19 }
  0xf8   : > { %v1174_v2 = vpop.f32.mrf.mxu0 }
  0xf9   : > { %v1214_v3 = vpop.f32.mrf.mxu1  ;;  %v1175_v15 = vadd.f32 %v1174_v2, %v1173_v0 }
  0xfa   : > { %v1176_v4 = vpop.f32.mrf.mxu0  ;;  %v1215_v30 = vadd.f32 %v1214_v3, %v1213_v1 }
  0xfb   : > { %v1216_v5 = vpop.f32.mrf.mxu1  ;;  %v704_v23 = vadd.f32 %v1175_v15, %v1049_v19 }
  0xfc   : > { %v1177_v6 = vpop.f32.mrf.mxu0 }
  0xfd   : > { %v1217_v7 = vpop.f32.mrf.mxu1  ;;  %v1178_v24 = vadd.f32 %v1177_v6, %v1176_v4  ;;  %v769_v41 = vadd.f32 %v1215_v30, %v704_v23 }
  0xfe   : > { %v1179_v8 = vpop.f32.mrf.mxu0  ;;  %v1218_v47 = vadd.f32 %v1217_v7, %v1216_v5  ;;  %v764_v7 = vadd.f32 %v1212_v52, %v699_v43 }
  0xff   : > { %v1219_v9 = vpop.f32.mrf.mxu1  ;;  %v707_v38 = vadd.f32 %v1178_v24, %v1049_v19 }
 0x100   : > { %v1180_v10 = vpop.f32.mrf.mxu0 }
 0x101   : > { %v1220_v11 = vpop.f32.mrf.mxu1  ;;  %v1181_v21 = vadd.f32 %v1180_v10, %v1179_v8  ;;  %v772_v60 = vadd.f32 %v1218_v47, %v707_v38 }
 0x102   : > { %v1182_v12 = vpop.f32.mrf.mxu0  ;;  %v1221_v44 = vadd.f32 %v1220_v11, %v1219_v9 }
 0x103   : > { %v1222_v13 = vpop.f32.mrf.mxu1  ;;  %v712_v35 = vadd.f32 %v1181_v21, %v1049_v19 }
 0x104   : > { %v1183_v14 = vpop.f32.mrf.mxu0 }
 0x105   : > { %v1223_v16 = vpop.f32.mrf.mxu1  ;;  %v1184_v36 = vadd.f32 %v1183_v14, %v1182_v12  ;;  %v777_v56 = vadd.f32 %v1221_v44, %v712_v35 }
 0x106   : > { %v1185_v18 = vpop.f32.mrf.mxu0  ;;  %v1224_v0 = vadd.f32 %v1223_v16, %v1222_v13 }
 0x107   : > { %v1225_v20 = vpop.f32.mrf.mxu1  ;;  %v715_v53 = vadd.f32 %v1184_v36, %v1049_v19 }
 0x108   : > { %v1186_v22 = vpop.f32.mrf.mxu0 }
 0x109   : > { %v1187_v25 = vadd.f32 %v1186_v22, %v1185_v18  ;;  %v1226_v26 = vpop.f32.mrf.mxu1  ;;  %v780_v9 = vadd.f32 %v1224_v0, %v715_v53 }
 0x10a   : > { %v1188_v29 = vpop.f32.mrf.mxu0  ;;  %v1227_v32 = vadd.f32 %v1226_v26, %v1225_v20 }
 0x10b   : > { %v720_v31 = vadd.f32 %v1187_v25, %v1049_v19  ;;  %v1228_v33 = vpop.f32.mrf.mxu1 }
 0x10c   : > { %v1189_v37 = vpop.f32.mrf.mxu0 }
 0x10d   : > { %v1190_v39 = vadd.f32 %v1189_v37, %v1188_v29  ;;  %v1229_v40 = vpop.f32.mrf.mxu1  ;;  %v785_v42 = vadd.f32 %v1227_v32, %v720_v31 }
 0x10e   : > { %v1249_v45 = vpop.f32.mrf.mxu0  ;;  %v1230_v49 = vadd.f32 %v1229_v40, %v1228_v33 }
 0x10f   : > { %v723_v48 = vadd.f32 %v1190_v39, %v1049_v19  ;;  %v834_v50 = vadd.f32 %v1249_v45, %v769_v41  ;;  %v1253_v51 = vpop.f32.mrf.mxu1 }
 0x110   : > { %v850_v54 = vadd.f32 %v1253_v51, %v785_v42  ;;  %v825_v55 = vpop.f32.mrf.mxu0 }
 0x111   : > { %v866_v57 = vmul.f32 0.70710677, %v834_v50  ;;  %v826_v58 = vadd.f32 %v825_v55, %v761_v46  ;;  %v841_v59 = vpop.f32.mrf.mxu1  ;;  %v788_v62 = vadd.f32 %v1230_v49, %v723_v48  ;;  %v858_v23 = vmul.f32 0.5, %v834_v50 }
 0x112   : > { %v870_v1 = vmul.f32 0.70710677, %v850_v54  ;;  %v842_v2 = vadd.f32 %v841_v59, %v777_v56  ;;  %v1250_v3 = vpop.f32.mrf.mxu0  ;;  %v862_v24 = vmul.f32 0.5, %v850_v54 }
 0x113   : > { %1352 = verf.f32 %v866_v57  ;;  %v864_v4 = vmul.f32 0.70710677, %v826_v58  ;;  %v837_v5 = vadd.f32 %v1250_v3, %v772_v60  ;;  %v1254_v6 = vpop.f32.mrf.mxu1  ;;  %v856_v27 = vmul.f32 0.5, %v826_v58 }
 0x114   : > { %1354 = verf.f32 %v870_v1  ;;  %v868_v61 = vmul.f32 0.70710677, %v842_v2  ;;  %v853_v63 = vadd.f32 %v1254_v6, %v788_v62  ;;  %v828_v8 = vpop.f32.mrf.mxu0  ;;  %v860_v32 = vmul.f32 0.5, %v842_v2 }
 0x115   : > { %1356 = verf.f32 %v864_v4  ;;  %v867_v10 = vmul.f32 0.70710677, %v837_v5  ;;  %v829_v11 = vadd.f32 %v828_v8, %v764_v7  ;;  %v844_v12 = vpop.f32.mrf.mxu1  ;;  %v859_v29 = vmul.f32 0.5, %v837_v5 }
 0x116   : > { %1358 = verf.f32 %v868_v61  ;;  %v871_v14 = vmul.f32 0.70710677, %v853_v63  ;;  %v845_v13 = vadd.f32 %v844_v12, %v780_v9  ;;  %v863_v34 = vmul.f32 0.5, %v853_v63 }
 0x117   : > { %1360 = verf.f32 %v867_v10  ;;  %v865_v15 = vmul.f32 0.70710677, %v829_v11  ;;  %v857_v39 = vmul.f32 0.5, %v829_v11 }
 0x118   : > { %1362 = verf.f32 %v871_v14  ;;  %v869_v16 = vmul.f32 0.70710677, %v845_v13  ;;  %v861_v43 = vmul.f32 0.5, %v845_v13 }
 0x119   : > { %1364 = verf.f32 %v865_v15 }
 0x11a   : > { %1366 = verf.f32 %v869_v16 }
 0x120   : > { %v1353_v17 = vpop.eup %1352 }
 0x121   : > { %v1355_v18 = vpop.eup %1354  ;;  %v882_v21 = vadd.f32 1.0, %v1353_v17 }
 0x122   : > { %v1357_v19 = vpop.eup %1356  ;;  %v886_v25 = vadd.f32 1.0, %v1355_v18 }
 0x123   : > { %v1359_v20 = vpop.eup %1358  ;;  %v880_v28 = vadd.f32 1.0, %v1357_v19  ;;  %v890_v37 = vmul.f32 %v882_v21, %v858_v23 }
 0x124   : > { %v1361_v22 = vpop.eup %1360  ;;  %v884_v33 = vadd.f32 1.0, %v1359_v20  ;;  %v894_v41 = vmul.f32 %v886_v25, %v862_v24 }
 0x125   : > { %v1363_v26 = vpop.eup %1362  ;;  %v883_v30 = vadd.f32 1.0, %v1361_v22  ;;  %v888_v45 = vmul.f32 %v880_v28, %v856_v27 }
 0x126   : > { %v1365_v31 = vpop.eup %1364  ;;  %v887_v35 = vadd.f32 1.0, %v1363_v26  ;;  %v892_v48 = vmul.f32 %v884_v33, %v860_v32 }
 0x127   : > { %v1367_v36 = vpop.eup %1366  ;;  %v891_v38 = vmul.f32 %v883_v30, %v859_v29  ;;  %v881_v40 = vadd.f32 1.0, %v1365_v31 }
 0x128   : > { %v895_v42 = vmul.f32 %v887_v35, %v863_v34  ;;  %v885_v44 = vadd.f32 1.0, %v1367_v36 }
 0x129   : > { %v1136_v46 = vpack.c.bf16 %v891_v38, %v890_v37  ;;  %v889_v47 = vmul.f32 %v881_v40, %v857_v39 }
 0x12a   : > { %v1146_v49 = vpack.c.bf16 %v895_v42, %v894_v41  ;;  %v893_v50 = vmul.f32 %v885_v44, %v861_v43 }
 0x12b   : > { %1148 = vst [vmem:[%s226_s29 + $0x8] sm:$0xff] %v1136_v46   ;;  %v1131_v51 = vpack.c.bf16 %v889_v47, %v888_v45 }
 0x12c   : > { %1150 = vst [vmem:[%s226_s29 + $0x18] sm:$0xff] %v1146_v49   ;;  %v1141_v52 = vpack.c.bf16 %v893_v50, %v892_v48 }
 0x12d   : > { %1132 = vst [vmem:[%s226_s29] sm:$0xff] %v1131_v51  }
 0x12e   : > { %1149 = vst [vmem:[%s226_s29 + $0x10] sm:$0xff] %v1141_v52  }
 0x12f PF: > { %s13_s14 = sadd.s32 1, %s1390_s14   ;;  %s1589_s12 = smov %s1386_s13 }
 0x130   : > { %p10_p5 = scmp.ge.s32.totalorder %s13_s14, 4   ;;  %s1590_s13 = smov %s1592_s15 }
 0x132   :  { %12 = sbr.rel (!%p10_p5) target bundleno = 2 (0x2), region = 68 }

// kernel: nature_conv_body.7
= control target key start
LH: loop header
LB: loop body
LE: loop exit
PB: predicated region body
PF: predicated region fallthrough
CT: control target
= control target key end

     0   :  { %s15030_s12 = smov 0   ;;  %s15032_s13 = smov 0   ;;  %s17810_s0 = inlined_call_operand.vmem [shape: bf16[16,6272], index: 0, kind: input, shape index: {}]   ;;  %s17811_s1 = inlined_call_operand.vmem [shape: bf16[6272,512], index: 1, kind: input, shape index: {}]   ;;  %s17812_s2 = inlined_call_operand.vmem [shape: f32[1,512], index: 2, kind: input, shape index: {}]   ;;  %s17813_s3 = inlined_call_operand.vmem [shape: f32[16,512], index: 3, kind: output, shape index: {}]  }
   0x1   :  { %s15034_s14 = smov 0   ;;  %s15036_s15 = smov 0  }
   0x2   :  { %s15038_s16 = smov 0  }
   0x3 LB: > { %s22_s17 = sadd.s32 1, %s15003_s15  ;;  %s12819_s18 = sadd.s32 4294967295, %s15007_s16   ;;  %s15007_s16 = sphi %s15038_s16, %s13_s16   ;;  %s15003_s15 = sphi %s15036_s15, %s17830_s15   ;;  %s14999_s14 = sphi %s15034_s14, %s17829_s14   ;;  %s14995_s13 = sphi %s15032_s13, %s17828_s13   ;;  %s14991_s12 = sphi %s15030_s12, %s17827_s12  }
   0x4   : > { %p23_p0 = scmp.ge.s32.totalorder %s22_s17, 2  ;;  %p65_p1 = scmp.ne.s32.totalorder %s14995_s13, %s14991_s12 }
   0x5   : > { %p66_p2 = scmp.eq.s32.totalorder %s15007_s16, 0  ;;  %p123_p4 = scmp.eq.s32.totalorder %s12819_s18, 1 }
   0x6   : > { %s17832_s17 = smov (%p23_p0, %s22_s17), 0  ;;  %s58_s20 = sadd.s32 1, %s14995_s13 }
   0x7   : > { %p67_p3 = por %p66_p2, %p65_p1  ;;  %s55_s19 = ssub.s32 %s15003_s15, %s17832_s17 }
   0x8   : > { %p56_p5 = scmp.eq.s32.totalorder %s55_s19, 0  ;;  %p15065_p6 = por %p123_p4, %p65_p1 }
   0x9   : > { %p12823_p7 = scmp.ge.s32.totalorder %s15007_s16, 2 }
   0xa   : > { %s15070_s22 = scalar_select %p56_p5, %s14995_s13, %s58_s20  }
   0xb   : > { %155 = sbr.rel (%p12823_p7) target bundleno = 412 (0x19c), region = 20 }
  0x10   : > { %158 = sbr.rel (!%p67_p3) target bundleno = 412 (0x19c), region = 24  ;;  %s160_s23 = sand.u32 (%p67_p3), 1, %s14995_s13  }
  0x11   : > { %s13667_s24 = sshll.u32 (%p67_p3), %s15003_s15, 3  ;;  %s13669_s25 = smul.u32 (%p67_p3), 6272, %s160_s23 }
  0x12   : > { %s15078_s28 = scalar_lea.vmem (%p67_p3), %s17811_s1, %s13667_s24 }
  0x13   : > { %v1763_v0 = vld [vmem:[%s15078_s28] sm:$0xff] (%p67_p3)  ;;  %v1765_v1 = vld [vmem:[%s15078_s28 + $0x10] sm:$0xff] (%p67_p3)  ;;  %s15086_s29 = scalar_lea.vmem (%p67_p3), [#allocation2], %s13669_s25 }
  0x14   : > { %v1767_v2 = vld [vmem:[%s15078_s28 + $0x20] sm:$0xff] (%p67_p3)  ;;  %v1769_v3 = vld [vmem:[%s15078_s28 + $0x30] sm:$0xff] (%p67_p3)  ;;  %1764 = vst [vmem:[%s15086_s29] sm:$0xff] (%p67_p3), %v1763_v0  ;;  %1766 = vst [vmem:[%s15086_s29 + $0x8] sm:$0xff] (%p67_p3), %v1765_v1 }
  0x15   : > { %v1771_v4 = vld [vmem:[%s15078_s28 + $0x40] sm:$0xff]  ;;  %v1773_v5 = vld [vmem:[%s15078_s28 + $0x50] sm:$0xff]  ;;  %1768 = vst [vmem:[%s15086_s29 + $0x10] sm:$0xff] %v1767_v2  ;;  %1770 = vst [vmem:[%s15086_s29 + $0x18] sm:$0xff] %v1769_v3 }
  0x16   : > { %1772 = vst [vmem:[%s15086_s29 + $0x20] sm:$0xff] %v1771_v4  ;;  %1774 = vst [vmem:[%s15086_s29 + $0x28] sm:$0xff] %v1773_v5  ;;  %v1775_v6 = vld [vmem:[%s15078_s28 + $0x60] sm:$0xff]  ;;  %v1777_v7 = vld [vmem:[%s15078_s28 + $0x70] sm:$0xff] }
  0x17   : > { %v1779_v8 = vld [vmem:[%s15078_s28 + $0x80] sm:$0xff]  ;;  %1776 = vst [vmem:[%s15086_s29 + $0x30] sm:$0xff] %v1775_v6  ;;  %1778 = vst [vmem:[%s15086_s29 + $0x38] sm:$0xff] %v1777_v7  ;;  %v1781_v9 = vld [vmem:[%s15078_s28 + $0x90] sm:$0xff] }
  0x18   : > { %1780 = vst [vmem:[%s15086_s29 + $0x40] sm:$0xff] %v1779_v8  ;;  %v1783_v10 = vld [vmem:[%s15078_s28 + $0xa0] sm:$0xff]  ;;  %v1785_v11 = vld [vmem:[%s15078_s28 + $0xb0] sm:$0xff]  ;;  %1782 = vst [vmem:[%s15086_s29 + $0x48] sm:$0xff] %v1781_v9 }
  0x19   : > { %1784 = vst [vmem:[%s15086_s29 + $0x50] sm:$0xff] %v1783_v10  ;;  %1786 = vst [vmem:[%s15086_s29 + $0x58] sm:$0xff] %v1785_v11  ;;  %v1787_v12 = vld [vmem:[%s15078_s28 + $0xc0] sm:$0xff]  ;;  %v1789_v13 = vld [vmem:[%s15078_s28 + $0xd0] sm:$0xff] }
  0x1a   : > { %v1791_v14 = vld [vmem:[%s15078_s28 + $0xe0] sm:$0xff]  ;;  %1788 = vst [vmem:[%s15086_s29 + $0x60] sm:$0xff] %v1787_v12  ;;  %1790 = vst [vmem:[%s15086_s29 + $0x68] sm:$0xff] %v1789_v13  ;;  %v1793_v15 = vld [vmem:[%s15078_s28 + $0xf0] sm:$0xff] }
  0x1b   : > { %1792 = vst [vmem:[%s15086_s29 + $0x70] sm:$0xff] %v1791_v14  ;;  %v1795_v16 = vld [vmem:[%s15078_s28 + $0x100] sm:$0xff]  ;;  %v1797_v17 = vld [vmem:[%s15078_s28 + $0x110] sm:$0xff]  ;;  %1794 = vst [vmem:[%s15086_s29 + $0x78] sm:$0xff] %v1793_v15 }
  0x1c   : > { %1796 = vst [vmem:[%s15086_s29 + $0x80] sm:$0xff] %v1795_v16  ;;  %1798 = vst [vmem:[%s15086_s29 + $0x88] sm:$0xff] %v1797_v17  ;;  %v1799_v18 = vld [vmem:[%s15078_s28 + $0x120] sm:$0xff]  ;;  %v1801_v19 = vld [vmem:[%s15078_s28 + $0x130] sm:$0xff] }
  0x1d   : > { %v1803_v20 = vld [vmem:[%s15078_s28 + $0x140] sm:$0xff]  ;;  %1800 = vst [vmem:[%s15086_s29 + $0x90] sm:$0xff] %v1799_v18  ;;  %1802 = vst [vmem:[%s15086_s29 + $0x98] sm:$0xff] %v1801_v19  ;;  %v1805_v21 = vld [vmem:[%s15078_s28 + $0x150] sm:$0xff] }
  0x1e   : > { %1804 = vst [vmem:[%s15086_s29 + $0xa0] sm:$0xff] %v1803_v20  ;;  %v1807_v22 = vld [vmem:[%s15078_s28 + $0x160] sm:$0xff]  ;;  %v1809_v23 = vld [vmem:[%s15078_s28 + $0x170] sm:$0xff]  ;;  %1806 = vst [vmem:[%s15086_s29 + $0xa8] sm:$0xff] %v1805_v21 }
  0x1f   : > { %1808 = vst [vmem:[%s15086_s29 + $0xb0] sm:$0xff] %v1807_v22  ;;  %1810 = vst [vmem:[%s15086_s29 + $0xb8] sm:$0xff] %v1809_v23  ;;  %v1811_v24 = vld [vmem:[%s15078_s28 + $0x180] sm:$0xff]  ;;  %v1813_v25 = vld [vmem:[%s15078_s28 + $0x190] sm:$0xff] }
  0x20   : > { %v1815_v26 = vld [vmem:[%s15078_s28 + $0x1a0] sm:$0xff]  ;;  %1812 = vst [vmem:[%s15086_s29 + $0xc0] sm:$0xff] %v1811_v24  ;;  %1814 = vst [vmem:[%s15086_s29 + $0xc8] sm:$0xff] %v1813_v25  ;;  %v1817_v27 = vld [vmem:[%s15078_s28 + $0x1b0] sm:$0xff] }
  0x21   : > { %1816 = vst [vmem:[%s15086_s29 + $0xd0] sm:$0xff] %v1815_v26  ;;  %v1819_v28 = vld [vmem:[%s15078_s28 + $0x1c0] sm:$0xff]  ;;  %v1821_v29 = vld [vmem:[%s15078_s28 + $0x1d0] sm:$0xff]  ;;  %1818 = vst [vmem:[%s15086_s29 + $0xd8] sm:$0xff] %v1817_v27 }
  0x22   : > { %1820 = vst [vmem:[%s15086_s29 + $0xe0] sm:$0xff] %v1819_v28  ;;  %1822 = vst [vmem:[%s15086_s29 + $0xe8] sm:$0xff] %v1821_v29  ;;  %v1823_v30 = vld [vmem:[%s15078_s28 + $0x1e0] sm:$0xff]  ;;  %v1825_v31 = vld [vmem:[%s15078_s28 + $0x1f0] sm:$0xff] }
  0x23   : > { %v1827_v32 = vld [vmem:[%s15078_s28 + $0x200] sm:$0xff]  ;;  %1824 = vst [vmem:[%s15086_s29 + $0xf0] sm:$0xff] %v1823_v30  ;;  %1826 = vst [vmem:[%s15086_s29 + $0xf8] sm:$0xff] %v1825_v31  ;;  %v1829_v33 = vld [vmem:[%s15078_s28 + $0x210] sm:$0xff] }
  0x24   : > { %1828 = vst [vmem:[%s15086_s29 + $0x100] sm:$0xff] %v1827_v32  ;;  %v1831_v34 = vld [vmem:[%s15078_s28 + $0x220] sm:$0xff]  ;;  %v1833_v35 = vld [vmem:[%s15078_s28 + $0x230] sm:$0xff]  ;;  %1830 = vst [vmem:[%s15086_s29 + $0x108] sm:$0xff] %v1829_v33 }
  0x25   : > { %1832 = vst [vmem:[%s15086_s29 + $0x110] sm:$0xff] %v1831_v34  ;;  %1834 = vst [vmem:[%s15086_s29 + $0x118] sm:$0xff] %v1833_v35  ;;  %v1835_v36 = vld [vmem:[%s15078_s28 + $0x240] sm:$0xff]  ;;  %v1837_v37 = vld [vmem:[%s15078_s28 + $0x250] sm:$0xff] }
  0x26   : > { %v1839_v38 = vld [vmem:[%s15078_s28 + $0x260] sm:$0xff]  ;;  %1836 = vst [vmem:[%s15086_s29 + $0x120] sm:$0xff] %v1835_v36  ;;  %1838 = vst [vmem:[%s15086_s29 + $0x128] sm:$0xff] %v1837_v37  ;;  %v1841_v39 = vld [vmem:[%s15078_s28 + $0x270] sm:$0xff] }
  0x27   : > { %1840 = vst [vmem:[%s15086_s29 + $0x130] sm:$0xff] %v1839_v38  ;;  %v1843_v40 = vld [vmem:[%s15078_s28 + $0x280] sm:$0xff]  ;;  %v1845_v41 = vld [vmem:[%s15078_s28 + $0x290] sm:$0xff]  ;;  %1842 = vst [vmem:[%s15086_s29 + $0x138] sm:$0xff] %v1841_v39 }
  0x28   : > { %1844 = vst [vmem:[%s15086_s29 + $0x140] sm:$0xff] %v1843_v40  ;;  %1846 = vst [vmem:[%s15086_s29 + $0x148] sm:$0xff] %v1845_v41  ;;  %v1847_v42 = vld [vmem:[%s15078_s28 + $0x2a0] sm:$0xff]  ;;  %v1849_v43 = vld [vmem:[%s15078_s28 + $0x2b0] sm:$0xff] }
  0x29   : > { %v1851_v44 = vld [vmem:[%s15078_s28 + $0x2c0] sm:$0xff]  ;;  %1848 = vst [vmem:[%s15086_s29 + $0x150] sm:$0xff] %v1847_v42  ;;  %1850 = vst [vmem:[%s15086_s29 + $0x158] sm:$0xff] %v1849_v43  ;;  %v1853_v45 = vld [vmem:[%s15078_s28 + $0x2d0] sm:$0xff] }
  0x2a   : > { %1852 = vst [vmem:[%s15086_s29 + $0x160] sm:$0xff] %v1851_v44  ;;  %v1855_v46 = vld [vmem:[%s15078_s28 + $0x2e0] sm:$0xff]  ;;  %v1857_v47 = vld [vmem:[%s15078_s28 + $0x2f0] sm:$0xff]  ;;  %1854 = vst [vmem:[%s15086_s29 + $0x168] sm:$0xff] %v1853_v45 }
  0x2b   : > { %1856 = vst [vmem:[%s15086_s29 + $0x170] sm:$0xff] %v1855_v46  ;;  %1858 = vst [vmem:[%s15086_s29 + $0x178] sm:$0xff] %v1857_v47  ;;  %v1859_v48 = vld [vmem:[%s15078_s28 + $0x300] sm:$0xff]  ;;  %v1861_v49 = vld [vmem:[%s15078_s28 + $0x310] sm:$0xff] }
  0x2c   : > { %v1863_v50 = vld [vmem:[%s15078_s28 + $0x320] sm:$0xff]  ;;  %1860 = vst [vmem:[%s15086_s29 + $0x180] sm:$0xff] %v1859_v48  ;;  %1862 = vst [vmem:[%s15086_s29 + $0x188] sm:$0xff] %v1861_v49  ;;  %v1865_v51 = vld [vmem:[%s15078_s28 + $0x330] sm:$0xff] }
  0x2d   : > { %1864 = vst [vmem:[%s15086_s29 + $0x190] sm:$0xff] %v1863_v50  ;;  %v1867_v52 = vld [vmem:[%s15078_s28 + $0x340] sm:$0xff]  ;;  %v1869_v53 = vld [vmem:[%s15078_s28 + $0x350] sm:$0xff]  ;;  %1866 = vst [vmem:[%s15086_s29 + $0x198] sm:$0xff] %v1865_v51 }
  0x2e   : > { %1868 = vst [vmem:[%s15086_s29 + $0x1a0] sm:$0xff] %v1867_v52  ;;  %1870 = vst [vmem:[%s15086_s29 + $0x1a8] sm:$0xff] %v1869_v53  ;;  %v1871_v54 = vld [vmem:[%s15078_s28 + $0x360] sm:$0xff]  ;;  %v1873_v55 = vld [vmem:[%s15078_s28 + $0x370] sm:$0xff] }
  0x2f   : > { %v1875_v56 = vld [vmem:[%s15078_s28 + $0x380] sm:$0xff]  ;;  %1872 = vst [vmem:[%s15086_s29 + $0x1b0] sm:$0xff] %v1871_v54  ;;  %1874 = vst [vmem:[%s15086_s29 + $0x1b8] sm:$0xff] %v1873_v55  ;;  %v1877_v57 = vld [vmem:[%s15078_s28 + $0x390] sm:$0xff] }
  0x30   : > { %1876 = vst [vmem:[%s15086_s29 + $0x1c0] sm:$0xff] %v1875_v56  ;;  %v1879_v58 = vld [vmem:[%s15078_s28 + $0x3a0] sm:$0xff]  ;;  %v1881_v59 = vld [vmem:[%s15078_s28 + $0x3b0] sm:$0xff]  ;;  %1878 = vst [vmem:[%s15086_s29 + $0x1c8] sm:$0xff] %v1877_v57 }
  0x31   : > { %1880 = vst [vmem:[%s15086_s29 + $0x1d0] sm:$0xff] %v1879_v58  ;;  %1882 = vst [vmem:[%s15086_s29 + $0x1d8] sm:$0xff] %v1881_v59  ;;  %v1883_v60 = vld [vmem:[%s15078_s28 + $0x3c0] sm:$0xff]  ;;  %v1885_v61 = vld [vmem:[%s15078_s28 + $0x3d0] sm:$0xff] }
  0x32   : > { %v1887_v62 = vld [vmem:[%s15078_s28 + $0x3e0] sm:$0xff]  ;;  %1884 = vst [vmem:[%s15086_s29 + $0x1e0] sm:$0xff] %v1883_v60  ;;  %1886 = vst [vmem:[%s15086_s29 + $0x1e8] sm:$0xff] %v1885_v61  ;;  %v1889_v63 = vld [vmem:[%s15078_s28 + $0x3f0] sm:$0xff] }
  0x33   : > { %1888 = vst [vmem:[%s15086_s29 + $0x1f0] sm:$0xff] %v1887_v62  ;;  %v1891_v0 = vld [vmem:[%s15078_s28 + $0x400] sm:$0xff]  ;;  %v1893_v1 = vld [vmem:[%s15078_s28 + $0x410] sm:$0xff]  ;;  %1890 = vst [vmem:[%s15086_s29 + $0x1f8] sm:$0xff] %v1889_v63 }
  0x34   : > { %1892 = vst [vmem:[%s15086_s29 + $0x200] sm:$0xff] %v1891_v0  ;;  %1894 = vst [vmem:[%s15086_s29 + $0x208] sm:$0xff] %v1893_v1  ;;  %v1895_v2 = vld [vmem:[%s15078_s28 + $0x420] sm:$0xff]  ;;  %v1897_v3 = vld [vmem:[%s15078_s28 + $0x430] sm:$0xff] }
  0x35   : > { %v1899_v4 = vld [vmem:[%s15078_s28 + $0x440] sm:$0xff]  ;;  %1896 = vst [vmem:[%s15086_s29 + $0x210] sm:$0xff] %v1895_v2  ;;  %1898 = vst [vmem:[%s15086_s29 + $0x218] sm:$0xff] %v1897_v3  ;;  %v1901_v5 = vld [vmem:[%s15078_s28 + $0x450] sm:$0xff] }
  0x36   : > { %1900 = vst [vmem:[%s15086_s29 + $0x220] sm:$0xff] %v1899_v4  ;;  %v1903_v6 = vld [vmem:[%s15078_s28 + $0x460] sm:$0xff]  ;;  %v1905_v7 = vld [vmem:[%s15078_s28 + $0x470] sm:$0xff]  ;;  %1902 = vst [vmem:[%s15086_s29 + $0x228] sm:$0xff] %v1901_v5 }
  0x37   : > { %1904 = vst [vmem:[%s15086_s29 + $0x230] sm:$0xff] %v1903_v6  ;;  %1906 = vst [vmem:[%s15086_s29 + $0x238] sm:$0xff] %v1905_v7  ;;  %v1907_v8 = vld [vmem:[%s15078_s28 + $0x480] sm:$0xff]  ;;  %v1909_v9 = vld [vmem:[%s15078_s28 + $0x490] sm:$0xff] }
  0x38   : > { %v1911_v10 = vld [vmem:[%s15078_s28 + $0x4a0] sm:$0xff]  ;;  %1908 = vst [vmem:[%s15086_s29 + $0x240] sm:$0xff] %v1907_v8  ;;  %1910 = vst [vmem:[%s15086_s29 + $0x248] sm:$0xff] %v1909_v9  ;;  %v1913_v11 = vld [vmem:[%s15078_s28 + $0x4b0] sm:$0xff] }
  0x39   : > { %1912 = vst [vmem:[%s15086_s29 + $0x250] sm:$0xff] %v1911_v10  ;;  %v1915_v12 = vld [vmem:[%s15078_s28 + $0x4c0] sm:$0xff]  ;;  %v1917_v13 = vld [vmem:[%s15078_s28 + $0x4d0] sm:$0xff]  ;;  %1914 = vst [vmem:[%s15086_s29 + $0x258] sm:$0xff] %v1913_v11 }
  0x3a   : > { %1916 = vst [vmem:[%s15086_s29 + $0x260] sm:$0xff] %v1915_v12  ;;  %1918 = vst [vmem:[%s15086_s29 + $0x268] sm:$0xff] %v1917_v13  ;;  %v1919_v14 = vld [vmem:[%s15078_s28 + $0x4e0] sm:$0xff]  ;;  %v1921_v15 = vld [vmem:[%s15078_s28 + $0x4f0] sm:$0xff] }
  0x3b   : > { %v1923_v16 = vld [vmem:[%s15078_s28 + $0x500] sm:$0xff]  ;;  %1920 = vst [vmem:[%s15086_s29 + $0x270] sm:$0xff] %v1919_v14  ;;  %1922 = vst [vmem:[%s15086_s29 + $0x278] sm:$0xff] %v1921_v15  ;;  %v1925_v17 = vld [vmem:[%s15078_s28 + $0x510] sm:$0xff] }
  0x3c   : > { %1924 = vst [vmem:[%s15086_s29 + $0x280] sm:$0xff] %v1923_v16  ;;  %v1927_v18 = vld [vmem:[%s15078_s28 + $0x520] sm:$0xff]  ;;  %v1929_v19 = vld [vmem:[%s15078_s28 + $0x530] sm:$0xff]  ;;  %1926 = vst [vmem:[%s15086_s29 + $0x288] sm:$0xff] %v1925_v17 }
  0x3d   : > { %1928 = vst [vmem:[%s15086_s29 + $0x290] sm:$0xff] %v1927_v18  ;;  %1930 = vst [vmem:[%s15086_s29 + $0x298] sm:$0xff] %v1929_v19  ;;  %v1931_v20 = vld [vmem:[%s15078_s28 + $0x540] sm:$0xff]  ;;  %v1933_v21 = vld [vmem:[%s15078_s28 + $0x550] sm:$0xff] }
  0x3e   : > { %v1935_v22 = vld [vmem:[%s15078_s28 + $0x560] sm:$0xff]  ;;  %1932 = vst [vmem:[%s15086_s29 + $0x2a0] sm:$0xff] %v1931_v20  ;;  %1934 = vst [vmem:[%s15086_s29 + $0x2a8] sm:$0xff] %v1933_v21  ;;  %v1937_v23 = vld [vmem:[%s15078_s28 + $0x570] sm:$0xff] }
  0x3f   : > { %1936 = vst [vmem:[%s15086_s29 + $0x2b0] sm:$0xff] %v1935_v22  ;;  %v1939_v24 = vld [vmem:[%s15078_s28 + $0x580] sm:$0xff]  ;;  %v1941_v25 = vld [vmem:[%s15078_s28 + $0x590] sm:$0xff]  ;;  %1938 = vst [vmem:[%s15086_s29 + $0x2b8] sm:$0xff] %v1937_v23 }
  0x40   : > { %1940 = vst [vmem:[%s15086_s29 + $0x2c0] sm:$0xff] %v1939_v24  ;;  %1942 = vst [vmem:[%s15086_s29 + $0x2c8] sm:$0xff] %v1941_v25  ;;  %v1943_v26 = vld [vmem:[%s15078_s28 + $0x5a0] sm:$0xff]  ;;  %v1945_v27 = vld [vmem:[%s15078_s28 + $0x5b0] sm:$0xff] }
  0x41   : > { %v1947_v28 = vld [vmem:[%s15078_s28 + $0x5c0] sm:$0xff]  ;;  %1944 = vst [vmem:[%s15086_s29 + $0x2d0] sm:$0xff] %v1943_v26  ;;  %1946 = vst [vmem:[%s15086_s29 + $0x2d8] sm:$0xff] %v1945_v27  ;;  %v1949_v29 = vld [vmem:[%s15078_s28 + $0x5d0] sm:$0xff] }
  0x42   : > { %1948 = vst [vmem:[%s15086_s29 + $0x2e0] sm:$0xff] %v1947_v28  ;;  %v1951_v30 = vld [vmem:[%s15078_s28 + $0x5e0] sm:$0xff]  ;;  %v1953_v31 = vld [vmem:[%s15078_s28 + $0x5f0] sm:$0xff]  ;;  %1950 = vst [vmem:[%s15086_s29 + $0x2e8] sm:$0xff] %v1949_v29 }
  0x43   : > { %1952 = vst [vmem:[%s15086_s29 + $0x2f0] sm:$0xff] %v1951_v30  ;;  %1954 = vst [vmem:[%s15086_s29 + $0x2f8] sm:$0xff] %v1953_v31  ;;  %v1955_v32 = vld [vmem:[%s15078_s28 + $0x600] sm:$0xff]  ;;  %v1957_v33 = vld [vmem:[%s15078_s28 + $0x610] sm:$0xff] }
  0x44   : > { %v1959_v34 = vld [vmem:[%s15078_s28 + $0x620] sm:$0xff]  ;;  %1956 = vst [vmem:[%s15086_s29 + $0x300] sm:$0xff] %v1955_v32  ;;  %1958 = vst [vmem:[%s15086_s29 + $0x308] sm:$0xff] %v1957_v33  ;;  %v1961_v35 = vld [vmem:[%s15078_s28 + $0x630] sm:$0xff] }
  0x45   : > { %1960 = vst [vmem:[%s15086_s29 + $0x310] sm:$0xff] %v1959_v34  ;;  %v1963_v36 = vld [vmem:[%s15078_s28 + $0x640] sm:$0xff]  ;;  %v1965_v37 = vld [vmem:[%s15078_s28 + $0x650] sm:$0xff]  ;;  %1962 = vst [vmem:[%s15086_s29 + $0x318] sm:$0xff] %v1961_v35 }
  0x46   : > { %1964 = vst [vmem:[%s15086_s29 + $0x320] sm:$0xff] %v1963_v36  ;;  %1966 = vst [vmem:[%s15086_s29 + $0x328] sm:$0xff] %v1965_v37  ;;  %v1967_v38 = vld [vmem:[%s15078_s28 + $0x660] sm:$0xff]  ;;  %v1969_v39 = vld [vmem:[%s15078_s28 + $0x670] sm:$0xff] }
  0x47   : > { %v1971_v40 = vld [vmem:[%s15078_s28 + $0x680] sm:$0xff]  ;;  %1968 = vst [vmem:[%s15086_s29 + $0x330] sm:$0xff] %v1967_v38  ;;  %1970 = vst [vmem:[%s15086_s29 + $0x338] sm:$0xff] %v1969_v39  ;;  %v1973_v41 = vld [vmem:[%s15078_s28 + $0x690] sm:$0xff] }
  0x48   : > { %1972 = vst [vmem:[%s15086_s29 + $0x340] sm:$0xff] %v1971_v40  ;;  %v1975_v42 = vld [vmem:[%s15078_s28 + $0x6a0] sm:$0xff]  ;;  %v1977_v43 = vld [vmem:[%s15078_s28 + $0x6b0] sm:$0xff]  ;;  %1974 = vst [vmem:[%s15086_s29 + $0x348] sm:$0xff] %v1973_v41 }
  0x49   : > { %1976 = vst [vmem:[%s15086_s29 + $0x350] sm:$0xff] %v1975_v42  ;;  %1978 = vst [vmem:[%s15086_s29 + $0x358] sm:$0xff] %v1977_v43  ;;  %v1979_v44 = vld [vmem:[%s15078_s28 + $0x6c0] sm:$0xff]  ;;  %v1981_v45 = vld [vmem:[%s15078_s28 + $0x6d0] sm:$0xff] }
  0x4a   : > { %v1983_v46 = vld [vmem:[%s15078_s28 + $0x6e0] sm:$0xff]  ;;  %1980 = vst [vmem:[%s15086_s29 + $0x360] sm:$0xff] %v1979_v44  ;;  %1982 = vst [vmem:[%s15086_s29 + $0x368] sm:$0xff] %v1981_v45  ;;  %v1985_v47 = vld [vmem:[%s15078_s28 + $0x6f0] sm:$0xff] }
  0x4b   : > { %1984 = vst [vmem:[%s15086_s29 + $0x370] sm:$0xff] %v1983_v46  ;;  %v1987_v48 = vld [vmem:[%s15078_s28 + $0x700] sm:$0xff]  ;;  %v1989_v49 = vld [vmem:[%s15078_s28 + $0x710] sm:$0xff]  ;;  %1986 = vst [vmem:[%s15086_s29 + $0x378] sm:$0xff] %v1985_v47 }
  0x4c   : > { %1988 = vst [vmem:[%s15086_s29 + $0x380] sm:$0xff] %v1987_v48  ;;  %1990 = vst [vmem:[%s15086_s29 + $0x388] sm:$0xff] %v1989_v49  ;;  %v1991_v50 = vld [vmem:[%s15078_s28 + $0x720] sm:$0xff]  ;;  %v1993_v51 = vld [vmem:[%s15078_s28 + $0x730] sm:$0xff] }
  0x4d   : > { %v1995_v52 = vld [vmem:[%s15078_s28 + $0x740] sm:$0xff]  ;;  %1992 = vst [vmem:[%s15086_s29 + $0x390] sm:$0xff] %v1991_v50  ;;  %1994 = vst [vmem:[%s15086_s29 + $0x398] sm:$0xff] %v1993_v51  ;;  %v1997_v53 = vld [vmem:[%s15078_s28 + $0x750] sm:$0xff] }
  0x4e   : > { %1996 = vst [vmem:[%s15086_s29 + $0x3a0] sm:$0xff] %v1995_v52  ;;  %v1999_v54 = vld [vmem:[%s15078_s28 + $0x760] sm:$0xff]  ;;  %v2001_v55 = vld [vmem:[%s15078_s28 + $0x770] sm:$0xff]  ;;  %1998 = vst [vmem:[%s15086_s29 + $0x3a8] sm:$0xff] %v1997_v53 }
  0x4f   : > { %2000 = vst [vmem:[%s15086_s29 + $0x3b0] sm:$0xff] %v1999_v54  ;;  %2002 = vst [vmem:[%s15086_s29 + $0x3b8] sm:$0xff] %v2001_v55  ;;  %v2003_v56 = vld [vmem:[%s15078_s28 + $0x780] sm:$0xff]  ;;  %v2005_v57 = vld [vmem:[%s15078_s28 + $0x790] sm:$0xff] }
  0x50   : > { %v2007_v58 = vld [vmem:[%s15078_s28 + $0x7a0] sm:$0xff]  ;;  %2004 = vst [vmem:[%s15086_s29 + $0x3c0] sm:$0xff] %v2003_v56  ;;  %2006 = vst [vmem:[%s15086_s29 + $0x3c8] sm:$0xff] %v2005_v57  ;;  %v2009_v59 = vld [vmem:[%s15078_s28 + $0x7b0] sm:$0xff] }
  0x51   : > { %2008 = vst [vmem:[%s15086_s29 + $0x3d0] sm:$0xff] %v2007_v58  ;;  %v2011_v60 = vld [vmem:[%s15078_s28 + $0x7c0] sm:$0xff]  ;;  %v2013_v61 = vld [vmem:[%s15078_s28 + $0x7d0] sm:$0xff]  ;;  %2010 = vst [vmem:[%s15086_s29 + $0x3d8] sm:$0xff] %v2009_v59 }
  0x52   : > { %2012 = vst [vmem:[%s15086_s29 + $0x3e0] sm:$0xff] %v2011_v60  ;;  %2014 = vst [vmem:[%s15086_s29 + $0x3e8] sm:$0xff] %v2013_v61  ;;  %v2015_v62 = vld [vmem:[%s15078_s28 + $0x7e0] sm:$0xff]  ;;  %v2017_v63 = vld [vmem:[%s15078_s28 + $0x7f0] sm:$0xff] }
  0x53   : > { %v2019_v0 = vld [vmem:[%s15078_s28 + $0x800] sm:$0xff]  ;;  %2016 = vst [vmem:[%s15086_s29 + $0x3f0] sm:$0xff] %v2015_v62  ;;  %2018 = vst [vmem:[%s15086_s29 + $0x3f8] sm:$0xff] %v2017_v63  ;;  %v2021_v1 = vld [vmem:[%s15078_s28 + $0x810] sm:$0xff] }
  0x54   : > { %2020 = vst [vmem:[%s15086_s29 + $0x400] sm:$0xff] %v2019_v0  ;;  %v2023_v2 = vld [vmem:[%s15078_s28 + $0x820] sm:$0xff]  ;;  %v2025_v3 = vld [vmem:[%s15078_s28 + $0x830] sm:$0xff]  ;;  %2022 = vst [vmem:[%s15086_s29 + $0x408] sm:$0xff] %v2021_v1 }
  0x55   : > { %2024 = vst [vmem:[%s15086_s29 + $0x410] sm:$0xff] %v2023_v2  ;;  %2026 = vst [vmem:[%s15086_s29 + $0x418] sm:$0xff] %v2025_v3  ;;  %v2027_v4 = vld [vmem:[%s15078_s28 + $0x840] sm:$0xff]  ;;  %v2029_v5 = vld [vmem:[%s15078_s28 + $0x850] sm:$0xff] }
  0x56   : > { %v2031_v6 = vld [vmem:[%s15078_s28 + $0x860] sm:$0xff]  ;;  %2028 = vst [vmem:[%s15086_s29 + $0x420] sm:$0xff] %v2027_v4  ;;  %2030 = vst [vmem:[%s15086_s29 + $0x428] sm:$0xff] %v2029_v5  ;;  %v2033_v7 = vld [vmem:[%s15078_s28 + $0x870] sm:$0xff] }
  0x57   : > { %2032 = vst [vmem:[%s15086_s29 + $0x430] sm:$0xff] %v2031_v6  ;;  %v2035_v8 = vld [vmem:[%s15078_s28 + $0x880] sm:$0xff]  ;;  %v2037_v9 = vld [vmem:[%s15078_s28 + $0x890] sm:$0xff]  ;;  %2034 = vst [vmem:[%s15086_s29 + $0x438] sm:$0xff] %v2033_v7 }
  0x58   : > { %2036 = vst [vmem:[%s15086_s29 + $0x440] sm:$0xff] %v2035_v8  ;;  %2038 = vst [vmem:[%s15086_s29 + $0x448] sm:$0xff] %v2037_v9  ;;  %v2039_v10 = vld [vmem:[%s15078_s28 + $0x8a0] sm:$0xff]  ;;  %v2041_v11 = vld [vmem:[%s15078_s28 + $0x8b0] sm:$0xff] }
  0x59   : > { %v2043_v12 = vld [vmem:[%s15078_s28 + $0x8c0] sm:$0xff]  ;;  %2040 = vst [vmem:[%s15086_s29 + $0x450] sm:$0xff] %v2039_v10  ;;  %2042 = vst [vmem:[%s15086_s29 + $0x458] sm:$0xff] %v2041_v11  ;;  %v2045_v13 = vld [vmem:[%s15078_s28 + $0x8d0] sm:$0xff] }
  0x5a   : > { %2044 = vst [vmem:[%s15086_s29 + $0x460] sm:$0xff] %v2043_v12  ;;  %v2047_v14 = vld [vmem:[%s15078_s28 + $0x8e0] sm:$0xff]  ;;  %v2049_v15 = vld [vmem:[%s15078_s28 + $0x8f0] sm:$0xff]  ;;  %2046 = vst [vmem:[%s15086_s29 + $0x468] sm:$0xff] %v2045_v13 }
  0x5b   : > { %2048 = vst [vmem:[%s15086_s29 + $0x470] sm:$0xff] %v2047_v14  ;;  %2050 = vst [vmem:[%s15086_s29 + $0x478] sm:$0xff] %v2049_v15  ;;  %v2051_v16 = vld [vmem:[%s15078_s28 + $0x900] sm:$0xff]  ;;  %v2053_v17 = vld [vmem:[%s15078_s28 + $0x910] sm:$0xff] }
  0x5c   : > { %v2055_v18 = vld [vmem:[%s15078_s28 + $0x920] sm:$0xff]  ;;  %2052 = vst [vmem:[%s15086_s29 + $0x480] sm:$0xff] %v2051_v16  ;;  %2054 = vst [vmem:[%s15086_s29 + $0x488] sm:$0xff] %v2053_v17  ;;  %v2057_v19 = vld [vmem:[%s15078_s28 + $0x930] sm:$0xff] }
  0x5d   : > { %2056 = vst [vmem:[%s15086_s29 + $0x490] sm:$0xff] %v2055_v18  ;;  %v2059_v20 = vld [vmem:[%s15078_s28 + $0x940] sm:$0xff]  ;;  %v2061_v21 = vld [vmem:[%s15078_s28 + $0x950] sm:$0xff]  ;;  %2058 = vst [vmem:[%s15086_s29 + $0x498] sm:$0xff] %v2057_v19 }
  0x5e   : > { %2060 = vst [vmem:[%s15086_s29 + $0x4a0] sm:$0xff] %v2059_v20  ;;  %2062 = vst [vmem:[%s15086_s29 + $0x4a8] sm:$0xff] %v2061_v21  ;;  %v2063_v22 = vld [vmem:[%s15078_s28 + $0x960] sm:$0xff]  ;;  %v2065_v23 = vld [vmem:[%s15078_s28 + $0x970] sm:$0xff] }
  0x5f   : > { %v2067_v24 = vld [vmem:[%s15078_s28 + $0x980] sm:$0xff]  ;;  %2064 = vst [vmem:[%s15086_s29 + $0x4b0] sm:$0xff] %v2063_v22  ;;  %2066 = vst [vmem:[%s15086_s29 + $0x4b8] sm:$0xff] %v2065_v23  ;;  %v2069_v25 = vld [vmem:[%s15078_s28 + $0x990] sm:$0xff] }
  0x60   : > { %2068 = vst [vmem:[%s15086_s29 + $0x4c0] sm:$0xff] %v2067_v24  ;;  %v2071_v26 = vld [vmem:[%s15078_s28 + $0x9a0] sm:$0xff]  ;;  %v2073_v27 = vld [vmem:[%s15078_s28 + $0x9b0] sm:$0xff]  ;;  %2070 = vst [vmem:[%s15086_s29 + $0x4c8] sm:$0xff] %v2069_v25 }
  0x61   : > { %2072 = vst [vmem:[%s15086_s29 + $0x4d0] sm:$0xff] %v2071_v26  ;;  %2074 = vst [vmem:[%s15086_s29 + $0x4d8] sm:$0xff] %v2073_v27  ;;  %v2075_v28 = vld [vmem:[%s15078_s28 + $0x9c0] sm:$0xff]  ;;  %v2077_v29 = vld [vmem:[%s15078_s28 + $0x9d0] sm:$0xff] }
  0x62   : > { %v2079_v30 = vld [vmem:[%s15078_s28 + $0x9e0] sm:$0xff]  ;;  %2076 = vst [vmem:[%s15086_s29 + $0x4e0] sm:$0xff] %v2075_v28  ;;  %2078 = vst [vmem:[%s15086_s29 + $0x4e8] sm:$0xff] %v2077_v29  ;;  %v2081_v31 = vld [vmem:[%s15078_s28 + $0x9f0] sm:$0xff] }
  0x63   : > { %2080 = vst [vmem:[%s15086_s29 + $0x4f0] sm:$0xff] %v2079_v30  ;;  %v2083_v32 = vld [vmem:[%s15078_s28 + $0xa00] sm:$0xff]  ;;  %v2085_v33 = vld [vmem:[%s15078_s28 + $0xa10] sm:$0xff]  ;;  %2082 = vst [vmem:[%s15086_s29 + $0x4f8] sm:$0xff] %v2081_v31 }
  0x64   : > { %2084 = vst [vmem:[%s15086_s29 + $0x500] sm:$0xff] %v2083_v32  ;;  %2086 = vst [vmem:[%s15086_s29 + $0x508] sm:$0xff] %v2085_v33  ;;  %v2087_v34 = vld [vmem:[%s15078_s28 + $0xa20] sm:$0xff]  ;;  %v2089_v35 = vld [vmem:[%s15078_s28 + $0xa30] sm:$0xff] }
  0x65   : > { %v2091_v36 = vld [vmem:[%s15078_s28 + $0xa40] sm:$0xff]  ;;  %2088 = vst [vmem:[%s15086_s29 + $0x510] sm:$0xff] %v2087_v34  ;;  %2090 = vst [vmem:[%s15086_s29 + $0x518] sm:$0xff] %v2089_v35  ;;  %v2093_v37 = vld [vmem:[%s15078_s28 + $0xa50] sm:$0xff] }
  0x66   : > { %2092 = vst [vmem:[%s15086_s29 + $0x520] sm:$0xff] %v2091_v36  ;;  %v2095_v38 = vld [vmem:[%s15078_s28 + $0xa60] sm:$0xff]  ;;  %v2097_v39 = vld [vmem:[%s15078_s28 + $0xa70] sm:$0xff]  ;;  %2094 = vst [vmem:[%s15086_s29 + $0x528] sm:$0xff] %v2093_v37 }
  0x67   : > { %2096 = vst [vmem:[%s15086_s29 + $0x530] sm:$0xff] %v2095_v38  ;;  %2098 = vst [vmem:[%s15086_s29 + $0x538] sm:$0xff] %v2097_v39  ;;  %v2099_v40 = vld [vmem:[%s15078_s28 + $0xa80] sm:$0xff]  ;;  %v2101_v41 = vld [vmem:[%s15078_s28 + $0xa90] sm:$0xff] }
  0x68   : > { %v2103_v42 = vld [vmem:[%s15078_s28 + $0xaa0] sm:$0xff]  ;;  %2100 = vst [vmem:[%s15086_s29 + $0x540] sm:$0xff] %v2099_v40  ;;  %2102 = vst [vmem:[%s15086_s29 + $0x548] sm:$0xff] %v2101_v41  ;;  %v2105_v43 = vld [vmem:[%s15078_s28 + $0xab0] sm:$0xff] }
  0x69   : > { %2104 = vst [vmem:[%s15086_s29 + $0x550] sm:$0xff] %v2103_v42  ;;  %v2107_v44 = vld [vmem:[%s15078_s28 + $0xac0] sm:$0xff]  ;;  %v2109_v45 = vld [vmem:[%s15078_s28 + $0xad0] sm:$0xff]  ;;  %2106 = vst [vmem:[%s15086_s29 + $0x558] sm:$0xff] %v2105_v43 }
  0x6a   : > { %2108 = vst [vmem:[%s15086_s29 + $0x560] sm:$0xff] %v2107_v44  ;;  %2110 = vst [vmem:[%s15086_s29 + $0x568] sm:$0xff] %v2109_v45  ;;  %v2111_v46 = vld [vmem:[%s15078_s28 + $0xae0] sm:$0xff]  ;;  %v2113_v47 = vld [vmem:[%s15078_s28 + $0xaf0] sm:$0xff] }
  0x6b   : > { %v2115_v48 = vld [vmem:[%s15078_s28 + $0xb00] sm:$0xff]  ;;  %2112 = vst [vmem:[%s15086_s29 + $0x570] sm:$0xff] %v2111_v46  ;;  %2114 = vst [vmem:[%s15086_s29 + $0x578] sm:$0xff] %v2113_v47  ;;  %v2117_v49 = vld [vmem:[%s15078_s28 + $0xb10] sm:$0xff] }
  0x6c   : > { %2116 = vst [vmem:[%s15086_s29 + $0x580] sm:$0xff] %v2115_v48  ;;  %v2119_v50 = vld [vmem:[%s15078_s28 + $0xb20] sm:$0xff]  ;;  %v2121_v51 = vld [vmem:[%s15078_s28 + $0xb30] sm:$0xff]  ;;  %2118 = vst [vmem:[%s15086_s29 + $0x588] sm:$0xff] %v2117_v49 }
  0x6d   : > { %2120 = vst [vmem:[%s15086_s29 + $0x590] sm:$0xff] %v2119_v50  ;;  %2122 = vst [vmem:[%s15086_s29 + $0x598] sm:$0xff] %v2121_v51  ;;  %v2123_v52 = vld [vmem:[%s15078_s28 + $0xb40] sm:$0xff]  ;;  %v2125_v53 = vld [vmem:[%s15078_s28 + $0xb50] sm:$0xff] }
  0x6e   : > { %v2127_v54 = vld [vmem:[%s15078_s28 + $0xb60] sm:$0xff]  ;;  %2124 = vst [vmem:[%s15086_s29 + $0x5a0] sm:$0xff] %v2123_v52  ;;  %2126 = vst [vmem:[%s15086_s29 + $0x5a8] sm:$0xff] %v2125_v53  ;;  %v2129_v55 = vld [vmem:[%s15078_s28 + $0xb70] sm:$0xff] }
  0x6f   : > { %2128 = vst [vmem:[%s15086_s29 + $0x5b0] sm:$0xff] %v2127_v54  ;;  %v2131_v56 = vld [vmem:[%s15078_s28 + $0xb80] sm:$0xff]  ;;  %v2133_v57 = vld [vmem:[%s15078_s28 + $0xb90] sm:$0xff]  ;;  %2130 = vst [vmem:[%s15086_s29 + $0x5b8] sm:$0xff] %v2129_v55 }
  0x70   : > { %2132 = vst [vmem:[%s15086_s29 + $0x5c0] sm:$0xff] %v2131_v56  ;;  %2134 = vst [vmem:[%s15086_s29 + $0x5c8] sm:$0xff] %v2133_v57  ;;  %v2135_v58 = vld [vmem:[%s15078_s28 + $0xba0] sm:$0xff]  ;;  %v2137_v59 = vld [vmem:[%s15078_s28 + $0xbb0] sm:$0xff] }
  0x71   : > { %v2139_v60 = vld [vmem:[%s15078_s28 + $0xbc0] sm:$0xff]  ;;  %2136 = vst [vmem:[%s15086_s29 + $0x5d0] sm:$0xff] %v2135_v58  ;;  %2138 = vst [vmem:[%s15086_s29 + $0x5d8] sm:$0xff] %v2137_v59  ;;  %v2141_v61 = vld [vmem:[%s15078_s28 + $0xbd0] sm:$0xff] }
  0x72   : > { %2140 = vst [vmem:[%s15086_s29 + $0x5e0] sm:$0xff] %v2139_v60  ;;  %v2143_v62 = vld [vmem:[%s15078_s28 + $0xbe0] sm:$0xff]  ;;  %v2145_v63 = vld [vmem:[%s15078_s28 + $0xbf0] sm:$0xff]  ;;  %2142 = vst [vmem:[%s15086_s29 + $0x5e8] sm:$0xff] %v2141_v61 }
  0x73   : > { %2144 = vst [vmem:[%s15086_s29 + $0x5f0] sm:$0xff] %v2143_v62  ;;  %2146 = vst [vmem:[%s15086_s29 + $0x5f8] sm:$0xff] %v2145_v63  ;;  %v2147_v0 = vld [vmem:[%s15078_s28 + $0xc00] sm:$0xff]  ;;  %v2149_v1 = vld [vmem:[%s15078_s28 + $0xc10] sm:$0xff] }
  0x74   : > { %v2151_v2 = vld [vmem:[%s15078_s28 + $0xc20] sm:$0xff]  ;;  %2148 = vst [vmem:[%s15086_s29 + $0x600] sm:$0xff] %v2147_v0  ;;  %2150 = vst [vmem:[%s15086_s29 + $0x608] sm:$0xff] %v2149_v1  ;;  %v2153_v3 = vld [vmem:[%s15078_s28 + $0xc30] sm:$0xff] }
  0x75   : > { %2152 = vst [vmem:[%s15086_s29 + $0x610] sm:$0xff] %v2151_v2  ;;  %v2155_v4 = vld [vmem:[%s15078_s28 + $0xc40] sm:$0xff]  ;;  %v2157_v5 = vld [vmem:[%s15078_s28 + $0xc50] sm:$0xff]  ;;  %2154 = vst [vmem:[%s15086_s29 + $0x618] sm:$0xff] %v2153_v3 }
  0x76   : > { %2156 = vst [vmem:[%s15086_s29 + $0x620] sm:$0xff] %v2155_v4  ;;  %2158 = vst [vmem:[%s15086_s29 + $0x628] sm:$0xff] %v2157_v5  ;;  %v2159_v6 = vld [vmem:[%s15078_s28 + $0xc60] sm:$0xff]  ;;  %v2161_v7 = vld [vmem:[%s15078_s28 + $0xc70] sm:$0xff] }
  0x77   : > { %v2163_v8 = vld [vmem:[%s15078_s28 + $0xc80] sm:$0xff]  ;;  %2160 = vst [vmem:[%s15086_s29 + $0x630] sm:$0xff] %v2159_v6  ;;  %2162 = vst [vmem:[%s15086_s29 + $0x638] sm:$0xff] %v2161_v7  ;;  %v2165_v9 = vld [vmem:[%s15078_s28 + $0xc90] sm:$0xff] }
  0x78   : > { %2164 = vst [vmem:[%s15086_s29 + $0x640] sm:$0xff] %v2163_v8  ;;  %v2167_v10 = vld [vmem:[%s15078_s28 + $0xca0] sm:$0xff]  ;;  %v2169_v11 = vld [vmem:[%s15078_s28 + $0xcb0] sm:$0xff]  ;;  %2166 = vst [vmem:[%s15086_s29 + $0x648] sm:$0xff] %v2165_v9 }
  0x79   : > { %2168 = vst [vmem:[%s15086_s29 + $0x650] sm:$0xff] %v2167_v10  ;;  %2170 = vst [vmem:[%s15086_s29 + $0x658] sm:$0xff] %v2169_v11  ;;  %v2171_v12 = vld [vmem:[%s15078_s28 + $0xcc0] sm:$0xff]  ;;  %v2173_v13 = vld [vmem:[%s15078_s28 + $0xcd0] sm:$0xff] }
  0x7a   : > { %v2175_v14 = vld [vmem:[%s15078_s28 + $0xce0] sm:$0xff]  ;;  %2172 = vst [vmem:[%s15086_s29 + $0x660] sm:$0xff] %v2171_v12  ;;  %2174 = vst [vmem:[%s15086_s29 + $0x668] sm:$0xff] %v2173_v13  ;;  %v2177_v15 = vld [vmem:[%s15078_s28 + $0xcf0] sm:$0xff] }
  0x7b   : > { %2176 = vst [vmem:[%s15086_s29 + $0x670] sm:$0xff] %v2175_v14  ;;  %v2179_v16 = vld [vmem:[%s15078_s28 + $0xd00] sm:$0xff]  ;;  %v2181_v17 = vld [vmem:[%s15078_s28 + $0xd10] sm:$0xff]  ;;  %2178 = vst [vmem:[%s15086_s29 + $0x678] sm:$0xff] %v2177_v15 }
  0x7c   : > { %2180 = vst [vmem:[%s15086_s29 + $0x680] sm:$0xff] %v2179_v16  ;;  %2182 = vst [vmem:[%s15086_s29 + $0x688] sm:$0xff] %v2181_v17  ;;  %v2183_v18 = vld [vmem:[%s15078_s28 + $0xd20] sm:$0xff]  ;;  %v2185_v19 = vld [vmem:[%s15078_s28 + $0xd30] sm:$0xff] }
  0x7d   : > { %v2187_v20 = vld [vmem:[%s15078_s28 + $0xd40] sm:$0xff]  ;;  %2184 = vst [vmem:[%s15086_s29 + $0x690] sm:$0xff] %v2183_v18  ;;  %2186 = vst [vmem:[%s15086_s29 + $0x698] sm:$0xff] %v2185_v19  ;;  %v2189_v21 = vld [vmem:[%s15078_s28 + $0xd50] sm:$0xff] }
  0x7e   : > { %2188 = vst [vmem:[%s15086_s29 + $0x6a0] sm:$0xff] %v2187_v20  ;;  %v2191_v22 = vld [vmem:[%s15078_s28 + $0xd60] sm:$0xff]  ;;  %v2193_v23 = vld [vmem:[%s15078_s28 + $0xd70] sm:$0xff]  ;;  %2190 = vst [vmem:[%s15086_s29 + $0x6a8] sm:$0xff] %v2189_v21 }
  0x7f   : > { %2192 = vst [vmem:[%s15086_s29 + $0x6b0] sm:$0xff] %v2191_v22  ;;  %2194 = vst [vmem:[%s15086_s29 + $0x6b8] sm:$0xff] %v2193_v23  ;;  %v2195_v24 = vld [vmem:[%s15078_s28 + $0xd80] sm:$0xff]  ;;  %v2197_v25 = vld [vmem:[%s15078_s28 + $0xd90] sm:$0xff] }
  0x80   : > { %v2199_v26 = vld [vmem:[%s15078_s28 + $0xda0] sm:$0xff]  ;;  %2196 = vst [vmem:[%s15086_s29 + $0x6c0] sm:$0xff] %v2195_v24  ;;  %2198 = vst [vmem:[%s15086_s29 + $0x6c8] sm:$0xff] %v2197_v25  ;;  %v2201_v27 = vld [vmem:[%s15078_s28 + $0xdb0] sm:$0xff] }
  0x81   : > { %2200 = vst [vmem:[%s15086_s29 + $0x6d0] sm:$0xff] %v2199_v26  ;;  %v2203_v28 = vld [vmem:[%s15078_s28 + $0xdc0] sm:$0xff]  ;;  %v2205_v29 = vld [vmem:[%s15078_s28 + $0xdd0] sm:$0xff]  ;;  %2202 = vst [vmem:[%s15086_s29 + $0x6d8] sm:$0xff] %v2201_v27 }
  0x82   : > { %2204 = vst [vmem:[%s15086_s29 + $0x6e0] sm:$0xff] %v2203_v28  ;;  %2206 = vst [vmem:[%s15086_s29 + $0x6e8] sm:$0xff] %v2205_v29  ;;  %v2207_v30 = vld [vmem:[%s15078_s28 + $0xde0] sm:$0xff]  ;;  %v2209_v31 = vld [vmem:[%s15078_s28 + $0xdf0] sm:$0xff] }
  0x83   : > { %v2211_v32 = vld [vmem:[%s15078_s28 + $0xe00] sm:$0xff]  ;;  %2208 = vst [vmem:[%s15086_s29 + $0x6f0] sm:$0xff] %v2207_v30  ;;  %2210 = vst [vmem:[%s15086_s29 + $0x6f8] sm:$0xff] %v2209_v31  ;;  %v2213_v33 = vld [vmem:[%s15078_s28 + $0xe10] sm:$0xff] }
  0x84   : > { %2212 = vst [vmem:[%s15086_s29 + $0x700] sm:$0xff] %v2211_v32  ;;  %v2215_v34 = vld [vmem:[%s15078_s28 + $0xe20] sm:$0xff]  ;;  %v2217_v35 = vld [vmem:[%s15078_s28 + $0xe30] sm:$0xff]  ;;  %2214 = vst [vmem:[%s15086_s29 + $0x708] sm:$0xff] %v2213_v33 }
  0x85   : > { %2216 = vst [vmem:[%s15086_s29 + $0x710] sm:$0xff] %v2215_v34  ;;  %2218 = vst [vmem:[%s15086_s29 + $0x718] sm:$0xff] %v2217_v35  ;;  %v2219_v36 = vld [vmem:[%s15078_s28 + $0xe40] sm:$0xff]  ;;  %v2221_v37 = vld [vmem:[%s15078_s28 + $0xe50] sm:$0xff] }
  0x86   : > { %v2223_v38 = vld [vmem:[%s15078_s28 + $0xe60] sm:$0xff]  ;;  %2220 = vst [vmem:[%s15086_s29 + $0x720] sm:$0xff] %v2219_v36  ;;  %2222 = vst [vmem:[%s15086_s29 + $0x728] sm:$0xff] %v2221_v37  ;;  %v2225_v39 = vld [vmem:[%s15078_s28 + $0xe70] sm:$0xff] }
  0x87   : > { %2224 = vst [vmem:[%s15086_s29 + $0x730] sm:$0xff] %v2223_v38  ;;  %v2227_v40 = vld [vmem:[%s15078_s28 + $0xe80] sm:$0xff]  ;;  %v2229_v41 = vld [vmem:[%s15078_s28 + $0xe90] sm:$0xff]  ;;  %2226 = vst [vmem:[%s15086_s29 + $0x738] sm:$0xff] %v2225_v39 }
  0x88   : > { %2228 = vst [vmem:[%s15086_s29 + $0x740] sm:$0xff] %v2227_v40  ;;  %2230 = vst [vmem:[%s15086_s29 + $0x748] sm:$0xff] %v2229_v41  ;;  %v2231_v42 = vld [vmem:[%s15078_s28 + $0xea0] sm:$0xff]  ;;  %v2233_v43 = vld [vmem:[%s15078_s28 + $0xeb0] sm:$0xff] }
  0x89   : > { %v2235_v44 = vld [vmem:[%s15078_s28 + $0xec0] sm:$0xff]  ;;  %2232 = vst [vmem:[%s15086_s29 + $0x750] sm:$0xff] %v2231_v42  ;;  %2234 = vst [vmem:[%s15086_s29 + $0x758] sm:$0xff] %v2233_v43  ;;  %v2237_v45 = vld [vmem:[%s15078_s28 + $0xed0] sm:$0xff] }
  0x8a   : > { %2236 = vst [vmem:[%s15086_s29 + $0x760] sm:$0xff] %v2235_v44  ;;  %v2239_v46 = vld [vmem:[%s15078_s28 + $0xee0] sm:$0xff]  ;;  %v2241_v47 = vld [vmem:[%s15078_s28 + $0xef0] sm:$0xff]  ;;  %2238 = vst [vmem:[%s15086_s29 + $0x768] sm:$0xff] %v2237_v45 }
  0x8b   : > { %2240 = vst [vmem:[%s15086_s29 + $0x770] sm:$0xff] %v2239_v46  ;;  %2242 = vst [vmem:[%s15086_s29 + $0x778] sm:$0xff] %v2241_v47  ;;  %v2243_v48 = vld [vmem:[%s15078_s28 + $0xf00] sm:$0xff]  ;;  %v2245_v49 = vld [vmem:[%s15078_s28 + $0xf10] sm:$0xff] }
  0x8c   : > { %v2247_v50 = vld [vmem:[%s15078_s28 + $0xf20] sm:$0xff]  ;;  %2244 = vst [vmem:[%s15086_s29 + $0x780] sm:$0xff] %v2243_v48  ;;  %2246 = vst [vmem:[%s15086_s29 + $0x788] sm:$0xff] %v2245_v49  ;;  %v2249_v51 = vld [vmem:[%s15078_s28 + $0xf30] sm:$0xff] }
  0x8d   : > { %2248 = vst [vmem:[%s15086_s29 + $0x790] sm:$0xff] %v2247_v50  ;;  %v2251_v52 = vld [vmem:[%s15078_s28 + $0xf40] sm:$0xff]  ;;  %v2253_v53 = vld [vmem:[%s15078_s28 + $0xf50] sm:$0xff]  ;;  %2250 = vst [vmem:[%s15086_s29 + $0x798] sm:$0xff] %v2249_v51 }
  0x8e   : > { %2252 = vst [vmem:[%s15086_s29 + $0x7a0] sm:$0xff] %v2251_v52  ;;  %2254 = vst [vmem:[%s15086_s29 + $0x7a8] sm:$0xff] %v2253_v53  ;;  %v2255_v54 = vld [vmem:[%s15078_s28 + $0xf60] sm:$0xff]  ;;  %v2257_v55 = vld [vmem:[%s15078_s28 + $0xf70] sm:$0xff] }
  0x8f   : > { %v2259_v56 = vld [vmem:[%s15078_s28 + $0xf80] sm:$0xff]  ;;  %2256 = vst [vmem:[%s15086_s29 + $0x7b0] sm:$0xff] %v2255_v54  ;;  %2258 = vst [vmem:[%s15086_s29 + $0x7b8] sm:$0xff] %v2257_v55  ;;  %v2261_v57 = vld [vmem:[%s15078_s28 + $0xf90] sm:$0xff] }
  0x90   : > { %2260 = vst [vmem:[%s15086_s29 + $0x7c0] sm:$0xff] %v2259_v56  ;;  %v2263_v58 = vld [vmem:[%s15078_s28 + $0xfa0] sm:$0xff]  ;;  %v2265_v59 = vld [vmem:[%s15078_s28 + $0xfb0] sm:$0xff]  ;;  %2262 = vst [vmem:[%s15086_s29 + $0x7c8] sm:$0xff] %v2261_v57 }
  0x91   : > { %2264 = vst [vmem:[%s15086_s29 + $0x7d0] sm:$0xff] %v2263_v58  ;;  %2266 = vst [vmem:[%s15086_s29 + $0x7d8] sm:$0xff] %v2265_v59  ;;  %v2267_v60 = vld [vmem:[%s15078_s28 + $0xfc0] sm:$0xff]  ;;  %v2269_v61 = vld [vmem:[%s15078_s28 + $0xfd0] sm:$0xff] }
  0x92   : > { %v2271_v62 = vld [vmem:[%s15078_s28 + $0xfe0] sm:$0xff]  ;;  %2268 = vst [vmem:[%s15086_s29 + $0x7e0] sm:$0xff] %v2267_v60  ;;  %2270 = vst [vmem:[%s15086_s29 + $0x7e8] sm:$0xff] %v2269_v61  ;;  %v2273_v63 = vld [vmem:[%s15078_s28 + $0xff0] sm:$0xff] }
  0x93   : > { %2272 = vst [vmem:[%s15086_s29 + $0x7f0] sm:$0xff] %v2271_v62  ;;  %v2275_v0 = vld [vmem:[%s15078_s28 + $0x1000] sm:$0xff]  ;;  %v2277_v1 = vld [vmem:[%s15078_s28 + $0x1010] sm:$0xff]  ;;  %2274 = vst [vmem:[%s15086_s29 + $0x7f8] sm:$0xff] %v2273_v63 }
  0x94   : > { %2276 = vst [vmem:[%s15086_s29 + $0x800] sm:$0xff] %v2275_v0  ;;  %2278 = vst [vmem:[%s15086_s29 + $0x808] sm:$0xff] %v2277_v1  ;;  %v2279_v2 = vld [vmem:[%s15078_s28 + $0x1020] sm:$0xff]  ;;  %v2281_v3 = vld [vmem:[%s15078_s28 + $0x1030] sm:$0xff] }
  0x95   : > { %v2283_v4 = vld [vmem:[%s15078_s28 + $0x1040] sm:$0xff]  ;;  %2280 = vst [vmem:[%s15086_s29 + $0x810] sm:$0xff] %v2279_v2  ;;  %2282 = vst [vmem:[%s15086_s29 + $0x818] sm:$0xff] %v2281_v3  ;;  %v2285_v5 = vld [vmem:[%s15078_s28 + $0x1050] sm:$0xff] }
  0x96   : > { %2284 = vst [vmem:[%s15086_s29 + $0x820] sm:$0xff] %v2283_v4  ;;  %v2287_v6 = vld [vmem:[%s15078_s28 + $0x1060] sm:$0xff]  ;;  %v2289_v7 = vld [vmem:[%s15078_s28 + $0x1070] sm:$0xff]  ;;  %2286 = vst [vmem:[%s15086_s29 + $0x828] sm:$0xff] %v2285_v5 }
  0x97   : > { %2288 = vst [vmem:[%s15086_s29 + $0x830] sm:$0xff] %v2287_v6  ;;  %2290 = vst [vmem:[%s15086_s29 + $0x838] sm:$0xff] %v2289_v7  ;;  %v2291_v8 = vld [vmem:[%s15078_s28 + $0x1080] sm:$0xff]  ;;  %v2293_v9 = vld [vmem:[%s15078_s28 + $0x1090] sm:$0xff] }
  0x98   : > { %v2295_v10 = vld [vmem:[%s15078_s28 + $0x10a0] sm:$0xff]  ;;  %2292 = vst [vmem:[%s15086_s29 + $0x840] sm:$0xff] %v2291_v8  ;;  %2294 = vst [vmem:[%s15086_s29 + $0x848] sm:$0xff] %v2293_v9  ;;  %v2297_v11 = vld [vmem:[%s15078_s28 + $0x10b0] sm:$0xff] }
  0x99   : > { %2296 = vst [vmem:[%s15086_s29 + $0x850] sm:$0xff] %v2295_v10  ;;  %v2299_v12 = vld [vmem:[%s15078_s28 + $0x10c0] sm:$0xff]  ;;  %v2301_v13 = vld [vmem:[%s15078_s28 + $0x10d0] sm:$0xff]  ;;  %2298 = vst [vmem:[%s15086_s29 + $0x858] sm:$0xff] %v2297_v11 }
  0x9a   : > { %2300 = vst [vmem:[%s15086_s29 + $0x860] sm:$0xff] %v2299_v12  ;;  %2302 = vst [vmem:[%s15086_s29 + $0x868] sm:$0xff] %v2301_v13  ;;  %v2303_v14 = vld [vmem:[%s15078_s28 + $0x10e0] sm:$0xff]  ;;  %v2305_v15 = vld [vmem:[%s15078_s28 + $0x10f0] sm:$0xff] }
  0x9b   : > { %v2307_v16 = vld [vmem:[%s15078_s28 + $0x1100] sm:$0xff]  ;;  %2304 = vst [vmem:[%s15086_s29 + $0x870] sm:$0xff] %v2303_v14  ;;  %2306 = vst [vmem:[%s15086_s29 + $0x878] sm:$0xff] %v2305_v15  ;;  %v2309_v17 = vld [vmem:[%s15078_s28 + $0x1110] sm:$0xff] }
  0x9c   : > { %2308 = vst [vmem:[%s15086_s29 + $0x880] sm:$0xff] %v2307_v16  ;;  %v2311_v18 = vld [vmem:[%s15078_s28 + $0x1120] sm:$0xff]  ;;  %v2313_v19 = vld [vmem:[%s15078_s28 + $0x1130] sm:$0xff]  ;;  %2310 = vst [vmem:[%s15086_s29 + $0x888] sm:$0xff] %v2309_v17 }
  0x9d   : > { %2312 = vst [vmem:[%s15086_s29 + $0x890] sm:$0xff] %v2311_v18  ;;  %2314 = vst [vmem:[%s15086_s29 + $0x898] sm:$0xff] %v2313_v19  ;;  %v2315_v20 = vld [vmem:[%s15078_s28 + $0x1140] sm:$0xff]  ;;  %v2317_v21 = vld [vmem:[%s15078_s28 + $0x1150] sm:$0xff] }
  0x9e   : > { %v2319_v22 = vld [vmem:[%s15078_s28 + $0x1160] sm:$0xff]  ;;  %2316 = vst [vmem:[%s15086_s29 + $0x8a0] sm:$0xff] %v2315_v20  ;;  %2318 = vst [vmem:[%s15086_s29 + $0x8a8] sm:$0xff] %v2317_v21  ;;  %v2321_v23 = vld [vmem:[%s15078_s28 + $0x1170] sm:$0xff] }
  0x9f   : > { %2320 = vst [vmem:[%s15086_s29 + $0x8b0] sm:$0xff] %v2319_v22  ;;  %v2323_v24 = vld [vmem:[%s15078_s28 + $0x1180] sm:$0xff]  ;;  %v2325_v25 = vld [vmem:[%s15078_s28 + $0x1190] sm:$0xff]  ;;  %2322 = vst [vmem:[%s15086_s29 + $0x8b8] sm:$0xff] %v2321_v23 }
  0xa0   : > { %2324 = vst [vmem:[%s15086_s29 + $0x8c0] sm:$0xff] %v2323_v24  ;;  %2326 = vst [vmem:[%s15086_s29 + $0x8c8] sm:$0xff] %v2325_v25  ;;  %v2327_v26 = vld [vmem:[%s15078_s28 + $0x11a0] sm:$0xff]  ;;  %v2329_v27 = vld [vmem:[%s15078_s28 + $0x11b0] sm:$0xff] }
  0xa1   : > { %v2331_v28 = vld [vmem:[%s15078_s28 + $0x11c0] sm:$0xff]  ;;  %2328 = vst [vmem:[%s15086_s29 + $0x8d0] sm:$0xff] %v2327_v26  ;;  %2330 = vst [vmem:[%s15086_s29 + $0x8d8] sm:$0xff] %v2329_v27  ;;  %v2333_v29 = vld [vmem:[%s15078_s28 + $0x11d0] sm:$0xff] }
  0xa2   : > { %2332 = vst [vmem:[%s15086_s29 + $0x8e0] sm:$0xff] %v2331_v28  ;;  %v2335_v30 = vld [vmem:[%s15078_s28 + $0x11e0] sm:$0xff]  ;;  %v2337_v31 = vld [vmem:[%s15078_s28 + $0x11f0] sm:$0xff]  ;;  %2334 = vst [vmem:[%s15086_s29 + $0x8e8] sm:$0xff] %v2333_v29 }
  0xa3   : > { %2336 = vst [vmem:[%s15086_s29 + $0x8f0] sm:$0xff] %v2335_v30  ;;  %2338 = vst [vmem:[%s15086_s29 + $0x8f8] sm:$0xff] %v2337_v31  ;;  %v2339_v32 = vld [vmem:[%s15078_s28 + $0x1200] sm:$0xff]  ;;  %v2341_v33 = vld [vmem:[%s15078_s28 + $0x1210] sm:$0xff] }
  0xa4   : > { %v2343_v34 = vld [vmem:[%s15078_s28 + $0x1220] sm:$0xff]  ;;  %2340 = vst [vmem:[%s15086_s29 + $0x900] sm:$0xff] %v2339_v32  ;;  %2342 = vst [vmem:[%s15086_s29 + $0x908] sm:$0xff] %v2341_v33  ;;  %v2345_v35 = vld [vmem:[%s15078_s28 + $0x1230] sm:$0xff] }
  0xa5   : > { %2344 = vst [vmem:[%s15086_s29 + $0x910] sm:$0xff] %v2343_v34  ;;  %v2347_v36 = vld [vmem:[%s15078_s28 + $0x1240] sm:$0xff]  ;;  %v2349_v37 = vld [vmem:[%s15078_s28 + $0x1250] sm:$0xff]  ;;  %2346 = vst [vmem:[%s15086_s29 + $0x918] sm:$0xff] %v2345_v35 }
  0xa6   : > { %2348 = vst [vmem:[%s15086_s29 + $0x920] sm:$0xff] %v2347_v36  ;;  %2350 = vst [vmem:[%s15086_s29 + $0x928] sm:$0xff] %v2349_v37  ;;  %v2351_v38 = vld [vmem:[%s15078_s28 + $0x1260] sm:$0xff]  ;;  %v2353_v39 = vld [vmem:[%s15078_s28 + $0x1270] sm:$0xff] }
  0xa7   : > { %v2355_v40 = vld [vmem:[%s15078_s28 + $0x1280] sm:$0xff]  ;;  %2352 = vst [vmem:[%s15086_s29 + $0x930] sm:$0xff] %v2351_v38  ;;  %2354 = vst [vmem:[%s15086_s29 + $0x938] sm:$0xff] %v2353_v39  ;;  %v2357_v41 = vld [vmem:[%s15078_s28 + $0x1290] sm:$0xff] }
  0xa8   : > { %2356 = vst [vmem:[%s15086_s29 + $0x940] sm:$0xff] %v2355_v40  ;;  %v2359_v42 = vld [vmem:[%s15078_s28 + $0x12a0] sm:$0xff]  ;;  %v2361_v43 = vld [vmem:[%s15078_s28 + $0x12b0] sm:$0xff]  ;;  %2358 = vst [vmem:[%s15086_s29 + $0x948] sm:$0xff] %v2357_v41 }
  0xa9   : > { %2360 = vst [vmem:[%s15086_s29 + $0x950] sm:$0xff] %v2359_v42  ;;  %2362 = vst [vmem:[%s15086_s29 + $0x958] sm:$0xff] %v2361_v43  ;;  %v2363_v44 = vld [vmem:[%s15078_s28 + $0x12c0] sm:$0xff]  ;;  %v2365_v45 = vld [vmem:[%s15078_s28 + $0x12d0] sm:$0xff] }
  0xaa   : > { %v2367_v46 = vld [vmem:[%s15078_s28 + $0x12e0] sm:$0xff]  ;;  %2364 = vst [vmem:[%s15086_s29 + $0x960] sm:$0xff] %v2363_v44  ;;  %2366 = vst [vmem:[%s15086_s29 + $0x968] sm:$0xff] %v2365_v45  ;;  %v2369_v47 = vld [vmem:[%s15078_s28 + $0x12f0] sm:$0xff] }
  0xab   : > { %2368 = vst [vmem:[%s15086_s29 + $0x970] sm:$0xff] %v2367_v46  ;;  %v2371_v48 = vld [vmem:[%s15078_s28 + $0x1300] sm:$0xff]  ;;  %v2373_v49 = vld [vmem:[%s15078_s28 + $0x1310] sm:$0xff]  ;;  %2370 = vst [vmem:[%s15086_s29 + $0x978] sm:$0xff] %v2369_v47 }
  0xac   : > { %2372 = vst [vmem:[%s15086_s29 + $0x980] sm:$0xff] %v2371_v48  ;;  %2374 = vst [vmem:[%s15086_s29 + $0x988] sm:$0xff] %v2373_v49  ;;  %v2375_v50 = vld [vmem:[%s15078_s28 + $0x1320] sm:$0xff]  ;;  %v2377_v51 = vld [vmem:[%s15078_s28 + $0x1330] sm:$0xff] }
  0xad   : > { %v2379_v52 = vld [vmem:[%s15078_s28 + $0x1340] sm:$0xff]  ;;  %2376 = vst [vmem:[%s15086_s29 + $0x990] sm:$0xff] %v2375_v50  ;;  %2378 = vst [vmem:[%s15086_s29 + $0x998] sm:$0xff] %v2377_v51  ;;  %v2381_v53 = vld [vmem:[%s15078_s28 + $0x1350] sm:$0xff] }
  0xae   : > { %2380 = vst [vmem:[%s15086_s29 + $0x9a0] sm:$0xff] %v2379_v52  ;;  %v2383_v54 = vld [vmem:[%s15078_s28 + $0x1360] sm:$0xff]  ;;  %v2385_v55 = vld [vmem:[%s15078_s28 + $0x1370] sm:$0xff]  ;;  %2382 = vst [vmem:[%s15086_s29 + $0x9a8] sm:$0xff] %v2381_v53 }
  0xaf   : > { %2384 = vst [vmem:[%s15086_s29 + $0x9b0] sm:$0xff] %v2383_v54  ;;  %2386 = vst [vmem:[%s15086_s29 + $0x9b8] sm:$0xff] %v2385_v55  ;;  %v2387_v56 = vld [vmem:[%s15078_s28 + $0x1380] sm:$0xff]  ;;  %v2389_v57 = vld [vmem:[%s15078_s28 + $0x1390] sm:$0xff] }
  0xb0   : > { %v2391_v58 = vld [vmem:[%s15078_s28 + $0x13a0] sm:$0xff]  ;;  %2388 = vst [vmem:[%s15086_s29 + $0x9c0] sm:$0xff] %v2387_v56  ;;  %2390 = vst [vmem:[%s15086_s29 + $0x9c8] sm:$0xff] %v2389_v57  ;;  %v2393_v59 = vld [vmem:[%s15078_s28 + $0x13b0] sm:$0xff] }
  0xb1   : > { %2392 = vst [vmem:[%s15086_s29 + $0x9d0] sm:$0xff] %v2391_v58  ;;  %v2395_v60 = vld [vmem:[%s15078_s28 + $0x13c0] sm:$0xff]  ;;  %v2397_v61 = vld [vmem:[%s15078_s28 + $0x13d0] sm:$0xff]  ;;  %2394 = vst [vmem:[%s15086_s29 + $0x9d8] sm:$0xff] %v2393_v59 }
  0xb2   : > { %2396 = vst [vmem:[%s15086_s29 + $0x9e0] sm:$0xff] %v2395_v60  ;;  %2398 = vst [vmem:[%s15086_s29 + $0x9e8] sm:$0xff] %v2397_v61  ;;  %v2399_v62 = vld [vmem:[%s15078_s28 + $0x13e0] sm:$0xff]  ;;  %v2401_v63 = vld [vmem:[%s15078_s28 + $0x13f0] sm:$0xff] }
  0xb3   : > { %v2403_v0 = vld [vmem:[%s15078_s28 + $0x1400] sm:$0xff]  ;;  %2400 = vst [vmem:[%s15086_s29 + $0x9f0] sm:$0xff] %v2399_v62  ;;  %2402 = vst [vmem:[%s15086_s29 + $0x9f8] sm:$0xff] %v2401_v63  ;;  %v2405_v1 = vld [vmem:[%s15078_s28 + $0x1410] sm:$0xff] }
  0xb4   : > { %2404 = vst [vmem:[%s15086_s29 + $0xa00] sm:$0xff] %v2403_v0  ;;  %v2407_v2 = vld [vmem:[%s15078_s28 + $0x1420] sm:$0xff]  ;;  %v2409_v3 = vld [vmem:[%s15078_s28 + $0x1430] sm:$0xff]  ;;  %2406 = vst [vmem:[%s15086_s29 + $0xa08] sm:$0xff] %v2405_v1 }
  0xb5   : > { %2408 = vst [vmem:[%s15086_s29 + $0xa10] sm:$0xff] %v2407_v2  ;;  %2410 = vst [vmem:[%s15086_s29 + $0xa18] sm:$0xff] %v2409_v3  ;;  %v2411_v4 = vld [vmem:[%s15078_s28 + $0x1440] sm:$0xff]  ;;  %v2413_v5 = vld [vmem:[%s15078_s28 + $0x1450] sm:$0xff] }
  0xb6   : > { %v2415_v6 = vld [vmem:[%s15078_s28 + $0x1460] sm:$0xff]  ;;  %2412 = vst [vmem:[%s15086_s29 + $0xa20] sm:$0xff] %v2411_v4  ;;  %2414 = vst [vmem:[%s15086_s29 + $0xa28] sm:$0xff] %v2413_v5  ;;  %v2417_v7 = vld [vmem:[%s15078_s28 + $0x1470] sm:$0xff] }
  0xb7   : > { %2416 = vst [vmem:[%s15086_s29 + $0xa30] sm:$0xff] %v2415_v6  ;;  %v2419_v8 = vld [vmem:[%s15078_s28 + $0x1480] sm:$0xff]  ;;  %v2421_v9 = vld [vmem:[%s15078_s28 + $0x1490] sm:$0xff]  ;;  %2418 = vst [vmem:[%s15086_s29 + $0xa38] sm:$0xff] %v2417_v7 }
  0xb8   : > { %2420 = vst [vmem:[%s15086_s29 + $0xa40] sm:$0xff] %v2419_v8  ;;  %2422 = vst [vmem:[%s15086_s29 + $0xa48] sm:$0xff] %v2421_v9  ;;  %v2423_v10 = vld [vmem:[%s15078_s28 + $0x14a0] sm:$0xff]  ;;  %v2425_v11 = vld [vmem:[%s15078_s28 + $0x14b0] sm:$0xff] }
  0xb9   : > { %v2427_v12 = vld [vmem:[%s15078_s28 + $0x14c0] sm:$0xff]  ;;  %2424 = vst [vmem:[%s15086_s29 + $0xa50] sm:$0xff] %v2423_v10  ;;  %2426 = vst [vmem:[%s15086_s29 + $0xa58] sm:$0xff] %v2425_v11  ;;  %v2429_v13 = vld [vmem:[%s15078_s28 + $0x14d0] sm:$0xff] }
  0xba   : > { %2428 = vst [vmem:[%s15086_s29 + $0xa60] sm:$0xff] %v2427_v12  ;;  %v2431_v14 = vld [vmem:[%s15078_s28 + $0x14e0] sm:$0xff]  ;;  %v2433_v15 = vld [vmem:[%s15078_s28 + $0x14f0] sm:$0xff]  ;;  %2430 = vst [vmem:[%s15086_s29 + $0xa68] sm:$0xff] %v2429_v13 }
  0xbb   : > { %2432 = vst [vmem:[%s15086_s29 + $0xa70] sm:$0xff] %v2431_v14  ;;  %2434 = vst [vmem:[%s15086_s29 + $0xa78] sm:$0xff] %v2433_v15  ;;  %v2435_v16 = vld [vmem:[%s15078_s28 + $0x1500] sm:$0xff]  ;;  %v2437_v17 = vld [vmem:[%s15078_s28 + $0x1510] sm:$0xff] }
  0xbc   : > { %v2439_v18 = vld [vmem:[%s15078_s28 + $0x1520] sm:$0xff]  ;;  %2436 = vst [vmem:[%s15086_s29 + $0xa80] sm:$0xff] %v2435_v16  ;;  %2438 = vst [vmem:[%s15086_s29 + $0xa88] sm:$0xff] %v2437_v17  ;;  %v2441_v19 = vld [vmem:[%s15078_s28 + $0x1530] sm:$0xff] }
  0xbd   : > { %2440 = vst [vmem:[%s15086_s29 + $0xa90] sm:$0xff] %v2439_v18  ;;  %v2443_v20 = vld [vmem:[%s15078_s28 + $0x1540] sm:$0xff]  ;;  %v2445_v21 = vld [vmem:[%s15078_s28 + $0x1550] sm:$0xff]  ;;  %2442 = vst [vmem:[%s15086_s29 + $0xa98] sm:$0xff] %v2441_v19 }
  0xbe   : > { %2444 = vst [vmem:[%s15086_s29 + $0xaa0] sm:$0xff] %v2443_v20  ;;  %2446 = vst [vmem:[%s15086_s29 + $0xaa8] sm:$0xff] %v2445_v21  ;;  %v2447_v22 = vld [vmem:[%s15078_s28 + $0x1560] sm:$0xff]  ;;  %v2449_v23 = vld [vmem:[%s15078_s28 + $0x1570] sm:$0xff] }
  0xbf   : > { %v2451_v24 = vld [vmem:[%s15078_s28 + $0x1580] sm:$0xff]  ;;  %2448 = vst [vmem:[%s15086_s29 + $0xab0] sm:$0xff] %v2447_v22  ;;  %2450 = vst [vmem:[%s15086_s29 + $0xab8] sm:$0xff] %v2449_v23  ;;  %v2453_v25 = vld [vmem:[%s15078_s28 + $0x1590] sm:$0xff] }
  0xc0   : > { %2452 = vst [vmem:[%s15086_s29 + $0xac0] sm:$0xff] %v2451_v24  ;;  %v2455_v26 = vld [vmem:[%s15078_s28 + $0x15a0] sm:$0xff]  ;;  %v2457_v27 = vld [vmem:[%s15078_s28 + $0x15b0] sm:$0xff]  ;;  %2454 = vst [vmem:[%s15086_s29 + $0xac8] sm:$0xff] %v2453_v25 }
  0xc1   : > { %2456 = vst [vmem:[%s15086_s29 + $0xad0] sm:$0xff] %v2455_v26  ;;  %2458 = vst [vmem:[%s15086_s29 + $0xad8] sm:$0xff] %v2457_v27  ;;  %v2459_v28 = vld [vmem:[%s15078_s28 + $0x15c0] sm:$0xff]  ;;  %v2461_v29 = vld [vmem:[%s15078_s28 + $0x15d0] sm:$0xff] }
  0xc2   : > { %v2463_v30 = vld [vmem:[%s15078_s28 + $0x15e0] sm:$0xff]  ;;  %2460 = vst [vmem:[%s15086_s29 + $0xae0] sm:$0xff] %v2459_v28  ;;  %2462 = vst [vmem:[%s15086_s29 + $0xae8] sm:$0xff] %v2461_v29  ;;  %v2465_v31 = vld [vmem:[%s15078_s28 + $0x15f0] sm:$0xff] }
  0xc3   : > { %2464 = vst [vmem:[%s15086_s29 + $0xaf0] sm:$0xff] %v2463_v30  ;;  %v2467_v32 = vld [vmem:[%s15078_s28 + $0x1600] sm:$0xff]  ;;  %v2469_v33 = vld [vmem:[%s15078_s28 + $0x1610] sm:$0xff]  ;;  %2466 = vst [vmem:[%s15086_s29 + $0xaf8] sm:$0xff] %v2465_v31 }
  0xc4   : > { %2468 = vst [vmem:[%s15086_s29 + $0xb00] sm:$0xff] %v2467_v32  ;;  %2470 = vst [vmem:[%s15086_s29 + $0xb08] sm:$0xff] %v2469_v33  ;;  %v2471_v34 = vld [vmem:[%s15078_s28 + $0x1620] sm:$0xff]  ;;  %v2473_v35 = vld [vmem:[%s15078_s28 + $0x1630] sm:$0xff] }
  0xc5   : > { %v2475_v36 = vld [vmem:[%s15078_s28 + $0x1640] sm:$0xff]  ;;  %2472 = vst [vmem:[%s15086_s29 + $0xb10] sm:$0xff] %v2471_v34  ;;  %2474 = vst [vmem:[%s15086_s29 + $0xb18] sm:$0xff] %v2473_v35  ;;  %v2477_v37 = vld [vmem:[%s15078_s28 + $0x1650] sm:$0xff] }
  0xc6   : > { %2476 = vst [vmem:[%s15086_s29 + $0xb20] sm:$0xff] %v2475_v36  ;;  %v2479_v38 = vld [vmem:[%s15078_s28 + $0x1660] sm:$0xff]  ;;  %v2481_v39 = vld [vmem:[%s15078_s28 + $0x1670] sm:$0xff]  ;;  %2478 = vst [vmem:[%s15086_s29 + $0xb28] sm:$0xff] %v2477_v37 }
  0xc7   : > { %2480 = vst [vmem:[%s15086_s29 + $0xb30] sm:$0xff] %v2479_v38  ;;  %2482 = vst [vmem:[%s15086_s29 + $0xb38] sm:$0xff] %v2481_v39  ;;  %v2483_v40 = vld [vmem:[%s15078_s28 + $0x1680] sm:$0xff]  ;;  %v2485_v41 = vld [vmem:[%s15078_s28 + $0x1690] sm:$0xff] }
  0xc8   : > { %v2487_v42 = vld [vmem:[%s15078_s28 + $0x16a0] sm:$0xff]  ;;  %2484 = vst [vmem:[%s15086_s29 + $0xb40] sm:$0xff] %v2483_v40  ;;  %2486 = vst [vmem:[%s15086_s29 + $0xb48] sm:$0xff] %v2485_v41  ;;  %v2489_v43 = vld [vmem:[%s15078_s28 + $0x16b0] sm:$0xff] }
  0xc9   : > { %2488 = vst [vmem:[%s15086_s29 + $0xb50] sm:$0xff] %v2487_v42  ;;  %v2491_v44 = vld [vmem:[%s15078_s28 + $0x16c0] sm:$0xff]  ;;  %v2493_v45 = vld [vmem:[%s15078_s28 + $0x16d0] sm:$0xff]  ;;  %2490 = vst [vmem:[%s15086_s29 + $0xb58] sm:$0xff] %v2489_v43 }
  0xca   : > { %2492 = vst [vmem:[%s15086_s29 + $0xb60] sm:$0xff] %v2491_v44  ;;  %2494 = vst [vmem:[%s15086_s29 + $0xb68] sm:$0xff] %v2493_v45  ;;  %v2495_v46 = vld [vmem:[%s15078_s28 + $0x16e0] sm:$0xff]  ;;  %v2497_v47 = vld [vmem:[%s15078_s28 + $0x16f0] sm:$0xff] }
  0xcb   : > { %v2499_v48 = vld [vmem:[%s15078_s28 + $0x1700] sm:$0xff]  ;;  %2496 = vst [vmem:[%s15086_s29 + $0xb70] sm:$0xff] %v2495_v46  ;;  %2498 = vst [vmem:[%s15086_s29 + $0xb78] sm:$0xff] %v2497_v47  ;;  %v2501_v49 = vld [vmem:[%s15078_s28 + $0x1710] sm:$0xff] }
  0xcc   : > { %2500 = vst [vmem:[%s15086_s29 + $0xb80] sm:$0xff] %v2499_v48  ;;  %v2503_v50 = vld [vmem:[%s15078_s28 + $0x1720] sm:$0xff]  ;;  %v2505_v51 = vld [vmem:[%s15078_s28 + $0x1730] sm:$0xff]  ;;  %2502 = vst [vmem:[%s15086_s29 + $0xb88] sm:$0xff] %v2501_v49 }
  0xcd   : > { %2504 = vst [vmem:[%s15086_s29 + $0xb90] sm:$0xff] %v2503_v50  ;;  %2506 = vst [vmem:[%s15086_s29 + $0xb98] sm:$0xff] %v2505_v51  ;;  %v2507_v52 = vld [vmem:[%s15078_s28 + $0x1740] sm:$0xff]  ;;  %v2509_v53 = vld [vmem:[%s15078_s28 + $0x1750] sm:$0xff] }
  0xce   : > { %v2511_v54 = vld [vmem:[%s15078_s28 + $0x1760] sm:$0xff]  ;;  %2508 = vst [vmem:[%s15086_s29 + $0xba0] sm:$0xff] %v2507_v52  ;;  %2510 = vst [vmem:[%s15086_s29 + $0xba8] sm:$0xff] %v2509_v53  ;;  %v2513_v55 = vld [vmem:[%s15078_s28 + $0x1770] sm:$0xff] }
  0xcf   : > { %2512 = vst [vmem:[%s15086_s29 + $0xbb0] sm:$0xff] %v2511_v54  ;;  %v2515_v56 = vld [vmem:[%s15078_s28 + $0x1780] sm:$0xff]  ;;  %v2517_v57 = vld [vmem:[%s15078_s28 + $0x1790] sm:$0xff]  ;;  %2514 = vst [vmem:[%s15086_s29 + $0xbb8] sm:$0xff] %v2513_v55 }
  0xd0   : > { %2516 = vst [vmem:[%s15086_s29 + $0xbc0] sm:$0xff] %v2515_v56  ;;  %2518 = vst [vmem:[%s15086_s29 + $0xbc8] sm:$0xff] %v2517_v57  ;;  %v2519_v58 = vld [vmem:[%s15078_s28 + $0x17a0] sm:$0xff]  ;;  %v2521_v59 = vld [vmem:[%s15078_s28 + $0x17b0] sm:$0xff] }
  0xd1   : > { %v2523_v60 = vld [vmem:[%s15078_s28 + $0x17c0] sm:$0xff]  ;;  %2520 = vst [vmem:[%s15086_s29 + $0xbd0] sm:$0xff] %v2519_v58  ;;  %2522 = vst [vmem:[%s15086_s29 + $0xbd8] sm:$0xff] %v2521_v59  ;;  %v2525_v61 = vld [vmem:[%s15078_s28 + $0x17d0] sm:$0xff] }
  0xd2   : > { %2524 = vst [vmem:[%s15086_s29 + $0xbe0] sm:$0xff] %v2523_v60  ;;  %v2527_v62 = vld [vmem:[%s15078_s28 + $0x17e0] sm:$0xff]  ;;  %v2529_v63 = vld [vmem:[%s15078_s28 + $0x17f0] sm:$0xff]  ;;  %2526 = vst [vmem:[%s15086_s29 + $0xbe8] sm:$0xff] %v2525_v61 }
  0xd3   : > { %2528 = vst [vmem:[%s15086_s29 + $0xbf0] sm:$0xff] %v2527_v62  ;;  %2530 = vst [vmem:[%s15086_s29 + $0xbf8] sm:$0xff] %v2529_v63  ;;  %v2531_v0 = vld [vmem:[%s15078_s28 + $0x1800] sm:$0xff]  ;;  %v2533_v1 = vld [vmem:[%s15078_s28 + $0x1810] sm:$0xff] }
  0xd4   : > { %v2535_v2 = vld [vmem:[%s15078_s28 + $0x1820] sm:$0xff]  ;;  %2532 = vst [vmem:[%s15086_s29 + $0xc00] sm:$0xff] %v2531_v0  ;;  %2534 = vst [vmem:[%s15086_s29 + $0xc08] sm:$0xff] %v2533_v1  ;;  %v2537_v3 = vld [vmem:[%s15078_s28 + $0x1830] sm:$0xff] }
  0xd5   : > { %2536 = vst [vmem:[%s15086_s29 + $0xc10] sm:$0xff] %v2535_v2  ;;  %v2539_v4 = vld [vmem:[%s15078_s28 + $0x1840] sm:$0xff]  ;;  %v2541_v5 = vld [vmem:[%s15078_s28 + $0x1850] sm:$0xff]  ;;  %2538 = vst [vmem:[%s15086_s29 + $0xc18] sm:$0xff] %v2537_v3 }
  0xd6   : > { %2540 = vst [vmem:[%s15086_s29 + $0xc20] sm:$0xff] %v2539_v4  ;;  %2542 = vst [vmem:[%s15086_s29 + $0xc28] sm:$0xff] %v2541_v5  ;;  %v2543_v6 = vld [vmem:[%s15078_s28 + $0x1860] sm:$0xff]  ;;  %v2545_v7 = vld [vmem:[%s15078_s28 + $0x1870] sm:$0xff] }
  0xd7   : > { %v2547_v8 = vld [vmem:[%s15078_s28 + $0x1880] sm:$0xff]  ;;  %2544 = vst [vmem:[%s15086_s29 + $0xc30] sm:$0xff] %v2543_v6  ;;  %2546 = vst [vmem:[%s15086_s29 + $0xc38] sm:$0xff] %v2545_v7  ;;  %v2549_v9 = vld [vmem:[%s15078_s28 + $0x1890] sm:$0xff] }
  0xd8   : > { %2548 = vst [vmem:[%s15086_s29 + $0xc40] sm:$0xff] %v2547_v8  ;;  %v2551_v10 = vld [vmem:[%s15078_s28 + $0x18a0] sm:$0xff]  ;;  %v2553_v11 = vld [vmem:[%s15078_s28 + $0x18b0] sm:$0xff]  ;;  %2550 = vst [vmem:[%s15086_s29 + $0xc48] sm:$0xff] %v2549_v9 }
  0xd9   : > { %2552 = vst [vmem:[%s15086_s29 + $0xc50] sm:$0xff] %v2551_v10  ;;  %2554 = vst [vmem:[%s15086_s29 + $0xc58] sm:$0xff] %v2553_v11  ;;  %v2555_v12 = vld [vmem:[%s15078_s28 + $0x18c0] sm:$0xff]  ;;  %v2557_v13 = vld [vmem:[%s15078_s28 + $0x18d0] sm:$0xff] }
  0xda   : > { %v2559_v14 = vld [vmem:[%s15078_s28 + $0x18e0] sm:$0xff]  ;;  %2556 = vst [vmem:[%s15086_s29 + $0xc60] sm:$0xff] %v2555_v12  ;;  %2558 = vst [vmem:[%s15086_s29 + $0xc68] sm:$0xff] %v2557_v13  ;;  %v2561_v15 = vld [vmem:[%s15078_s28 + $0x18f0] sm:$0xff] }
  0xdb   : > { %2560 = vst [vmem:[%s15086_s29 + $0xc70] sm:$0xff] %v2559_v14  ;;  %v2563_v16 = vld [vmem:[%s15078_s28 + $0x1900] sm:$0xff]  ;;  %v2565_v17 = vld [vmem:[%s15078_s28 + $0x1910] sm:$0xff]  ;;  %2562 = vst [vmem:[%s15086_s29 + $0xc78] sm:$0xff] %v2561_v15 }
  0xdc   : > { %2564 = vst [vmem:[%s15086_s29 + $0xc80] sm:$0xff] %v2563_v16  ;;  %2566 = vst [vmem:[%s15086_s29 + $0xc88] sm:$0xff] %v2565_v17  ;;  %v2567_v18 = vld [vmem:[%s15078_s28 + $0x1920] sm:$0xff]  ;;  %v2569_v19 = vld [vmem:[%s15078_s28 + $0x1930] sm:$0xff] }
  0xdd   : > { %v2571_v20 = vld [vmem:[%s15078_s28 + $0x1940] sm:$0xff]  ;;  %2568 = vst [vmem:[%s15086_s29 + $0xc90] sm:$0xff] %v2567_v18  ;;  %2570 = vst [vmem:[%s15086_s29 + $0xc98] sm:$0xff] %v2569_v19  ;;  %v2573_v21 = vld [vmem:[%s15078_s28 + $0x1950] sm:$0xff] }
  0xde   : > { %2572 = vst [vmem:[%s15086_s29 + $0xca0] sm:$0xff] %v2571_v20  ;;  %v2575_v22 = vld [vmem:[%s15078_s28 + $0x1960] sm:$0xff]  ;;  %v2577_v23 = vld [vmem:[%s15078_s28 + $0x1970] sm:$0xff]  ;;  %2574 = vst [vmem:[%s15086_s29 + $0xca8] sm:$0xff] %v2573_v21 }
  0xdf   : > { %2576 = vst [vmem:[%s15086_s29 + $0xcb0] sm:$0xff] %v2575_v22  ;;  %2578 = vst [vmem:[%s15086_s29 + $0xcb8] sm:$0xff] %v2577_v23  ;;  %v2579_v24 = vld [vmem:[%s15078_s28 + $0x1980] sm:$0xff]  ;;  %v2581_v25 = vld [vmem:[%s15078_s28 + $0x1990] sm:$0xff] }
  0xe0   : > { %v2583_v26 = vld [vmem:[%s15078_s28 + $0x19a0] sm:$0xff]  ;;  %2580 = vst [vmem:[%s15086_s29 + $0xcc0] sm:$0xff] %v2579_v24  ;;  %2582 = vst [vmem:[%s15086_s29 + $0xcc8] sm:$0xff] %v2581_v25  ;;  %v2585_v27 = vld [vmem:[%s15078_s28 + $0x19b0] sm:$0xff] }
  0xe1   : > { %2584 = vst [vmem:[%s15086_s29 + $0xcd0] sm:$0xff] %v2583_v26  ;;  %v2587_v28 = vld [vmem:[%s15078_s28 + $0x19c0] sm:$0xff]  ;;  %v2589_v29 = vld [vmem:[%s15078_s28 + $0x19d0] sm:$0xff]  ;;  %2586 = vst [vmem:[%s15086_s29 + $0xcd8] sm:$0xff] %v2585_v27 }
  0xe2   : > { %2588 = vst [vmem:[%s15086_s29 + $0xce0] sm:$0xff] %v2587_v28  ;;  %2590 = vst [vmem:[%s15086_s29 + $0xce8] sm:$0xff] %v2589_v29  ;;  %v2591_v30 = vld [vmem:[%s15078_s28 + $0x19e0] sm:$0xff]  ;;  %v2593_v31 = vld [vmem:[%s15078_s28 + $0x19f0] sm:$0xff] }
  0xe3   : > { %v2595_v32 = vld [vmem:[%s15078_s28 + $0x1a00] sm:$0xff]  ;;  %2592 = vst [vmem:[%s15086_s29 + $0xcf0] sm:$0xff] %v2591_v30  ;;  %2594 = vst [vmem:[%s15086_s29 + $0xcf8] sm:$0xff] %v2593_v31  ;;  %v2597_v33 = vld [vmem:[%s15078_s28 + $0x1a10] sm:$0xff] }
  0xe4   : > { %2596 = vst [vmem:[%s15086_s29 + $0xd00] sm:$0xff] %v2595_v32  ;;  %v2599_v34 = vld [vmem:[%s15078_s28 + $0x1a20] sm:$0xff]  ;;  %v2601_v35 = vld [vmem:[%s15078_s28 + $0x1a30] sm:$0xff]  ;;  %2598 = vst [vmem:[%s15086_s29 + $0xd08] sm:$0xff] %v2597_v33 }
  0xe5   : > { %2600 = vst [vmem:[%s15086_s29 + $0xd10] sm:$0xff] %v2599_v34  ;;  %2602 = vst [vmem:[%s15086_s29 + $0xd18] sm:$0xff] %v2601_v35  ;;  %v2603_v36 = vld [vmem:[%s15078_s28 + $0x1a40] sm:$0xff]  ;;  %v2605_v37 = vld [vmem:[%s15078_s28 + $0x1a50] sm:$0xff] }
  0xe6   : > { %v2607_v38 = vld [vmem:[%s15078_s28 + $0x1a60] sm:$0xff]  ;;  %2604 = vst [vmem:[%s15086_s29 + $0xd20] sm:$0xff] %v2603_v36  ;;  %2606 = vst [vmem:[%s15086_s29 + $0xd28] sm:$0xff] %v2605_v37  ;;  %v2609_v39 = vld [vmem:[%s15078_s28 + $0x1a70] sm:$0xff] }
  0xe7   : > { %2608 = vst [vmem:[%s15086_s29 + $0xd30] sm:$0xff] %v2607_v38  ;;  %v2611_v40 = vld [vmem:[%s15078_s28 + $0x1a80] sm:$0xff]  ;;  %v2613_v41 = vld [vmem:[%s15078_s28 + $0x1a90] sm:$0xff]  ;;  %2610 = vst [vmem:[%s15086_s29 + $0xd38] sm:$0xff] %v2609_v39 }
  0xe8   : > { %2612 = vst [vmem:[%s15086_s29 + $0xd40] sm:$0xff] %v2611_v40  ;;  %2614 = vst [vmem:[%s15086_s29 + $0xd48] sm:$0xff] %v2613_v41  ;;  %v2615_v42 = vld [vmem:[%s15078_s28 + $0x1aa0] sm:$0xff]  ;;  %v2617_v43 = vld [vmem:[%s15078_s28 + $0x1ab0] sm:$0xff] }
  0xe9   : > { %v2619_v44 = vld [vmem:[%s15078_s28 + $0x1ac0] sm:$0xff]  ;;  %2616 = vst [vmem:[%s15086_s29 + $0xd50] sm:$0xff] %v2615_v42  ;;  %2618 = vst [vmem:[%s15086_s29 + $0xd58] sm:$0xff] %v2617_v43  ;;  %v2621_v45 = vld [vmem:[%s15078_s28 + $0x1ad0] sm:$0xff] }
  0xea   : > { %2620 = vst [vmem:[%s15086_s29 + $0xd60] sm:$0xff] %v2619_v44  ;;  %v2623_v46 = vld [vmem:[%s15078_s28 + $0x1ae0] sm:$0xff]  ;;  %v2625_v47 = vld [vmem:[%s15078_s28 + $0x1af0] sm:$0xff]  ;;  %2622 = vst [vmem:[%s15086_s29 + $0xd68] sm:$0xff] %v2621_v45 }
  0xeb   : > { %2624 = vst [vmem:[%s15086_s29 + $0xd70] sm:$0xff] %v2623_v46  ;;  %2626 = vst [vmem:[%s15086_s29 + $0xd78] sm:$0xff] %v2625_v47  ;;  %v2627_v48 = vld [vmem:[%s15078_s28 + $0x1b00] sm:$0xff]  ;;  %v2629_v49 = vld [vmem:[%s15078_s28 + $0x1b10] sm:$0xff] }
  0xec   : > { %v2631_v50 = vld [vmem:[%s15078_s28 + $0x1b20] sm:$0xff]  ;;  %2628 = vst [vmem:[%s15086_s29 + $0xd80] sm:$0xff] %v2627_v48  ;;  %2630 = vst [vmem:[%s15086_s29 + $0xd88] sm:$0xff] %v2629_v49  ;;  %v2633_v51 = vld [vmem:[%s15078_s28 + $0x1b30] sm:$0xff] }
  0xed   : > { %2632 = vst [vmem:[%s15086_s29 + $0xd90] sm:$0xff] %v2631_v50  ;;  %v2635_v52 = vld [vmem:[%s15078_s28 + $0x1b40] sm:$0xff]  ;;  %v2637_v53 = vld [vmem:[%s15078_s28 + $0x1b50] sm:$0xff]  ;;  %2634 = vst [vmem:[%s15086_s29 + $0xd98] sm:$0xff] %v2633_v51 }
  0xee   : > { %2636 = vst [vmem:[%s15086_s29 + $0xda0] sm:$0xff] %v2635_v52  ;;  %2638 = vst [vmem:[%s15086_s29 + $0xda8] sm:$0xff] %v2637_v53  ;;  %v2639_v54 = vld [vmem:[%s15078_s28 + $0x1b60] sm:$0xff]  ;;  %v2641_v55 = vld [vmem:[%s15078_s28 + $0x1b70] sm:$0xff] }
  0xef   : > { %v2643_v56 = vld [vmem:[%s15078_s28 + $0x1b80] sm:$0xff]  ;;  %2640 = vst [vmem:[%s15086_s29 + $0xdb0] sm:$0xff] %v2639_v54  ;;  %2642 = vst [vmem:[%s15086_s29 + $0xdb8] sm:$0xff] %v2641_v55  ;;  %v2645_v57 = vld [vmem:[%s15078_s28 + $0x1b90] sm:$0xff] }
  0xf0   : > { %2644 = vst [vmem:[%s15086_s29 + $0xdc0] sm:$0xff] %v2643_v56  ;;  %v2647_v58 = vld [vmem:[%s15078_s28 + $0x1ba0] sm:$0xff]  ;;  %v2649_v59 = vld [vmem:[%s15078_s28 + $0x1bb0] sm:$0xff]  ;;  %2646 = vst [vmem:[%s15086_s29 + $0xdc8] sm:$0xff] %v2645_v57 }
  0xf1   : > { %2648 = vst [vmem:[%s15086_s29 + $0xdd0] sm:$0xff] %v2647_v58  ;;  %2650 = vst [vmem:[%s15086_s29 + $0xdd8] sm:$0xff] %v2649_v59  ;;  %v2651_v60 = vld [vmem:[%s15078_s28 + $0x1bc0] sm:$0xff]  ;;  %v2653_v61 = vld [vmem:[%s15078_s28 + $0x1bd0] sm:$0xff] }
  0xf2   : > { %v2655_v62 = vld [vmem:[%s15078_s28 + $0x1be0] sm:$0xff]  ;;  %2652 = vst [vmem:[%s15086_s29 + $0xde0] sm:$0xff] %v2651_v60  ;;  %2654 = vst [vmem:[%s15086_s29 + $0xde8] sm:$0xff] %v2653_v61  ;;  %v2657_v63 = vld [vmem:[%s15078_s28 + $0x1bf0] sm:$0xff] }
  0xf3   : > { %2656 = vst [vmem:[%s15086_s29 + $0xdf0] sm:$0xff] %v2655_v62  ;;  %v2659_v0 = vld [vmem:[%s15078_s28 + $0x1c00] sm:$0xff]  ;;  %v2661_v1 = vld [vmem:[%s15078_s28 + $0x1c10] sm:$0xff]  ;;  %2658 = vst [vmem:[%s15086_s29 + $0xdf8] sm:$0xff] %v2657_v63 }
  0xf4   : > { %2660 = vst [vmem:[%s15086_s29 + $0xe00] sm:$0xff] %v2659_v0  ;;  %2662 = vst [vmem:[%s15086_s29 + $0xe08] sm:$0xff] %v2661_v1  ;;  %v2663_v2 = vld [vmem:[%s15078_s28 + $0x1c20] sm:$0xff]  ;;  %v2665_v3 = vld [vmem:[%s15078_s28 + $0x1c30] sm:$0xff] }
  0xf5   : > { %v2667_v4 = vld [vmem:[%s15078_s28 + $0x1c40] sm:$0xff]  ;;  %2664 = vst [vmem:[%s15086_s29 + $0xe10] sm:$0xff] %v2663_v2  ;;  %2666 = vst [vmem:[%s15086_s29 + $0xe18] sm:$0xff] %v2665_v3  ;;  %v2669_v5 = vld [vmem:[%s15078_s28 + $0x1c50] sm:$0xff] }
  0xf6   : > { %2668 = vst [vmem:[%s15086_s29 + $0xe20] sm:$0xff] %v2667_v4  ;;  %v2671_v6 = vld [vmem:[%s15078_s28 + $0x1c60] sm:$0xff]  ;;  %v2673_v7 = vld [vmem:[%s15078_s28 + $0x1c70] sm:$0xff]  ;;  %2670 = vst [vmem:[%s15086_s29 + $0xe28] sm:$0xff] %v2669_v5 }
  0xf7   : > { %2672 = vst [vmem:[%s15086_s29 + $0xe30] sm:$0xff] %v2671_v6  ;;  %2674 = vst [vmem:[%s15086_s29 + $0xe38] sm:$0xff] %v2673_v7  ;;  %v2675_v8 = vld [vmem:[%s15078_s28 + $0x1c80] sm:$0xff]  ;;  %v2677_v9 = vld [vmem:[%s15078_s28 + $0x1c90] sm:$0xff] }
  0xf8   : > { %v2679_v10 = vld [vmem:[%s15078_s28 + $0x1ca0] sm:$0xff]  ;;  %2676 = vst [vmem:[%s15086_s29 + $0xe40] sm:$0xff] %v2675_v8  ;;  %2678 = vst [vmem:[%s15086_s29 + $0xe48] sm:$0xff] %v2677_v9  ;;  %v2681_v11 = vld [vmem:[%s15078_s28 + $0x1cb0] sm:$0xff] }
  0xf9   : > { %2680 = vst [vmem:[%s15086_s29 + $0xe50] sm:$0xff] %v2679_v10  ;;  %v2683_v12 = vld [vmem:[%s15078_s28 + $0x1cc0] sm:$0xff]  ;;  %v2685_v13 = vld [vmem:[%s15078_s28 + $0x1cd0] sm:$0xff]  ;;  %2682 = vst [vmem:[%s15086_s29 + $0xe58] sm:$0xff] %v2681_v11 }
  0xfa   : > { %2684 = vst [vmem:[%s15086_s29 + $0xe60] sm:$0xff] %v2683_v12  ;;  %2686 = vst [vmem:[%s15086_s29 + $0xe68] sm:$0xff] %v2685_v13  ;;  %v2687_v14 = vld [vmem:[%s15078_s28 + $0x1ce0] sm:$0xff]  ;;  %v2689_v15 = vld [vmem:[%s15078_s28 + $0x1cf0] sm:$0xff] }
  0xfb   : > { %v2691_v16 = vld [vmem:[%s15078_s28 + $0x1d00] sm:$0xff]  ;;  %2688 = vst [vmem:[%s15086_s29 + $0xe70] sm:$0xff] %v2687_v14  ;;  %2690 = vst [vmem:[%s15086_s29 + $0xe78] sm:$0xff] %v2689_v15  ;;  %v2693_v17 = vld [vmem:[%s15078_s28 + $0x1d10] sm:$0xff] }
  0xfc   : > { %2692 = vst [vmem:[%s15086_s29 + $0xe80] sm:$0xff] %v2691_v16  ;;  %v2695_v18 = vld [vmem:[%s15078_s28 + $0x1d20] sm:$0xff]  ;;  %v2697_v19 = vld [vmem:[%s15078_s28 + $0x1d30] sm:$0xff]  ;;  %2694 = vst [vmem:[%s15086_s29 + $0xe88] sm:$0xff] %v2693_v17 }
  0xfd   : > { %2696 = vst [vmem:[%s15086_s29 + $0xe90] sm:$0xff] %v2695_v18  ;;  %2698 = vst [vmem:[%s15086_s29 + $0xe98] sm:$0xff] %v2697_v19  ;;  %v2699_v20 = vld [vmem:[%s15078_s28 + $0x1d40] sm:$0xff]  ;;  %v2701_v21 = vld [vmem:[%s15078_s28 + $0x1d50] sm:$0xff] }
  0xfe   : > { %v2703_v22 = vld [vmem:[%s15078_s28 + $0x1d60] sm:$0xff]  ;;  %2700 = vst [vmem:[%s15086_s29 + $0xea0] sm:$0xff] %v2699_v20  ;;  %2702 = vst [vmem:[%s15086_s29 + $0xea8] sm:$0xff] %v2701_v21  ;;  %v2705_v23 = vld [vmem:[%s15078_s28 + $0x1d70] sm:$0xff] }
  0xff   : > { %2704 = vst [vmem:[%s15086_s29 + $0xeb0] sm:$0xff] %v2703_v22  ;;  %v2707_v24 = vld [vmem:[%s15078_s28 + $0x1d80] sm:$0xff]  ;;  %v2709_v25 = vld [vmem:[%s15078_s28 + $0x1d90] sm:$0xff]  ;;  %2706 = vst [vmem:[%s15086_s29 + $0xeb8] sm:$0xff] %v2705_v23 }
 0x100   : > { %2708 = vst [vmem:[%s15086_s29 + $0xec0] sm:$0xff] %v2707_v24  ;;  %2710 = vst [vmem:[%s15086_s29 + $0xec8] sm:$0xff] %v2709_v25  ;;  %v2711_v26 = vld [vmem:[%s15078_s28 + $0x1da0] sm:$0xff]  ;;  %v2713_v27 = vld [vmem:[%s15078_s28 + $0x1db0] sm:$0xff] }
 0x101   : > { %v2715_v28 = vld [vmem:[%s15078_s28 + $0x1dc0] sm:$0xff]  ;;  %2712 = vst [vmem:[%s15086_s29 + $0xed0] sm:$0xff] %v2711_v26  ;;  %2714 = vst [vmem:[%s15086_s29 + $0xed8] sm:$0xff] %v2713_v27  ;;  %v2717_v29 = vld [vmem:[%s15078_s28 + $0x1dd0] sm:$0xff] }
 0x102   : > { %2716 = vst [vmem:[%s15086_s29 + $0xee0] sm:$0xff] %v2715_v28  ;;  %v2719_v30 = vld [vmem:[%s15078_s28 + $0x1de0] sm:$0xff]  ;;  %v2721_v31 = vld [vmem:[%s15078_s28 + $0x1df0] sm:$0xff]  ;;  %2718 = vst [vmem:[%s15086_s29 + $0xee8] sm:$0xff] %v2717_v29 }
 0x103   : > { %2720 = vst [vmem:[%s15086_s29 + $0xef0] sm:$0xff] %v2719_v30  ;;  %2722 = vst [vmem:[%s15086_s29 + $0xef8] sm:$0xff] %v2721_v31  ;;  %v2723_v32 = vld [vmem:[%s15078_s28 + $0x1e00] sm:$0xff]  ;;  %v2725_v33 = vld [vmem:[%s15078_s28 + $0x1e10] sm:$0xff] }
 0x104   : > { %v2727_v34 = vld [vmem:[%s15078_s28 + $0x1e20] sm:$0xff]  ;;  %2724 = vst [vmem:[%s15086_s29 + $0xf00] sm:$0xff] %v2723_v32  ;;  %2726 = vst [vmem:[%s15086_s29 + $0xf08] sm:$0xff] %v2725_v33  ;;  %v2729_v35 = vld [vmem:[%s15078_s28 + $0x1e30] sm:$0xff] }
 0x105   : > { %2728 = vst [vmem:[%s15086_s29 + $0xf10] sm:$0xff] %v2727_v34  ;;  %v2731_v36 = vld [vmem:[%s15078_s28 + $0x1e40] sm:$0xff]  ;;  %v2733_v37 = vld [vmem:[%s15078_s28 + $0x1e50] sm:$0xff]  ;;  %2730 = vst [vmem:[%s15086_s29 + $0xf18] sm:$0xff] %v2729_v35 }
 0x106   : > { %2732 = vst [vmem:[%s15086_s29 + $0xf20] sm:$0xff] %v2731_v36  ;;  %2734 = vst [vmem:[%s15086_s29 + $0xf28] sm:$0xff] %v2733_v37  ;;  %v2735_v38 = vld [vmem:[%s15078_s28 + $0x1e60] sm:$0xff]  ;;  %v2737_v39 = vld [vmem:[%s15078_s28 + $0x1e70] sm:$0xff] }
 0x107   : > { %v2739_v40 = vld [vmem:[%s15078_s28 + $0x1e80] sm:$0xff]  ;;  %2736 = vst [vmem:[%s15086_s29 + $0xf30] sm:$0xff] %v2735_v38  ;;  %2738 = vst [vmem:[%s15086_s29 + $0xf38] sm:$0xff] %v2737_v39  ;;  %v2741_v41 = vld [vmem:[%s15078_s28 + $0x1e90] sm:$0xff] }
 0x108   : > { %2740 = vst [vmem:[%s15086_s29 + $0xf40] sm:$0xff] %v2739_v40  ;;  %v2743_v42 = vld [vmem:[%s15078_s28 + $0x1ea0] sm:$0xff]  ;;  %v2745_v43 = vld [vmem:[%s15078_s28 + $0x1eb0] sm:$0xff]  ;;  %2742 = vst [vmem:[%s15086_s29 + $0xf48] sm:$0xff] %v2741_v41 }
 0x109   : > { %2744 = vst [vmem:[%s15086_s29 + $0xf50] sm:$0xff] %v2743_v42  ;;  %2746 = vst [vmem:[%s15086_s29 + $0xf58] sm:$0xff] %v2745_v43  ;;  %v2747_v44 = vld [vmem:[%s15078_s28 + $0x1ec0] sm:$0xff]  ;;  %v2749_v45 = vld [vmem:[%s15078_s28 + $0x1ed0] sm:$0xff] }
 0x10a   : > { %v2751_v46 = vld [vmem:[%s15078_s28 + $0x1ee0] sm:$0xff]  ;;  %2748 = vst [vmem:[%s15086_s29 + $0xf60] sm:$0xff] %v2747_v44  ;;  %2750 = vst [vmem:[%s15086_s29 + $0xf68] sm:$0xff] %v2749_v45  ;;  %v2753_v47 = vld [vmem:[%s15078_s28 + $0x1ef0] sm:$0xff] }
 0x10b   : > { %2752 = vst [vmem:[%s15086_s29 + $0xf70] sm:$0xff] %v2751_v46  ;;  %v2755_v48 = vld [vmem:[%s15078_s28 + $0x1f00] sm:$0xff]  ;;  %v2757_v49 = vld [vmem:[%s15078_s28 + $0x1f10] sm:$0xff]  ;;  %2754 = vst [vmem:[%s15086_s29 + $0xf78] sm:$0xff] %v2753_v47 }
 0x10c   : > { %2756 = vst [vmem:[%s15086_s29 + $0xf80] sm:$0xff] %v2755_v48  ;;  %2758 = vst [vmem:[%s15086_s29 + $0xf88] sm:$0xff] %v2757_v49  ;;  %v2759_v50 = vld [vmem:[%s15078_s28 + $0x1f20] sm:$0xff]  ;;  %v2761_v51 = vld [vmem:[%s15078_s28 + $0x1f30] sm:$0xff] }
 0x10d   : > { %v2763_v52 = vld [vmem:[%s15078_s28 + $0x1f40] sm:$0xff]  ;;  %2760 = vst [vmem:[%s15086_s29 + $0xf90] sm:$0xff] %v2759_v50  ;;  %2762 = vst [vmem:[%s15086_s29 + $0xf98] sm:$0xff] %v2761_v51  ;;  %v2765_v53 = vld [vmem:[%s15078_s28 + $0x1f50] sm:$0xff] }
 0x10e   : > { %2764 = vst [vmem:[%s15086_s29 + $0xfa0] sm:$0xff] %v2763_v52  ;;  %v2767_v54 = vld [vmem:[%s15078_s28 + $0x1f60] sm:$0xff]  ;;  %v2769_v55 = vld [vmem:[%s15078_s28 + $0x1f70] sm:$0xff]  ;;  %2766 = vst [vmem:[%s15086_s29 + $0xfa8] sm:$0xff] %v2765_v53 }
 0x10f   : > { %2768 = vst [vmem:[%s15086_s29 + $0xfb0] sm:$0xff] %v2767_v54  ;;  %2770 = vst [vmem:[%s15086_s29 + $0xfb8] sm:$0xff] %v2769_v55  ;;  %v2771_v56 = vld [vmem:[%s15078_s28 + $0x1f80] sm:$0xff]  ;;  %v2773_v57 = vld [vmem:[%s15078_s28 + $0x1f90] sm:$0xff] }
 0x110   : > { %v2775_v58 = vld [vmem:[%s15078_s28 + $0x1fa0] sm:$0xff]  ;;  %2772 = vst [vmem:[%s15086_s29 + $0xfc0] sm:$0xff] %v2771_v56  ;;  %2774 = vst [vmem:[%s15086_s29 + $0xfc8] sm:$0xff] %v2773_v57  ;;  %v2777_v59 = vld [vmem:[%s15078_s28 + $0x1fb0] sm:$0xff] }
 0x111   : > { %2776 = vst [vmem:[%s15086_s29 + $0xfd0] sm:$0xff] %v2775_v58  ;;  %v2779_v60 = vld [vmem:[%s15078_s28 + $0x1fc0] sm:$0xff]  ;;  %v2781_v61 = vld [vmem:[%s15078_s28 + $0x1fd0] sm:$0xff]  ;;  %2778 = vst [vmem:[%s15086_s29 + $0xfd8] sm:$0xff] %v2777_v59 }
 0x112   : > { %2780 = vst [vmem:[%s15086_s29 + $0xfe0] sm:$0xff] %v2779_v60  ;;  %2782 = vst [vmem:[%s15086_s29 + $0xfe8] sm:$0xff] %v2781_v61  ;;  %v2783_v62 = vld [vmem:[%s15078_s28 + $0x1fe0] sm:$0xff]  ;;  %v2785_v63 = vld [vmem:[%s15078_s28 + $0x1ff0] sm:$0xff] }
 0x113   : > { %v2787_v0 = vld [vmem:[%s15078_s28 + $0x2000] sm:$0xff]  ;;  %2784 = vst [vmem:[%s15086_s29 + $0xff0] sm:$0xff] %v2783_v62  ;;  %2786 = vst [vmem:[%s15086_s29 + $0xff8] sm:$0xff] %v2785_v63  ;;  %v2789_v1 = vld [vmem:[%s15078_s28 + $0x2010] sm:$0xff] }
 0x114   : > { %2788 = vst [vmem:[%s15086_s29 + $0x1000] sm:$0xff] %v2787_v0  ;;  %v2791_v2 = vld [vmem:[%s15078_s28 + $0x2020] sm:$0xff]  ;;  %v2793_v3 = vld [vmem:[%s15078_s28 + $0x2030] sm:$0xff]  ;;  %2790 = vst [vmem:[%s15086_s29 + $0x1008] sm:$0xff] %v2789_v1 }
 0x115   : > { %2792 = vst [vmem:[%s15086_s29 + $0x1010] sm:$0xff] %v2791_v2  ;;  %2794 = vst [vmem:[%s15086_s29 + $0x1018] sm:$0xff] %v2793_v3  ;;  %v2795_v4 = vld [vmem:[%s15078_s28 + $0x2040] sm:$0xff]  ;;  %v2797_v5 = vld [vmem:[%s15078_s28 + $0x2050] sm:$0xff] }
 0x116   : > { %v2799_v6 = vld [vmem:[%s15078_s28 + $0x2060] sm:$0xff]  ;;  %2796 = vst [vmem:[%s15086_s29 + $0x1020] sm:$0xff] %v2795_v4  ;;  %2798 = vst [vmem:[%s15086_s29 + $0x1028] sm:$0xff] %v2797_v5  ;;  %v2801_v7 = vld [vmem:[%s15078_s28 + $0x2070] sm:$0xff] }
 0x117   : > { %2800 = vst [vmem:[%s15086_s29 + $0x1030] sm:$0xff] %v2799_v6  ;;  %v2803_v8 = vld [vmem:[%s15078_s28 + $0x2080] sm:$0xff]  ;;  %v2805_v9 = vld [vmem:[%s15078_s28 + $0x2090] sm:$0xff]  ;;  %2802 = vst [vmem:[%s15086_s29 + $0x1038] sm:$0xff] %v2801_v7 }
 0x118   : > { %2804 = vst [vmem:[%s15086_s29 + $0x1040] sm:$0xff] %v2803_v8  ;;  %2806 = vst [vmem:[%s15086_s29 + $0x1048] sm:$0xff] %v2805_v9  ;;  %v2807_v10 = vld [vmem:[%s15078_s28 + $0x20a0] sm:$0xff]  ;;  %v2809_v11 = vld [vmem:[%s15078_s28 + $0x20b0] sm:$0xff] }
 0x119   : > { %v2811_v12 = vld [vmem:[%s15078_s28 + $0x20c0] sm:$0xff]  ;;  %2808 = vst [vmem:[%s15086_s29 + $0x1050] sm:$0xff] %v2807_v10  ;;  %2810 = vst [vmem:[%s15086_s29 + $0x1058] sm:$0xff] %v2809_v11  ;;  %v2813_v13 = vld [vmem:[%s15078_s28 + $0x20d0] sm:$0xff] }
 0x11a   : > { %2812 = vst [vmem:[%s15086_s29 + $0x1060] sm:$0xff] %v2811_v12  ;;  %v2815_v14 = vld [vmem:[%s15078_s28 + $0x20e0] sm:$0xff]  ;;  %v2817_v15 = vld [vmem:[%s15078_s28 + $0x20f0] sm:$0xff]  ;;  %2814 = vst [vmem:[%s15086_s29 + $0x1068] sm:$0xff] %v2813_v13 }
 0x11b   : > { %2816 = vst [vmem:[%s15086_s29 + $0x1070] sm:$0xff] %v2815_v14  ;;  %2818 = vst [vmem:[%s15086_s29 + $0x1078] sm:$0xff] %v2817_v15  ;;  %v2819_v16 = vld [vmem:[%s15078_s28 + $0x2100] sm:$0xff]  ;;  %v2821_v17 = vld [vmem:[%s15078_s28 + $0x2110] sm:$0xff] }
 0x11c   : > { %v2823_v18 = vld [vmem:[%s15078_s28 + $0x2120] sm:$0xff]  ;;  %2820 = vst [vmem:[%s15086_s29 + $0x1080] sm:$0xff] %v2819_v16  ;;  %2822 = vst [vmem:[%s15086_s29 + $0x1088] sm:$0xff] %v2821_v17  ;;  %v2825_v19 = vld [vmem:[%s15078_s28 + $0x2130] sm:$0xff] }
 0x11d   : > { %2824 = vst [vmem:[%s15086_s29 + $0x1090] sm:$0xff] %v2823_v18  ;;  %v2827_v20 = vld [vmem:[%s15078_s28 + $0x2140] sm:$0xff]  ;;  %v2829_v21 = vld [vmem:[%s15078_s28 + $0x2150] sm:$0xff]  ;;  %2826 = vst [vmem:[%s15086_s29 + $0x1098] sm:$0xff] %v2825_v19 }
 0x11e   : > { %2828 = vst [vmem:[%s15086_s29 + $0x10a0] sm:$0xff] %v2827_v20  ;;  %2830 = vst [vmem:[%s15086_s29 + $0x10a8] sm:$0xff] %v2829_v21  ;;  %v2831_v22 = vld [vmem:[%s15078_s28 + $0x2160] sm:$0xff]  ;;  %v2833_v23 = vld [vmem:[%s15078_s28 + $0x2170] sm:$0xff] }
 0x11f   : > { %v2835_v24 = vld [vmem:[%s15078_s28 + $0x2180] sm:$0xff]  ;;  %2832 = vst [vmem:[%s15086_s29 + $0x10b0] sm:$0xff] %v2831_v22  ;;  %2834 = vst [vmem:[%s15086_s29 + $0x10b8] sm:$0xff] %v2833_v23  ;;  %v2837_v25 = vld [vmem:[%s15078_s28 + $0x2190] sm:$0xff] }
 0x120   : > { %2836 = vst [vmem:[%s15086_s29 + $0x10c0] sm:$0xff] %v2835_v24  ;;  %v2839_v26 = vld [vmem:[%s15078_s28 + $0x21a0] sm:$0xff]  ;;  %v2841_v27 = vld [vmem:[%s15078_s28 + $0x21b0] sm:$0xff]  ;;  %2838 = vst [vmem:[%s15086_s29 + $0x10c8] sm:$0xff] %v2837_v25 }
 0x121   : > { %2840 = vst [vmem:[%s15086_s29 + $0x10d0] sm:$0xff] %v2839_v26  ;;  %2842 = vst [vmem:[%s15086_s29 + $0x10d8] sm:$0xff] %v2841_v27  ;;  %v2843_v28 = vld [vmem:[%s15078_s28 + $0x21c0] sm:$0xff]  ;;  %v2845_v29 = vld [vmem:[%s15078_s28 + $0x21d0] sm:$0xff] }
 0x122   : > { %v2847_v30 = vld [vmem:[%s15078_s28 + $0x21e0] sm:$0xff]  ;;  %2844 = vst [vmem:[%s15086_s29 + $0x10e0] sm:$0xff] %v2843_v28  ;;  %2846 = vst [vmem:[%s15086_s29 + $0x10e8] sm:$0xff] %v2845_v29  ;;  %v2849_v31 = vld [vmem:[%s15078_s28 + $0x21f0] sm:$0xff] }
 0x123   : > { %2848 = vst [vmem:[%s15086_s29 + $0x10f0] sm:$0xff] %v2847_v30  ;;  %v2851_v32 = vld [vmem:[%s15078_s28 + $0x2200] sm:$0xff]  ;;  %v2853_v33 = vld [vmem:[%s15078_s28 + $0x2210] sm:$0xff]  ;;  %2850 = vst [vmem:[%s15086_s29 + $0x10f8] sm:$0xff] %v2849_v31 }
 0x124   : > { %2852 = vst [vmem:[%s15086_s29 + $0x1100] sm:$0xff] %v2851_v32  ;;  %2854 = vst [vmem:[%s15086_s29 + $0x1108] sm:$0xff] %v2853_v33  ;;  %v2855_v34 = vld [vmem:[%s15078_s28 + $0x2220] sm:$0xff]  ;;  %v2857_v35 = vld [vmem:[%s15078_s28 + $0x2230] sm:$0xff] }
 0x125   : > { %v2859_v36 = vld [vmem:[%s15078_s28 + $0x2240] sm:$0xff]  ;;  %2856 = vst [vmem:[%s15086_s29 + $0x1110] sm:$0xff] %v2855_v34  ;;  %2858 = vst [vmem:[%s15086_s29 + $0x1118] sm:$0xff] %v2857_v35  ;;  %v2861_v37 = vld [vmem:[%s15078_s28 + $0x2250] sm:$0xff] }
 0x126   : > { %2860 = vst [vmem:[%s15086_s29 + $0x1120] sm:$0xff] %v2859_v36  ;;  %v2863_v38 = vld [vmem:[%s15078_s28 + $0x2260] sm:$0xff]  ;;  %v2865_v39 = vld [vmem:[%s15078_s28 + $0x2270] sm:$0xff]  ;;  %2862 = vst [vmem:[%s15086_s29 + $0x1128] sm:$0xff] %v2861_v37 }
 0x127   : > { %2864 = vst [vmem:[%s15086_s29 + $0x1130] sm:$0xff] %v2863_v38  ;;  %2866 = vst [vmem:[%s15086_s29 + $0x1138] sm:$0xff] %v2865_v39  ;;  %v2867_v40 = vld [vmem:[%s15078_s28 + $0x2280] sm:$0xff]  ;;  %v2869_v41 = vld [vmem:[%s15078_s28 + $0x2290] sm:$0xff] }
 0x128   : > { %v2871_v42 = vld [vmem:[%s15078_s28 + $0x22a0] sm:$0xff]  ;;  %2868 = vst [vmem:[%s15086_s29 + $0x1140] sm:$0xff] %v2867_v40  ;;  %2870 = vst [vmem:[%s15086_s29 + $0x1148] sm:$0xff] %v2869_v41  ;;  %v2873_v43 = vld [vmem:[%s15078_s28 + $0x22b0] sm:$0xff] }
 0x129   : > { %2872 = vst [vmem:[%s15086_s29 + $0x1150] sm:$0xff] %v2871_v42  ;;  %v2875_v44 = vld [vmem:[%s15078_s28 + $0x22c0] sm:$0xff]  ;;  %v2877_v45 = vld [vmem:[%s15078_s28 + $0x22d0] sm:$0xff]  ;;  %2874 = vst [vmem:[%s15086_s29 + $0x1158] sm:$0xff] %v2873_v43 }
 0x12a   : > { %2876 = vst [vmem:[%s15086_s29 + $0x1160] sm:$0xff] %v2875_v44  ;;  %2878 = vst [vmem:[%s15086_s29 + $0x1168] sm:$0xff] %v2877_v45  ;;  %v2879_v46 = vld [vmem:[%s15078_s28 + $0x22e0] sm:$0xff]  ;;  %v2881_v47 = vld [vmem:[%s15078_s28 + $0x22f0] sm:$0xff] }
 0x12b   : > { %v2883_v48 = vld [vmem:[%s15078_s28 + $0x2300] sm:$0xff]  ;;  %2880 = vst [vmem:[%s15086_s29 + $0x1170] sm:$0xff] %v2879_v46  ;;  %2882 = vst [vmem:[%s15086_s29 + $0x1178] sm:$0xff] %v2881_v47  ;;  %v2885_v49 = vld [vmem:[%s15078_s28 + $0x2310] sm:$0xff] }
 0x12c   : > { %2884 = vst [vmem:[%s15086_s29 + $0x1180] sm:$0xff] %v2883_v48  ;;  %v2887_v50 = vld [vmem:[%s15078_s28 + $0x2320] sm:$0xff]  ;;  %v2889_v51 = vld [vmem:[%s15078_s28 + $0x2330] sm:$0xff]  ;;  %2886 = vst [vmem:[%s15086_s29 + $0x1188] sm:$0xff] %v2885_v49 }
 0x12d   : > { %2888 = vst [vmem:[%s15086_s29 + $0x1190] sm:$0xff] %v2887_v50  ;;  %2890 = vst [vmem:[%s15086_s29 + $0x1198] sm:$0xff] %v2889_v51  ;;  %v2891_v52 = vld [vmem:[%s15078_s28 + $0x2340] sm:$0xff]  ;;  %v2893_v53 = vld [vmem:[%s15078_s28 + $0x2350] sm:$0xff] }
 0x12e   : > { %v2895_v54 = vld [vmem:[%s15078_s28 + $0x2360] sm:$0xff]  ;;  %2892 = vst [vmem:[%s15086_s29 + $0x11a0] sm:$0xff] %v2891_v52  ;;  %2894 = vst [vmem:[%s15086_s29 + $0x11a8] sm:$0xff] %v2893_v53  ;;  %v2897_v55 = vld [vmem:[%s15078_s28 + $0x2370] sm:$0xff] }
 0x12f   : > { %2896 = vst [vmem:[%s15086_s29 + $0x11b0] sm:$0xff] %v2895_v54  ;;  %v2899_v56 = vld [vmem:[%s15078_s28 + $0x2380] sm:$0xff]  ;;  %v2901_v57 = vld [vmem:[%s15078_s28 + $0x2390] sm:$0xff]  ;;  %2898 = vst [vmem:[%s15086_s29 + $0x11b8] sm:$0xff] %v2897_v55 }
 0x130   : > { %2900 = vst [vmem:[%s15086_s29 + $0x11c0] sm:$0xff] %v2899_v56  ;;  %2902 = vst [vmem:[%s15086_s29 + $0x11c8] sm:$0xff] %v2901_v57  ;;  %v2903_v58 = vld [vmem:[%s15078_s28 + $0x23a0] sm:$0xff]  ;;  %v2905_v59 = vld [vmem:[%s15078_s28 + $0x23b0] sm:$0xff] }
 0x131   : > { %v2907_v60 = vld [vmem:[%s15078_s28 + $0x23c0] sm:$0xff]  ;;  %2904 = vst [vmem:[%s15086_s29 + $0x11d0] sm:$0xff] %v2903_v58  ;;  %2906 = vst [vmem:[%s15086_s29 + $0x11d8] sm:$0xff] %v2905_v59  ;;  %v2909_v61 = vld [vmem:[%s15078_s28 + $0x23d0] sm:$0xff] }
 0x132   : > { %2908 = vst [vmem:[%s15086_s29 + $0x11e0] sm:$0xff] %v2907_v60  ;;  %v2911_v62 = vld [vmem:[%s15078_s28 + $0x23e0] sm:$0xff]  ;;  %v2913_v63 = vld [vmem:[%s15078_s28 + $0x23f0] sm:$0xff]  ;;  %2910 = vst [vmem:[%s15086_s29 + $0x11e8] sm:$0xff] %v2909_v61 }
 0x133   : > { %2912 = vst [vmem:[%s15086_s29 + $0x11f0] sm:$0xff] %v2911_v62  ;;  %2914 = vst [vmem:[%s15086_s29 + $0x11f8] sm:$0xff] %v2913_v63  ;;  %v2915_v0 = vld [vmem:[%s15078_s28 + $0x2400] sm:$0xff]  ;;  %v2917_v1 = vld [vmem:[%s15078_s28 + $0x2410] sm:$0xff] }
 0x134   : > { %v2919_v2 = vld [vmem:[%s15078_s28 + $0x2420] sm:$0xff]  ;;  %2916 = vst [vmem:[%s15086_s29 + $0x1200] sm:$0xff] %v2915_v0  ;;  %2918 = vst [vmem:[%s15086_s29 + $0x1208] sm:$0xff] %v2917_v1  ;;  %v2921_v3 = vld [vmem:[%s15078_s28 + $0x2430] sm:$0xff] }
 0x135   : > { %2920 = vst [vmem:[%s15086_s29 + $0x1210] sm:$0xff] %v2919_v2  ;;  %v2923_v4 = vld [vmem:[%s15078_s28 + $0x2440] sm:$0xff]  ;;  %v2925_v5 = vld [vmem:[%s15078_s28 + $0x2450] sm:$0xff]  ;;  %2922 = vst [vmem:[%s15086_s29 + $0x1218] sm:$0xff] %v2921_v3 }
 0x136   : > { %2924 = vst [vmem:[%s15086_s29 + $0x1220] sm:$0xff] %v2923_v4  ;;  %2926 = vst [vmem:[%s15086_s29 + $0x1228] sm:$0xff] %v2925_v5  ;;  %v2927_v6 = vld [vmem:[%s15078_s28 + $0x2460] sm:$0xff]  ;;  %v2929_v7 = vld [vmem:[%s15078_s28 + $0x2470] sm:$0xff] }
 0x137   : > { %v2931_v8 = vld [vmem:[%s15078_s28 + $0x2480] sm:$0xff]  ;;  %2928 = vst [vmem:[%s15086_s29 + $0x1230] sm:$0xff] %v2927_v6  ;;  %2930 = vst [vmem:[%s15086_s29 + $0x1238] sm:$0xff] %v2929_v7  ;;  %v2933_v9 = vld [vmem:[%s15078_s28 + $0x2490] sm:$0xff] }
 0x138   : > { %2932 = vst [vmem:[%s15086_s29 + $0x1240] sm:$0xff] %v2931_v8  ;;  %v2935_v10 = vld [vmem:[%s15078_s28 + $0x24a0] sm:$0xff]  ;;  %v2937_v11 = vld [vmem:[%s15078_s28 + $0x24b0] sm:$0xff]  ;;  %2934 = vst [vmem:[%s15086_s29 + $0x1248] sm:$0xff] %v2933_v9 }
 0x139   : > { %2936 = vst [vmem:[%s15086_s29 + $0x1250] sm:$0xff] %v2935_v10  ;;  %2938 = vst [vmem:[%s15086_s29 + $0x1258] sm:$0xff] %v2937_v11  ;;  %v2939_v12 = vld [vmem:[%s15078_s28 + $0x24c0] sm:$0xff]  ;;  %v2941_v13 = vld [vmem:[%s15078_s28 + $0x24d0] sm:$0xff] }
 0x13a   : > { %v2943_v14 = vld [vmem:[%s15078_s28 + $0x24e0] sm:$0xff]  ;;  %2940 = vst [vmem:[%s15086_s29 + $0x1260] sm:$0xff] %v2939_v12  ;;  %2942 = vst [vmem:[%s15086_s29 + $0x1268] sm:$0xff] %v2941_v13  ;;  %v2945_v15 = vld [vmem:[%s15078_s28 + $0x24f0] sm:$0xff] }
 0x13b   : > { %2944 = vst [vmem:[%s15086_s29 + $0x1270] sm:$0xff] %v2943_v14  ;;  %v2947_v16 = vld [vmem:[%s15078_s28 + $0x2500] sm:$0xff]  ;;  %v2949_v17 = vld [vmem:[%s15078_s28 + $0x2510] sm:$0xff]  ;;  %2946 = vst [vmem:[%s15086_s29 + $0x1278] sm:$0xff] %v2945_v15 }
 0x13c   : > { %2948 = vst [vmem:[%s15086_s29 + $0x1280] sm:$0xff] %v2947_v16  ;;  %2950 = vst [vmem:[%s15086_s29 + $0x1288] sm:$0xff] %v2949_v17  ;;  %v2951_v18 = vld [vmem:[%s15078_s28 + $0x2520] sm:$0xff]  ;;  %v2953_v19 = vld [vmem:[%s15078_s28 + $0x2530] sm:$0xff] }
 0x13d   : > { %v2955_v20 = vld [vmem:[%s15078_s28 + $0x2540] sm:$0xff]  ;;  %2952 = vst [vmem:[%s15086_s29 + $0x1290] sm:$0xff] %v2951_v18  ;;  %2954 = vst [vmem:[%s15086_s29 + $0x1298] sm:$0xff] %v2953_v19  ;;  %v2957_v21 = vld [vmem:[%s15078_s28 + $0x2550] sm:$0xff] }
 0x13e   : > { %2956 = vst [vmem:[%s15086_s29 + $0x12a0] sm:$0xff] %v2955_v20  ;;  %v2959_v22 = vld [vmem:[%s15078_s28 + $0x2560] sm:$0xff]  ;;  %v2961_v23 = vld [vmem:[%s15078_s28 + $0x2570] sm:$0xff]  ;;  %2958 = vst [vmem:[%s15086_s29 + $0x12a8] sm:$0xff] %v2957_v21 }
 0x13f   : > { %2960 = vst [vmem:[%s15086_s29 + $0x12b0] sm:$0xff] %v2959_v22  ;;  %2962 = vst [vmem:[%s15086_s29 + $0x12b8] sm:$0xff] %v2961_v23  ;;  %v2963_v24 = vld [vmem:[%s15078_s28 + $0x2580] sm:$0xff]  ;;  %v2965_v25 = vld [vmem:[%s15078_s28 + $0x2590] sm:$0xff] }
 0x140   : > { %v2967_v26 = vld [vmem:[%s15078_s28 + $0x25a0] sm:$0xff]  ;;  %2964 = vst [vmem:[%s15086_s29 + $0x12c0] sm:$0xff] %v2963_v24  ;;  %2966 = vst [vmem:[%s15086_s29 + $0x12c8] sm:$0xff] %v2965_v25  ;;  %v2969_v27 = vld [vmem:[%s15078_s28 + $0x25b0] sm:$0xff] }
 0x141   : > { %2968 = vst [vmem:[%s15086_s29 + $0x12d0] sm:$0xff] %v2967_v26  ;;  %v2971_v28 = vld [vmem:[%s15078_s28 + $0x25c0] sm:$0xff]  ;;  %v2973_v29 = vld [vmem:[%s15078_s28 + $0x25d0] sm:$0xff]  ;;  %2970 = vst [vmem:[%s15086_s29 + $0x12d8] sm:$0xff] %v2969_v27 }
 0x142   : > { %2972 = vst [vmem:[%s15086_s29 + $0x12e0] sm:$0xff] %v2971_v28  ;;  %2974 = vst [vmem:[%s15086_s29 + $0x12e8] sm:$0xff] %v2973_v29  ;;  %v2975_v30 = vld [vmem:[%s15078_s28 + $0x25e0] sm:$0xff]  ;;  %v2977_v31 = vld [vmem:[%s15078_s28 + $0x25f0] sm:$0xff] }
 0x143   : > { %v2979_v32 = vld [vmem:[%s15078_s28 + $0x2600] sm:$0xff]  ;;  %2976 = vst [vmem:[%s15086_s29 + $0x12f0] sm:$0xff] %v2975_v30  ;;  %2978 = vst [vmem:[%s15086_s29 + $0x12f8] sm:$0xff] %v2977_v31  ;;  %v2981_v33 = vld [vmem:[%s15078_s28 + $0x2610] sm:$0xff] }
 0x144   : > { %2980 = vst [vmem:[%s15086_s29 + $0x1300] sm:$0xff] %v2979_v32  ;;  %v2983_v34 = vld [vmem:[%s15078_s28 + $0x2620] sm:$0xff]  ;;  %v2985_v35 = vld [vmem:[%s15078_s28 + $0x2630] sm:$0xff]  ;;  %2982 = vst [vmem:[%s15086_s29 + $0x1308] sm:$0xff] %v2981_v33 }
 0x145   : > { %2984 = vst [vmem:[%s15086_s29 + $0x1310] sm:$0xff] %v2983_v34  ;;  %2986 = vst [vmem:[%s15086_s29 + $0x1318] sm:$0xff] %v2985_v35  ;;  %v2987_v36 = vld [vmem:[%s15078_s28 + $0x2640] sm:$0xff]  ;;  %v2989_v37 = vld [vmem:[%s15078_s28 + $0x2650] sm:$0xff] }
 0x146   : > { %v2991_v38 = vld [vmem:[%s15078_s28 + $0x2660] sm:$0xff]  ;;  %2988 = vst [vmem:[%s15086_s29 + $0x1320] sm:$0xff] %v2987_v36  ;;  %2990 = vst [vmem:[%s15086_s29 + $0x1328] sm:$0xff] %v2989_v37  ;;  %v2993_v39 = vld [vmem:[%s15078_s28 + $0x2670] sm:$0xff] }
 0x147   : > { %2992 = vst [vmem:[%s15086_s29 + $0x1330] sm:$0xff] %v2991_v38  ;;  %v2995_v40 = vld [vmem:[%s15078_s28 + $0x2680] sm:$0xff]  ;;  %v2997_v41 = vld [vmem:[%s15078_s28 + $0x2690] sm:$0xff]  ;;  %2994 = vst [vmem:[%s15086_s29 + $0x1338] sm:$0xff] %v2993_v39 }
 0x148   : > { %2996 = vst [vmem:[%s15086_s29 + $0x1340] sm:$0xff] %v2995_v40  ;;  %2998 = vst [vmem:[%s15086_s29 + $0x1348] sm:$0xff] %v2997_v41  ;;  %v2999_v42 = vld [vmem:[%s15078_s28 + $0x26a0] sm:$0xff]  ;;  %v3001_v43 = vld [vmem:[%s15078_s28 + $0x26b0] sm:$0xff] }
 0x149   : > { %v3003_v44 = vld [vmem:[%s15078_s28 + $0x26c0] sm:$0xff]  ;;  %3000 = vst [vmem:[%s15086_s29 + $0x1350] sm:$0xff] %v2999_v42  ;;  %3002 = vst [vmem:[%s15086_s29 + $0x1358] sm:$0xff] %v3001_v43  ;;  %v3005_v45 = vld [vmem:[%s15078_s28 + $0x26d0] sm:$0xff] }
 0x14a   : > { %3004 = vst [vmem:[%s15086_s29 + $0x1360] sm:$0xff] %v3003_v44  ;;  %v3007_v46 = vld [vmem:[%s15078_s28 + $0x26e0] sm:$0xff]  ;;  %v3009_v47 = vld [vmem:[%s15078_s28 + $0x26f0] sm:$0xff]  ;;  %3006 = vst [vmem:[%s15086_s29 + $0x1368] sm:$0xff] %v3005_v45 }
 0x14b   : > { %3008 = vst [vmem:[%s15086_s29 + $0x1370] sm:$0xff] %v3007_v46  ;;  %3010 = vst [vmem:[%s15086_s29 + $0x1378] sm:$0xff] %v3009_v47  ;;  %v3011_v48 = vld [vmem:[%s15078_s28 + $0x2700] sm:$0xff]  ;;  %v3013_v49 = vld [vmem:[%s15078_s28 + $0x2710] sm:$0xff] }
 0x14c   : > { %v3015_v50 = vld [vmem:[%s15078_s28 + $0x2720] sm:$0xff]  ;;  %3012 = vst [vmem:[%s15086_s29 + $0x1380] sm:$0xff] %v3011_v48  ;;  %3014 = vst [vmem:[%s15086_s29 + $0x1388] sm:$0xff] %v3013_v49  ;;  %v3017_v51 = vld [vmem:[%s15078_s28 + $0x2730] sm:$0xff] }
 0x14d   : > { %3016 = vst [vmem:[%s15086_s29 + $0x1390] sm:$0xff] %v3015_v50  ;;  %v3019_v52 = vld [vmem:[%s15078_s28 + $0x2740] sm:$0xff]  ;;  %v3021_v53 = vld [vmem:[%s15078_s28 + $0x2750] sm:$0xff]  ;;  %3018 = vst [vmem:[%s15086_s29 + $0x1398] sm:$0xff] %v3017_v51 }
 0x14e   : > { %3020 = vst [vmem:[%s15086_s29 + $0x13a0] sm:$0xff] %v3019_v52  ;;  %3022 = vst [vmem:[%s15086_s29 + $0x13a8] sm:$0xff] %v3021_v53  ;;  %v3023_v54 = vld [vmem:[%s15078_s28 + $0x2760] sm:$0xff]  ;;  %v3025_v55 = vld [vmem:[%s15078_s28 + $0x2770] sm:$0xff] }
 0x14f   : > { %v3027_v56 = vld [vmem:[%s15078_s28 + $0x2780] sm:$0xff]  ;;  %3024 = vst [vmem:[%s15086_s29 + $0x13b0] sm:$0xff] %v3023_v54  ;;  %3026 = vst [vmem:[%s15086_s29 + $0x13b8] sm:$0xff] %v3025_v55  ;;  %v3029_v57 = vld [vmem:[%s15078_s28 + $0x2790] sm:$0xff] }
 0x150   : > { %3028 = vst [vmem:[%s15086_s29 + $0x13c0] sm:$0xff] %v3027_v56  ;;  %v3031_v58 = vld [vmem:[%s15078_s28 + $0x27a0] sm:$0xff]  ;;  %v3033_v59 = vld [vmem:[%s15078_s28 + $0x27b0] sm:$0xff]  ;;  %3030 = vst [vmem:[%s15086_s29 + $0x13c8] sm:$0xff] %v3029_v57 }
 0x151   : > { %3032 = vst [vmem:[%s15086_s29 + $0x13d0] sm:$0xff] %v3031_v58  ;;  %3034 = vst [vmem:[%s15086_s29 + $0x13d8] sm:$0xff] %v3033_v59  ;;  %v3035_v60 = vld [vmem:[%s15078_s28 + $0x27c0] sm:$0xff]  ;;  %v3037_v61 = vld [vmem:[%s15078_s28 + $0x27d0] sm:$0xff] }
 0x152   : > { %v3039_v62 = vld [vmem:[%s15078_s28 + $0x27e0] sm:$0xff]  ;;  %3036 = vst [vmem:[%s15086_s29 + $0x13e0] sm:$0xff] %v3035_v60  ;;  %3038 = vst [vmem:[%s15086_s29 + $0x13e8] sm:$0xff] %v3037_v61  ;;  %v3041_v63 = vld [vmem:[%s15078_s28 + $0x27f0] sm:$0xff] }
 0x153   : > { %3040 = vst [vmem:[%s15086_s29 + $0x13f0] sm:$0xff] %v3039_v62  ;;  %v3043_v0 = vld [vmem:[%s15078_s28 + $0x2800] sm:$0xff]  ;;  %v3045_v1 = vld [vmem:[%s15078_s28 + $0x2810] sm:$0xff]  ;;  %3042 = vst [vmem:[%s15086_s29 + $0x13f8] sm:$0xff] %v3041_v63 }
 0x154   : > { %3044 = vst [vmem:[%s15086_s29 + $0x1400] sm:$0xff] %v3043_v0  ;;  %3046 = vst [vmem:[%s15086_s29 + $0x1408] sm:$0xff] %v3045_v1  ;;  %v3047_v2 = vld [vmem:[%s15078_s28 + $0x2820] sm:$0xff]  ;;  %v3049_v3 = vld [vmem:[%s15078_s28 + $0x2830] sm:$0xff] }
 0x155   : > { %v3051_v4 = vld [vmem:[%s15078_s28 + $0x2840] sm:$0xff]  ;;  %3048 = vst [vmem:[%s15086_s29 + $0x1410] sm:$0xff] %v3047_v2  ;;  %3050 = vst [vmem:[%s15086_s29 + $0x1418] sm:$0xff] %v3049_v3  ;;  %v3053_v5 = vld [vmem:[%s15078_s28 + $0x2850] sm:$0xff] }
 0x156   : > { %3052 = vst [vmem:[%s15086_s29 + $0x1420] sm:$0xff] %v3051_v4  ;;  %v3055_v6 = vld [vmem:[%s15078_s28 + $0x2860] sm:$0xff]  ;;  %v3057_v7 = vld [vmem:[%s15078_s28 + $0x2870] sm:$0xff]  ;;  %3054 = vst [vmem:[%s15086_s29 + $0x1428] sm:$0xff] %v3053_v5 }
 0x157   : > { %3056 = vst [vmem:[%s15086_s29 + $0x1430] sm:$0xff] %v3055_v6  ;;  %3058 = vst [vmem:[%s15086_s29 + $0x1438] sm:$0xff] %v3057_v7  ;;  %v3059_v8 = vld [vmem:[%s15078_s28 + $0x2880] sm:$0xff]  ;;  %v3061_v9 = vld [vmem:[%s15078_s28 + $0x2890] sm:$0xff] }
 0x158   : > { %v3063_v10 = vld [vmem:[%s15078_s28 + $0x28a0] sm:$0xff]  ;;  %3060 = vst [vmem:[%s15086_s29 + $0x1440] sm:$0xff] %v3059_v8  ;;  %3062 = vst [vmem:[%s15086_s29 + $0x1448] sm:$0xff] %v3061_v9  ;;  %v3065_v11 = vld [vmem:[%s15078_s28 + $0x28b0] sm:$0xff] }
 0x159   : > { %3064 = vst [vmem:[%s15086_s29 + $0x1450] sm:$0xff] %v3063_v10  ;;  %v3067_v12 = vld [vmem:[%s15078_s28 + $0x28c0] sm:$0xff]  ;;  %v3069_v13 = vld [vmem:[%s15078_s28 + $0x28d0] sm:$0xff]  ;;  %3066 = vst [vmem:[%s15086_s29 + $0x1458] sm:$0xff] %v3065_v11 }
 0x15a   : > { %3068 = vst [vmem:[%s15086_s29 + $0x1460] sm:$0xff] %v3067_v12  ;;  %3070 = vst [vmem:[%s15086_s29 + $0x1468] sm:$0xff] %v3069_v13  ;;  %v3071_v14 = vld [vmem:[%s15078_s28 + $0x28e0] sm:$0xff]  ;;  %v3073_v15 = vld [vmem:[%s15078_s28 + $0x28f0] sm:$0xff] }
 0x15b   : > { %v3075_v16 = vld [vmem:[%s15078_s28 + $0x2900] sm:$0xff]  ;;  %3072 = vst [vmem:[%s15086_s29 + $0x1470] sm:$0xff] %v3071_v14  ;;  %3074 = vst [vmem:[%s15086_s29 + $0x1478] sm:$0xff] %v3073_v15  ;;  %v3077_v17 = vld [vmem:[%s15078_s28 + $0x2910] sm:$0xff] }
 0x15c   : > { %3076 = vst [vmem:[%s15086_s29 + $0x1480] sm:$0xff] %v3075_v16  ;;  %v3079_v18 = vld [vmem:[%s15078_s28 + $0x2920] sm:$0xff]  ;;  %v3081_v19 = vld [vmem:[%s15078_s28 + $0x2930] sm:$0xff]  ;;  %3078 = vst [vmem:[%s15086_s29 + $0x1488] sm:$0xff] %v3077_v17 }
 0x15d   : > { %3080 = vst [vmem:[%s15086_s29 + $0x1490] sm:$0xff] %v3079_v18  ;;  %3082 = vst [vmem:[%s15086_s29 + $0x1498] sm:$0xff] %v3081_v19  ;;  %v3083_v20 = vld [vmem:[%s15078_s28 + $0x2940] sm:$0xff]  ;;  %v3085_v21 = vld [vmem:[%s15078_s28 + $0x2950] sm:$0xff] }
 0x15e   : > { %v3087_v22 = vld [vmem:[%s15078_s28 + $0x2960] sm:$0xff]  ;;  %3084 = vst [vmem:[%s15086_s29 + $0x14a0] sm:$0xff] %v3083_v20  ;;  %3086 = vst [vmem:[%s15086_s29 + $0x14a8] sm:$0xff] %v3085_v21  ;;  %v3089_v23 = vld [vmem:[%s15078_s28 + $0x2970] sm:$0xff] }
 0x15f   : > { %3088 = vst [vmem:[%s15086_s29 + $0x14b0] sm:$0xff] %v3087_v22  ;;  %v3091_v24 = vld [vmem:[%s15078_s28 + $0x2980] sm:$0xff]  ;;  %v3093_v25 = vld [vmem:[%s15078_s28 + $0x2990] sm:$0xff]  ;;  %3090 = vst [vmem:[%s15086_s29 + $0x14b8] sm:$0xff] %v3089_v23 }
 0x160   : > { %3092 = vst [vmem:[%s15086_s29 + $0x14c0] sm:$0xff] %v3091_v24  ;;  %3094 = vst [vmem:[%s15086_s29 + $0x14c8] sm:$0xff] %v3093_v25  ;;  %v3095_v26 = vld [vmem:[%s15078_s28 + $0x29a0] sm:$0xff]  ;;  %v3097_v27 = vld [vmem:[%s15078_s28 + $0x29b0] sm:$0xff] }
 0x161   : > { %v3099_v28 = vld [vmem:[%s15078_s28 + $0x29c0] sm:$0xff]  ;;  %3096 = vst [vmem:[%s15086_s29 + $0x14d0] sm:$0xff] %v3095_v26  ;;  %3098 = vst [vmem:[%s15086_s29 + $0x14d8] sm:$0xff] %v3097_v27  ;;  %v3101_v29 = vld [vmem:[%s15078_s28 + $0x29d0] sm:$0xff] }
 0x162   : > { %3100 = vst [vmem:[%s15086_s29 + $0x14e0] sm:$0xff] %v3099_v28  ;;  %v3103_v30 = vld [vmem:[%s15078_s28 + $0x29e0] sm:$0xff]  ;;  %v3105_v31 = vld [vmem:[%s15078_s28 + $0x29f0] sm:$0xff]  ;;  %3102 = vst [vmem:[%s15086_s29 + $0x14e8] sm:$0xff] %v3101_v29 }
 0x163   : > { %3104 = vst [vmem:[%s15086_s29 + $0x14f0] sm:$0xff] %v3103_v30  ;;  %3106 = vst [vmem:[%s15086_s29 + $0x14f8] sm:$0xff] %v3105_v31  ;;  %v3107_v32 = vld [vmem:[%s15078_s28 + $0x2a00] sm:$0xff]  ;;  %v3109_v33 = vld [vmem:[%s15078_s28 + $0x2a10] sm:$0xff] }
 0x164   : > { %v3111_v34 = vld [vmem:[%s15078_s28 + $0x2a20] sm:$0xff]  ;;  %3108 = vst [vmem:[%s15086_s29 + $0x1500] sm:$0xff] %v3107_v32  ;;  %3110 = vst [vmem:[%s15086_s29 + $0x1508] sm:$0xff] %v3109_v33  ;;  %v3113_v35 = vld [vmem:[%s15078_s28 + $0x2a30] sm:$0xff] }
 0x165   : > { %3112 = vst [vmem:[%s15086_s29 + $0x1510] sm:$0xff] %v3111_v34  ;;  %v3115_v36 = vld [vmem:[%s15078_s28 + $0x2a40] sm:$0xff]  ;;  %v3117_v37 = vld [vmem:[%s15078_s28 + $0x2a50] sm:$0xff]  ;;  %3114 = vst [vmem:[%s15086_s29 + $0x1518] sm:$0xff] %v3113_v35 }
 0x166   : > { %3116 = vst [vmem:[%s15086_s29 + $0x1520] sm:$0xff] %v3115_v36  ;;  %3118 = vst [vmem:[%s15086_s29 + $0x1528] sm:$0xff] %v3117_v37  ;;  %v3119_v38 = vld [vmem:[%s15078_s28 + $0x2a60] sm:$0xff]  ;;  %v3121_v39 = vld [vmem:[%s15078_s28 + $0x2a70] sm:$0xff] }
 0x167   : > { %v3123_v40 = vld [vmem:[%s15078_s28 + $0x2a80] sm:$0xff]  ;;  %3120 = vst [vmem:[%s15086_s29 + $0x1530] sm:$0xff] %v3119_v38  ;;  %3122 = vst [vmem:[%s15086_s29 + $0x1538] sm:$0xff] %v3121_v39  ;;  %v3125_v41 = vld [vmem:[%s15078_s28 + $0x2a90] sm:$0xff] }
 0x168   : > { %3124 = vst [vmem:[%s15086_s29 + $0x1540] sm:$0xff] %v3123_v40  ;;  %v3127_v42 = vld [vmem:[%s15078_s28 + $0x2aa0] sm:$0xff]  ;;  %v3129_v43 = vld [vmem:[%s15078_s28 + $0x2ab0] sm:$0xff]  ;;  %3126 = vst [vmem:[%s15086_s29 + $0x1548] sm:$0xff] %v3125_v41 }
 0x169   : > { %3128 = vst [vmem:[%s15086_s29 + $0x1550] sm:$0xff] %v3127_v42  ;;  %3130 = vst [vmem:[%s15086_s29 + $0x1558] sm:$0xff] %v3129_v43  ;;  %v3131_v44 = vld [vmem:[%s15078_s28 + $0x2ac0] sm:$0xff]  ;;  %v3133_v45 = vld [vmem:[%s15078_s28 + $0x2ad0] sm:$0xff] }
 0x16a   : > { %v3135_v46 = vld [vmem:[%s15078_s28 + $0x2ae0] sm:$0xff]  ;;  %3132 = vst [vmem:[%s15086_s29 + $0x1560] sm:$0xff] %v3131_v44  ;;  %3134 = vst [vmem:[%s15086_s29 + $0x1568] sm:$0xff] %v3133_v45  ;;  %v3137_v47 = vld [vmem:[%s15078_s28 + $0x2af0] sm:$0xff] }
 0x16b   : > { %3136 = vst [vmem:[%s15086_s29 + $0x1570] sm:$0xff] %v3135_v46  ;;  %v3139_v48 = vld [vmem:[%s15078_s28 + $0x2b00] sm:$0xff]  ;;  %v3141_v49 = vld [vmem:[%s15078_s28 + $0x2b10] sm:$0xff]  ;;  %3138 = vst [vmem:[%s15086_s29 + $0x1578] sm:$0xff] %v3137_v47 }
 0x16c   : > { %3140 = vst [vmem:[%s15086_s29 + $0x1580] sm:$0xff] %v3139_v48  ;;  %3142 = vst [vmem:[%s15086_s29 + $0x1588] sm:$0xff] %v3141_v49  ;;  %v3143_v50 = vld [vmem:[%s15078_s28 + $0x2b20] sm:$0xff]  ;;  %v3145_v51 = vld [vmem:[%s15078_s28 + $0x2b30] sm:$0xff] }
 0x16d   : > { %v3147_v52 = vld [vmem:[%s15078_s28 + $0x2b40] sm:$0xff]  ;;  %3144 = vst [vmem:[%s15086_s29 + $0x1590] sm:$0xff] %v3143_v50  ;;  %3146 = vst [vmem:[%s15086_s29 + $0x1598] sm:$0xff] %v3145_v51  ;;  %v3149_v53 = vld [vmem:[%s15078_s28 + $0x2b50] sm:$0xff] }
 0x16e   : > { %3148 = vst [vmem:[%s15086_s29 + $0x15a0] sm:$0xff] %v3147_v52  ;;  %v3151_v54 = vld [vmem:[%s15078_s28 + $0x2b60] sm:$0xff]  ;;  %v3153_v55 = vld [vmem:[%s15078_s28 + $0x2b70] sm:$0xff]  ;;  %3150 = vst [vmem:[%s15086_s29 + $0x15a8] sm:$0xff] %v3149_v53 }
 0x16f   : > { %3152 = vst [vmem:[%s15086_s29 + $0x15b0] sm:$0xff] %v3151_v54  ;;  %3154 = vst [vmem:[%s15086_s29 + $0x15b8] sm:$0xff] %v3153_v55  ;;  %v3155_v56 = vld [vmem:[%s15078_s28 + $0x2b80] sm:$0xff]  ;;  %v3157_v57 = vld [vmem:[%s15078_s28 + $0x2b90] sm:$0xff] }
 0x170   : > { %v3159_v58 = vld [vmem:[%s15078_s28 + $0x2ba0] sm:$0xff]  ;;  %3156 = vst [vmem:[%s15086_s29 + $0x15c0] sm:$0xff] %v3155_v56  ;;  %3158 = vst [vmem:[%s15086_s29 + $0x15c8] sm:$0xff] %v3157_v57  ;;  %v3161_v59 = vld [vmem:[%s15078_s28 + $0x2bb0] sm:$0xff] }
 0x171   : > { %3160 = vst [vmem:[%s15086_s29 + $0x15d0] sm:$0xff] %v3159_v58  ;;  %v3163_v60 = vld [vmem:[%s15078_s28 + $0x2bc0] sm:$0xff]  ;;  %v3165_v61 = vld [vmem:[%s15078_s28 + $0x2bd0] sm:$0xff]  ;;  %3162 = vst [vmem:[%s15086_s29 + $0x15d8] sm:$0xff] %v3161_v59 }
 0x172   : > { %3164 = vst [vmem:[%s15086_s29 + $0x15e0] sm:$0xff] %v3163_v60  ;;  %3166 = vst [vmem:[%s15086_s29 + $0x15e8] sm:$0xff] %v3165_v61  ;;  %v3167_v62 = vld [vmem:[%s15078_s28 + $0x2be0] sm:$0xff]  ;;  %v3169_v63 = vld [vmem:[%s15078_s28 + $0x2bf0] sm:$0xff] }
 0x173   : > { %v3171_v0 = vld [vmem:[%s15078_s28 + $0x2c00] sm:$0xff]  ;;  %3168 = vst [vmem:[%s15086_s29 + $0x15f0] sm:$0xff] %v3167_v62  ;;  %3170 = vst [vmem:[%s15086_s29 + $0x15f8] sm:$0xff] %v3169_v63  ;;  %v3173_v1 = vld [vmem:[%s15078_s28 + $0x2c10] sm:$0xff] }
 0x174   : > { %3172 = vst [vmem:[%s15086_s29 + $0x1600] sm:$0xff] %v3171_v0  ;;  %v3175_v2 = vld [vmem:[%s15078_s28 + $0x2c20] sm:$0xff]  ;;  %v3177_v3 = vld [vmem:[%s15078_s28 + $0x2c30] sm:$0xff]  ;;  %3174 = vst [vmem:[%s15086_s29 + $0x1608] sm:$0xff] %v3173_v1 }
 0x175   : > { %3176 = vst [vmem:[%s15086_s29 + $0x1610] sm:$0xff] %v3175_v2  ;;  %3178 = vst [vmem:[%s15086_s29 + $0x1618] sm:$0xff] %v3177_v3  ;;  %v3179_v4 = vld [vmem:[%s15078_s28 + $0x2c40] sm:$0xff]  ;;  %v3181_v5 = vld [vmem:[%s15078_s28 + $0x2c50] sm:$0xff] }
 0x176   : > { %v3183_v6 = vld [vmem:[%s15078_s28 + $0x2c60] sm:$0xff]  ;;  %3180 = vst [vmem:[%s15086_s29 + $0x1620] sm:$0xff] %v3179_v4  ;;  %3182 = vst [vmem:[%s15086_s29 + $0x1628] sm:$0xff] %v3181_v5  ;;  %v3185_v7 = vld [vmem:[%s15078_s28 + $0x2c70] sm:$0xff] }
 0x177   : > { %3184 = vst [vmem:[%s15086_s29 + $0x1630] sm:$0xff] %v3183_v6  ;;  %v3187_v8 = vld [vmem:[%s15078_s28 + $0x2c80] sm:$0xff]  ;;  %v3189_v9 = vld [vmem:[%s15078_s28 + $0x2c90] sm:$0xff]  ;;  %3186 = vst [vmem:[%s15086_s29 + $0x1638] sm:$0xff] %v3185_v7 }
 0x178   : > { %3188 = vst [vmem:[%s15086_s29 + $0x1640] sm:$0xff] %v3187_v8  ;;  %3190 = vst [vmem:[%s15086_s29 + $0x1648] sm:$0xff] %v3189_v9  ;;  %v3191_v10 = vld [vmem:[%s15078_s28 + $0x2ca0] sm:$0xff]  ;;  %v3193_v11 = vld [vmem:[%s15078_s28 + $0x2cb0] sm:$0xff] }
 0x179   : > { %v3195_v12 = vld [vmem:[%s15078_s28 + $0x2cc0] sm:$0xff]  ;;  %3192 = vst [vmem:[%s15086_s29 + $0x1650] sm:$0xff] %v3191_v10  ;;  %3194 = vst [vmem:[%s15086_s29 + $0x1658] sm:$0xff] %v3193_v11  ;;  %v3197_v13 = vld [vmem:[%s15078_s28 + $0x2cd0] sm:$0xff] }
 0x17a   : > { %3196 = vst [vmem:[%s15086_s29 + $0x1660] sm:$0xff] %v3195_v12  ;;  %v3199_v14 = vld [vmem:[%s15078_s28 + $0x2ce0] sm:$0xff]  ;;  %v3201_v15 = vld [vmem:[%s15078_s28 + $0x2cf0] sm:$0xff]  ;;  %3198 = vst [vmem:[%s15086_s29 + $0x1668] sm:$0xff] %v3197_v13 }
 0x17b   : > { %3200 = vst [vmem:[%s15086_s29 + $0x1670] sm:$0xff] %v3199_v14  ;;  %3202 = vst [vmem:[%s15086_s29 + $0x1678] sm:$0xff] %v3201_v15  ;;  %v3203_v16 = vld [vmem:[%s15078_s28 + $0x2d00] sm:$0xff]  ;;  %v3205_v17 = vld [vmem:[%s15078_s28 + $0x2d10] sm:$0xff] }
 0x17c   : > { %v3207_v18 = vld [vmem:[%s15078_s28 + $0x2d20] sm:$0xff]  ;;  %3204 = vst [vmem:[%s15086_s29 + $0x1680] sm:$0xff] %v3203_v16  ;;  %3206 = vst [vmem:[%s15086_s29 + $0x1688] sm:$0xff] %v3205_v17  ;;  %v3209_v19 = vld [vmem:[%s15078_s28 + $0x2d30] sm:$0xff] }
 0x17d   : > { %3208 = vst [vmem:[%s15086_s29 + $0x1690] sm:$0xff] %v3207_v18  ;;  %v3211_v20 = vld [vmem:[%s15078_s28 + $0x2d40] sm:$0xff]  ;;  %v3213_v21 = vld [vmem:[%s15078_s28 + $0x2d50] sm:$0xff]  ;;  %3210 = vst [vmem:[%s15086_s29 + $0x1698] sm:$0xff] %v3209_v19 }
 0x17e   : > { %3212 = vst [vmem:[%s15086_s29 + $0x16a0] sm:$0xff] %v3211_v20  ;;  %3214 = vst [vmem:[%s15086_s29 + $0x16a8] sm:$0xff] %v3213_v21  ;;  %v3215_v22 = vld [vmem:[%s15078_s28 + $0x2d60] sm:$0xff]  ;;  %v3217_v23 = vld [vmem:[%s15078_s28 + $0x2d70] sm:$0xff] }
 0x17f   : > { %v3219_v24 = vld [vmem:[%s15078_s28 + $0x2d80] sm:$0xff]  ;;  %3216 = vst [vmem:[%s15086_s29 + $0x16b0] sm:$0xff] %v3215_v22  ;;  %3218 = vst [vmem:[%s15086_s29 + $0x16b8] sm:$0xff] %v3217_v23  ;;  %v3221_v25 = vld [vmem:[%s15078_s28 + $0x2d90] sm:$0xff] }
 0x180   : > { %3220 = vst [vmem:[%s15086_s29 + $0x16c0] sm:$0xff] %v3219_v24  ;;  %v3223_v26 = vld [vmem:[%s15078_s28 + $0x2da0] sm:$0xff]  ;;  %v3225_v27 = vld [vmem:[%s15078_s28 + $0x2db0] sm:$0xff]  ;;  %3222 = vst [vmem:[%s15086_s29 + $0x16c8] sm:$0xff] %v3221_v25 }
 0x181   : > { %3224 = vst [vmem:[%s15086_s29 + $0x16d0] sm:$0xff] %v3223_v26  ;;  %3226 = vst [vmem:[%s15086_s29 + $0x16d8] sm:$0xff] %v3225_v27  ;;  %v3227_v28 = vld [vmem:[%s15078_s28 + $0x2dc0] sm:$0xff]  ;;  %v3229_v29 = vld [vmem:[%s15078_s28 + $0x2dd0] sm:$0xff] }
 0x182   : > { %v3231_v30 = vld [vmem:[%s15078_s28 + $0x2de0] sm:$0xff]  ;;  %3228 = vst [vmem:[%s15086_s29 + $0x16e0] sm:$0xff] %v3227_v28  ;;  %3230 = vst [vmem:[%s15086_s29 + $0x16e8] sm:$0xff] %v3229_v29  ;;  %v3233_v31 = vld [vmem:[%s15078_s28 + $0x2df0] sm:$0xff] }
 0x183   : > { %3232 = vst [vmem:[%s15086_s29 + $0x16f0] sm:$0xff] %v3231_v30  ;;  %v3235_v32 = vld [vmem:[%s15078_s28 + $0x2e00] sm:$0xff]  ;;  %v3237_v33 = vld [vmem:[%s15078_s28 + $0x2e10] sm:$0xff]  ;;  %3234 = vst [vmem:[%s15086_s29 + $0x16f8] sm:$0xff] %v3233_v31 }
 0x184   : > { %3236 = vst [vmem:[%s15086_s29 + $0x1700] sm:$0xff] %v3235_v32  ;;  %3238 = vst [vmem:[%s15086_s29 + $0x1708] sm:$0xff] %v3237_v33  ;;  %v3239_v34 = vld [vmem:[%s15078_s28 + $0x2e20] sm:$0xff]  ;;  %v3241_v35 = vld [vmem:[%s15078_s28 + $0x2e30] sm:$0xff] }
 0x185   : > { %v3243_v36 = vld [vmem:[%s15078_s28 + $0x2e40] sm:$0xff]  ;;  %3240 = vst [vmem:[%s15086_s29 + $0x1710] sm:$0xff] %v3239_v34  ;;  %3242 = vst [vmem:[%s15086_s29 + $0x1718] sm:$0xff] %v3241_v35  ;;  %v3245_v37 = vld [vmem:[%s15078_s28 + $0x2e50] sm:$0xff] }
 0x186   : > { %3244 = vst [vmem:[%s15086_s29 + $0x1720] sm:$0xff] %v3243_v36  ;;  %v3247_v38 = vld [vmem:[%s15078_s28 + $0x2e60] sm:$0xff]  ;;  %v3249_v39 = vld [vmem:[%s15078_s28 + $0x2e70] sm:$0xff]  ;;  %3246 = vst [vmem:[%s15086_s29 + $0x1728] sm:$0xff] %v3245_v37 }
 0x187   : > { %3248 = vst [vmem:[%s15086_s29 + $0x1730] sm:$0xff] %v3247_v38  ;;  %3250 = vst [vmem:[%s15086_s29 + $0x1738] sm:$0xff] %v3249_v39  ;;  %v3251_v40 = vld [vmem:[%s15078_s28 + $0x2e80] sm:$0xff]  ;;  %v3253_v41 = vld [vmem:[%s15078_s28 + $0x2e90] sm:$0xff] }
 0x188   : > { %v3255_v42 = vld [vmem:[%s15078_s28 + $0x2ea0] sm:$0xff]  ;;  %3252 = vst [vmem:[%s15086_s29 + $0x1740] sm:$0xff] %v3251_v40  ;;  %3254 = vst [vmem:[%s15086_s29 + $0x1748] sm:$0xff] %v3253_v41  ;;  %v3257_v43 = vld [vmem:[%s15078_s28 + $0x2eb0] sm:$0xff] }
 0x189   : > { %3256 = vst [vmem:[%s15086_s29 + $0x1750] sm:$0xff] %v3255_v42  ;;  %v3259_v44 = vld [vmem:[%s15078_s28 + $0x2ec0] sm:$0xff]  ;;  %v3261_v45 = vld [vmem:[%s15078_s28 + $0x2ed0] sm:$0xff]  ;;  %3258 = vst [vmem:[%s15086_s29 + $0x1758] sm:$0xff] %v3257_v43 }
 0x18a   : > { %3260 = vst [vmem:[%s15086_s29 + $0x1760] sm:$0xff] %v3259_v44  ;;  %3262 = vst [vmem:[%s15086_s29 + $0x1768] sm:$0xff] %v3261_v45  ;;  %v3263_v46 = vld [vmem:[%s15078_s28 + $0x2ee0] sm:$0xff]  ;;  %v3265_v47 = vld [vmem:[%s15078_s28 + $0x2ef0] sm:$0xff] }
 0x18b   : > { %v3267_v48 = vld [vmem:[%s15078_s28 + $0x2f00] sm:$0xff]  ;;  %3264 = vst [vmem:[%s15086_s29 + $0x1770] sm:$0xff] %v3263_v46  ;;  %3266 = vst [vmem:[%s15086_s29 + $0x1778] sm:$0xff] %v3265_v47  ;;  %v3269_v49 = vld [vmem:[%s15078_s28 + $0x2f10] sm:$0xff] }
 0x18c   : > { %3268 = vst [vmem:[%s15086_s29 + $0x1780] sm:$0xff] %v3267_v48  ;;  %v3271_v50 = vld [vmem:[%s15078_s28 + $0x2f20] sm:$0xff]  ;;  %v3273_v51 = vld [vmem:[%s15078_s28 + $0x2f30] sm:$0xff]  ;;  %3270 = vst [vmem:[%s15086_s29 + $0x1788] sm:$0xff] %v3269_v49 }
 0x18d   : > { %3272 = vst [vmem:[%s15086_s29 + $0x1790] sm:$0xff] %v3271_v50  ;;  %3274 = vst [vmem:[%s15086_s29 + $0x1798] sm:$0xff] %v3273_v51  ;;  %v3275_v52 = vld [vmem:[%s15078_s28 + $0x2f40] sm:$0xff]  ;;  %v3277_v53 = vld [vmem:[%s15078_s28 + $0x2f50] sm:$0xff] }
 0x18e   : > { %v3279_v54 = vld [vmem:[%s15078_s28 + $0x2f60] sm:$0xff]  ;;  %3276 = vst [vmem:[%s15086_s29 + $0x17a0] sm:$0xff] %v3275_v52  ;;  %3278 = vst [vmem:[%s15086_s29 + $0x17a8] sm:$0xff] %v3277_v53  ;;  %v3281_v55 = vld [vmem:[%s15078_s28 + $0x2f70] sm:$0xff] }
 0x18f   : > { %3280 = vst [vmem:[%s15086_s29 + $0x17b0] sm:$0xff] %v3279_v54  ;;  %v3283_v56 = vld [vmem:[%s15078_s28 + $0x2f80] sm:$0xff]  ;;  %v3285_v57 = vld [vmem:[%s15078_s28 + $0x2f90] sm:$0xff]  ;;  %3282 = vst [vmem:[%s15086_s29 + $0x17b8] sm:$0xff] %v3281_v55 }
 0x190   : > { %3284 = vst [vmem:[%s15086_s29 + $0x17c0] sm:$0xff] %v3283_v56  ;;  %3286 = vst [vmem:[%s15086_s29 + $0x17c8] sm:$0xff] %v3285_v57  ;;  %v3287_v58 = vld [vmem:[%s15078_s28 + $0x2fa0] sm:$0xff]  ;;  %v3289_v59 = vld [vmem:[%s15078_s28 + $0x2fb0] sm:$0xff] }
 0x191   : > { %v3291_v60 = vld [vmem:[%s15078_s28 + $0x2fc0] sm:$0xff]  ;;  %3288 = vst [vmem:[%s15086_s29 + $0x17d0] sm:$0xff] %v3287_v58  ;;  %3290 = vst [vmem:[%s15086_s29 + $0x17d8] sm:$0xff] %v3289_v59  ;;  %v3293_v61 = vld [vmem:[%s15078_s28 + $0x2fd0] sm:$0xff] }
 0x192   : > { %3292 = vst [vmem:[%s15086_s29 + $0x17e0] sm:$0xff] %v3291_v60  ;;  %v3295_v62 = vld [vmem:[%s15078_s28 + $0x2fe0] sm:$0xff]  ;;  %v3297_v63 = vld [vmem:[%s15078_s28 + $0x2ff0] sm:$0xff]  ;;  %3294 = vst [vmem:[%s15086_s29 + $0x17e8] sm:$0xff] %v3293_v61 }
 0x193   : > { %3296 = vst [vmem:[%s15086_s29 + $0x17f0] sm:$0xff] %v3295_v62  ;;  %3298 = vst [vmem:[%s15086_s29 + $0x17f8] sm:$0xff] %v3297_v63  ;;  %v3299_v0 = vld [vmem:[%s15078_s28 + $0x3000] sm:$0xff]  ;;  %v3301_v1 = vld [vmem:[%s15078_s28 + $0x3010] sm:$0xff] }
 0x194   : > { %v3303_v2 = vld [vmem:[%s15078_s28 + $0x3020] sm:$0xff]  ;;  %3300 = vst [vmem:[%s15086_s29 + $0x1800] sm:$0xff] %v3299_v0  ;;  %3302 = vst [vmem:[%s15086_s29 + $0x1808] sm:$0xff] %v3301_v1  ;;  %v3305_v3 = vld [vmem:[%s15078_s28 + $0x3030] sm:$0xff] }
 0x195   : > { %3304 = vst [vmem:[%s15086_s29 + $0x1810] sm:$0xff] %v3303_v2  ;;  %v3307_v4 = vld [vmem:[%s15078_s28 + $0x3040] sm:$0xff]  ;;  %v3309_v5 = vld [vmem:[%s15078_s28 + $0x3050] sm:$0xff]  ;;  %3306 = vst [vmem:[%s15086_s29 + $0x1818] sm:$0xff] %v3305_v3 }
 0x196   : > { %3308 = vst [vmem:[%s15086_s29 + $0x1820] sm:$0xff] %v3307_v4  ;;  %3310 = vst [vmem:[%s15086_s29 + $0x1828] sm:$0xff] %v3309_v5  ;;  %v3311_v6 = vld [vmem:[%s15078_s28 + $0x3060] sm:$0xff]  ;;  %v3313_v7 = vld [vmem:[%s15078_s28 + $0x3070] sm:$0xff] }
 0x197   : > { %v3315_v8 = vld [vmem:[%s15078_s28 + $0x3080] sm:$0xff]  ;;  %3312 = vst [vmem:[%s15086_s29 + $0x1830] sm:$0xff] %v3311_v6  ;;  %3314 = vst [vmem:[%s15086_s29 + $0x1838] sm:$0xff] %v3313_v7  ;;  %v3317_v9 = vld [vmem:[%s15078_s28 + $0x3090] sm:$0xff] }
 0x198   : > { %3316 = vst [vmem:[%s15086_s29 + $0x1840] sm:$0xff] %v3315_v8  ;;  %v3319_v10 = vld [vmem:[%s15078_s28 + $0x30a0] sm:$0xff]  ;;  %v3321_v11 = vld [vmem:[%s15078_s28 + $0x30b0] sm:$0xff]  ;;  %3318 = vst [vmem:[%s15086_s29 + $0x1848] sm:$0xff] %v3317_v9 }
 0x199   : > { %3320 = vst [vmem:[%s15086_s29 + $0x1850] sm:$0xff] %v3319_v10  ;;  %3322 = vst [vmem:[%s15086_s29 + $0x1858] sm:$0xff] %v3321_v11  ;;  %v3323_v12 = vld [vmem:[%s15078_s28 + $0x30c0] sm:$0xff]  ;;  %v3325_v13 = vld [vmem:[%s15078_s28 + $0x30d0] sm:$0xff] }
 0x19a   : > { %v3327_v14 = vld [vmem:[%s15078_s28 + $0x30e0] sm:$0xff]  ;;  %3324 = vst [vmem:[%s15086_s29 + $0x1860] sm:$0xff] %v3323_v12  ;;  %3326 = vst [vmem:[%s15086_s29 + $0x1868] sm:$0xff] %v3325_v13  ;;  %v3329_v15 = vld [vmem:[%s15078_s28 + $0x30f0] sm:$0xff] }
 0x19b   : > { %3328 = vst [vmem:[%s15086_s29 + $0x1870] sm:$0xff] %v3327_v14  ;;  %3330 = vst [vmem:[%s15086_s29 + $0x1878] sm:$0xff] %v3329_v15 }
 0x19c PF: > { %p12826_p8 = scmp.ge.s32.totalorder %s15007_s16, 1  ;;  %p6516_p9 = scmp.lt.s32.totalorder %s15007_s16, 3 }
 0x19e   : > { %p6517_p10 = pnand %p12826_p8, %p6516_p9 }
 0x1a0   : > { %6520 = sbr.rel (%p6517_p10) target bundleno = 1456 (0x5b0), region = 80 }
 0x1a5   : > { %s6523_s30 = sand.u32 1, %s14991_s12   ;;  %v13809_v16 = vld [vmem:[%s17810_s0 + $0x4] ss:$196 sps:$4 sm:$0xff]   ;;  %v13816_v17 = vld [vmem:[%s17810_s0 + $0xc] ss:$196 sps:$4 sm:$0xff]   ;;  %s13668_s12 = sshll.u32 (%p15065_p6), %s14999_s14, 4 }
 0x1a6   : > { %s13670_s4 = smul.u32 6272, %s6523_s30  ;;  %11615 = vmatprep.mubr.bf16.mxu0 %v13809_v16  ;;  %11658 = vmatprep.mubr.bf16.mxu1 %v13816_v17  ;;  %v13807_v17 = vld [vmem:[%s17810_s0] ss:$196 sps:$4 sm:$0xff]   ;;  %s12694_s7 = scalar_lea.vmem (%p15065_p6), %s17813_s3, %s13668_s12 }
 0x1a8   : > { %s16661_s9 = scalar_lea.vmem [#allocation2], %s13670_s4  ;;  %s12827_s4 = sshll.u32 %s6523_s30, 5 }
 0x1a9   : > { %v13712_v18 = vld [vmem:[%s16661_s9 + $0x74] ss:$8 sps:$4 sm:$0xff]   ;;  %v13714_v19 = vld [vmem:[%s16661_s9 + $0x70] ss:$8 sps:$4 sm:$0xff]   ;;  %v13718_v22 = vld [vmem:[%s16661_s9 + $0x64] ss:$8 sps:$4 sm:$0xff]  }
 0x1aa   : > { %11583 = vmatprep.subr.bf16.mxu0 %v13712_v18  ;;  %v13715_v20 = vld [vmem:[%s16661_s9 + $0x174] ss:$8 sps:$4 sm:$0xff]   ;;  %v13717_v21 = vld [vmem:[%s16661_s9 + $0x170] ss:$8 sps:$4 sm:$0xff]   ;;  %v13720_v23 = vld [vmem:[%s16661_s9 + $0x60] ss:$8 sps:$4 sm:$0xff]  }
 0x1ab   : > { %11584 = vmatpush1.bf16.msra.mxu0 %v13714_v19  ;;  %11626 = vmatprep.subr.bf16.mxu1 %v13715_v20  ;;  %v13721_v24 = vld [vmem:[%s16661_s9 + $0x164] ss:$8 sps:$4 sm:$0xff]   ;;  %v13723_v25 = vld [vmem:[%s16661_s9 + $0x160] ss:$8 sps:$4 sm:$0xff]   ;;  %v13724_v26 = vld [vmem:[%s16661_s9 + $0x54] ss:$8 sps:$4 sm:$0xff]  }
 0x1ac   : > { %11627 = vmatpush1.bf16.msra.mxu1 %v13717_v21  ;;  %11585 = vmatprep.subr.bf16.mxu0 %v13718_v22  ;;  %v13726_v27 = vld [vmem:[%s16661_s9 + $0x50] ss:$8 sps:$4 sm:$0xff]   ;;  %v13727_v28 = vld [vmem:[%s16661_s9 + $0x154] ss:$8 sps:$4 sm:$0xff]   ;;  %v13730_v29 = vld [vmem:[%s16661_s9 + $0x44] ss:$8 sps:$4 sm:$0xff]  }
 0x1ad   : > { %11628 = vmatprep.subr.bf16.mxu1 %v13721_v24  ;;  %v13729_v30 = vld [vmem:[%s16661_s9 + $0x150] ss:$8 sps:$4 sm:$0xff]   ;;  %v13733_v31 = vld [vmem:[%s16661_s9 + $0x144] ss:$8 sps:$4 sm:$0xff]   ;;  %v13732_v32 = vld [vmem:[%s16661_s9 + $0x40] ss:$8 sps:$4 sm:$0xff]  }
 0x1ae   : > { %v13736_v33 = vld [vmem:[%s16661_s9 + $0x34] ss:$8 sps:$4 sm:$0xff]   ;;  %v13735_v34 = vld [vmem:[%s16661_s9 + $0x140] ss:$8 sps:$4 sm:$0xff]   ;;  %v13738_v36 = vld [vmem:[%s16661_s9 + $0x30] ss:$8 sps:$4 sm:$0xff]  }
 0x1af   : > { %11586 = vmatpush1.bf16.msra.mxu0 %v13720_v23  ;;  %v13739_v35 = vld [vmem:[%s16661_s9 + $0x134] ss:$8 sps:$4 sm:$0xff]   ;;  %v13742_v37 = vld [vmem:[%s16661_s9 + $0x24] ss:$8 sps:$4 sm:$0xff]   ;;  %v13741_v38 = vld [vmem:[%s16661_s9 + $0x130] ss:$8 sps:$4 sm:$0xff]  }
 0x1b0   : > { %11587 = vmatprep.subr.bf16.mxu0 %v13724_v26  ;;  %11629 = vmatpush1.bf16.msra.mxu1 %v13723_v25  ;;  %v13745_v39 = vld [vmem:[%s16661_s9 + $0x124] ss:$8 sps:$4 sm:$0xff]   ;;  %v13744_v40 = vld [vmem:[%s16661_s9 + $0x20] ss:$8 sps:$4 sm:$0xff]   ;;  %v13748_v41 = vld [vmem:[%s16661_s9 + $0x14] ss:$8 sps:$4 sm:$0xff]  }
 0x1b1   : > { %11630 = vmatprep.subr.bf16.mxu1 %v13727_v28  ;;  %v13747_v42 = vld [vmem:[%s16661_s9 + $0x120] ss:$8 sps:$4 sm:$0xff]   ;;  %v13751_v43 = vld [vmem:[%s16661_s9 + $0x114] ss:$8 sps:$4 sm:$0xff]   ;;  %v13750_v44 = vld [vmem:[%s16661_s9 + $0x10] ss:$8 sps:$4 sm:$0xff]  }
 0x1b2   : > { %v13754_v45 = vld [vmem:[%s16661_s9 + $0x4] ss:$8 sps:$4 sm:$0xff]   ;;  %v13753_v46 = vld [vmem:[%s16661_s9 + $0x110] ss:$8 sps:$4 sm:$0xff]   ;;  %v13756_v48 = vld [vmem:[%s16661_s9] ss:$8 sps:$4 sm:$0xff]  }
 0x1b3   : > { %11588 = vmatpush1.bf16.msra.mxu0 %v13726_v27  ;;  %v13757_v47 = vld [vmem:[%s16661_s9 + $0x104] ss:$8 sps:$4 sm:$0xff]   ;;  %v13760_v49 = vld [vmem:[%s16661_s9 + $0xf4] ss:$8 sps:$4 sm:$0xff]   ;;  %v13759_v50 = vld [vmem:[%s16661_s9 + $0x100] ss:$8 sps:$4 sm:$0xff]  }
 0x1b4   : > { %11589 = vmatprep.subr.bf16.mxu0 %v13730_v29  ;;  %11631 = vmatpush1.bf16.msra.mxu1 %v13729_v30  ;;  %v13763_v51 = vld [vmem:[%s16661_s9 + $0x1f4] ss:$8 sps:$4 sm:$0xff]   ;;  %v13762_v52 = vld [vmem:[%s16661_s9 + $0xf0] ss:$8 sps:$4 sm:$0xff]   ;;  %v13766_v53 = vld [vmem:[%s16661_s9 + $0xe4] ss:$8 sps:$4 sm:$0xff]  }
 0x1b5   : > { %11632 = vmatprep.subr.bf16.mxu1 %v13733_v31  ;;  %v13765_v54 = vld [vmem:[%s16661_s9 + $0x1f0] ss:$8 sps:$4 sm:$0xff]   ;;  %v13769_v55 = vld [vmem:[%s16661_s9 + $0x1e4] ss:$8 sps:$4 sm:$0xff]   ;;  %v13768_v56 = vld [vmem:[%s16661_s9 + $0xe0] ss:$8 sps:$4 sm:$0xff]  }
 0x1b6   : > { %v13772_v57 = vld [vmem:[%s16661_s9 + $0xd4] ss:$8 sps:$4 sm:$0xff]   ;;  %v13771_v58 = vld [vmem:[%s16661_s9 + $0x1e0] ss:$8 sps:$4 sm:$0xff]   ;;  %v13774_v60 = vld [vmem:[%s16661_s9 + $0xd0] ss:$8 sps:$4 sm:$0xff]  }
 0x1b7   : > { %11590 = vmatpush1.bf16.msra.mxu0 %v13732_v32  ;;  %v13775_v59 = vld [vmem:[%s16661_s9 + $0x1d4] ss:$8 sps:$4 sm:$0xff]   ;;  %v13778_v61 = vld [vmem:[%s16661_s9 + $0xc4] ss:$8 sps:$4 sm:$0xff]   ;;  %v13777_v62 = vld [vmem:[%s16661_s9 + $0x1d0] ss:$8 sps:$4 sm:$0xff]  }
 0x1b8   : > { %11591 = vmatprep.subr.bf16.mxu0 %v13736_v33  ;;  %11633 = vmatpush1.bf16.msra.mxu1 %v13735_v34  ;;  %v13781_v63 = vld [vmem:[%s16661_s9 + $0x1c4] ss:$8 sps:$4 sm:$0xff]   ;;  %v13780_v0 = vld [vmem:[%s16661_s9 + $0xc0] ss:$8 sps:$4 sm:$0xff]   ;;  %v13784_v1 = vld [vmem:[%s16661_s9 + $0xb4] ss:$8 sps:$4 sm:$0xff]  }
 0x1b9   : > { %11634 = vmatprep.subr.bf16.mxu1 %v13739_v35  ;;  %v13783_v2 = vld [vmem:[%s16661_s9 + $0x1c0] ss:$8 sps:$4 sm:$0xff]   ;;  %v13787_v3 = vld [vmem:[%s16661_s9 + $0x1b4] ss:$8 sps:$4 sm:$0xff]   ;;  %v13786_v4 = vld [vmem:[%s16661_s9 + $0xb0] ss:$8 sps:$4 sm:$0xff]  }
 0x1ba   : > { %v13790_v5 = vld [vmem:[%s16661_s9 + $0xa4] ss:$8 sps:$4 sm:$0xff]   ;;  %v13789_v6 = vld [vmem:[%s16661_s9 + $0x1b0] ss:$8 sps:$4 sm:$0xff]   ;;  %v13792_v8 = vld [vmem:[%s16661_s9 + $0xa0] ss:$8 sps:$4 sm:$0xff]  }
 0x1bb   : > { %11592 = vmatpush1.bf16.msra.mxu0 %v13738_v36  ;;  %v13793_v7 = vld [vmem:[%s16661_s9 + $0x1a4] ss:$8 sps:$4 sm:$0xff]   ;;  %v13796_v9 = vld [vmem:[%s16661_s9 + $0x94] ss:$8 sps:$4 sm:$0xff]   ;;  %v13795_v10 = vld [vmem:[%s16661_s9 + $0x1a0] ss:$8 sps:$4 sm:$0xff]  }
 0x1bc   : > { %11593 = vmatprep.subr.bf16.mxu0 %v13742_v37  ;;  %11635 = vmatpush1.bf16.msra.mxu1 %v13741_v38  ;;  %v13799_v11 = vld [vmem:[%s16661_s9 + $0x194] ss:$8 sps:$4 sm:$0xff]   ;;  %v13798_v12 = vld [vmem:[%s16661_s9 + $0x90] ss:$8 sps:$4 sm:$0xff]   ;;  %v13802_v13 = vld [vmem:[%s16661_s9 + $0x84] ss:$8 sps:$4 sm:$0xff]  }
 0x1bd   : > { %11636 = vmatprep.subr.bf16.mxu1 %v13745_v39  ;;  %v13801_v14 = vld [vmem:[%s16661_s9 + $0x190] ss:$8 sps:$4 sm:$0xff]   ;;  %v13805_v15 = vld [vmem:[%s16661_s9 + $0x184] ss:$8 sps:$4 sm:$0xff]   ;;  %v13804_v16 = vld [vmem:[%s16661_s9 + $0x80] ss:$8 sps:$4 sm:$0xff]  }
 0x1be   : > { %v13813_v18 = vld [vmem:[%s16661_s9 + $0x274] ss:$8 sps:$4 sm:$0xff]   ;;  %v13810_v19 = vld [vmem:[%s16661_s9 + $0x180] ss:$8 sps:$4 sm:$0xff]   ;;  %v13811_v22 = vld [vmem:[%s16661_s9 + $0x270] ss:$8 sps:$4 sm:$0xff]  }
 0x1bf   : > { %11594 = vmatpush1.bf16.msra.mxu0 %v13744_v40  ;;  %v13814_v20 = vld [vmem:[%s17810_s0 + $0x8] ss:$196 sps:$4 sm:$0xff]   ;;  %v13819_v21 = vld [vmem:[%s16661_s9 + $0x374] ss:$8 sps:$4 sm:$0xff]   ;;  %v13817_v25 = vld [vmem:[%s16661_s9 + $0x370] ss:$8 sps:$4 sm:$0xff]  }
 0x1c0   : > { %11595 = vmatprep.subr.bf16.mxu0 %v13748_v41  ;;  %11637 = vmatpush1.bf16.msra.mxu1 %v13747_v42  ;;  %v13912_v23 = vld [vmem:[%s17810_s0 + $0x14] ss:$196 sps:$4 sm:$0xff]   ;;  %v13822_v24 = vld [vmem:[%s16661_s9 + $0x264] ss:$8 sps:$4 sm:$0xff]   ;;  %v13820_v27 = vld [vmem:[%s16661_s9 + $0x260] ss:$8 sps:$4 sm:$0xff]  }
 0x1c1   : > { %11638 = vmatprep.subr.bf16.mxu1 %v13751_v43  ;;  %v13825_v26 = vld [vmem:[%s16661_s9 + $0x364] ss:$8 sps:$4 sm:$0xff]   ;;  %v13828_v28 = vld [vmem:[%s16661_s9 + $0x254] ss:$8 sps:$4 sm:$0xff]   ;;  %v13823_v29 = vld [vmem:[%s16661_s9 + $0x360] ss:$8 sps:$4 sm:$0xff]  }
 0x1c2   : > { %v13831_v30 = vld [vmem:[%s16661_s9 + $0x354] ss:$8 sps:$4 sm:$0xff]   ;;  %v13826_v31 = vld [vmem:[%s16661_s9 + $0x250] ss:$8 sps:$4 sm:$0xff]   ;;  %v13834_v32 = vld [vmem:[%s16661_s9 + $0x244] ss:$8 sps:$4 sm:$0xff]  }
 0x1c3   : > { %11596 = vmatpush1.bf16.msra.mxu0 %v13750_v44  ;;  %v13829_v33 = vld [vmem:[%s16661_s9 + $0x350] ss:$8 sps:$4 sm:$0xff]   ;;  %v13837_v34 = vld [vmem:[%s16661_s9 + $0x344] ss:$8 sps:$4 sm:$0xff]   ;;  %v13832_v35 = vld [vmem:[%s16661_s9 + $0x240] ss:$8 sps:$4 sm:$0xff]  }
 0x1c4   : > { %11597 = vmatprep.subr.bf16.mxu0 %v13754_v45  ;;  %11639 = vmatpush1.bf16.msra.mxu1 %v13753_v46  ;;  %v13840_v36 = vld [vmem:[%s16661_s9 + $0x234] ss:$8 sps:$4 sm:$0xff]   ;;  %v13835_v37 = vld [vmem:[%s16661_s9 + $0x340] ss:$8 sps:$4 sm:$0xff]   ;;  %v13838_v39 = vld [vmem:[%s16661_s9 + $0x230] ss:$8 sps:$4 sm:$0xff]  }
 0x1c5   : > { %11640 = vmatprep.subr.bf16.mxu1 %v13757_v47  ;;  %v13843_v38 = vld [vmem:[%s16661_s9 + $0x334] ss:$8 sps:$4 sm:$0xff]   ;;  %v13846_v40 = vld [vmem:[%s16661_s9 + $0x224] ss:$8 sps:$4 sm:$0xff]   ;;  %v13841_v41 = vld [vmem:[%s16661_s9 + $0x330] ss:$8 sps:$4 sm:$0xff]  }
 0x1c6   : > { %v13849_v42 = vld [vmem:[%s16661_s9 + $0x324] ss:$8 sps:$4 sm:$0xff]   ;;  %v13844_v43 = vld [vmem:[%s16661_s9 + $0x220] ss:$8 sps:$4 sm:$0xff]   ;;  %v13852_v44 = vld [vmem:[%s16661_s9 + $0x214] ss:$8 sps:$4 sm:$0xff]  }
 0x1c7   : > { %11598 = vmatpush1.bf16.msra.mxu0 %v13756_v48  ;;  %v13847_v45 = vld [vmem:[%s16661_s9 + $0x320] ss:$8 sps:$4 sm:$0xff]   ;;  %v13855_v46 = vld [vmem:[%s16661_s9 + $0x314] ss:$8 sps:$4 sm:$0xff]   ;;  %v13850_v47 = vld [vmem:[%s16661_s9 + $0x210] ss:$8 sps:$4 sm:$0xff]  }
 0x1c8   : > { %11599 = vmatprep.subr.bf16.mxu0 %v13760_v49  ;;  %11641 = vmatpush1.bf16.msra.mxu1 %v13759_v50  ;;  %v13918_v48 = vld [vmem:[%s17810_s0 + $0x1c] ss:$196 sps:$4 sm:$0xff]   ;;  %v13858_v49 = vld [vmem:[%s16661_s9 + $0x204] ss:$8 sps:$4 sm:$0xff]   ;;  %v13853_v50 = vld [vmem:[%s16661_s9 + $0x310] ss:$8 sps:$4 sm:$0xff]  }
 0x1c9   : > { %11642 = vmatprep.subr.bf16.mxu1 %v13763_v51  ;;  %v13861_v51 = vld [vmem:[%s16661_s9 + $0x304] ss:$8 sps:$4 sm:$0xff]   ;;  %s6554_s5 = scalar_lea.vmem [#allocation3], %s12827_s4 }
 0x1cb   : > { %11600 = vmatpush2.bf16.msra.mxu0 %v13762_v52  ;;  %v13856_v52 = vld [vmem:[%s16661_s9 + $0x200] ss:$8 sps:$4 sm:$0xff]  }
 0x1cc   : > { %11601 = vmatprep.subr.bf16.mxu0 %v13766_v53  ;;  %11643 = vmatpush2.bf16.msra.mxu1 %v13765_v54  ;;  %v13864_v53 = vld [vmem:[%s16661_s9 + $0x2f4] ss:$8 sps:$4 sm:$0xff]   ;;  %v13859_v54 = vld [vmem:[%s16661_s9 + $0x300] ss:$8 sps:$4 sm:$0xff]  }
 0x1cd   : > { %11644 = vmatprep.subr.bf16.mxu1 %v13769_v55  ;;  %v13867_v55 = vld [vmem:[%s16661_s9 + $0x3f4] ss:$8 sps:$4 sm:$0xff]  }
 0x1cf   : > { %11602 = vmatpush2.bf16.msra.mxu0 %v13768_v56  ;;  %v13862_v56 = vld [vmem:[%s16661_s9 + $0x2f0] ss:$8 sps:$4 sm:$0xff]  }
 0x1d0   : > { %11603 = vmatprep.subr.bf16.mxu0 %v13772_v57  ;;  %11645 = vmatpush2.bf16.msra.mxu1 %v13771_v58  ;;  %v13870_v57 = vld [vmem:[%s16661_s9 + $0x2e4] ss:$8 sps:$4 sm:$0xff]   ;;  %v13865_v58 = vld [vmem:[%s16661_s9 + $0x3f0] ss:$8 sps:$4 sm:$0xff]  }
 0x1d1   : > { %11646 = vmatprep.subr.bf16.mxu1 %v13775_v59  ;;  %v13873_v59 = vld [vmem:[%s16661_s9 + $0x3e4] ss:$8 sps:$4 sm:$0xff]  }
 0x1d3   : > { %11604 = vmatpush2.bf16.msra.mxu0 %v13774_v60  ;;  %v13868_v60 = vld [vmem:[%s16661_s9 + $0x2e0] ss:$8 sps:$4 sm:$0xff]  }
 0x1d4   : > { %11605 = vmatprep.subr.bf16.mxu0 %v13778_v61  ;;  %11647 = vmatpush2.bf16.msra.mxu1 %v13777_v62  ;;  %v13876_v61 = vld [vmem:[%s16661_s9 + $0x2d4] ss:$8 sps:$4 sm:$0xff]   ;;  %v13871_v62 = vld [vmem:[%s16661_s9 + $0x3e0] ss:$8 sps:$4 sm:$0xff]  }
 0x1d5   : > { %11648 = vmatprep.subr.bf16.mxu1 %v13781_v63  ;;  %v13879_v63 = vld [vmem:[%s16661_s9 + $0x3d4] ss:$8 sps:$4 sm:$0xff]  }
 0x1d7   : > { %11606 = vmatpush2.bf16.msra.mxu0 %v13780_v0  ;;  %v13874_v0 = vld [vmem:[%s16661_s9 + $0x2d0] ss:$8 sps:$4 sm:$0xff]  }
 0x1d8   : > { %11607 = vmatprep.subr.bf16.mxu0 %v13784_v1  ;;  %11649 = vmatpush2.bf16.msra.mxu1 %v13783_v2  ;;  %v13882_v1 = vld [vmem:[%s16661_s9 + $0x2c4] ss:$8 sps:$4 sm:$0xff]   ;;  %v13877_v2 = vld [vmem:[%s16661_s9 + $0x3d0] ss:$8 sps:$4 sm:$0xff]  }
 0x1d9   : > { %11650 = vmatprep.subr.bf16.mxu1 %v13787_v3  ;;  %v13885_v3 = vld [vmem:[%s16661_s9 + $0x3c4] ss:$8 sps:$4 sm:$0xff]  }
 0x1db   : > { %11608 = vmatpush2.bf16.msra.mxu0 %v13786_v4  ;;  %v13880_v4 = vld [vmem:[%s16661_s9 + $0x2c0] ss:$8 sps:$4 sm:$0xff]  }
 0x1dc   : > { %11609 = vmatprep.subr.bf16.mxu0 %v13790_v5  ;;  %11651 = vmatpush2.bf16.msra.mxu1 %v13789_v6  ;;  %v13888_v5 = vld [vmem:[%s16661_s9 + $0x2b4] ss:$8 sps:$4 sm:$0xff]   ;;  %v13883_v6 = vld [vmem:[%s16661_s9 + $0x3c0] ss:$8 sps:$4 sm:$0xff]  }
 0x1dd   : > { %11652 = vmatprep.subr.bf16.mxu1 %v13793_v7  ;;  %v13891_v7 = vld [vmem:[%s16661_s9 + $0x3b4] ss:$8 sps:$4 sm:$0xff]  }
 0x1df   : > { %11610 = vmatpush2.bf16.msra.mxu0 %v13792_v8  ;;  %v13886_v8 = vld [vmem:[%s16661_s9 + $0x2b0] ss:$8 sps:$4 sm:$0xff]  }
 0x1e0   : > { %11611 = vmatprep.subr.bf16.mxu0 %v13796_v9  ;;  %11653 = vmatpush2.bf16.msra.mxu1 %v13795_v10  ;;  %v13894_v9 = vld [vmem:[%s16661_s9 + $0x2a4] ss:$8 sps:$4 sm:$0xff]   ;;  %v13889_v10 = vld [vmem:[%s16661_s9 + $0x3b0] ss:$8 sps:$4 sm:$0xff]  }
 0x1e1   : > { %11654 = vmatprep.subr.bf16.mxu1 %v13799_v11  ;;  %v13897_v11 = vld [vmem:[%s16661_s9 + $0x3a4] ss:$8 sps:$4 sm:$0xff]  }
 0x1e3   : > { %11612 = vmatpush2.bf16.msra.mxu0 %v13798_v12  ;;  %v13892_v12 = vld [vmem:[%s16661_s9 + $0x2a0] ss:$8 sps:$4 sm:$0xff]  }
 0x1e4   : > { %11613 = vmatprep.subr.bf16.mxu0 %v13802_v13  ;;  %11655 = vmatpush2.bf16.msra.mxu1 %v13801_v14  ;;  %v13900_v13 = vld [vmem:[%s16661_s9 + $0x294] ss:$8 sps:$4 sm:$0xff]   ;;  %v13895_v14 = vld [vmem:[%s16661_s9 + $0x3a0] ss:$8 sps:$4 sm:$0xff]  }
 0x1e5   : > { %11656 = vmatprep.subr.bf16.mxu1 %v13805_v15  ;;  %v13903_v15 = vld [vmem:[%s16661_s9 + $0x394] ss:$8 sps:$4 sm:$0xff]  }
 0x1e7   : > { %11614 = vmatpush2.bf16.msra.mxu0 %v13804_v16  ;;  %v13898_v16 = vld [vmem:[%s16661_s9 + $0x290] ss:$8 sps:$4 sm:$0xff]  }
 0x1e8   : > { %11669 = vmatprep.subr.bf16.mxu0 %v13813_v18  ;;  %11657 = vmatpush2.bf16.msra.mxu1 %v13810_v19  ;;  %v13901_v18 = vld [vmem:[%s16661_s9 + $0x390] ss:$8 sps:$4 sm:$0xff]   ;;  %v13909_v19 = vld [vmem:[%s16661_s9 + $0x384] ss:$8 sps:$4 sm:$0xff]  }
 0x1e9   : > { %11712 = vmatprep.subr.bf16.mxu1 %v13819_v21  ;;  %v13915_v21 = vld [vmem:[%s16661_s9 + $0x474] ss:$8 sps:$4 sm:$0xff]  }
 0x1ea   : > { %11616 = vmatmul.mubr.bf16.vlgmr.msra.gmra.mxu0 %v13807_v17  ;;  %v13906_v17 = vld [vmem:[%s16661_s9 + $0x284] ss:$8 sps:$4 sm:$0xff]  }
 0x1eb   : > { %11670 = vmatpush1.bf16.msra.mxu0 %v13811_v22  ;;  %11701 = vmatprep.mubr.bf16.mxu0 %v13912_v23  ;;  %v13907_v22 = vld [vmem:[%s16661_s9 + $0x380] ss:$8 sps:$4 sm:$0xff]   ;;  %v13910_v23 = vld [vmem:[%s17810_s0 + $0x10] ss:$196 sps:$4 sm:$0xff]  }
 0x1ec   : > { %11659 = vmatmul.mubr.bf16.vlgmr.msra.gmra.mxu1 %v13814_v20  ;;  %11671 = vmatprep.subr.bf16.mxu0 %v13822_v24  ;;  %v13904_v20 = vld [vmem:[%s16661_s9 + $0x280] ss:$8 sps:$4 sm:$0xff]   ;;  %v13921_v24 = vld [vmem:[%s16661_s9 + $0x574] ss:$8 sps:$4 sm:$0xff]  }
 0x1ed   : > { %11713 = vmatpush1.bf16.msra.mxu1 %v13817_v25  ;;  %11744 = vmatprep.mubr.bf16.mxu1 %v13918_v48  ;;  %v13913_v25 = vld [vmem:[%s16661_s9 + $0x470] ss:$8 sps:$4 sm:$0xff]   ;;  %v13946_v48 = vld [vmem:[%s16661_s9 + $0x420] ss:$8 sps:$4 sm:$0xff]  }
 0x1ee   : > { %11714 = vmatprep.subr.bf16.mxu1 %v13825_v26  ;;  %v13916_v26 = vld [vmem:[%s17810_s0 + $0x18] ss:$196 sps:$4 sm:$0xff]  }
 0x1ef   : > { %11672 = vmatpush1.bf16.msra.mxu0 %v13820_v27  ;;  %v13924_v27 = vld [vmem:[%s16661_s9 + $0x464] ss:$8 sps:$4 sm:$0xff]  }
 0x1f0   : > { %11673 = vmatprep.subr.bf16.mxu0 %v13828_v28  ;;  %v13919_v28 = vld [vmem:[%s16661_s9 + $0x570] ss:$8 sps:$4 sm:$0xff]  }
 0x1f1   : > { %11715 = vmatpush1.bf16.msra.mxu1 %v13823_v29  ;;  %v13927_v29 = vld [vmem:[%s16661_s9 + $0x564] ss:$8 sps:$4 sm:$0xff]  }
 0x1f2   : > { %11716 = vmatprep.subr.bf16.mxu1 %v13831_v30  ;;  %v14014_v30 = vld [vmem:[%s17810_s0 + $0x24] ss:$196 sps:$4 sm:$0xff]  }
 0x1f3   : > { %11674 = vmatpush1.bf16.msra.mxu0 %v13826_v31  ;;  %v13922_v31 = vld [vmem:[%s16661_s9 + $0x460] ss:$8 sps:$4 sm:$0xff]  }
 0x1f4   : > { %11675 = vmatprep.subr.bf16.mxu0 %v13834_v32  ;;  %v13925_v32 = vld [vmem:[%s16661_s9 + $0x560] ss:$8 sps:$4 sm:$0xff]  }
 0x1f5   : > { %11717 = vmatpush1.bf16.msra.mxu1 %v13829_v33  ;;  %v13930_v33 = vld [vmem:[%s16661_s9 + $0x454] ss:$8 sps:$4 sm:$0xff]  }
 0x1f6   : > { %11718 = vmatprep.subr.bf16.mxu1 %v13837_v34  ;;  %v14020_v34 = vld [vmem:[%s17810_s0 + $0x2c] ss:$196 sps:$4 sm:$0xff]  }
 0x1f7   : > { %11676 = vmatpush1.bf16.msra.mxu0 %v13832_v35  ;;  %v13933_v35 = vld [vmem:[%s16661_s9 + $0x554] ss:$8 sps:$4 sm:$0xff]  }
 0x1f8   : > { %11677 = vmatprep.subr.bf16.mxu0 %v13840_v36  ;;  %v13928_v36 = vld [vmem:[%s16661_s9 + $0x450] ss:$8 sps:$4 sm:$0xff]  }
 0x1f9   : > { %11719 = vmatpush1.bf16.msra.mxu1 %v13835_v37  ;;  %v13936_v37 = vld [vmem:[%s16661_s9 + $0x444] ss:$8 sps:$4 sm:$0xff]  }
 0x1fa   : > { %11720 = vmatprep.subr.bf16.mxu1 %v13843_v38  ;;  %v13931_v38 = vld [vmem:[%s16661_s9 + $0x550] ss:$8 sps:$4 sm:$0xff]  }
 0x1fb   : > { %11678 = vmatpush1.bf16.msra.mxu0 %v13838_v39  ;;  %v13939_v39 = vld [vmem:[%s16661_s9 + $0x544] ss:$8 sps:$4 sm:$0xff]  }
 0x1fc   : > { %11679 = vmatprep.subr.bf16.mxu0 %v13846_v40  ;;  %v13934_v40 = vld [vmem:[%s16661_s9 + $0x440] ss:$8 sps:$4 sm:$0xff]  }
 0x1fd   : > { %11721 = vmatpush1.bf16.msra.mxu1 %v13841_v41  ;;  %v13942_v41 = vld [vmem:[%s16661_s9 + $0x434] ss:$8 sps:$4 sm:$0xff]  }
 0x1fe   : > { %11722 = vmatprep.subr.bf16.mxu1 %v13849_v42  ;;  %v13937_v42 = vld [vmem:[%s16661_s9 + $0x540] ss:$8 sps:$4 sm:$0xff]  }
 0x1ff   : > { %11680 = vmatpush1.bf16.msra.mxu0 %v13844_v43  ;;  %v13945_v43 = vld [vmem:[%s16661_s9 + $0x534] ss:$8 sps:$4 sm:$0xff]  }
 0x200   : > { %11681 = vmatprep.subr.bf16.mxu0 %v13852_v44  ;;  %v13940_v44 = vld [vmem:[%s16661_s9 + $0x430] ss:$8 sps:$4 sm:$0xff]  }
 0x201   : > { %11723 = vmatpush1.bf16.msra.mxu1 %v13847_v45  ;;  %v13948_v45 = vld [vmem:[%s16661_s9 + $0x424] ss:$8 sps:$4 sm:$0xff]  }
 0x202   : > { %11724 = vmatprep.subr.bf16.mxu1 %v13855_v46  ;;  %v13943_v46 = vld [vmem:[%s16661_s9 + $0x530] ss:$8 sps:$4 sm:$0xff]  }
 0x203   : > { %11682 = vmatpush1.bf16.msra.mxu0 %v13850_v47  ;;  %v13951_v47 = vld [vmem:[%s16661_s9 + $0x524] ss:$8 sps:$4 sm:$0xff]  }
 0x204   : > { %11683 = vmatprep.subr.bf16.mxu0 %v13858_v49  ;;  %v13954_v49 = vld [vmem:[%s16661_s9 + $0x414] ss:$8 sps:$4 sm:$0xff]  }
 0x205   : > { %11725 = vmatpush1.bf16.msra.mxu1 %v13853_v50  ;;  %v13949_v50 = vld [vmem:[%s16661_s9 + $0x520] ss:$8 sps:$4 sm:$0xff]  }
 0x206   : > { %11726 = vmatprep.subr.bf16.mxu1 %v13861_v51  ;;  %v13957_v51 = vld [vmem:[%s16661_s9 + $0x514] ss:$8 sps:$4 sm:$0xff]  }
 0x207   : > { %11684 = vmatpush1.bf16.msra.mxu0 %v13856_v52  ;;  %v13952_v52 = vld [vmem:[%s16661_s9 + $0x410] ss:$8 sps:$4 sm:$0xff]  }
 0x208   : > { %11685 = vmatprep.subr.bf16.mxu0 %v13864_v53  ;;  %v13960_v53 = vld [vmem:[%s16661_s9 + $0x404] ss:$8 sps:$4 sm:$0xff]  }
 0x209   : > { %11727 = vmatpush1.bf16.msra.mxu1 %v13859_v54  ;;  %v13955_v54 = vld [vmem:[%s16661_s9 + $0x510] ss:$8 sps:$4 sm:$0xff]  }
 0x20a   : > { %11728 = vmatprep.subr.bf16.mxu1 %v13867_v55  ;;  %v13963_v55 = vld [vmem:[%s16661_s9 + $0x504] ss:$8 sps:$4 sm:$0xff]  }
 0x20b   : > { %11686 = vmatpush2.bf16.msra.mxu0 %v13862_v56  ;;  %v13958_v56 = vld [vmem:[%s16661_s9 + $0x400] ss:$8 sps:$4 sm:$0xff]  }
 0x20c   : > { %11687 = vmatprep.subr.bf16.mxu0 %v13870_v57  ;;  %v13966_v57 = vld [vmem:[%s16661_s9 + $0x4f4] ss:$8 sps:$4 sm:$0xff]  }
 0x20d   : > { %11729 = vmatpush2.bf16.msra.mxu1 %v13865_v58  ;;  %v13961_v58 = vld [vmem:[%s16661_s9 + $0x500] ss:$8 sps:$4 sm:$0xff]  }
 0x20e   : > { %11730 = vmatprep.subr.bf16.mxu1 %v13873_v59  ;;  %v13969_v59 = vld [vmem:[%s16661_s9 + $0x5f4] ss:$8 sps:$4 sm:$0xff]  }
 0x20f   : > { %11688 = vmatpush2.bf16.msra.mxu0 %v13868_v60  ;;  %v13964_v60 = vld [vmem:[%s16661_s9 + $0x4f0] ss:$8 sps:$4 sm:$0xff]  }
 0x210   : > { %11689 = vmatprep.subr.bf16.mxu0 %v13876_v61  ;;  %v13972_v61 = vld [vmem:[%s16661_s9 + $0x4e4] ss:$8 sps:$4 sm:$0xff]  }
 0x211   : > { %11731 = vmatpush2.bf16.msra.mxu1 %v13871_v62  ;;  %v13967_v62 = vld [vmem:[%s16661_s9 + $0x5f0] ss:$8 sps:$4 sm:$0xff]  }
 0x212   : > { %11732 = vmatprep.subr.bf16.mxu1 %v13879_v63  ;;  %v13975_v63 = vld [vmem:[%s16661_s9 + $0x5e4] ss:$8 sps:$4 sm:$0xff]  }
 0x213   : > { %11690 = vmatpush2.bf16.msra.mxu0 %v13874_v0  ;;  %v13970_v0 = vld [vmem:[%s16661_s9 + $0x4e0] ss:$8 sps:$4 sm:$0xff]  }
 0x214   : > { %11691 = vmatprep.subr.bf16.mxu0 %v13882_v1  ;;  %v13978_v1 = vld [vmem:[%s16661_s9 + $0x4d4] ss:$8 sps:$4 sm:$0xff]  }
 0x215   : > { %11733 = vmatpush2.bf16.msra.mxu1 %v13877_v2  ;;  %v13973_v2 = vld [vmem:[%s16661_s9 + $0x5e0] ss:$8 sps:$4 sm:$0xff]  }
 0x216   : > { %11734 = vmatprep.subr.bf16.mxu1 %v13885_v3  ;;  %v13981_v3 = vld [vmem:[%s16661_s9 + $0x5d4] ss:$8 sps:$4 sm:$0xff]  }
 0x217   : > { %11692 = vmatpush2.bf16.msra.mxu0 %v13880_v4  ;;  %v13976_v4 = vld [vmem:[%s16661_s9 + $0x4d0] ss:$8 sps:$4 sm:$0xff]  }
 0x218   : > { %11693 = vmatprep.subr.bf16.mxu0 %v13888_v5  ;;  %v13984_v5 = vld [vmem:[%s16661_s9 + $0x4c4] ss:$8 sps:$4 sm:$0xff]  }
 0x219   : > { %11735 = vmatpush2.bf16.msra.mxu1 %v13883_v6  ;;  %v13979_v6 = vld [vmem:[%s16661_s9 + $0x5d0] ss:$8 sps:$4 sm:$0xff]  }
 0x21a   : > { %11736 = vmatprep.subr.bf16.mxu1 %v13891_v7  ;;  %v13987_v7 = vld [vmem:[%s16661_s9 + $0x5c4] ss:$8 sps:$4 sm:$0xff]  }
 0x21b   : > { %11694 = vmatpush2.bf16.msra.mxu0 %v13886_v8  ;;  %v13982_v8 = vld [vmem:[%s16661_s9 + $0x4c0] ss:$8 sps:$4 sm:$0xff]  }
 0x21c   : > { %11695 = vmatprep.subr.bf16.mxu0 %v13894_v9  ;;  %v13990_v9 = vld [vmem:[%s16661_s9 + $0x4b4] ss:$8 sps:$4 sm:$0xff]  }
 0x21d   : > { %11737 = vmatpush2.bf16.msra.mxu1 %v13889_v10  ;;  %v13985_v10 = vld [vmem:[%s16661_s9 + $0x5c0] ss:$8 sps:$4 sm:$0xff]  }
 0x21e   : > { %11738 = vmatprep.subr.bf16.mxu1 %v13897_v11  ;;  %v13993_v11 = vld [vmem:[%s16661_s9 + $0x5b4] ss:$8 sps:$4 sm:$0xff]  }
 0x21f   : > { %11696 = vmatpush2.bf16.msra.mxu0 %v13892_v12  ;;  %v13988_v12 = vld [vmem:[%s16661_s9 + $0x4b0] ss:$8 sps:$4 sm:$0xff]  }
 0x220   : > { %11697 = vmatprep.subr.bf16.mxu0 %v13900_v13  ;;  %v13996_v13 = vld [vmem:[%s16661_s9 + $0x4a4] ss:$8 sps:$4 sm:$0xff]  }
 0x221   : > { %11739 = vmatpush2.bf16.msra.mxu1 %v13895_v14  ;;  %v13991_v14 = vld [vmem:[%s16661_s9 + $0x5b0] ss:$8 sps:$4 sm:$0xff]  }
 0x222   : > { %11740 = vmatprep.subr.bf16.mxu1 %v13903_v15  ;;  %v13999_v15 = vld [vmem:[%s16661_s9 + $0x5a4] ss:$8 sps:$4 sm:$0xff]  }
 0x223   : > { %11698 = vmatpush2.bf16.msra.mxu0 %v13898_v16  ;;  %v13994_v16 = vld [vmem:[%s16661_s9 + $0x4a0] ss:$8 sps:$4 sm:$0xff]  }
 0x224   : > { %11699 = vmatprep.subr.bf16.mxu0 %v13906_v17  ;;  %v14002_v17 = vld [vmem:[%s16661_s9 + $0x494] ss:$8 sps:$4 sm:$0xff]  }
 0x225   : > { %11741 = vmatpush2.bf16.msra.mxu1 %v13901_v18  ;;  %v13997_v18 = vld [vmem:[%s16661_s9 + $0x5a0] ss:$8 sps:$4 sm:$0xff]  }
 0x226   : > { %11742 = vmatprep.subr.bf16.mxu1 %v13909_v19  ;;  %v14005_v19 = vld [vmem:[%s16661_s9 + $0x594] ss:$8 sps:$4 sm:$0xff]  }
 0x227   : > { %11700 = vmatpush2.bf16.msra.mxu0 %v13904_v20  ;;  %v14000_v20 = vld [vmem:[%s16661_s9 + $0x490] ss:$8 sps:$4 sm:$0xff]  }
 0x228   : > { %11755 = vmatprep.subr.bf16.mxu0 %v13915_v21  ;;  %v14008_v21 = vld [vmem:[%s16661_s9 + $0x484] ss:$8 sps:$4 sm:$0xff]  }
 0x229   : > { %11743 = vmatpush2.bf16.msra.mxu1 %v13907_v22  ;;  %v14003_v22 = vld [vmem:[%s16661_s9 + $0x590] ss:$8 sps:$4 sm:$0xff]  }
 0x22a   : > { %11702 = vmatmul.mubr.bf16.vlgmr.msra.gmra.mxu0 %v13910_v23  ;;  %11798 = vmatprep.subr.bf16.mxu1 %v13921_v24  ;;  %v14006_v23 = vld [vmem:[%s16661_s9 + $0x480] ss:$8 sps:$4 sm:$0xff]   ;;  %v14011_v24 = vld [vmem:[%s16661_s9 + $0x584] ss:$8 sps:$4 sm:$0xff]  }
 0x22b   : > { %11756 = vmatpush1.bf16.msra.mxu0 %v13913_v25  ;;  %11787 = vmatprep.mubr.bf16.mxu0 %v14014_v30  ;;  %v14009_v25 = vld [vmem:[%s16661_s9 + $0x580] ss:$8 sps:$4 sm:$0xff]   ;;  %v14023_v30 = vld [vmem:[%s16661_s9 + $0x774] ss:$8 sps:$4 sm:$0xff]  }
 0x22c   : > { %11745 = vmatmul.mubr.bf16.vlgmr.msra.gmra.mxu1 %v13916_v26  ;;  %11757 = vmatprep.subr.bf16.mxu0 %v13924_v27  ;;  %v14017_v26 = vld [vmem:[%s16661_s9 + $0x674] ss:$8 sps:$4 sm:$0xff]   ;;  %v14012_v27 = vld [vmem:[%s17810_s0 + $0x20] ss:$196 sps:$4 sm:$0xff]  }
 0x22d   : > { %11799 = vmatpush1.bf16.msra.mxu1 %v13919_v28  ;;  %11830 = vmatprep.mubr.bf16.mxu1 %v14020_v34  ;;  %v14015_v28 = vld [vmem:[%s16661_s9 + $0x670] ss:$8 sps:$4 sm:$0xff]   ;;  %v14122_v34 = vld [vmem:[%s17810_s0 + $0x3c] ss:$196 sps:$4 sm:$0xff]  }
 0x22e   : > { %11800 = vmatprep.subr.bf16.mxu1 %v13927_v29  ;;  %v14018_v29 = vld [vmem:[%s17810_s0 + $0x28] ss:$196 sps:$4 sm:$0xff]  }
 0x22f   : > { %11758 = vmatpush1.bf16.msra.mxu0 %v13922_v31  ;;  %v14116_v31 = vld [vmem:[%s17810_s0 + $0x34] ss:$196 sps:$4 sm:$0xff]  }
 0x230   : > { %11759 = vmatprep.subr.bf16.mxu0 %v13930_v33  ;;  %v14021_v33 = vld [vmem:[%s16661_s9 + $0x770] ss:$8 sps:$4 sm:$0xff]  }
 0x231   : > { %11801 = vmatpush1.bf16.msra.mxu1 %v13925_v32  ;;  %v14026_v32 = vld [vmem:[%s16661_s9 + $0x664] ss:$8 sps:$4 sm:$0xff]  }
 0x232   : > { %11802 = vmatprep.subr.bf16.mxu1 %v13933_v35  ;;  %v14029_v35 = vld [vmem:[%s16661_s9 + $0x764] ss:$8 sps:$4 sm:$0xff]  }
 0x233   : > { %11760 = vmatpush1.bf16.msra.mxu0 %v13928_v36  ;;  %v14024_v36 = vld [vmem:[%s16661_s9 + $0x660] ss:$8 sps:$4 sm:$0xff]  }
 0x234   : > { %11761 = vmatprep.subr.bf16.mxu0 %v13936_v37  ;;  %v14032_v37 = vld [vmem:[%s16661_s9 + $0x654] ss:$8 sps:$4 sm:$0xff]  }
 0x235   : > { %11803 = vmatpush1.bf16.msra.mxu1 %v13931_v38  ;;  %v14027_v38 = vld [vmem:[%s16661_s9 + $0x760] ss:$8 sps:$4 sm:$0xff]  }
 0x236   : > { %11804 = vmatprep.subr.bf16.mxu1 %v13939_v39  ;;  %v14035_v39 = vld [vmem:[%s16661_s9 + $0x754] ss:$8 sps:$4 sm:$0xff]  }
 0x237   : > { %11762 = vmatpush1.bf16.msra.mxu0 %v13934_v40  ;;  %v14030_v40 = vld [vmem:[%s16661_s9 + $0x650] ss:$8 sps:$4 sm:$0xff]  }
 0x238   : > { %11763 = vmatprep.subr.bf16.mxu0 %v13942_v41  ;;  %v14038_v41 = vld [vmem:[%s16661_s9 + $0x644] ss:$8 sps:$4 sm:$0xff]  }
 0x239   : > { %11805 = vmatpush1.bf16.msra.mxu1 %v13937_v42  ;;  %v14033_v42 = vld [vmem:[%s16661_s9 + $0x750] ss:$8 sps:$4 sm:$0xff]  }
 0x23a   : > { %11806 = vmatprep.subr.bf16.mxu1 %v13945_v43  ;;  %v14041_v43 = vld [vmem:[%s16661_s9 + $0x744] ss:$8 sps:$4 sm:$0xff]  }
 0x23b   : > { %11764 = vmatpush1.bf16.msra.mxu0 %v13940_v44  ;;  %v14036_v44 = vld [vmem:[%s16661_s9 + $0x640] ss:$8 sps:$4 sm:$0xff]  }
 0x23c   : > { %11765 = vmatprep.subr.bf16.mxu0 %v13948_v45  ;;  %v14044_v45 = vld [vmem:[%s16661_s9 + $0x634] ss:$8 sps:$4 sm:$0xff]  }
 0x23d   : > { %11807 = vmatpush1.bf16.msra.mxu1 %v13943_v46  ;;  %v14039_v46 = vld [vmem:[%s16661_s9 + $0x740] ss:$8 sps:$4 sm:$0xff]  }
 0x23e   : > { %11808 = vmatprep.subr.bf16.mxu1 %v13951_v47  ;;  %v14047_v47 = vld [vmem:[%s16661_s9 + $0x734] ss:$8 sps:$4 sm:$0xff]  }
 0x23f   : > { %11766 = vmatpush1.bf16.msra.mxu0 %v13946_v48  ;;  %v14042_v48 = vld [vmem:[%s16661_s9 + $0x630] ss:$8 sps:$4 sm:$0xff]  }
 0x240   : > { %11767 = vmatprep.subr.bf16.mxu0 %v13954_v49  ;;  %v14050_v49 = vld [vmem:[%s16661_s9 + $0x624] ss:$8 sps:$4 sm:$0xff]  }
 0x241   : > { %11809 = vmatpush1.bf16.msra.mxu1 %v13949_v50  ;;  %v14045_v50 = vld [vmem:[%s16661_s9 + $0x730] ss:$8 sps:$4 sm:$0xff]  }
 0x242   : > { %11810 = vmatprep.subr.bf16.mxu1 %v13957_v51  ;;  %v14053_v51 = vld [vmem:[%s16661_s9 + $0x724] ss:$8 sps:$4 sm:$0xff]  }
 0x243   : > { %11768 = vmatpush1.bf16.msra.mxu0 %v13952_v52  ;;  %v14048_v52 = vld [vmem:[%s16661_s9 + $0x620] ss:$8 sps:$4 sm:$0xff]  }
 0x244   : > { %11769 = vmatprep.subr.bf16.mxu0 %v13960_v53  ;;  %v14056_v53 = vld [vmem:[%s16661_s9 + $0x614] ss:$8 sps:$4 sm:$0xff]  }
 0x245   : > { %11811 = vmatpush1.bf16.msra.mxu1 %v13955_v54  ;;  %v14051_v54 = vld [vmem:[%s16661_s9 + $0x720] ss:$8 sps:$4 sm:$0xff]  }
 0x246   : > { %11812 = vmatprep.subr.bf16.mxu1 %v13963_v55  ;;  %v14059_v55 = vld [vmem:[%s16661_s9 + $0x714] ss:$8 sps:$4 sm:$0xff]  }
 0x247   : > { %11770 = vmatpush1.bf16.msra.mxu0 %v13958_v56  ;;  %v14054_v56 = vld [vmem:[%s16661_s9 + $0x610] ss:$8 sps:$4 sm:$0xff]  }
 0x248   : > { %11771 = vmatprep.subr.bf16.mxu0 %v13966_v57  ;;  %v14062_v57 = vld [vmem:[%s16661_s9 + $0x604] ss:$8 sps:$4 sm:$0xff]  }
 0x249   : > { %11813 = vmatpush1.bf16.msra.mxu1 %v13961_v58  ;;  %v14057_v58 = vld [vmem:[%s16661_s9 + $0x710] ss:$8 sps:$4 sm:$0xff]  }
 0x24a   : > { %11814 = vmatprep.subr.bf16.mxu1 %v13969_v59  ;;  %v14065_v59 = vld [vmem:[%s16661_s9 + $0x704] ss:$8 sps:$4 sm:$0xff]  }
 0x24b   : > { %11772 = vmatpush2.bf16.msra.mxu0 %v13964_v60  ;;  %v14060_v60 = vld [vmem:[%s16661_s9 + $0x600] ss:$8 sps:$4 sm:$0xff]  }
 0x24c   : > { %11773 = vmatprep.subr.bf16.mxu0 %v13972_v61  ;;  %v14068_v61 = vld [vmem:[%s16661_s9 + $0x6f4] ss:$8 sps:$4 sm:$0xff]  }
 0x24d   : > { %11815 = vmatpush2.bf16.msra.mxu1 %v13967_v62  ;;  %v14063_v62 = vld [vmem:[%s16661_s9 + $0x700] ss:$8 sps:$4 sm:$0xff]  }
 0x24e   : > { %11816 = vmatprep.subr.bf16.mxu1 %v13975_v63  ;;  %v14071_v63 = vld [vmem:[%s16661_s9 + $0x7f4] ss:$8 sps:$4 sm:$0xff]  }
 0x24f   : > { %11774 = vmatpush2.bf16.msra.mxu0 %v13970_v0  ;;  %v14066_v0 = vld [vmem:[%s16661_s9 + $0x6f0] ss:$8 sps:$4 sm:$0xff]  }
 0x250   : > { %11775 = vmatprep.subr.bf16.mxu0 %v13978_v1  ;;  %v14074_v1 = vld [vmem:[%s16661_s9 + $0x6e4] ss:$8 sps:$4 sm:$0xff]  }
 0x251   : > { %11817 = vmatpush2.bf16.msra.mxu1 %v13973_v2  ;;  %v14069_v2 = vld [vmem:[%s16661_s9 + $0x7f0] ss:$8 sps:$4 sm:$0xff]  }
 0x252   : > { %11818 = vmatprep.subr.bf16.mxu1 %v13981_v3  ;;  %v14077_v3 = vld [vmem:[%s16661_s9 + $0x7e4] ss:$8 sps:$4 sm:$0xff]  }
 0x253   : > { %11776 = vmatpush2.bf16.msra.mxu0 %v13976_v4  ;;  %v14072_v4 = vld [vmem:[%s16661_s9 + $0x6e0] ss:$8 sps:$4 sm:$0xff]  }
 0x254   : > { %11777 = vmatprep.subr.bf16.mxu0 %v13984_v5  ;;  %v14080_v5 = vld [vmem:[%s16661_s9 + $0x6d4] ss:$8 sps:$4 sm:$0xff]  }
 0x255   : > { %11819 = vmatpush2.bf16.msra.mxu1 %v13979_v6  ;;  %v14075_v6 = vld [vmem:[%s16661_s9 + $0x7e0] ss:$8 sps:$4 sm:$0xff]  }
 0x256   : > { %11820 = vmatprep.subr.bf16.mxu1 %v13987_v7  ;;  %v14083_v7 = vld [vmem:[%s16661_s9 + $0x7d4] ss:$8 sps:$4 sm:$0xff]  }
 0x257   : > { %11778 = vmatpush2.bf16.msra.mxu0 %v13982_v8  ;;  %v14078_v8 = vld [vmem:[%s16661_s9 + $0x6d0] ss:$8 sps:$4 sm:$0xff]  }
 0x258   : > { %11779 = vmatprep.subr.bf16.mxu0 %v13990_v9  ;;  %v14086_v9 = vld [vmem:[%s16661_s9 + $0x6c4] ss:$8 sps:$4 sm:$0xff]  }
 0x259   : > { %11821 = vmatpush2.bf16.msra.mxu1 %v13985_v10  ;;  %v14081_v10 = vld [vmem:[%s16661_s9 + $0x7d0] ss:$8 sps:$4 sm:$0xff]  }
 0x25a   : > { %11822 = vmatprep.subr.bf16.mxu1 %v13993_v11  ;;  %v14089_v11 = vld [vmem:[%s16661_s9 + $0x7c4] ss:$8 sps:$4 sm:$0xff]  }
 0x25b   : > { %11780 = vmatpush2.bf16.msra.mxu0 %v13988_v12  ;;  %v14084_v12 = vld [vmem:[%s16661_s9 + $0x6c0] ss:$8 sps:$4 sm:$0xff]  }
 0x25c   : > { %11781 = vmatprep.subr.bf16.mxu0 %v13996_v13  ;;  %v14092_v13 = vld [vmem:[%s16661_s9 + $0x6b4] ss:$8 sps:$4 sm:$0xff]  }
 0x25d   : > { %11823 = vmatpush2.bf16.msra.mxu1 %v13991_v14  ;;  %v14087_v14 = vld [vmem:[%s16661_s9 + $0x7c0] ss:$8 sps:$4 sm:$0xff]  }
 0x25e   : > { %11824 = vmatprep.subr.bf16.mxu1 %v13999_v15  ;;  %v14095_v15 = vld [vmem:[%s16661_s9 + $0x7b4] ss:$8 sps:$4 sm:$0xff]  }
 0x25f   : > { %11782 = vmatpush2.bf16.msra.mxu0 %v13994_v16  ;;  %v14090_v16 = vld [vmem:[%s16661_s9 + $0x6b0] ss:$8 sps:$4 sm:$0xff]  }
 0x260   : > { %11783 = vmatprep.subr.bf16.mxu0 %v14002_v17  ;;  %v14098_v17 = vld [vmem:[%s16661_s9 + $0x6a4] ss:$8 sps:$4 sm:$0xff]  }
 0x261   : > { %11825 = vmatpush2.bf16.msra.mxu1 %v13997_v18  ;;  %v14093_v18 = vld [vmem:[%s16661_s9 + $0x7b0] ss:$8 sps:$4 sm:$0xff]  }
 0x262   : > { %11826 = vmatprep.subr.bf16.mxu1 %v14005_v19  ;;  %v14101_v19 = vld [vmem:[%s16661_s9 + $0x7a4] ss:$8 sps:$4 sm:$0xff]  }
 0x263   : > { %11784 = vmatpush2.bf16.msra.mxu0 %v14000_v20  ;;  %v14096_v20 = vld [vmem:[%s16661_s9 + $0x6a0] ss:$8 sps:$4 sm:$0xff]  }
 0x264   : > { %11785 = vmatprep.subr.bf16.mxu0 %v14008_v21  ;;  %v14104_v21 = vld [vmem:[%s16661_s9 + $0x694] ss:$8 sps:$4 sm:$0xff]  }
 0x265   : > { %11827 = vmatpush2.bf16.msra.mxu1 %v14003_v22  ;;  %v14099_v22 = vld [vmem:[%s16661_s9 + $0x7a0] ss:$8 sps:$4 sm:$0xff]  }
 0x266   : > { %11828 = vmatprep.subr.bf16.mxu1 %v14011_v24  ;;  %v14102_v24 = vld [vmem:[%s16661_s9 + $0x690] ss:$8 sps:$4 sm:$0xff]  }
 0x267   : > { %11786 = vmatpush2.bf16.msra.mxu0 %v14006_v23  ;;  %v14107_v23 = vld [vmem:[%s16661_s9 + $0x794] ss:$8 sps:$4 sm:$0xff]  }
 0x268   : > { %11841 = vmatprep.subr.bf16.mxu0 %v14017_v26  ;;  %v14105_v26 = vld [vmem:[%s16661_s9 + $0x790] ss:$8 sps:$4 sm:$0xff]  }
 0x269   : > { %11829 = vmatpush2.bf16.msra.mxu1 %v14009_v25  ;;  %v14110_v25 = vld [vmem:[%s16661_s9 + $0x684] ss:$8 sps:$4 sm:$0xff]  }
 0x26a   : > { %11788 = vmatmul.mubr.bf16.vlgmr.msra.gmra.mxu0 %v14012_v27  ;;  %11884 = vmatprep.subr.bf16.mxu1 %v14023_v30  ;;  %v14108_v27 = vld [vmem:[%s16661_s9 + $0x680] ss:$8 sps:$4 sm:$0xff]   ;;  %v14119_v30 = vld [vmem:[%s16661_s9 + $0x874] ss:$8 sps:$4 sm:$0xff]  }
 0x26b   : > { %11842 = vmatpush1.bf16.msra.mxu0 %v14015_v28  ;;  %11873 = vmatprep.mubr.bf16.mxu0 %v14116_v31  ;;  %v14113_v28 = vld [vmem:[%s16661_s9 + $0x784] ss:$8 sps:$4 sm:$0xff]   ;;  %v14114_v31 = vld [vmem:[%s17810_s0 + $0x30] ss:$196 sps:$4 sm:$0xff]  }
 0x26c   : > { %11831 = vmatmul.mubr.bf16.vlgmr.msra.gmra.mxu1 %v14018_v29  ;;  %11843 = vmatprep.subr.bf16.mxu0 %v14026_v32  ;;  %v14111_v29 = vld [vmem:[%s16661_s9 + $0x780] ss:$8 sps:$4 sm:$0xff]   ;;  %v14117_v32 = vld [vmem:[%s16661_s9 + $0x870] ss:$8 sps:$4 sm:$0xff]  }
 0x26d   : > { %11885 = vmatpush1.bf16.msra.mxu1 %v14021_v33  ;;  %11916 = vmatprep.mubr.bf16.mxu1 %v14122_v34  ;;  %v14120_v33 = vld [vmem:[%s17810_s0 + $0x38] ss:$196 sps:$4 sm:$0xff]  }
 0x26e   : > { %11886 = vmatprep.subr.bf16.mxu1 %v14029_v35  ;;  %v14125_v34 = vld [vmem:[%s16661_s9 + $0x974] ss:$8 sps:$4 sm:$0xff]   ;;  %v14218_v35 = vld [vmem:[%s17810_s0 + $0x44] ss:$196 sps:$4 sm:$0xff]  }
 0x26f   : > { %11844 = vmatpush1.bf16.msra.mxu0 %v14024_v36  ;;  %v14128_v36 = vld [vmem:[%s16661_s9 + $0x864] ss:$8 sps:$4 sm:$0xff]  }
 0x270   : > { %11845 = vmatprep.subr.bf16.mxu0 %v14032_v37  ;;  %v14123_v37 = vld [vmem:[%s16661_s9 + $0x970] ss:$8 sps:$4 sm:$0xff]  }
 0x271   : > { %11887 = vmatpush1.bf16.msra.mxu1 %v14027_v38  ;;  %v14224_v38 = vld [vmem:[%s17810_s0 + $0x4c] ss:$196 sps:$4 sm:$0xff]  }
 0x272   : > { %11888 = vmatprep.subr.bf16.mxu1 %v14035_v39  ;;  %v14131_v39 = vld [vmem:[%s16661_s9 + $0x964] ss:$8 sps:$4 sm:$0xff]  }
 0x273   : > { %11846 = vmatpush1.bf16.msra.mxu0 %v14030_v40  ;;  %v14126_v40 = vld [vmem:[%s16661_s9 + $0x860] ss:$8 sps:$4 sm:$0xff]  }
 0x274   : > { %11847 = vmatprep.subr.bf16.mxu0 %v14038_v41  ;;  %v14134_v41 = vld [vmem:[%s16661_s9 + $0x854] ss:$8 sps:$4 sm:$0xff]  }
 0x275   : > { %11889 = vmatpush1.bf16.msra.mxu1 %v14033_v42  ;;  %v14129_v42 = vld [vmem:[%s16661_s9 + $0x960] ss:$8 sps:$4 sm:$0xff]  }
 0x276   : > { %11890 = vmatprep.subr.bf16.mxu1 %v14041_v43  ;;  %v14137_v43 = vld [vmem:[%s16661_s9 + $0x954] ss:$8 sps:$4 sm:$0xff]  }
 0x277   : > { %11848 = vmatpush1.bf16.msra.mxu0 %v14036_v44  ;;  %v14132_v44 = vld [vmem:[%s16661_s9 + $0x850] ss:$8 sps:$4 sm:$0xff]  }
 0x278   : > { %11849 = vmatprep.subr.bf16.mxu0 %v14044_v45  ;;  %v14140_v45 = vld [vmem:[%s16661_s9 + $0x844] ss:$8 sps:$4 sm:$0xff]  }
 0x279   : > { %11891 = vmatpush1.bf16.msra.mxu1 %v14039_v46  ;;  %v14135_v46 = vld [vmem:[%s16661_s9 + $0x950] ss:$8 sps:$4 sm:$0xff]  }
 0x27a   : > { %11892 = vmatprep.subr.bf16.mxu1 %v14047_v47  ;;  %v14143_v47 = vld [vmem:[%s16661_s9 + $0x944] ss:$8 sps:$4 sm:$0xff]  }
 0x27b   : > { %11850 = vmatpush1.bf16.msra.mxu0 %v14042_v48  ;;  %v14138_v48 = vld [vmem:[%s16661_s9 + $0x840] ss:$8 sps:$4 sm:$0xff]  }
 0x27c   : > { %11851 = vmatprep.subr.bf16.mxu0 %v14050_v49  ;;  %v14146_v49 = vld [vmem:[%s16661_s9 + $0x834] ss:$8 sps:$4 sm:$0xff]  }
 0x27d   : > { %11893 = vmatpush1.bf16.msra.mxu1 %v14045_v50  ;;  %v14141_v50 = vld [vmem:[%s16661_s9 + $0x940] ss:$8 sps:$4 sm:$0xff]  }
 0x27e   : > { %11894 = vmatprep.subr.bf16.mxu1 %v14053_v51  ;;  %v14149_v51 = vld [vmem:[%s16661_s9 + $0x934] ss:$8 sps:$4 sm:$0xff]  }
 0x27f   : > { %11852 = vmatpush1.bf16.msra.mxu0 %v14048_v52  ;;  %v14144_v52 = vld [vmem:[%s16661_s9 + $0x830] ss:$8 sps:$4 sm:$0xff]  }
 0x280   : > { %11853 = vmatprep.subr.bf16.mxu0 %v14056_v53  ;;  %v14152_v53 = vld [vmem:[%s16661_s9 + $0x824] ss:$8 sps:$4 sm:$0xff]  }
 0x281   : > { %11895 = vmatpush1.bf16.msra.mxu1 %v14051_v54  ;;  %v14147_v54 = vld [vmem:[%s16661_s9 + $0x930] ss:$8 sps:$4 sm:$0xff]  }
 0x282   : > { %11896 = vmatprep.subr.bf16.mxu1 %v14059_v55  ;;  %v14155_v55 = vld [vmem:[%s16661_s9 + $0x924] ss:$8 sps:$4 sm:$0xff]  }
 0x283   : > { %11854 = vmatpush1.bf16.msra.mxu0 %v14054_v56  ;;  %v14150_v56 = vld [vmem:[%s16661_s9 + $0x820] ss:$8 sps:$4 sm:$0xff]  }
 0x284   : > { %11855 = vmatprep.subr.bf16.mxu0 %v14062_v57  ;;  %v14158_v57 = vld [vmem:[%s16661_s9 + $0x814] ss:$8 sps:$4 sm:$0xff]  }
 0x285   : > { %11897 = vmatpush1.bf16.msra.mxu1 %v14057_v58  ;;  %v14153_v58 = vld [vmem:[%s16661_s9 + $0x920] ss:$8 sps:$4 sm:$0xff]  }
 0x286   : > { %11898 = vmatprep.subr.bf16.mxu1 %v14065_v59  ;;  %v14161_v59 = vld [vmem:[%s16661_s9 + $0x914] ss:$8 sps:$4 sm:$0xff]  }
 0x287   : > { %11856 = vmatpush1.bf16.msra.mxu0 %v14060_v60  ;;  %v14156_v60 = vld [vmem:[%s16661_s9 + $0x810] ss:$8 sps:$4 sm:$0xff]  }
 0x288   : > { %11857 = vmatprep.subr.bf16.mxu0 %v14068_v61  ;;  %v14164_v61 = vld [vmem:[%s16661_s9 + $0x804] ss:$8 sps:$4 sm:$0xff]  }
 0x289   : > { %11899 = vmatpush1.bf16.msra.mxu1 %v14063_v62  ;;  %v14159_v62 = vld [vmem:[%s16661_s9 + $0x910] ss:$8 sps:$4 sm:$0xff]  }
 0x28a   : > { %11900 = vmatprep.subr.bf16.mxu1 %v14071_v63  ;;  %v14167_v63 = vld [vmem:[%s16661_s9 + $0x904] ss:$8 sps:$4 sm:$0xff]  }
 0x28b   : > { %11858 = vmatpush2.bf16.msra.mxu0 %v14066_v0  ;;  %v14162_v0 = vld [vmem:[%s16661_s9 + $0x800] ss:$8 sps:$4 sm:$0xff]  }
 0x28c   : > { %11859 = vmatprep.subr.bf16.mxu0 %v14074_v1  ;;  %v14170_v1 = vld [vmem:[%s16661_s9 + $0x8f4] ss:$8 sps:$4 sm:$0xff]  }
 0x28d   : > { %11901 = vmatpush2.bf16.msra.mxu1 %v14069_v2  ;;  %v14165_v2 = vld [vmem:[%s16661_s9 + $0x900] ss:$8 sps:$4 sm:$0xff]  }
 0x28e   : > { %11902 = vmatprep.subr.bf16.mxu1 %v14077_v3  ;;  %v14173_v3 = vld [vmem:[%s16661_s9 + $0x9f4] ss:$8 sps:$4 sm:$0xff]  }
 0x28f   : > { %11860 = vmatpush2.bf16.msra.mxu0 %v14072_v4  ;;  %v14168_v4 = vld [vmem:[%s16661_s9 + $0x8f0] ss:$8 sps:$4 sm:$0xff]  }
 0x290   : > { %11861 = vmatprep.subr.bf16.mxu0 %v14080_v5  ;;  %v14176_v5 = vld [vmem:[%s16661_s9 + $0x8e4] ss:$8 sps:$4 sm:$0xff]  }
 0x291   : > { %11903 = vmatpush2.bf16.msra.mxu1 %v14075_v6  ;;  %v14171_v6 = vld [vmem:[%s16661_s9 + $0x9f0] ss:$8 sps:$4 sm:$0xff]  }
 0x292   : > { %11904 = vmatprep.subr.bf16.mxu1 %v14083_v7  ;;  %v14179_v7 = vld [vmem:[%s16661_s9 + $0x9e4] ss:$8 sps:$4 sm:$0xff]  }
 0x293   : > { %11862 = vmatpush2.bf16.msra.mxu0 %v14078_v8  ;;  %v14174_v8 = vld [vmem:[%s16661_s9 + $0x8e0] ss:$8 sps:$4 sm:$0xff]  }
 0x294   : > { %11863 = vmatprep.subr.bf16.mxu0 %v14086_v9  ;;  %v14182_v9 = vld [vmem:[%s16661_s9 + $0x8d4] ss:$8 sps:$4 sm:$0xff]  }
 0x295   : > { %11905 = vmatpush2.bf16.msra.mxu1 %v14081_v10  ;;  %v14177_v10 = vld [vmem:[%s16661_s9 + $0x9e0] ss:$8 sps:$4 sm:$0xff]  }
 0x296   : > { %11906 = vmatprep.subr.bf16.mxu1 %v14089_v11  ;;  %v14180_v11 = vld [vmem:[%s16661_s9 + $0x8d0] ss:$8 sps:$4 sm:$0xff]  }
 0x297   : > { %11864 = vmatpush2.bf16.msra.mxu0 %v14084_v12  ;;  %v14185_v12 = vld [vmem:[%s16661_s9 + $0x9d4] ss:$8 sps:$4 sm:$0xff]  }
 0x298   : > { %11865 = vmatprep.subr.bf16.mxu0 %v14092_v13  ;;  %v14183_v13 = vld [vmem:[%s16661_s9 + $0x9d0] ss:$8 sps:$4 sm:$0xff]  }
 0x299   : > { %11907 = vmatpush2.bf16.msra.mxu1 %v14087_v14  ;;  %v14188_v14 = vld [vmem:[%s16661_s9 + $0x8c4] ss:$8 sps:$4 sm:$0xff]  }
 0x29a   : > { %11908 = vmatprep.subr.bf16.mxu1 %v14095_v15  ;;  %v14186_v15 = vld [vmem:[%s16661_s9 + $0x8c0] ss:$8 sps:$4 sm:$0xff]  }
 0x29b   : > { %11866 = vmatpush2.bf16.msra.mxu0 %v14090_v16  ;;  %v14191_v16 = vld [vmem:[%s16661_s9 + $0x9c4] ss:$8 sps:$4 sm:$0xff]  }
 0x29c   : > { %11867 = vmatprep.subr.bf16.mxu0 %v14098_v17  ;;  %v14189_v17 = vld [vmem:[%s16661_s9 + $0x9c0] ss:$8 sps:$4 sm:$0xff]  }
 0x29d   : > { %11909 = vmatpush2.bf16.msra.mxu1 %v14093_v18  ;;  %v14194_v18 = vld [vmem:[%s16661_s9 + $0x8b4] ss:$8 sps:$4 sm:$0xff]  }
 0x29e   : > { %11910 = vmatprep.subr.bf16.mxu1 %v14101_v19  ;;  %v14192_v19 = vld [vmem:[%s16661_s9 + $0x8b0] ss:$8 sps:$4 sm:$0xff]  }
 0x29f   : > { %11868 = vmatpush2.bf16.msra.mxu0 %v14096_v20  ;;  %v14197_v20 = vld [vmem:[%s16661_s9 + $0x9b4] ss:$8 sps:$4 sm:$0xff]  }
 0x2a0   : > { %11869 = vmatprep.subr.bf16.mxu0 %v14104_v21  ;;  %v14195_v21 = vld [vmem:[%s16661_s9 + $0x9b0] ss:$8 sps:$4 sm:$0xff]  }
 0x2a1   : > { %11911 = vmatpush2.bf16.msra.mxu1 %v14099_v22  ;;  %v14200_v22 = vld [vmem:[%s16661_s9 + $0x8a4] ss:$8 sps:$4 sm:$0xff]  }
 0x2a2   : > { %11912 = vmatprep.subr.bf16.mxu1 %v14107_v23  ;;  %v14198_v23 = vld [vmem:[%s16661_s9 + $0x8a0] ss:$8 sps:$4 sm:$0xff]  }
 0x2a3   : > { %11870 = vmatpush2.bf16.msra.mxu0 %v14102_v24  ;;  %v14203_v24 = vld [vmem:[%s16661_s9 + $0x9a4] ss:$8 sps:$4 sm:$0xff]  }
 0x2a4   : > { %11871 = vmatprep.subr.bf16.mxu0 %v14110_v25  ;;  %v14201_v25 = vld [vmem:[%s16661_s9 + $0x9a0] ss:$8 sps:$4 sm:$0xff]  }
 0x2a5   : > { %11913 = vmatpush2.bf16.msra.mxu1 %v14105_v26  ;;  %v14206_v26 = vld [vmem:[%s16661_s9 + $0x894] ss:$8 sps:$4 sm:$0xff]  }
 0x2a6   : > { %11914 = vmatprep.subr.bf16.mxu1 %v14113_v28  ;;  %v14209_v28 = vld [vmem:[%s16661_s9 + $0x994] ss:$8 sps:$4 sm:$0xff]  }
 0x2a7   : > { %11872 = vmatpush2.bf16.msra.mxu0 %v14108_v27  ;;  %v14204_v27 = vld [vmem:[%s16661_s9 + $0x890] ss:$8 sps:$4 sm:$0xff]  }
 0x2a8   : > { %11927 = vmatprep.subr.bf16.mxu0 %v14119_v30  ;;  %v14212_v30 = vld [vmem:[%s16661_s9 + $0x884] ss:$8 sps:$4 sm:$0xff]  }
 0x2a9   : > { %11915 = vmatpush2.bf16.msra.mxu1 %v14111_v29  ;;  %v14207_v29 = vld [vmem:[%s16661_s9 + $0x990] ss:$8 sps:$4 sm:$0xff]  }
 0x2aa   : > { %11874 = vmatmul.mubr.bf16.vlgmr.msra.gmra.mxu0 %v14114_v31  ;;  %11970 = vmatprep.subr.bf16.mxu1 %v14125_v34  ;;  %v14210_v31 = vld [vmem:[%s16661_s9 + $0x880] ss:$8 sps:$4 sm:$0xff]   ;;  %v14221_v34 = vld [vmem:[%s16661_s9 + $0xa74] ss:$8 sps:$4 sm:$0xff]  }
 0x2ab   : > { %11928 = vmatpush1.bf16.msra.mxu0 %v14117_v32  ;;  %11959 = vmatprep.mubr.bf16.mxu0 %v14218_v35  ;;  %v14215_v32 = vld [vmem:[%s16661_s9 + $0x984] ss:$8 sps:$4 sm:$0xff]  }
 0x2ac   : > { %11917 = vmatmul.mubr.bf16.vlgmr.msra.gmra.mxu1 %v14120_v33  ;;  %11929 = vmatprep.subr.bf16.mxu0 %v14128_v36  ;;  %v14213_v33 = vld [vmem:[%s16661_s9 + $0x980] ss:$8 sps:$4 sm:$0xff]   ;;  %v14227_v36 = vld [vmem:[%s16661_s9 + $0xb74] ss:$8 sps:$4 sm:$0xff]  }
 0x2ad   : > { %11971 = vmatpush1.bf16.msra.mxu1 %v14123_v37  ;;  %12002 = vmatprep.mubr.bf16.mxu1 %v14224_v38  ;;  %v14216_v35 = vld [vmem:[%s17810_s0 + $0x40] ss:$196 sps:$4 sm:$0xff]   ;;  %v14219_v37 = vld [vmem:[%s16661_s9 + $0xa70] ss:$8 sps:$4 sm:$0xff]   ;;  %v14222_v38 = vld [vmem:[%s17810_s0 + $0x48] ss:$196 sps:$4 sm:$0xff]  }
 0x2ae   : > { %11972 = vmatprep.subr.bf16.mxu1 %v14131_v39  ;;  %v14320_v39 = vld [vmem:[%s17810_s0 + $0x54] ss:$196 sps:$4 sm:$0xff]  }
 0x2af   : > { %11930 = vmatpush1.bf16.msra.mxu0 %v14126_v40  ;;  %v14230_v40 = vld [vmem:[%s16661_s9 + $0xa64] ss:$8 sps:$4 sm:$0xff]  }
 0x2b0   : > { %11931 = vmatprep.subr.bf16.mxu0 %v14134_v41  ;;  %v14225_v41 = vld [vmem:[%s16661_s9 + $0xb70] ss:$8 sps:$4 sm:$0xff]  }
 0x2b1   : > { %11973 = vmatpush1.bf16.msra.mxu1 %v14129_v42  ;;  %v14326_v42 = vld [vmem:[%s17810_s0 + $0x5c] ss:$196 sps:$4 sm:$0xff]  }
 0x2b2   : > { %11974 = vmatprep.subr.bf16.mxu1 %v14137_v43  ;;  %v14228_v43 = vld [vmem:[%s16661_s9 + $0xa60] ss:$8 sps:$4 sm:$0xff]  }
 0x2b3   : > { %11932 = vmatpush1.bf16.msra.mxu0 %v14132_v44  ;;  %v14233_v44 = vld [vmem:[%s16661_s9 + $0xb64] ss:$8 sps:$4 sm:$0xff]  }
 0x2b4   : > { %11933 = vmatprep.subr.bf16.mxu0 %v14140_v45  ;;  %v14231_v45 = vld [vmem:[%s16661_s9 + $0xb60] ss:$8 sps:$4 sm:$0xff]  }
 0x2b5   : > { %11975 = vmatpush1.bf16.msra.mxu1 %v14135_v46  ;;  %v14236_v46 = vld [vmem:[%s16661_s9 + $0xa54] ss:$8 sps:$4 sm:$0xff]  }
 0x2b6   : > { %11976 = vmatprep.subr.bf16.mxu1 %v14143_v47  ;;  %v14234_v47 = vld [vmem:[%s16661_s9 + $0xa50] ss:$8 sps:$4 sm:$0xff]  }
 0x2b7   : > { %11934 = vmatpush1.bf16.msra.mxu0 %v14138_v48  ;;  %v14239_v48 = vld [vmem:[%s16661_s9 + $0xb54] ss:$8 sps:$4 sm:$0xff]  }
 0x2b8   : > { %11935 = vmatprep.subr.bf16.mxu0 %v14146_v49  ;;  %v14237_v49 = vld [vmem:[%s16661_s9 + $0xb50] ss:$8 sps:$4 sm:$0xff]  }
 0x2b9   : > { %11977 = vmatpush1.bf16.msra.mxu1 %v14141_v50  ;;  %v14242_v50 = vld [vmem:[%s16661_s9 + $0xa44] ss:$8 sps:$4 sm:$0xff]  }
 0x2ba   : > { %11978 = vmatprep.subr.bf16.mxu1 %v14149_v51  ;;  %v14240_v51 = vld [vmem:[%s16661_s9 + $0xa40] ss:$8 sps:$4 sm:$0xff]  }
 0x2bb   : > { %11936 = vmatpush1.bf16.msra.mxu0 %v14144_v52  ;;  %v14245_v52 = vld [vmem:[%s16661_s9 + $0xb44] ss:$8 sps:$4 sm:$0xff]  }
 0x2bc   : > { %11937 = vmatprep.subr.bf16.mxu0 %v14152_v53  ;;  %v14243_v53 = vld [vmem:[%s16661_s9 + $0xb40] ss:$8 sps:$4 sm:$0xff]  }
 0x2bd   : > { %11979 = vmatpush1.bf16.msra.mxu1 %v14147_v54  ;;  %v14248_v54 = vld [vmem:[%s16661_s9 + $0xa34] ss:$8 sps:$4 sm:$0xff]  }
 0x2be   : > { %11980 = vmatprep.subr.bf16.mxu1 %v14155_v55  ;;  %v14246_v55 = vld [vmem:[%s16661_s9 + $0xa30] ss:$8 sps:$4 sm:$0xff]  }
 0x2bf   : > { %11938 = vmatpush1.bf16.msra.mxu0 %v14150_v56  ;;  %v14251_v56 = vld [vmem:[%s16661_s9 + $0xb34] ss:$8 sps:$4 sm:$0xff]  }
 0x2c0   : > { %11939 = vmatprep.subr.bf16.mxu0 %v14158_v57  ;;  %v14249_v57 = vld [vmem:[%s16661_s9 + $0xb30] ss:$8 sps:$4 sm:$0xff]  }
 0x2c1   : > { %11981 = vmatpush1.bf16.msra.mxu1 %v14153_v58  ;;  %v14254_v58 = vld [vmem:[%s16661_s9 + $0xa24] ss:$8 sps:$4 sm:$0xff]  }
 0x2c2   : > { %11982 = vmatprep.subr.bf16.mxu1 %v14161_v59  ;;  %v14252_v59 = vld [vmem:[%s16661_s9 + $0xa20] ss:$8 sps:$4 sm:$0xff]  }
 0x2c3   : > { %11940 = vmatpush1.bf16.msra.mxu0 %v14156_v60  ;;  %v14257_v60 = vld [vmem:[%s16661_s9 + $0xb24] ss:$8 sps:$4 sm:$0xff]  }
 0x2c4   : > { %11941 = vmatprep.subr.bf16.mxu0 %v14164_v61  ;;  %v14255_v61 = vld [vmem:[%s16661_s9 + $0xb20] ss:$8 sps:$4 sm:$0xff]  }
 0x2c5   : > { %11983 = vmatpush1.bf16.msra.mxu1 %v14159_v62  ;;  %v14260_v62 = vld [vmem:[%s16661_s9 + $0xa14] ss:$8 sps:$4 sm:$0xff]  }
 0x2c6   : > { %11984 = vmatprep.subr.bf16.mxu1 %v14167_v63  ;;  %v14258_v63 = vld [vmem:[%s16661_s9 + $0xa10] ss:$8 sps:$4 sm:$0xff]  }
 0x2c7   : > { %11942 = vmatpush1.bf16.msra.mxu0 %v14162_v0  ;;  %v14263_v0 = vld [vmem:[%s16661_s9 + $0xb14] ss:$8 sps:$4 sm:$0xff]  }
 0x2c8   : > { %11943 = vmatprep.subr.bf16.mxu0 %v14170_v1  ;;  %v14261_v1 = vld [vmem:[%s16661_s9 + $0xb10] ss:$8 sps:$4 sm:$0xff]  }
 0x2c9   : > { %11985 = vmatpush1.bf16.msra.mxu1 %v14165_v2  ;;  %v14266_v2 = vld [vmem:[%s16661_s9 + $0xa04] ss:$8 sps:$4 sm:$0xff]  }
 0x2ca   : > { %11986 = vmatprep.subr.bf16.mxu1 %v14173_v3  ;;  %v14264_v3 = vld [vmem:[%s16661_s9 + $0xa00] ss:$8 sps:$4 sm:$0xff]  }
 0x2cb   : > { %11944 = vmatpush2.bf16.msra.mxu0 %v14168_v4  ;;  %v14269_v4 = vld [vmem:[%s16661_s9 + $0xb04] ss:$8 sps:$4 sm:$0xff]  }
 0x2cc   : > { %11945 = vmatprep.subr.bf16.mxu0 %v14176_v5  ;;  %v14267_v5 = vld [vmem:[%s16661_s9 + $0xb00] ss:$8 sps:$4 sm:$0xff]  }
 0x2cd   : > { %11987 = vmatpush2.bf16.msra.mxu1 %v14171_v6  ;;  %v14272_v6 = vld [vmem:[%s16661_s9 + $0xaf4] ss:$8 sps:$4 sm:$0xff]  }
 0x2ce   : > { %11988 = vmatprep.subr.bf16.mxu1 %v14179_v7  ;;  %v14270_v7 = vld [vmem:[%s16661_s9 + $0xaf0] ss:$8 sps:$4 sm:$0xff]  }
 0x2cf   : > { %11946 = vmatpush2.bf16.msra.mxu0 %v14174_v8  ;;  %v14275_v8 = vld [vmem:[%s16661_s9 + $0xbf4] ss:$8 sps:$4 sm:$0xff]  }
 0x2d0   : > { %11947 = vmatprep.subr.bf16.mxu0 %v14182_v9  ;;  %v14273_v9 = vld [vmem:[%s16661_s9 + $0xbf0] ss:$8 sps:$4 sm:$0xff]  }
 0x2d1   : > { %11989 = vmatpush2.bf16.msra.mxu1 %v14177_v10  ;;  %v14278_v10 = vld [vmem:[%s16661_s9 + $0xae4] ss:$8 sps:$4 sm:$0xff]  }
 0x2d2   : > { %11990 = vmatprep.subr.bf16.mxu1 %v14185_v12  ;;  %v14281_v12 = vld [vmem:[%s16661_s9 + $0xbe4] ss:$8 sps:$4 sm:$0xff]  }
 0x2d3   : > { %11948 = vmatpush2.bf16.msra.mxu0 %v14180_v11  ;;  %v14276_v11 = vld [vmem:[%s16661_s9 + $0xae0] ss:$8 sps:$4 sm:$0xff]  }
 0x2d4   : > { %11949 = vmatprep.subr.bf16.mxu0 %v14188_v14  ;;  %v14284_v14 = vld [vmem:[%s16661_s9 + $0xad4] ss:$8 sps:$4 sm:$0xff]  }
 0x2d5   : > { %11991 = vmatpush2.bf16.msra.mxu1 %v14183_v13  ;;  %v14279_v13 = vld [vmem:[%s16661_s9 + $0xbe0] ss:$8 sps:$4 sm:$0xff]  }
 0x2d6   : > { %11992 = vmatprep.subr.bf16.mxu1 %v14191_v16  ;;  %v14287_v16 = vld [vmem:[%s16661_s9 + $0xbd4] ss:$8 sps:$4 sm:$0xff]  }
 0x2d7   : > { %11950 = vmatpush2.bf16.msra.mxu0 %v14186_v15  ;;  %v14282_v15 = vld [vmem:[%s16661_s9 + $0xad0] ss:$8 sps:$4 sm:$0xff]  }
 0x2d8   : > { %11951 = vmatprep.subr.bf16.mxu0 %v14194_v18  ;;  %v14290_v18 = vld [vmem:[%s16661_s9 + $0xac4] ss:$8 sps:$4 sm:$0xff]  }
 0x2d9   : > { %11993 = vmatpush2.bf16.msra.mxu1 %v14189_v17  ;;  %v14285_v17 = vld [vmem:[%s16661_s9 + $0xbd0] ss:$8 sps:$4 sm:$0xff]  }
 0x2da   : > { %11994 = vmatprep.subr.bf16.mxu1 %v14197_v20  ;;  %v14293_v20 = vld [vmem:[%s16661_s9 + $0xbc4] ss:$8 sps:$4 sm:$0xff]  }
 0x2db   : > { %11952 = vmatpush2.bf16.msra.mxu0 %v14192_v19  ;;  %v14288_v19 = vld [vmem:[%s16661_s9 + $0xac0] ss:$8 sps:$4 sm:$0xff]  }
 0x2dc   : > { %11953 = vmatprep.subr.bf16.mxu0 %v14200_v22  ;;  %v14296_v22 = vld [vmem:[%s16661_s9 + $0xab4] ss:$8 sps:$4 sm:$0xff]  }
 0x2dd   : > { %11995 = vmatpush2.bf16.msra.mxu1 %v14195_v21  ;;  %v14291_v21 = vld [vmem:[%s16661_s9 + $0xbc0] ss:$8 sps:$4 sm:$0xff]  }
 0x2de   : > { %11996 = vmatprep.subr.bf16.mxu1 %v14203_v24  ;;  %v14299_v24 = vld [vmem:[%s16661_s9 + $0xbb4] ss:$8 sps:$4 sm:$0xff]  }
 0x2df   : > { %11954 = vmatpush2.bf16.msra.mxu0 %v14198_v23  ;;  %v14294_v23 = vld [vmem:[%s16661_s9 + $0xab0] ss:$8 sps:$4 sm:$0xff]  }
 0x2e0   : > { %11955 = vmatprep.subr.bf16.mxu0 %v14206_v26  ;;  %v14302_v26 = vld [vmem:[%s16661_s9 + $0xaa4] ss:$8 sps:$4 sm:$0xff]  }
 0x2e1   : > { %11997 = vmatpush2.bf16.msra.mxu1 %v14201_v25  ;;  %v14297_v25 = vld [vmem:[%s16661_s9 + $0xbb0] ss:$8 sps:$4 sm:$0xff]  }
 0x2e2   : > { %11998 = vmatprep.subr.bf16.mxu1 %v14209_v28  ;;  %v14305_v28 = vld [vmem:[%s16661_s9 + $0xba4] ss:$8 sps:$4 sm:$0xff]  }
 0x2e3   : > { %11956 = vmatpush2.bf16.msra.mxu0 %v14204_v27  ;;  %v14300_v27 = vld [vmem:[%s16661_s9 + $0xaa0] ss:$8 sps:$4 sm:$0xff]  }
 0x2e4   : > { %11957 = vmatprep.subr.bf16.mxu0 %v14212_v30  ;;  %v14308_v30 = vld [vmem:[%s16661_s9 + $0xa94] ss:$8 sps:$4 sm:$0xff]  }
 0x2e5   : > { %11999 = vmatpush2.bf16.msra.mxu1 %v14207_v29  ;;  %v14303_v29 = vld [vmem:[%s16661_s9 + $0xba0] ss:$8 sps:$4 sm:$0xff]  }
 0x2e6   : > { %12000 = vmatprep.subr.bf16.mxu1 %v14215_v32  ;;  %v14311_v32 = vld [vmem:[%s16661_s9 + $0xb94] ss:$8 sps:$4 sm:$0xff]  }
 0x2e7   : > { %11958 = vmatpush2.bf16.msra.mxu0 %v14210_v31  ;;  %v14306_v31 = vld [vmem:[%s16661_s9 + $0xa90] ss:$8 sps:$4 sm:$0xff]  }
 0x2e8   : > { %12013 = vmatprep.subr.bf16.mxu0 %v14221_v34  ;;  %v14314_v34 = vld [vmem:[%s16661_s9 + $0xa84] ss:$8 sps:$4 sm:$0xff]  }
 0x2e9   : > { %12001 = vmatpush2.bf16.msra.mxu1 %v14213_v33  ;;  %v14309_v33 = vld [vmem:[%s16661_s9 + $0xb90] ss:$8 sps:$4 sm:$0xff]  }
 0x2ea   : > { %11960 = vmatmul.mubr.bf16.vlgmr.msra.gmra.mxu0 %v14216_v35  ;;  %12056 = vmatprep.subr.bf16.mxu1 %v14227_v36  ;;  %v14312_v35 = vld [vmem:[%s16661_s9 + $0xa80] ss:$8 sps:$4 sm:$0xff]   ;;  %v14317_v36 = vld [vmem:[%s16661_s9 + $0xb84] ss:$8 sps:$4 sm:$0xff]  }
 0x2eb   : > { %12014 = vmatpush1.bf16.msra.mxu0 %v14219_v37  ;;  %12045 = vmatprep.mubr.bf16.mxu0 %v14320_v39  ;;  %v14315_v37 = vld [vmem:[%s16661_s9 + $0xb80] ss:$8 sps:$4 sm:$0xff]   ;;  %v14318_v39 = vld [vmem:[%s17810_s0 + $0x50] ss:$196 sps:$4 sm:$0xff]  }
 0x2ec   : > { %12003 = vmatmul.mubr.bf16.vlgmr.msra.gmra.mxu1 %v14222_v38  ;;  %12015 = vmatprep.subr.bf16.mxu0 %v14230_v40  ;;  %v14323_v38 = vld [vmem:[%s16661_s9 + $0xc74] ss:$8 sps:$4 sm:$0xff]  }
 0x2ed   : > { %12057 = vmatpush1.bf16.msra.mxu1 %v14225_v41  ;;  %12088 = vmatprep.mubr.bf16.mxu1 %v14326_v42  ;;  %v14329_v40 = vld [vmem:[%s16661_s9 + $0xd74] ss:$8 sps:$4 sm:$0xff]   ;;  %v14321_v41 = vld [vmem:[%s16661_s9 + $0xc70] ss:$8 sps:$4 sm:$0xff]  }
 0x2ee   : > { %12058 = vmatprep.subr.bf16.mxu1 %v14233_v44  ;;  %v14324_v42 = vld [vmem:[%s17810_s0 + $0x58] ss:$196 sps:$4 sm:$0xff]   ;;  %v14332_v44 = vld [vmem:[%s16661_s9 + $0xc64] ss:$8 sps:$4 sm:$0xff]  }
 0x2ef   : > { %12016 = vmatpush1.bf16.msra.mxu0 %v14228_v43  ;;  %v14422_v43 = vld [vmem:[%s17810_s0 + $0x64] ss:$196 sps:$4 sm:$0xff]  }
 0x2f0   : > { %12017 = vmatprep.subr.bf16.mxu0 %v14236_v46  ;;  %v14428_v46 = vld [vmem:[%s17810_s0 + $0x6c] ss:$196 sps:$4 sm:$0xff]  }
 0x2f1   : > { %12059 = vmatpush1.bf16.msra.mxu1 %v14231_v45  ;;  %v14327_v45 = vld [vmem:[%s16661_s9 + $0xd70] ss:$8 sps:$4 sm:$0xff]  }
 0x2f2   : > { %12060 = vmatprep.subr.bf16.mxu1 %v14239_v48  ;;  %v14335_v48 = vld [vmem:[%s16661_s9 + $0xd64] ss:$8 sps:$4 sm:$0xff]  }
 0x2f3   : > { %12018 = vmatpush1.bf16.msra.mxu0 %v14234_v47  ;;  %v14330_v47 = vld [vmem:[%s16661_s9 + $0xc60] ss:$8 sps:$4 sm:$0xff]  }
 0x2f4   : > { %12019 = vmatprep.subr.bf16.mxu0 %v14242_v50  ;;  %v14338_v50 = vld [vmem:[%s16661_s9 + $0xc54] ss:$8 sps:$4 sm:$0xff]  }
 0x2f5   : > { %12061 = vmatpush1.bf16.msra.mxu1 %v14237_v49  ;;  %v14333_v49 = vld [vmem:[%s16661_s9 + $0xd60] ss:$8 sps:$4 sm:$0xff]  }
 0x2f6   : > { %12062 = vmatprep.subr.bf16.mxu1 %v14245_v52  ;;  %v14341_v52 = vld [vmem:[%s16661_s9 + $0xd54] ss:$8 sps:$4 sm:$0xff]  }
 0x2f7   : > { %12020 = vmatpush1.bf16.msra.mxu0 %v14240_v51  ;;  %v14336_v51 = vld [vmem:[%s16661_s9 + $0xc50] ss:$8 sps:$4 sm:$0xff]  }
 0x2f8   : > { %12021 = vmatprep.subr.bf16.mxu0 %v14248_v54  ;;  %v14344_v54 = vld [vmem:[%s16661_s9 + $0xc44] ss:$8 sps:$4 sm:$0xff]  }
 0x2f9   : > { %12063 = vmatpush1.bf16.msra.mxu1 %v14243_v53  ;;  %v14339_v53 = vld [vmem:[%s16661_s9 + $0xd50] ss:$8 sps:$4 sm:$0xff]  }
 0x2fa   : > { %12064 = vmatprep.subr.bf16.mxu1 %v14251_v56  ;;  %v14347_v56 = vld [vmem:[%s16661_s9 + $0xd44] ss:$8 sps:$4 sm:$0xff]  }
 0x2fb   : > { %12022 = vmatpush1.bf16.msra.mxu0 %v14246_v55  ;;  %v14342_v55 = vld [vmem:[%s16661_s9 + $0xc40] ss:$8 sps:$4 sm:$0xff]  }
 0x2fc   : > { %12023 = vmatprep.subr.bf16.mxu0 %v14254_v58  ;;  %v14350_v58 = vld [vmem:[%s16661_s9 + $0xc34] ss:$8 sps:$4 sm:$0xff]  }
 0x2fd   : > { %12065 = vmatpush1.bf16.msra.mxu1 %v14249_v57  ;;  %v14345_v57 = vld [vmem:[%s16661_s9 + $0xd40] ss:$8 sps:$4 sm:$0xff]  }
 0x2fe   : > { %12066 = vmatprep.subr.bf16.mxu1 %v14257_v60  ;;  %v14353_v60 = vld [vmem:[%s16661_s9 + $0xd34] ss:$8 sps:$4 sm:$0xff]  }
 0x2ff   : > { %12024 = vmatpush1.bf16.msra.mxu0 %v14252_v59  ;;  %v14348_v59 = vld [vmem:[%s16661_s9 + $0xc30] ss:$8 sps:$4 sm:$0xff]  }
 0x300   : > { %12025 = vmatprep.subr.bf16.mxu0 %v14260_v62  ;;  %v14356_v62 = vld [vmem:[%s16661_s9 + $0xc24] ss:$8 sps:$4 sm:$0xff]  }
 0x301   : > { %12067 = vmatpush1.bf16.msra.mxu1 %v14255_v61  ;;  %v14351_v61 = vld [vmem:[%s16661_s9 + $0xd30] ss:$8 sps:$4 sm:$0xff]  }
 0x302   : > { %12068 = vmatprep.subr.bf16.mxu1 %v14263_v0  ;;  %v14359_v0 = vld [vmem:[%s16661_s9 + $0xd24] ss:$8 sps:$4 sm:$0xff]  }
 0x303   : > { %12026 = vmatpush1.bf16.msra.mxu0 %v14258_v63  ;;  %v14354_v63 = vld [vmem:[%s16661_s9 + $0xc20] ss:$8 sps:$4 sm:$0xff]  }
 0x304   : > { %12027 = vmatprep.subr.bf16.mxu0 %v14266_v2  ;;  %v14362_v2 = vld [vmem:[%s16661_s9 + $0xc14] ss:$8 sps:$4 sm:$0xff]  }
 0x305   : > { %12069 = vmatpush1.bf16.msra.mxu1 %v14261_v1  ;;  %v14357_v1 = vld [vmem:[%s16661_s9 + $0xd20] ss:$8 sps:$4 sm:$0xff]  }
 0x306   : > { %12070 = vmatprep.subr.bf16.mxu1 %v14269_v4  ;;  %v14365_v4 = vld [vmem:[%s16661_s9 + $0xd14] ss:$8 sps:$4 sm:$0xff]  }
 0x307   : > { %12028 = vmatpush1.bf16.msra.mxu0 %v14264_v3  ;;  %v14360_v3 = vld [vmem:[%s16661_s9 + $0xc10] ss:$8 sps:$4 sm:$0xff]  }
 0x308   : > { %12029 = vmatprep.subr.bf16.mxu0 %v14272_v6  ;;  %v14368_v6 = vld [vmem:[%s16661_s9 + $0xc04] ss:$8 sps:$4 sm:$0xff]  }
 0x309   : > { %12071 = vmatpush1.bf16.msra.mxu1 %v14267_v5  ;;  %v14363_v5 = vld [vmem:[%s16661_s9 + $0xd10] ss:$8 sps:$4 sm:$0xff]  }
 0x30a   : > { %12072 = vmatprep.subr.bf16.mxu1 %v14275_v8  ;;  %v14371_v8 = vld [vmem:[%s16661_s9 + $0xd04] ss:$8 sps:$4 sm:$0xff]  }
 0x30b   : > { %12030 = vmatpush2.bf16.msra.mxu0 %v14270_v7  ;;  %v14366_v7 = vld [vmem:[%s16661_s9 + $0xc00] ss:$8 sps:$4 sm:$0xff]  }
 0x30c   : > { %12031 = vmatprep.subr.bf16.mxu0 %v14278_v10  ;;  %v14374_v10 = vld [vmem:[%s16661_s9 + $0xcf4] ss:$8 sps:$4 sm:$0xff]  }
 0x30d   : > { %12073 = vmatpush2.bf16.msra.mxu1 %v14273_v9  ;;  %v14369_v9 = vld [vmem:[%s16661_s9 + $0xd00] ss:$8 sps:$4 sm:$0xff]  }
 0x30e   : > { %12074 = vmatprep.subr.bf16.mxu1 %v14281_v12  ;;  %v14377_v12 = vld [vmem:[%s16661_s9 + $0xdf4] ss:$8 sps:$4 sm:$0xff]  }
 0x30f   : > { %12032 = vmatpush2.bf16.msra.mxu0 %v14276_v11  ;;  %v14372_v11 = vld [vmem:[%s16661_s9 + $0xcf0] ss:$8 sps:$4 sm:$0xff]  }
 0x310   : > { %12033 = vmatprep.subr.bf16.mxu0 %v14284_v14  ;;  %v14380_v14 = vld [vmem:[%s16661_s9 + $0xce4] ss:$8 sps:$4 sm:$0xff]  }
 0x311   : > { %12075 = vmatpush2.bf16.msra.mxu1 %v14279_v13  ;;  %v14375_v13 = vld [vmem:[%s16661_s9 + $0xdf0] ss:$8 sps:$4 sm:$0xff]  }
 0x312   : > { %12076 = vmatprep.subr.bf16.mxu1 %v14287_v16  ;;  %v14383_v16 = vld [vmem:[%s16661_s9 + $0xde4] ss:$8 sps:$4 sm:$0xff]  }
 0x313   : > { %12034 = vmatpush2.bf16.msra.mxu0 %v14282_v15  ;;  %v14378_v15 = vld [vmem:[%s16661_s9 + $0xce0] ss:$8 sps:$4 sm:$0xff]  }
 0x314   : > { %12035 = vmatprep.subr.bf16.mxu0 %v14290_v18  ;;  %v14386_v18 = vld [vmem:[%s16661_s9 + $0xcd4] ss:$8 sps:$4 sm:$0xff]  }
 0x315   : > { %12077 = vmatpush2.bf16.msra.mxu1 %v14285_v17  ;;  %v14381_v17 = vld [vmem:[%s16661_s9 + $0xde0] ss:$8 sps:$4 sm:$0xff]  }
 0x316   : > { %12078 = vmatprep.subr.bf16.mxu1 %v14293_v20  ;;  %v14389_v20 = vld [vmem:[%s16661_s9 + $0xdd4] ss:$8 sps:$4 sm:$0xff]  }
 0x317   : > { %12036 = vmatpush2.bf16.msra.mxu0 %v14288_v19  ;;  %v14384_v19 = vld [vmem:[%s16661_s9 + $0xcd0] ss:$8 sps:$4 sm:$0xff]  }
 0x318   : > { %12037 = vmatprep.subr.bf16.mxu0 %v14296_v22  ;;  %v14392_v22 = vld [vmem:[%s16661_s9 + $0xcc4] ss:$8 sps:$4 sm:$0xff]  }
 0x319   : > { %12079 = vmatpush2.bf16.msra.mxu1 %v14291_v21  ;;  %v14387_v21 = vld [vmem:[%s16661_s9 + $0xdd0] ss:$8 sps:$4 sm:$0xff]  }
 0x31a   : > { %12080 = vmatprep.subr.bf16.mxu1 %v14299_v24  ;;  %v14395_v24 = vld [vmem:[%s16661_s9 + $0xdc4] ss:$8 sps:$4 sm:$0xff]  }
 0x31b   : > { %12038 = vmatpush2.bf16.msra.mxu0 %v14294_v23  ;;  %v14390_v23 = vld [vmem:[%s16661_s9 + $0xcc0] ss:$8 sps:$4 sm:$0xff]  }
 0x31c   : > { %12039 = vmatprep.subr.bf16.mxu0 %v14302_v26  ;;  %v14398_v26 = vld [vmem:[%s16661_s9 + $0xcb4] ss:$8 sps:$4 sm:$0xff]  }
 0x31d   : > { %12081 = vmatpush2.bf16.msra.mxu1 %v14297_v25  ;;  %v14393_v25 = vld [vmem:[%s16661_s9 + $0xdc0] ss:$8 sps:$4 sm:$0xff]  }
 0x31e   : > { %12082 = vmatprep.subr.bf16.mxu1 %v14305_v28  ;;  %v14401_v28 = vld [vmem:[%s16661_s9 + $0xdb4] ss:$8 sps:$4 sm:$0xff]  }
 0x31f   : > { %12040 = vmatpush2.bf16.msra.mxu0 %v14300_v27  ;;  %v14396_v27 = vld [vmem:[%s16661_s9 + $0xcb0] ss:$8 sps:$4 sm:$0xff]  }
 0x320   : > { %12041 = vmatprep.subr.bf16.mxu0 %v14308_v30  ;;  %v14404_v30 = vld [vmem:[%s16661_s9 + $0xca4] ss:$8 sps:$4 sm:$0xff]  }
 0x321   : > { %12083 = vmatpush2.bf16.msra.mxu1 %v14303_v29  ;;  %v14399_v29 = vld [vmem:[%s16661_s9 + $0xdb0] ss:$8 sps:$4 sm:$0xff]  }
 0x322   : > { %12084 = vmatprep.subr.bf16.mxu1 %v14311_v32  ;;  %v14407_v32 = vld [vmem:[%s16661_s9 + $0xda4] ss:$8 sps:$4 sm:$0xff]  }
 0x323   : > { %12042 = vmatpush2.bf16.msra.mxu0 %v14306_v31  ;;  %v14402_v31 = vld [vmem:[%s16661_s9 + $0xca0] ss:$8 sps:$4 sm:$0xff]  }
 0x324   : > { %12043 = vmatprep.subr.bf16.mxu0 %v14314_v34  ;;  %v14410_v34 = vld [vmem:[%s16661_s9 + $0xc94] ss:$8 sps:$4 sm:$0xff]  }
 0x325   : > { %12085 = vmatpush2.bf16.msra.mxu1 %v14309_v33  ;;  %v14405_v33 = vld [vmem:[%s16661_s9 + $0xda0] ss:$8 sps:$4 sm:$0xff]  }
 0x326   : > { %12086 = vmatprep.subr.bf16.mxu1 %v14317_v36  ;;  %v14413_v36 = vld [vmem:[%s16661_s9 + $0xd94] ss:$8 sps:$4 sm:$0xff]  }
 0x327   : > { %12044 = vmatpush2.bf16.msra.mxu0 %v14312_v35  ;;  %v14408_v35 = vld [vmem:[%s16661_s9 + $0xc90] ss:$8 sps:$4 sm:$0xff]  }
 0x328   : > { %12099 = vmatprep.subr.bf16.mxu0 %v14323_v38  ;;  %v14416_v38 = vld [vmem:[%s16661_s9 + $0xc84] ss:$8 sps:$4 sm:$0xff]  }
 0x329   : > { %12087 = vmatpush2.bf16.msra.mxu1 %v14315_v37  ;;  %v14411_v37 = vld [vmem:[%s16661_s9 + $0xd90] ss:$8 sps:$4 sm:$0xff]  }
 0x32a   : > { %12046 = vmatmul.mubr.bf16.vlgmr.msra.gmra.mxu0 %v14318_v39  ;;  %12142 = vmatprep.subr.bf16.mxu1 %v14329_v40  ;;  %v14414_v39 = vld [vmem:[%s16661_s9 + $0xc80] ss:$8 sps:$4 sm:$0xff]   ;;  %v14419_v40 = vld [vmem:[%s16661_s9 + $0xd84] ss:$8 sps:$4 sm:$0xff]  }
 0x32b   : > { %12100 = vmatpush1.bf16.msra.mxu0 %v14321_v41  ;;  %12131 = vmatprep.mubr.bf16.mxu0 %v14422_v43  ;;  %v14417_v41 = vld [vmem:[%s16661_s9 + $0xd80] ss:$8 sps:$4 sm:$0xff]  }
 0x32c   : > { %12089 = vmatmul.mubr.bf16.vlgmr.msra.gmra.mxu1 %v14324_v42  ;;  %12101 = vmatprep.subr.bf16.mxu0 %v14332_v44  ;;  %v14425_v42 = vld [vmem:[%s16661_s9 + $0xe74] ss:$8 sps:$4 sm:$0xff]   ;;  %v14420_v43 = vld [vmem:[%s17810_s0 + $0x60] ss:$196 sps:$4 sm:$0xff]  }
 0x32d   : > { %12143 = vmatpush1.bf16.msra.mxu1 %v14327_v45  ;;  %12174 = vmatprep.mubr.bf16.mxu1 %v14428_v46  ;;  %v14431_v44 = vld [vmem:[%s16661_s9 + $0xf74] ss:$8 sps:$4 sm:$0xff]   ;;  %v14423_v45 = vld [vmem:[%s16661_s9 + $0xe70] ss:$8 sps:$4 sm:$0xff]   ;;  %v14426_v46 = vld [vmem:[%s17810_s0 + $0x68] ss:$196 sps:$4 sm:$0xff]  }
 0x32e   : > { %12144 = vmatprep.subr.bf16.mxu1 %v14335_v48  ;;  %v14434_v48 = vld [vmem:[%s16661_s9 + $0xe64] ss:$8 sps:$4 sm:$0xff]  }
 0x32f   : > { %12102 = vmatpush1.bf16.msra.mxu0 %v14330_v47  ;;  %v14524_v47 = vld [vmem:[%s17810_s0 + $0x74] ss:$196 sps:$4 sm:$0xff]  }
 0x330   : > { %12103 = vmatprep.subr.bf16.mxu0 %v14338_v50  ;;  %v14530_v50 = vld [vmem:[%s17810_s0 + $0x7c] ss:$196 sps:$4 sm:$0xff]  }
 0x331   : > { %12145 = vmatpush1.bf16.msra.mxu1 %v14333_v49  ;;  %v14429_v49 = vld [vmem:[%s16661_s9 + $0xf70] ss:$8 sps:$4 sm:$0xff]  }
 0x332   : > { %12146 = vmatprep.subr.bf16.mxu1 %v14341_v52  ;;  %v14432_v52 = vld [vmem:[%s16661_s9 + $0xe60] ss:$8 sps:$4 sm:$0xff]  }
 0x333   : > { %12104 = vmatpush1.bf16.msra.mxu0 %v14336_v51  ;;  %v14437_v51 = vld [vmem:[%s16661_s9 + $0xf64] ss:$8 sps:$4 sm:$0xff]  }
 0x334   : > { %12105 = vmatprep.subr.bf16.mxu0 %v14344_v54  ;;  %v14435_v54 = vld [vmem:[%s16661_s9 + $0xf60] ss:$8 sps:$4 sm:$0xff]  }
 0x335   : > { %12147 = vmatpush1.bf16.msra.mxu1 %v14339_v53  ;;  %v14440_v53 = vld [vmem:[%s16661_s9 + $0xe54] ss:$8 sps:$4 sm:$0xff]  }
 0x336   : > { %12148 = vmatprep.subr.bf16.mxu1 %v14347_v56  ;;  %v14438_v56 = vld [vmem:[%s16661_s9 + $0xe50] ss:$8 sps:$4 sm:$0xff]  }
 0x337   : > { %12106 = vmatpush1.bf16.msra.mxu0 %v14342_v55  ;;  %v14443_v55 = vld [vmem:[%s16661_s9 + $0xf54] ss:$8 sps:$4 sm:$0xff]  }
 0x338   : > { %12107 = vmatprep.subr.bf16.mxu0 %v14350_v58  ;;  %v14441_v58 = vld [vmem:[%s16661_s9 + $0xf50] ss:$8 sps:$4 sm:$0xff]  }
 0x339   : > { %12149 = vmatpush1.bf16.msra.mxu1 %v14345_v57  ;;  %v14446_v57 = vld [vmem:[%s16661_s9 + $0xe44] ss:$8 sps:$4 sm:$0xff]  }
 0x33a   : > { %12150 = vmatprep.subr.bf16.mxu1 %v14353_v60  ;;  %v14444_v60 = vld [vmem:[%s16661_s9 + $0xe40] ss:$8 sps:$4 sm:$0xff]  }
 0x33b   : > { %12108 = vmatpush1.bf16.msra.mxu0 %v14348_v59  ;;  %v14449_v59 = vld [vmem:[%s16661_s9 + $0xf44] ss:$8 sps:$4 sm:$0xff]  }
 0x33c   : > { %12109 = vmatprep.subr.bf16.mxu0 %v14356_v62  ;;  %v14447_v62 = vld [vmem:[%s16661_s9 + $0xf40] ss:$8 sps:$4 sm:$0xff]  }
 0x33d   : > { %12151 = vmatpush1.bf16.msra.mxu1 %v14351_v61  ;;  %v14452_v61 = vld [vmem:[%s16661_s9 + $0xe34] ss:$8 sps:$4 sm:$0xff]  }
 0x33e   : > { %12152 = vmatprep.subr.bf16.mxu1 %v14359_v0  ;;  %v14450_v0 = vld [vmem:[%s16661_s9 + $0xe30] ss:$8 sps:$4 sm:$0xff]  }
 0x33f   : > { %12110 = vmatpush1.bf16.msra.mxu0 %v14354_v63  ;;  %v14455_v63 = vld [vmem:[%s16661_s9 + $0xf34] ss:$8 sps:$4 sm:$0xff]  }
 0x340   : > { %12111 = vmatprep.subr.bf16.mxu0 %v14362_v2  ;;  %v14453_v2 = vld [vmem:[%s16661_s9 + $0xf30] ss:$8 sps:$4 sm:$0xff]  }
 0x341   : > { %12153 = vmatpush1.bf16.msra.mxu1 %v14357_v1  ;;  %v14458_v1 = vld [vmem:[%s16661_s9 + $0xe24] ss:$8 sps:$4 sm:$0xff]  }
 0x342   : > { %12154 = vmatprep.subr.bf16.mxu1 %v14365_v4  ;;  %v14456_v4 = vld [vmem:[%s16661_s9 + $0xe20] ss:$8 sps:$4 sm:$0xff]  }
 0x343   : > { %12112 = vmatpush1.bf16.msra.mxu0 %v14360_v3  ;;  %v14461_v3 = vld [vmem:[%s16661_s9 + $0xf24] ss:$8 sps:$4 sm:$0xff]  }
 0x344   : > { %12113 = vmatprep.subr.bf16.mxu0 %v14368_v6  ;;  %v14459_v6 = vld [vmem:[%s16661_s9 + $0xf20] ss:$8 sps:$4 sm:$0xff]  }
 0x345   : > { %12155 = vmatpush1.bf16.msra.mxu1 %v14363_v5  ;;  %v14464_v5 = vld [vmem:[%s16661_s9 + $0xe14] ss:$8 sps:$4 sm:$0xff]  }
 0x346   : > { %12156 = vmatprep.subr.bf16.mxu1 %v14371_v8  ;;  %v14462_v8 = vld [vmem:[%s16661_s9 + $0xe10] ss:$8 sps:$4 sm:$0xff]  }
 0x347   : > { %12114 = vmatpush1.bf16.msra.mxu0 %v14366_v7  ;;  %v14467_v7 = vld [vmem:[%s16661_s9 + $0xf14] ss:$8 sps:$4 sm:$0xff]  }
 0x348   : > { %12115 = vmatprep.subr.bf16.mxu0 %v14374_v10  ;;  %v14465_v10 = vld [vmem:[%s16661_s9 + $0xf10] ss:$8 sps:$4 sm:$0xff]  }
 0x349   : > { %12157 = vmatpush1.bf16.msra.mxu1 %v14369_v9  ;;  %v14470_v9 = vld [vmem:[%s16661_s9 + $0xe04] ss:$8 sps:$4 sm:$0xff]  }
 0x34a   : > { %12158 = vmatprep.subr.bf16.mxu1 %v14377_v12  ;;  %v14468_v12 = vld [vmem:[%s16661_s9 + $0xe00] ss:$8 sps:$4 sm:$0xff]  }
 0x34b   : > { %12116 = vmatpush2.bf16.msra.mxu0 %v14372_v11  ;;  %v14473_v11 = vld [vmem:[%s16661_s9 + $0xf04] ss:$8 sps:$4 sm:$0xff]  }
 0x34c   : > { %12117 = vmatprep.subr.bf16.mxu0 %v14380_v14  ;;  %v14471_v14 = vld [vmem:[%s16661_s9 + $0xf00] ss:$8 sps:$4 sm:$0xff]  }
 0x34d   : > { %12159 = vmatpush2.bf16.msra.mxu1 %v14375_v13  ;;  %v14476_v13 = vld [vmem:[%s16661_s9 + $0xef4] ss:$8 sps:$4 sm:$0xff]  }
 0x34e   : > { %12160 = vmatprep.subr.bf16.mxu1 %v14383_v16  ;;  %v14474_v16 = vld [vmem:[%s16661_s9 + $0xef0] ss:$8 sps:$4 sm:$0xff]  }
 0x34f   : > { %12118 = vmatpush2.bf16.msra.mxu0 %v14378_v15  ;;  %v14479_v15 = vld [vmem:[%s16661_s9 + $0xff4] ss:$8 sps:$4 sm:$0xff]  }
 0x350   : > { %12119 = vmatprep.subr.bf16.mxu0 %v14386_v18  ;;  %v14477_v18 = vld [vmem:[%s16661_s9 + $0xff0] ss:$8 sps:$4 sm:$0xff]  }
 0x351   : > { %12161 = vmatpush2.bf16.msra.mxu1 %v14381_v17  ;;  %v14482_v17 = vld [vmem:[%s16661_s9 + $0xee4] ss:$8 sps:$4 sm:$0xff]  }
 0x352   : > { %12162 = vmatprep.subr.bf16.mxu1 %v14389_v20  ;;  %v14480_v20 = vld [vmem:[%s16661_s9 + $0xee0] ss:$8 sps:$4 sm:$0xff]  }
 0x353   : > { %12120 = vmatpush2.bf16.msra.mxu0 %v14384_v19  ;;  %v14485_v19 = vld [vmem:[%s16661_s9 + $0xfe4] ss:$8 sps:$4 sm:$0xff]  }
 0x354   : > { %12121 = vmatprep.subr.bf16.mxu0 %v14392_v22  ;;  %v14483_v22 = vld [vmem:[%s16661_s9 + $0xfe0] ss:$8 sps:$4 sm:$0xff]  }
 0x355   : > { %12163 = vmatpush2.bf16.msra.mxu1 %v14387_v21  ;;  %v14488_v21 = vld [vmem:[%s16661_s9 + $0xed4] ss:$8 sps:$4 sm:$0xff]  }
 0x356   : > { %12164 = vmatprep.subr.bf16.mxu1 %v14395_v24  ;;  %v14486_v24 = vld [vmem:[%s16661_s9 + $0xed0] ss:$8 sps:$4 sm:$0xff]  }
 0x357   : > { %12122 = vmatpush2.bf16.msra.mxu0 %v14390_v23  ;;  %v14491_v23 = vld [vmem:[%s16661_s9 + $0xfd4] ss:$8 sps:$4 sm:$0xff]  }
 0x358   : > { %12123 = vmatprep.subr.bf16.mxu0 %v14398_v26  ;;  %v14489_v26 = vld [vmem:[%s16661_s9 + $0xfd0] ss:$8 sps:$4 sm:$0xff]  }
 0x359   : > { %12165 = vmatpush2.bf16.msra.mxu1 %v14393_v25  ;;  %v14494_v25 = vld [vmem:[%s16661_s9 + $0xec4] ss:$8 sps:$4 sm:$0xff]  }
 0x35a   : > { %12166 = vmatprep.subr.bf16.mxu1 %v14401_v28  ;;  %v14492_v28 = vld [vmem:[%s16661_s9 + $0xec0] ss:$8 sps:$4 sm:$0xff]  }
 0x35b   : > { %12124 = vmatpush2.bf16.msra.mxu0 %v14396_v27  ;;  %v14497_v27 = vld [vmem:[%s16661_s9 + $0xfc4] ss:$8 sps:$4 sm:$0xff]  }
 0x35c   : > { %12125 = vmatprep.subr.bf16.mxu0 %v14404_v30  ;;  %v14495_v30 = vld [vmem:[%s16661_s9 + $0xfc0] ss:$8 sps:$4 sm:$0xff]  }
 0x35d   : > { %12167 = vmatpush2.bf16.msra.mxu1 %v14399_v29  ;;  %v14500_v29 = vld [vmem:[%s16661_s9 + $0xeb4] ss:$8 sps:$4 sm:$0xff]  }
 0x35e   : > { %12168 = vmatprep.subr.bf16.mxu1 %v14407_v32  ;;  %v14498_v32 = vld [vmem:[%s16661_s9 + $0xeb0] ss:$8 sps:$4 sm:$0xff]  }
 0x35f   : > { %12126 = vmatpush2.bf16.msra.mxu0 %v14402_v31  ;;  %v14503_v31 = vld [vmem:[%s16661_s9 + $0xfb4] ss:$8 sps:$4 sm:$0xff]  }
 0x360   : > { %12127 = vmatprep.subr.bf16.mxu0 %v14410_v34  ;;  %v14501_v34 = vld [vmem:[%s16661_s9 + $0xfb0] ss:$8 sps:$4 sm:$0xff]  }
 0x361   : > { %12169 = vmatpush2.bf16.msra.mxu1 %v14405_v33  ;;  %v14506_v33 = vld [vmem:[%s16661_s9 + $0xea4] ss:$8 sps:$4 sm:$0xff]  }
 0x362   : > { %12170 = vmatprep.subr.bf16.mxu1 %v14413_v36  ;;  %v14504_v36 = vld [vmem:[%s16661_s9 + $0xea0] ss:$8 sps:$4 sm:$0xff]  }
 0x363   : > { %12128 = vmatpush2.bf16.msra.mxu0 %v14408_v35  ;;  %v14509_v35 = vld [vmem:[%s16661_s9 + $0xfa4] ss:$8 sps:$4 sm:$0xff]  }
 0x364   : > { %12129 = vmatprep.subr.bf16.mxu0 %v14416_v38  ;;  %v14507_v38 = vld [vmem:[%s16661_s9 + $0xfa0] ss:$8 sps:$4 sm:$0xff]  }
 0x365   : > { %12171 = vmatpush2.bf16.msra.mxu1 %v14411_v37  ;;  %v14512_v37 = vld [vmem:[%s16661_s9 + $0xe94] ss:$8 sps:$4 sm:$0xff]  }
 0x366   : > { %12172 = vmatprep.subr.bf16.mxu1 %v14419_v40  ;;  %v14510_v40 = vld [vmem:[%s16661_s9 + $0xe90] ss:$8 sps:$4 sm:$0xff]  }
 0x367   : > { %12130 = vmatpush2.bf16.msra.mxu0 %v14414_v39  ;;  %v14515_v39 = vld [vmem:[%s16661_s9 + $0xf94] ss:$8 sps:$4 sm:$0xff]  }
 0x368   : > { %12185 = vmatprep.subr.bf16.mxu0 %v14425_v42  ;;  %v14513_v42 = vld [vmem:[%s16661_s9 + $0xf90] ss:$8 sps:$4 sm:$0xff]  }
 0x369   : > { %12173 = vmatpush2.bf16.msra.mxu1 %v14417_v41  ;;  %v14518_v41 = vld [vmem:[%s16661_s9 + $0xe84] ss:$8 sps:$4 sm:$0xff]  }
 0x36a   : > { %12132 = vmatmul.mubr.bf16.vlgmr.msra.gmra.mxu0 %v14420_v43  ;;  %12228 = vmatprep.subr.bf16.mxu1 %v14431_v44  ;;  %v14521_v43 = vld [vmem:[%s16661_s9 + $0xf84] ss:$8 sps:$4 sm:$0xff]   ;;  %v14516_v44 = vld [vmem:[%s16661_s9 + $0xe80] ss:$8 sps:$4 sm:$0xff]  }
 0x36b   : > { %12186 = vmatpush1.bf16.msra.mxu0 %v14423_v45  ;;  %12217 = vmatprep.mubr.bf16.mxu0 %v14524_v47  ;;  %v14527_v45 = vld [vmem:[%s16661_s9 + $0x1074] ss:$8 sps:$4 sm:$0xff]  }
 0x36c   : > { %12175 = vmatmul.mubr.bf16.vlgmr.msra.gmra.mxu1 %v14426_v46  ;;  %12187 = vmatprep.subr.bf16.mxu0 %v14434_v48  ;;  %v14519_v46 = vld [vmem:[%s16661_s9 + $0xf80] ss:$8 sps:$4 sm:$0xff]   ;;  %v14522_v47 = vld [vmem:[%s17810_s0 + $0x70] ss:$196 sps:$4 sm:$0xff]  }
 0x36d   : > { %12229 = vmatpush1.bf16.msra.mxu1 %v14429_v49  ;;  %12260 = vmatprep.mubr.bf16.mxu1 %v14530_v50  ;;  %v14533_v48 = vld [vmem:[%s16661_s9 + $0x1174] ss:$8 sps:$4 sm:$0xff]   ;;  %v14525_v49 = vld [vmem:[%s16661_s9 + $0x1070] ss:$8 sps:$4 sm:$0xff]   ;;  %v14626_v50 = vld [vmem:[%s17810_s0 + $0x84] ss:$196 sps:$4 sm:$0xff]  }
 0x36e   : > { %12230 = vmatprep.subr.bf16.mxu1 %v14437_v51  ;;  %v14528_v51 = vld [vmem:[%s17810_s0 + $0x78] ss:$196 sps:$4 sm:$0xff]  }
 0x36f   : > { %12188 = vmatpush1.bf16.msra.mxu0 %v14432_v52  ;;  %v14536_v52 = vld [vmem:[%s16661_s9 + $0x1064] ss:$8 sps:$4 sm:$0xff]  }
 0x370   : > { %12189 = vmatprep.subr.bf16.mxu0 %v14440_v53  ;;  %v14531_v53 = vld [vmem:[%s16661_s9 + $0x1170] ss:$8 sps:$4 sm:$0xff]  }
 0x371   : > { %12231 = vmatpush1.bf16.msra.mxu1 %v14435_v54  ;;  %v14632_v54 = vld [vmem:[%s17810_s0 + $0x8c] ss:$196 sps:$4 sm:$0xff]  }
 0x372   : > { %12232 = vmatprep.subr.bf16.mxu1 %v14443_v55  ;;  %v14539_v55 = vld [vmem:[%s16661_s9 + $0x1164] ss:$8 sps:$4 sm:$0xff]  }
 0x373   : > { %12190 = vmatpush1.bf16.msra.mxu0 %v14438_v56  ;;  %v14534_v56 = vld [vmem:[%s16661_s9 + $0x1060] ss:$8 sps:$4 sm:$0xff]  }
 0x374   : > { %12191 = vmatprep.subr.bf16.mxu0 %v14446_v57  ;;  %v14542_v57 = vld [vmem:[%s16661_s9 + $0x1054] ss:$8 sps:$4 sm:$0xff]  }
 0x375   : > { %12233 = vmatpush1.bf16.msra.mxu1 %v14441_v58  ;;  %v14537_v58 = vld [vmem:[%s16661_s9 + $0x1160] ss:$8 sps:$4 sm:$0xff]  }
 0x376   : > { %12234 = vmatprep.subr.bf16.mxu1 %v14449_v59  ;;  %v14545_v59 = vld [vmem:[%s16661_s9 + $0x1154] ss:$8 sps:$4 sm:$0xff]  }
 0x377   : > { %12192 = vmatpush1.bf16.msra.mxu0 %v14444_v60  ;;  %v14540_v60 = vld [vmem:[%s16661_s9 + $0x1050] ss:$8 sps:$4 sm:$0xff]  }
 0x378   : > { %12193 = vmatprep.subr.bf16.mxu0 %v14452_v61  ;;  %v14548_v61 = vld [vmem:[%s16661_s9 + $0x1044] ss:$8 sps:$4 sm:$0xff]  }
 0x379   : > { %12235 = vmatpush1.bf16.msra.mxu1 %v14447_v62  ;;  %v14543_v62 = vld [vmem:[%s16661_s9 + $0x1150] ss:$8 sps:$4 sm:$0xff]  }
 0x37a   : > { %12236 = vmatprep.subr.bf16.mxu1 %v14455_v63  ;;  %v14551_v63 = vld [vmem:[%s16661_s9 + $0x1144] ss:$8 sps:$4 sm:$0xff]  }
 0x37b   : > { %12194 = vmatpush1.bf16.msra.mxu0 %v14450_v0  ;;  %v14546_v0 = vld [vmem:[%s16661_s9 + $0x1040] ss:$8 sps:$4 sm:$0xff]  }
 0x37c   : > { %12195 = vmatprep.subr.bf16.mxu0 %v14458_v1  ;;  %v14554_v1 = vld [vmem:[%s16661_s9 + $0x1034] ss:$8 sps:$4 sm:$0xff]  }
 0x37d   : > { %12237 = vmatpush1.bf16.msra.mxu1 %v14453_v2  ;;  %v14549_v2 = vld [vmem:[%s16661_s9 + $0x1140] ss:$8 sps:$4 sm:$0xff]  }
 0x37e   : > { %12238 = vmatprep.subr.bf16.mxu1 %v14461_v3  ;;  %v14557_v3 = vld [vmem:[%s16661_s9 + $0x1134] ss:$8 sps:$4 sm:$0xff]  }
 0x37f   : > { %12196 = vmatpush1.bf16.msra.mxu0 %v14456_v4  ;;  %v14552_v4 = vld [vmem:[%s16661_s9 + $0x1030] ss:$8 sps:$4 sm:$0xff]  }
 0x380   : > { %12197 = vmatprep.subr.bf16.mxu0 %v14464_v5  ;;  %v14560_v5 = vld [vmem:[%s16661_s9 + $0x1024] ss:$8 sps:$4 sm:$0xff]  }
 0x381   : > { %12239 = vmatpush1.bf16.msra.mxu1 %v14459_v6  ;;  %v14555_v6 = vld [vmem:[%s16661_s9 + $0x1130] ss:$8 sps:$4 sm:$0xff]  }
 0x382   : > { %12240 = vmatprep.subr.bf16.mxu1 %v14467_v7  ;;  %v14563_v7 = vld [vmem:[%s16661_s9 + $0x1124] ss:$8 sps:$4 sm:$0xff]  }
 0x383   : > { %12198 = vmatpush1.bf16.msra.mxu0 %v14462_v8  ;;  %v14558_v8 = vld [vmem:[%s16661_s9 + $0x1020] ss:$8 sps:$4 sm:$0xff]  }
 0x384   : > { %12199 = vmatprep.subr.bf16.mxu0 %v14470_v9  ;;  %v14566_v9 = vld [vmem:[%s16661_s9 + $0x1014] ss:$8 sps:$4 sm:$0xff]  }
 0x385   : > { %12241 = vmatpush1.bf16.msra.mxu1 %v14465_v10  ;;  %v14561_v10 = vld [vmem:[%s16661_s9 + $0x1120] ss:$8 sps:$4 sm:$0xff]  }
 0x386   : > { %12242 = vmatprep.subr.bf16.mxu1 %v14473_v11  ;;  %v14569_v11 = vld [vmem:[%s16661_s9 + $0x1114] ss:$8 sps:$4 sm:$0xff]  }
 0x387   : > { %12200 = vmatpush1.bf16.msra.mxu0 %v14468_v12  ;;  %v14564_v12 = vld [vmem:[%s16661_s9 + $0x1010] ss:$8 sps:$4 sm:$0xff]  }
 0x388   : > { %12201 = vmatprep.subr.bf16.mxu0 %v14476_v13  ;;  %v14572_v13 = vld [vmem:[%s16661_s9 + $0x1004] ss:$8 sps:$4 sm:$0xff]  }
 0x389   : > { %12243 = vmatpush1.bf16.msra.mxu1 %v14471_v14  ;;  %v14567_v14 = vld [vmem:[%s16661_s9 + $0x1110] ss:$8 sps:$4 sm:$0xff]  }
 0x38a   : > { %12244 = vmatprep.subr.bf16.mxu1 %v14479_v15  ;;  %v14575_v15 = vld [vmem:[%s16661_s9 + $0x1104] ss:$8 sps:$4 sm:$0xff]  }
 0x38b   : > { %12202 = vmatpush2.bf16.msra.mxu0 %v14474_v16  ;;  %v14570_v16 = vld [vmem:[%s16661_s9 + $0x1000] ss:$8 sps:$4 sm:$0xff]  }
 0x38c   : > { %12203 = vmatprep.subr.bf16.mxu0 %v14482_v17  ;;  %v14578_v17 = vld [vmem:[%s16661_s9 + $0x10f4] ss:$8 sps:$4 sm:$0xff]  }
 0x38d   : > { %12245 = vmatpush2.bf16.msra.mxu1 %v14477_v18  ;;  %v14573_v18 = vld [vmem:[%s16661_s9 + $0x1100] ss:$8 sps:$4 sm:$0xff]  }
 0x38e   : > { %12246 = vmatprep.subr.bf16.mxu1 %v14485_v19  ;;  %v14581_v19 = vld [vmem:[%s16661_s9 + $0x11f4] ss:$8 sps:$4 sm:$0xff]  }
 0x38f   : > { %12204 = vmatpush2.bf16.msra.mxu0 %v14480_v20  ;;  %v14576_v20 = vld [vmem:[%s16661_s9 + $0x10f0] ss:$8 sps:$4 sm:$0xff]  }
 0x390   : > { %12205 = vmatprep.subr.bf16.mxu0 %v14488_v21  ;;  %v14584_v21 = vld [vmem:[%s16661_s9 + $0x10e4] ss:$8 sps:$4 sm:$0xff]  }
 0x391   : > { %12247 = vmatpush2.bf16.msra.mxu1 %v14483_v22  ;;  %v14579_v22 = vld [vmem:[%s16661_s9 + $0x11f0] ss:$8 sps:$4 sm:$0xff]  }
 0x392   : > { %12248 = vmatprep.subr.bf16.mxu1 %v14491_v23  ;;  %v14587_v23 = vld [vmem:[%s16661_s9 + $0x11e4] ss:$8 sps:$4 sm:$0xff]  }
 0x393   : > { %12206 = vmatpush2.bf16.msra.mxu0 %v14486_v24  ;;  %v14582_v24 = vld [vmem:[%s16661_s9 + $0x10e0] ss:$8 sps:$4 sm:$0xff]  }
 0x394   : > { %12207 = vmatprep.subr.bf16.mxu0 %v14494_v25  ;;  %v14590_v25 = vld [vmem:[%s16661_s9 + $0x10d4] ss:$8 sps:$4 sm:$0xff]  }
 0x395   : > { %12249 = vmatpush2.bf16.msra.mxu1 %v14489_v26  ;;  %v14585_v26 = vld [vmem:[%s16661_s9 + $0x11e0] ss:$8 sps:$4 sm:$0xff]  }
 0x396   : > { %12250 = vmatprep.subr.bf16.mxu1 %v14497_v27  ;;  %v14593_v27 = vld [vmem:[%s16661_s9 + $0x11d4] ss:$8 sps:$4 sm:$0xff]  }
 0x397   : > { %12208 = vmatpush2.bf16.msra.mxu0 %v14492_v28  ;;  %v14588_v28 = vld [vmem:[%s16661_s9 + $0x10d0] ss:$8 sps:$4 sm:$0xff]  }
 0x398   : > { %12209 = vmatprep.subr.bf16.mxu0 %v14500_v29  ;;  %v14596_v29 = vld [vmem:[%s16661_s9 + $0x10c4] ss:$8 sps:$4 sm:$0xff]  }
 0x399   : > { %12251 = vmatpush2.bf16.msra.mxu1 %v14495_v30  ;;  %v14591_v30 = vld [vmem:[%s16661_s9 + $0x11d0] ss:$8 sps:$4 sm:$0xff]  }
 0x39a   : > { %12252 = vmatprep.subr.bf16.mxu1 %v14503_v31  ;;  %v14599_v31 = vld [vmem:[%s16661_s9 + $0x11c4] ss:$8 sps:$4 sm:$0xff]  }
 0x39b   : > { %12210 = vmatpush2.bf16.msra.mxu0 %v14498_v32  ;;  %v14594_v32 = vld [vmem:[%s16661_s9 + $0x10c0] ss:$8 sps:$4 sm:$0xff]  }
 0x39c   : > { %12211 = vmatprep.subr.bf16.mxu0 %v14506_v33  ;;  %v14602_v33 = vld [vmem:[%s16661_s9 + $0x10b4] ss:$8 sps:$4 sm:$0xff]  }
 0x39d   : > { %12253 = vmatpush2.bf16.msra.mxu1 %v14501_v34  ;;  %v14597_v34 = vld [vmem:[%s16661_s9 + $0x11c0] ss:$8 sps:$4 sm:$0xff]  }
 0x39e   : > { %12254 = vmatprep.subr.bf16.mxu1 %v14509_v35  ;;  %v14605_v35 = vld [vmem:[%s16661_s9 + $0x11b4] ss:$8 sps:$4 sm:$0xff]  }
 0x39f   : > { %12212 = vmatpush2.bf16.msra.mxu0 %v14504_v36  ;;  %v14600_v36 = vld [vmem:[%s16661_s9 + $0x10b0] ss:$8 sps:$4 sm:$0xff]  }
 0x3a0   : > { %12213 = vmatprep.subr.bf16.mxu0 %v14512_v37  ;;  %v14608_v37 = vld [vmem:[%s16661_s9 + $0x10a4] ss:$8 sps:$4 sm:$0xff]  }
 0x3a1   : > { %12255 = vmatpush2.bf16.msra.mxu1 %v14507_v38  ;;  %v14603_v38 = vld [vmem:[%s16661_s9 + $0x11b0] ss:$8 sps:$4 sm:$0xff]  }
 0x3a2   : > { %12256 = vmatprep.subr.bf16.mxu1 %v14515_v39  ;;  %v14611_v39 = vld [vmem:[%s16661_s9 + $0x11a4] ss:$8 sps:$4 sm:$0xff]  }
 0x3a3   : > { %12214 = vmatpush2.bf16.msra.mxu0 %v14510_v40  ;;  %v14606_v40 = vld [vmem:[%s16661_s9 + $0x10a0] ss:$8 sps:$4 sm:$0xff]  }
 0x3a4   : > { %12215 = vmatprep.subr.bf16.mxu0 %v14518_v41  ;;  %v14614_v41 = vld [vmem:[%s16661_s9 + $0x1094] ss:$8 sps:$4 sm:$0xff]  }
 0x3a5   : > { %12257 = vmatpush2.bf16.msra.mxu1 %v14513_v42  ;;  %v14609_v42 = vld [vmem:[%s16661_s9 + $0x11a0] ss:$8 sps:$4 sm:$0xff]  }
 0x3a6   : > { %12258 = vmatprep.subr.bf16.mxu1 %v14521_v43  ;;  %v14617_v43 = vld [vmem:[%s16661_s9 + $0x1194] ss:$8 sps:$4 sm:$0xff]  }
 0x3a7   : > { %12216 = vmatpush2.bf16.msra.mxu0 %v14516_v44  ;;  %v14612_v44 = vld [vmem:[%s16661_s9 + $0x1090] ss:$8 sps:$4 sm:$0xff]  }
 0x3a8   : > { %12271 = vmatprep.subr.bf16.mxu0 %v14527_v45  ;;  %v14620_v45 = vld [vmem:[%s16661_s9 + $0x1084] ss:$8 sps:$4 sm:$0xff]  }
 0x3a9   : > { %12259 = vmatpush2.bf16.msra.mxu1 %v14519_v46  ;;  %v14615_v46 = vld [vmem:[%s16661_s9 + $0x1190] ss:$8 sps:$4 sm:$0xff]  }
 0x3aa   : > { %12218 = vmatmul.mubr.bf16.vlgmr.msra.gmra.mxu0 %v14522_v47  ;;  %12314 = vmatprep.subr.bf16.mxu1 %v14533_v48  ;;  %v14623_v47 = vld [vmem:[%s16661_s9 + $0x1184] ss:$8 sps:$4 sm:$0xff]   ;;  %v14618_v48 = vld [vmem:[%s16661_s9 + $0x1080] ss:$8 sps:$4 sm:$0xff]  }
 0x3ab   : > { %12272 = vmatpush1.bf16.msra.mxu0 %v14525_v49  ;;  %12303 = vmatprep.mubr.bf16.mxu0 %v14626_v50  ;;  %v14629_v49 = vld [vmem:[%s16661_s9 + $0x1274] ss:$8 sps:$4 sm:$0xff]   ;;  %v14621_v50 = vld [vmem:[%s16661_s9 + $0x1180] ss:$8 sps:$4 sm:$0xff]  }
 0x3ac   : > { %12261 = vmatmul.mubr.bf16.vlgmr.msra.gmra.mxu1 %v14528_v51  ;;  %12273 = vmatprep.subr.bf16.mxu0 %v14536_v52  ;;  %v14624_v51 = vld [vmem:[%s17810_s0 + $0x80] ss:$196 sps:$4 sm:$0xff]   ;;  %v14635_v52 = vld [vmem:[%s16661_s9 + $0x1374] ss:$8 sps:$4 sm:$0xff]  }
 0x3ad   : > { %12315 = vmatpush1.bf16.msra.mxu1 %v14531_v53  ;;  %12346 = vmatprep.mubr.bf16.mxu1 %v14632_v54  ;;  %v14627_v53 = vld [vmem:[%s16661_s9 + $0x1270] ss:$8 sps:$4 sm:$0xff]  }
 0x3ae   : > { %12316 = vmatprep.subr.bf16.mxu1 %v14539_v55  ;;  %v14728_v54 = vld [vmem:[%s17810_s0 + $0x94] ss:$196 sps:$4 sm:$0xff]   ;;  %v14630_v55 = vld [vmem:[%s17810_s0 + $0x88] ss:$196 sps:$4 sm:$0xff]  }
 0x3af   : > { %12274 = vmatpush1.bf16.msra.mxu0 %v14534_v56  ;;  %v14638_v56 = vld [vmem:[%s16661_s9 + $0x1264] ss:$8 sps:$4 sm:$0xff]  }
 0x3b0   : > { %12275 = vmatprep.subr.bf16.mxu0 %v14542_v57  ;;  %v14633_v57 = vld [vmem:[%s16661_s9 + $0x1370] ss:$8 sps:$4 sm:$0xff]  }
 0x3b1   : > { %12317 = vmatpush1.bf16.msra.mxu1 %v14537_v58  ;;  %v14734_v58 = vld [vmem:[%s17810_s0 + $0x9c] ss:$196 sps:$4 sm:$0xff]  }
 0x3b2   : > { %12318 = vmatprep.subr.bf16.mxu1 %v14545_v59  ;;  %v14641_v59 = vld [vmem:[%s16661_s9 + $0x1364] ss:$8 sps:$4 sm:$0xff]  }
 0x3b3   : > { %12276 = vmatpush1.bf16.msra.mxu0 %v14540_v60  ;;  %v14636_v60 = vld [vmem:[%s16661_s9 + $0x1260] ss:$8 sps:$4 sm:$0xff]  }
 0x3b4   : > { %12277 = vmatprep.subr.bf16.mxu0 %v14548_v61  ;;  %v14644_v61 = vld [vmem:[%s16661_s9 + $0x1254] ss:$8 sps:$4 sm:$0xff]  }
 0x3b5   : > { %12319 = vmatpush1.bf16.msra.mxu1 %v14543_v62  ;;  %v14639_v62 = vld [vmem:[%s16661_s9 + $0x1360] ss:$8 sps:$4 sm:$0xff]  }
 0x3b6   : > { %12320 = vmatprep.subr.bf16.mxu1 %v14551_v63  ;;  %v14647_v63 = vld [vmem:[%s16661_s9 + $0x1354] ss:$8 sps:$4 sm:$0xff]  }
 0x3b7   : > { %12278 = vmatpush1.bf16.msra.mxu0 %v14546_v0  ;;  %v14642_v0 = vld [vmem:[%s16661_s9 + $0x1250] ss:$8 sps:$4 sm:$0xff]  }
 0x3b8   : > { %12279 = vmatprep.subr.bf16.mxu0 %v14554_v1  ;;  %v14650_v1 = vld [vmem:[%s16661_s9 + $0x1244] ss:$8 sps:$4 sm:$0xff]  }
 0x3b9   : > { %12321 = vmatpush1.bf16.msra.mxu1 %v14549_v2  ;;  %v14645_v2 = vld [vmem:[%s16661_s9 + $0x1350] ss:$8 sps:$4 sm:$0xff]  }
 0x3ba   : > { %12322 = vmatprep.subr.bf16.mxu1 %v14557_v3  ;;  %v14653_v3 = vld [vmem:[%s16661_s9 + $0x1344] ss:$8 sps:$4 sm:$0xff]  }
 0x3bb   : > { %12280 = vmatpush1.bf16.msra.mxu0 %v14552_v4  ;;  %v14648_v4 = vld [vmem:[%s16661_s9 + $0x1240] ss:$8 sps:$4 sm:$0xff]  }
 0x3bc   : > { %12281 = vmatprep.subr.bf16.mxu0 %v14560_v5  ;;  %v14656_v5 = vld [vmem:[%s16661_s9 + $0x1234] ss:$8 sps:$4 sm:$0xff]  }
 0x3bd   : > { %12323 = vmatpush1.bf16.msra.mxu1 %v14555_v6  ;;  %v14651_v6 = vld [vmem:[%s16661_s9 + $0x1340] ss:$8 sps:$4 sm:$0xff]  }
 0x3be   : > { %12324 = vmatprep.subr.bf16.mxu1 %v14563_v7  ;;  %v14659_v7 = vld [vmem:[%s16661_s9 + $0x1334] ss:$8 sps:$4 sm:$0xff]  }
 0x3bf   : > { %12282 = vmatpush1.bf16.msra.mxu0 %v14558_v8  ;;  %v14654_v8 = vld [vmem:[%s16661_s9 + $0x1230] ss:$8 sps:$4 sm:$0xff]  }
 0x3c0   : > { %12283 = vmatprep.subr.bf16.mxu0 %v14566_v9  ;;  %v14662_v9 = vld [vmem:[%s16661_s9 + $0x1224] ss:$8 sps:$4 sm:$0xff]  }
 0x3c1   : > { %12325 = vmatpush1.bf16.msra.mxu1 %v14561_v10  ;;  %v14657_v10 = vld [vmem:[%s16661_s9 + $0x1330] ss:$8 sps:$4 sm:$0xff]  }
 0x3c2   : > { %12326 = vmatprep.subr.bf16.mxu1 %v14569_v11  ;;  %v14665_v11 = vld [vmem:[%s16661_s9 + $0x1324] ss:$8 sps:$4 sm:$0xff]  }
 0x3c3   : > { %12284 = vmatpush1.bf16.msra.mxu0 %v14564_v12  ;;  %v14660_v12 = vld [vmem:[%s16661_s9 + $0x1220] ss:$8 sps:$4 sm:$0xff]  }
 0x3c4   : > { %12285 = vmatprep.subr.bf16.mxu0 %v14572_v13  ;;  %v14668_v13 = vld [vmem:[%s16661_s9 + $0x1214] ss:$8 sps:$4 sm:$0xff]  }
 0x3c5   : > { %12327 = vmatpush1.bf16.msra.mxu1 %v14567_v14  ;;  %v14663_v14 = vld [vmem:[%s16661_s9 + $0x1320] ss:$8 sps:$4 sm:$0xff]  }
 0x3c6   : > { %12328 = vmatprep.subr.bf16.mxu1 %v14575_v15  ;;  %v14671_v15 = vld [vmem:[%s16661_s9 + $0x1314] ss:$8 sps:$4 sm:$0xff]  }
 0x3c7   : > { %12286 = vmatpush1.bf16.msra.mxu0 %v14570_v16  ;;  %v14666_v16 = vld [vmem:[%s16661_s9 + $0x1210] ss:$8 sps:$4 sm:$0xff]  }
 0x3c8   : > { %12287 = vmatprep.subr.bf16.mxu0 %v14578_v17  ;;  %v14674_v17 = vld [vmem:[%s16661_s9 + $0x1204] ss:$8 sps:$4 sm:$0xff]  }
 0x3c9   : > { %12329 = vmatpush1.bf16.msra.mxu1 %v14573_v18  ;;  %v14669_v18 = vld [vmem:[%s16661_s9 + $0x1310] ss:$8 sps:$4 sm:$0xff]  }
 0x3ca   : > { %12330 = vmatprep.subr.bf16.mxu1 %v14581_v19  ;;  %v14677_v19 = vld [vmem:[%s16661_s9 + $0x1304] ss:$8 sps:$4 sm:$0xff]  }
 0x3cb   : > { %12288 = vmatpush2.bf16.msra.mxu0 %v14576_v20  ;;  %v14672_v20 = vld [vmem:[%s16661_s9 + $0x1200] ss:$8 sps:$4 sm:$0xff]  }
 0x3cc   : > { %12289 = vmatprep.subr.bf16.mxu0 %v14584_v21  ;;  %v14680_v21 = vld [vmem:[%s16661_s9 + $0x12f4] ss:$8 sps:$4 sm:$0xff]  }
 0x3cd   : > { %12331 = vmatpush2.bf16.msra.mxu1 %v14579_v22  ;;  %v14675_v22 = vld [vmem:[%s16661_s9 + $0x1300] ss:$8 sps:$4 sm:$0xff]  }
 0x3ce   : > { %12332 = vmatprep.subr.bf16.mxu1 %v14587_v23  ;;  %v14683_v23 = vld [vmem:[%s16661_s9 + $0x13f4] ss:$8 sps:$4 sm:$0xff]  }
 0x3cf   : > { %12290 = vmatpush2.bf16.msra.mxu0 %v14582_v24  ;;  %v14678_v24 = vld [vmem:[%s16661_s9 + $0x12f0] ss:$8 sps:$4 sm:$0xff]  }
 0x3d0   : > { %12291 = vmatprep.subr.bf16.mxu0 %v14590_v25  ;;  %v14686_v25 = vld [vmem:[%s16661_s9 + $0x12e4] ss:$8 sps:$4 sm:$0xff]  }
 0x3d1   : > { %12333 = vmatpush2.bf16.msra.mxu1 %v14585_v26  ;;  %v14681_v26 = vld [vmem:[%s16661_s9 + $0x13f0] ss:$8 sps:$4 sm:$0xff]  }
 0x3d2   : > { %12334 = vmatprep.subr.bf16.mxu1 %v14593_v27  ;;  %v14689_v27 = vld [vmem:[%s16661_s9 + $0x13e4] ss:$8 sps:$4 sm:$0xff]  }
 0x3d3   : > { %12292 = vmatpush2.bf16.msra.mxu0 %v14588_v28  ;;  %v14684_v28 = vld [vmem:[%s16661_s9 + $0x12e0] ss:$8 sps:$4 sm:$0xff]  }
 0x3d4   : > { %12293 = vmatprep.subr.bf16.mxu0 %v14596_v29  ;;  %v14692_v29 = vld [vmem:[%s16661_s9 + $0x12d4] ss:$8 sps:$4 sm:$0xff]  }
 0x3d5   : > { %12335 = vmatpush2.bf16.msra.mxu1 %v14591_v30  ;;  %v14687_v30 = vld [vmem:[%s16661_s9 + $0x13e0] ss:$8 sps:$4 sm:$0xff]  }
 0x3d6   : > { %12336 = vmatprep.subr.bf16.mxu1 %v14599_v31  ;;  %v14695_v31 = vld [vmem:[%s16661_s9 + $0x13d4] ss:$8 sps:$4 sm:$0xff]  }
 0x3d7   : > { %12294 = vmatpush2.bf16.msra.mxu0 %v14594_v32  ;;  %v14690_v32 = vld [vmem:[%s16661_s9 + $0x12d0] ss:$8 sps:$4 sm:$0xff]  }
 0x3d8   : > { %12295 = vmatprep.subr.bf16.mxu0 %v14602_v33  ;;  %v14698_v33 = vld [vmem:[%s16661_s9 + $0x12c4] ss:$8 sps:$4 sm:$0xff]  }
 0x3d9   : > { %12337 = vmatpush2.bf16.msra.mxu1 %v14597_v34  ;;  %v14693_v34 = vld [vmem:[%s16661_s9 + $0x13d0] ss:$8 sps:$4 sm:$0xff]  }
 0x3da   : > { %12338 = vmatprep.subr.bf16.mxu1 %v14605_v35  ;;  %v14701_v35 = vld [vmem:[%s16661_s9 + $0x13c4] ss:$8 sps:$4 sm:$0xff]  }
 0x3db   : > { %12296 = vmatpush2.bf16.msra.mxu0 %v14600_v36  ;;  %v14696_v36 = vld [vmem:[%s16661_s9 + $0x12c0] ss:$8 sps:$4 sm:$0xff]  }
 0x3dc   : > { %12297 = vmatprep.subr.bf16.mxu0 %v14608_v37  ;;  %v14704_v37 = vld [vmem:[%s16661_s9 + $0x12b4] ss:$8 sps:$4 sm:$0xff]  }
 0x3dd   : > { %12339 = vmatpush2.bf16.msra.mxu1 %v14603_v38  ;;  %v14699_v38 = vld [vmem:[%s16661_s9 + $0x13c0] ss:$8 sps:$4 sm:$0xff]  }
 0x3de   : > { %12340 = vmatprep.subr.bf16.mxu1 %v14611_v39  ;;  %v14707_v39 = vld [vmem:[%s16661_s9 + $0x13b4] ss:$8 sps:$4 sm:$0xff]  }
 0x3df   : > { %12298 = vmatpush2.bf16.msra.mxu0 %v14606_v40  ;;  %v14702_v40 = vld [vmem:[%s16661_s9 + $0x12b0] ss:$8 sps:$4 sm:$0xff]  }
 0x3e0   : > { %12299 = vmatprep.subr.bf16.mxu0 %v14614_v41  ;;  %v14710_v41 = vld [vmem:[%s16661_s9 + $0x12a4] ss:$8 sps:$4 sm:$0xff]  }
 0x3e1   : > { %12341 = vmatpush2.bf16.msra.mxu1 %v14609_v42  ;;  %v14705_v42 = vld [vmem:[%s16661_s9 + $0x13b0] ss:$8 sps:$4 sm:$0xff]  }
 0x3e2   : > { %12342 = vmatprep.subr.bf16.mxu1 %v14617_v43  ;;  %v14713_v43 = vld [vmem:[%s16661_s9 + $0x13a4] ss:$8 sps:$4 sm:$0xff]  }
 0x3e3   : > { %12300 = vmatpush2.bf16.msra.mxu0 %v14612_v44  ;;  %v14708_v44 = vld [vmem:[%s16661_s9 + $0x12a0] ss:$8 sps:$4 sm:$0xff]  }
 0x3e4   : > { %12301 = vmatprep.subr.bf16.mxu0 %v14620_v45  ;;  %v14716_v45 = vld [vmem:[%s16661_s9 + $0x1294] ss:$8 sps:$4 sm:$0xff]  }
 0x3e5   : > { %12343 = vmatpush2.bf16.msra.mxu1 %v14615_v46  ;;  %v14711_v46 = vld [vmem:[%s16661_s9 + $0x13a0] ss:$8 sps:$4 sm:$0xff]  }
 0x3e6   : > { %12344 = vmatprep.subr.bf16.mxu1 %v14623_v47  ;;  %v14719_v47 = vld [vmem:[%s16661_s9 + $0x1394] ss:$8 sps:$4 sm:$0xff]  }
 0x3e7   : > { %12302 = vmatpush2.bf16.msra.mxu0 %v14618_v48  ;;  %v14714_v48 = vld [vmem:[%s16661_s9 + $0x1290] ss:$8 sps:$4 sm:$0xff]  }
 0x3e8   : > { %12357 = vmatprep.subr.bf16.mxu0 %v14629_v49  ;;  %v14722_v49 = vld [vmem:[%s16661_s9 + $0x1284] ss:$8 sps:$4 sm:$0xff]  }
 0x3e9   : > { %12345 = vmatpush2.bf16.msra.mxu1 %v14621_v50  ;;  %v14717_v50 = vld [vmem:[%s16661_s9 + $0x1390] ss:$8 sps:$4 sm:$0xff]  }
 0x3ea   : > { %12304 = vmatmul.mubr.bf16.vlgmr.msra.gmra.mxu0 %v14624_v51  ;;  %12400 = vmatprep.subr.bf16.mxu1 %v14635_v52  ;;  %v14725_v51 = vld [vmem:[%s16661_s9 + $0x1384] ss:$8 sps:$4 sm:$0xff]   ;;  %v14720_v52 = vld [vmem:[%s16661_s9 + $0x1280] ss:$8 sps:$4 sm:$0xff]  }
 0x3eb   : > { %12358 = vmatpush1.bf16.msra.mxu0 %v14627_v53  ;;  %12389 = vmatprep.mubr.bf16.mxu0 %v14728_v54  ;;  %v14731_v53 = vld [vmem:[%s16661_s9 + $0x1474] ss:$8 sps:$4 sm:$0xff]   ;;  %v14723_v54 = vld [vmem:[%s16661_s9 + $0x1380] ss:$8 sps:$4 sm:$0xff]  }
 0x3ec   : > { %12347 = vmatmul.mubr.bf16.vlgmr.msra.gmra.mxu1 %v14630_v55  ;;  %12359 = vmatprep.subr.bf16.mxu0 %v14638_v56  ;;  %v14726_v55 = vld [vmem:[%s17810_s0 + $0x90] ss:$196 sps:$4 sm:$0xff]  }
 0x3ed   : > { %12401 = vmatpush1.bf16.msra.mxu1 %v14633_v57  ;;  %12432 = vmatprep.mubr.bf16.mxu1 %v14734_v58  ;;  %v14737_v56 = vld [vmem:[%s16661_s9 + $0x1574] ss:$8 sps:$4 sm:$0xff]   ;;  %v14729_v57 = vld [vmem:[%s16661_s9 + $0x1470] ss:$8 sps:$4 sm:$0xff]   ;;  %v14830_v58 = vld [vmem:[%s17810_s0 + $0xa4] ss:$196 sps:$4 sm:$0xff]  }
 0x3ee   : > { %12402 = vmatprep.subr.bf16.mxu1 %v14641_v59  ;;  %v14732_v59 = vld [vmem:[%s17810_s0 + $0x98] ss:$196 sps:$4 sm:$0xff]  }
 0x3ef   : > { %12360 = vmatpush1.bf16.msra.mxu0 %v14636_v60  ;;  %v14740_v60 = vld [vmem:[%s16661_s9 + $0x1464] ss:$8 sps:$4 sm:$0xff]  }
 0x3f0   : > { %12361 = vmatprep.subr.bf16.mxu0 %v14644_v61  ;;  %v14735_v61 = vld [vmem:[%s16661_s9 + $0x1570] ss:$8 sps:$4 sm:$0xff]  }
 0x3f1   : > { %12403 = vmatpush1.bf16.msra.mxu1 %v14639_v62  ;;  %v14836_v62 = vld [vmem:[%s17810_s0 + $0xac] ss:$196 sps:$4 sm:$0xff]  }
 0x3f2   : > { %12404 = vmatprep.subr.bf16.mxu1 %v14647_v63  ;;  %v14743_v63 = vld [vmem:[%s16661_s9 + $0x1564] ss:$8 sps:$4 sm:$0xff]  }
 0x3f3   : > { %12362 = vmatpush1.bf16.msra.mxu0 %v14642_v0  ;;  %v14738_v0 = vld [vmem:[%s16661_s9 + $0x1460] ss:$8 sps:$4 sm:$0xff]  }
 0x3f4   : > { %12363 = vmatprep.subr.bf16.mxu0 %v14650_v1  ;;  %v14746_v1 = vld [vmem:[%s16661_s9 + $0x1454] ss:$8 sps:$4 sm:$0xff]  }
 0x3f5   : > { %12405 = vmatpush1.bf16.msra.mxu1 %v14645_v2  ;;  %v14741_v2 = vld [vmem:[%s16661_s9 + $0x1560] ss:$8 sps:$4 sm:$0xff]  }
 0x3f6   : > { %12406 = vmatprep.subr.bf16.mxu1 %v14653_v3  ;;  %v14749_v3 = vld [vmem:[%s16661_s9 + $0x1554] ss:$8 sps:$4 sm:$0xff]  }
 0x3f7   : > { %12364 = vmatpush1.bf16.msra.mxu0 %v14648_v4  ;;  %v14744_v4 = vld [vmem:[%s16661_s9 + $0x1450] ss:$8 sps:$4 sm:$0xff]  }
 0x3f8   : > { %12365 = vmatprep.subr.bf16.mxu0 %v14656_v5  ;;  %v14752_v5 = vld [vmem:[%s16661_s9 + $0x1444] ss:$8 sps:$4 sm:$0xff]  }
 0x3f9   : > { %12407 = vmatpush1.bf16.msra.mxu1 %v14651_v6  ;;  %v14747_v6 = vld [vmem:[%s16661_s9 + $0x1550] ss:$8 sps:$4 sm:$0xff]  }
 0x3fa   : > { %12408 = vmatprep.subr.bf16.mxu1 %v14659_v7  ;;  %v14755_v7 = vld [vmem:[%s16661_s9 + $0x1544] ss:$8 sps:$4 sm:$0xff]  }
 0x3fb   : > { %12366 = vmatpush1.bf16.msra.mxu0 %v14654_v8  ;;  %v14750_v8 = vld [vmem:[%s16661_s9 + $0x1440] ss:$8 sps:$4 sm:$0xff]  }
 0x3fc   : > { %12367 = vmatprep.subr.bf16.mxu0 %v14662_v9  ;;  %v14758_v9 = vld [vmem:[%s16661_s9 + $0x1434] ss:$8 sps:$4 sm:$0xff]  }
 0x3fd   : > { %12409 = vmatpush1.bf16.msra.mxu1 %v14657_v10  ;;  %v14753_v10 = vld [vmem:[%s16661_s9 + $0x1540] ss:$8 sps:$4 sm:$0xff]  }
 0x3fe   : > { %12410 = vmatprep.subr.bf16.mxu1 %v14665_v11  ;;  %v14761_v11 = vld [vmem:[%s16661_s9 + $0x1534] ss:$8 sps:$4 sm:$0xff]  }
 0x3ff   : > { %12368 = vmatpush1.bf16.msra.mxu0 %v14660_v12  ;;  %v14756_v12 = vld [vmem:[%s16661_s9 + $0x1430] ss:$8 sps:$4 sm:$0xff]  }
 0x400   : > { %12369 = vmatprep.subr.bf16.mxu0 %v14668_v13  ;;  %v14764_v13 = vld [vmem:[%s16661_s9 + $0x1424] ss:$8 sps:$4 sm:$0xff]  }
 0x401   : > { %12411 = vmatpush1.bf16.msra.mxu1 %v14663_v14  ;;  %v14759_v14 = vld [vmem:[%s16661_s9 + $0x1530] ss:$8 sps:$4 sm:$0xff]  }
 0x402   : > { %12412 = vmatprep.subr.bf16.mxu1 %v14671_v15  ;;  %v14767_v15 = vld [vmem:[%s16661_s9 + $0x1524] ss:$8 sps:$4 sm:$0xff]  }
 0x403   : > { %12370 = vmatpush1.bf16.msra.mxu0 %v14666_v16  ;;  %v14762_v16 = vld [vmem:[%s16661_s9 + $0x1420] ss:$8 sps:$4 sm:$0xff]  }
 0x404   : > { %12371 = vmatprep.subr.bf16.mxu0 %v14674_v17  ;;  %v14770_v17 = vld [vmem:[%s16661_s9 + $0x1414] ss:$8 sps:$4 sm:$0xff]  }
 0x405   : > { %12413 = vmatpush1.bf16.msra.mxu1 %v14669_v18  ;;  %v14765_v18 = vld [vmem:[%s16661_s9 + $0x1520] ss:$8 sps:$4 sm:$0xff]  }
 0x406   : > { %12414 = vmatprep.subr.bf16.mxu1 %v14677_v19  ;;  %v14773_v19 = vld [vmem:[%s16661_s9 + $0x1514] ss:$8 sps:$4 sm:$0xff]  }
 0x407   : > { %12372 = vmatpush1.bf16.msra.mxu0 %v14672_v20  ;;  %v14768_v20 = vld [vmem:[%s16661_s9 + $0x1410] ss:$8 sps:$4 sm:$0xff]  }
 0x408   : > { %12373 = vmatprep.subr.bf16.mxu0 %v14680_v21  ;;  %v14776_v21 = vld [vmem:[%s16661_s9 + $0x1404] ss:$8 sps:$4 sm:$0xff]  }
 0x409   : > { %12415 = vmatpush1.bf16.msra.mxu1 %v14675_v22  ;;  %v14771_v22 = vld [vmem:[%s16661_s9 + $0x1510] ss:$8 sps:$4 sm:$0xff]  }
 0x40a   : > { %12416 = vmatprep.subr.bf16.mxu1 %v14683_v23  ;;  %v14779_v23 = vld [vmem:[%s16661_s9 + $0x1504] ss:$8 sps:$4 sm:$0xff]  }
 0x40b   : > { %12374 = vmatpush2.bf16.msra.mxu0 %v14678_v24  ;;  %v14774_v24 = vld [vmem:[%s16661_s9 + $0x1400] ss:$8 sps:$4 sm:$0xff]  }
 0x40c   : > { %12375 = vmatprep.subr.bf16.mxu0 %v14686_v25  ;;  %v14782_v25 = vld [vmem:[%s16661_s9 + $0x14f4] ss:$8 sps:$4 sm:$0xff]  }
 0x40d   : > { %12417 = vmatpush2.bf16.msra.mxu1 %v14681_v26  ;;  %v14777_v26 = vld [vmem:[%s16661_s9 + $0x1500] ss:$8 sps:$4 sm:$0xff]  }
 0x40e   : > { %12418 = vmatprep.subr.bf16.mxu1 %v14689_v27  ;;  %v14785_v27 = vld [vmem:[%s16661_s9 + $0x15f4] ss:$8 sps:$4 sm:$0xff]  }
 0x40f   : > { %12376 = vmatpush2.bf16.msra.mxu0 %v14684_v28  ;;  %v14780_v28 = vld [vmem:[%s16661_s9 + $0x14f0] ss:$8 sps:$4 sm:$0xff]  }
 0x410   : > { %12377 = vmatprep.subr.bf16.mxu0 %v14692_v29  ;;  %v14788_v29 = vld [vmem:[%s16661_s9 + $0x14e4] ss:$8 sps:$4 sm:$0xff]  }
 0x411   : > { %12419 = vmatpush2.bf16.msra.mxu1 %v14687_v30  ;;  %v14783_v30 = vld [vmem:[%s16661_s9 + $0x15f0] ss:$8 sps:$4 sm:$0xff]  }
 0x412   : > { %12420 = vmatprep.subr.bf16.mxu1 %v14695_v31  ;;  %v14791_v31 = vld [vmem:[%s16661_s9 + $0x15e4] ss:$8 sps:$4 sm:$0xff]  }
 0x413   : > { %12378 = vmatpush2.bf16.msra.mxu0 %v14690_v32  ;;  %v14786_v32 = vld [vmem:[%s16661_s9 + $0x14e0] ss:$8 sps:$4 sm:$0xff]  }
 0x414   : > { %12379 = vmatprep.subr.bf16.mxu0 %v14698_v33  ;;  %v14794_v33 = vld [vmem:[%s16661_s9 + $0x14d4] ss:$8 sps:$4 sm:$0xff]  }
 0x415   : > { %12421 = vmatpush2.bf16.msra.mxu1 %v14693_v34  ;;  %v14789_v34 = vld [vmem:[%s16661_s9 + $0x15e0] ss:$8 sps:$4 sm:$0xff]  }
 0x416   : > { %12422 = vmatprep.subr.bf16.mxu1 %v14701_v35  ;;  %v14797_v35 = vld [vmem:[%s16661_s9 + $0x15d4] ss:$8 sps:$4 sm:$0xff]  }
 0x417   : > { %12380 = vmatpush2.bf16.msra.mxu0 %v14696_v36  ;;  %v14792_v36 = vld [vmem:[%s16661_s9 + $0x14d0] ss:$8 sps:$4 sm:$0xff]  }
 0x418   : > { %12381 = vmatprep.subr.bf16.mxu0 %v14704_v37  ;;  %v14800_v37 = vld [vmem:[%s16661_s9 + $0x14c4] ss:$8 sps:$4 sm:$0xff]  }
 0x419   : > { %12423 = vmatpush2.bf16.msra.mxu1 %v14699_v38  ;;  %v14795_v38 = vld [vmem:[%s16661_s9 + $0x15d0] ss:$8 sps:$4 sm:$0xff]  }
 0x41a   : > { %12424 = vmatprep.subr.bf16.mxu1 %v14707_v39  ;;  %v14803_v39 = vld [vmem:[%s16661_s9 + $0x15c4] ss:$8 sps:$4 sm:$0xff]  }
 0x41b   : > { %12382 = vmatpush2.bf16.msra.mxu0 %v14702_v40  ;;  %v14798_v40 = vld [vmem:[%s16661_s9 + $0x14c0] ss:$8 sps:$4 sm:$0xff]  }
 0x41c   : > { %12383 = vmatprep.subr.bf16.mxu0 %v14710_v41  ;;  %v14806_v41 = vld [vmem:[%s16661_s9 + $0x14b4] ss:$8 sps:$4 sm:$0xff]  }
 0x41d   : > { %12425 = vmatpush2.bf16.msra.mxu1 %v14705_v42  ;;  %v14801_v42 = vld [vmem:[%s16661_s9 + $0x15c0] ss:$8 sps:$4 sm:$0xff]  }
 0x41e   : > { %12426 = vmatprep.subr.bf16.mxu1 %v14713_v43  ;;  %v14809_v43 = vld [vmem:[%s16661_s9 + $0x15b4] ss:$8 sps:$4 sm:$0xff]  }
 0x41f   : > { %12384 = vmatpush2.bf16.msra.mxu0 %v14708_v44  ;;  %v14804_v44 = vld [vmem:[%s16661_s9 + $0x14b0] ss:$8 sps:$4 sm:$0xff]  }
 0x420   : > { %12385 = vmatprep.subr.bf16.mxu0 %v14716_v45  ;;  %v14812_v45 = vld [vmem:[%s16661_s9 + $0x14a4] ss:$8 sps:$4 sm:$0xff]  }
 0x421   : > { %12427 = vmatpush2.bf16.msra.mxu1 %v14711_v46  ;;  %v14807_v46 = vld [vmem:[%s16661_s9 + $0x15b0] ss:$8 sps:$4 sm:$0xff]  }
 0x422   : > { %12428 = vmatprep.subr.bf16.mxu1 %v14719_v47  ;;  %v14815_v47 = vld [vmem:[%s16661_s9 + $0x15a4] ss:$8 sps:$4 sm:$0xff]  }
 0x423   : > { %12386 = vmatpush2.bf16.msra.mxu0 %v14714_v48  ;;  %v14810_v48 = vld [vmem:[%s16661_s9 + $0x14a0] ss:$8 sps:$4 sm:$0xff]  }
 0x424   : > { %12387 = vmatprep.subr.bf16.mxu0 %v14722_v49  ;;  %v14818_v49 = vld [vmem:[%s16661_s9 + $0x1494] ss:$8 sps:$4 sm:$0xff]  }
 0x425   : > { %12429 = vmatpush2.bf16.msra.mxu1 %v14717_v50  ;;  %v14813_v50 = vld [vmem:[%s16661_s9 + $0x15a0] ss:$8 sps:$4 sm:$0xff]  }
 0x426   : > { %12430 = vmatprep.subr.bf16.mxu1 %v14725_v51  ;;  %v14821_v51 = vld [vmem:[%s16661_s9 + $0x1594] ss:$8 sps:$4 sm:$0xff]  }
 0x427   : > { %12388 = vmatpush2.bf16.msra.mxu0 %v14720_v52  ;;  %v14816_v52 = vld [vmem:[%s16661_s9 + $0x1490] ss:$8 sps:$4 sm:$0xff]  }
 0x428   : > { %12443 = vmatprep.subr.bf16.mxu0 %v14731_v53  ;;  %v14824_v53 = vld [vmem:[%s16661_s9 + $0x1484] ss:$8 sps:$4 sm:$0xff]  }
 0x429   : > { %12431 = vmatpush2.bf16.msra.mxu1 %v14723_v54  ;;  %v14819_v54 = vld [vmem:[%s16661_s9 + $0x1590] ss:$8 sps:$4 sm:$0xff]  }
 0x42a   : > { %12390 = vmatmul.mubr.bf16.vlgmr.msra.gmra.mxu0 %v14726_v55  ;;  %12486 = vmatprep.subr.bf16.mxu1 %v14737_v56  ;;  %v14827_v55 = vld [vmem:[%s16661_s9 + $0x1584] ss:$8 sps:$4 sm:$0xff]   ;;  %v14822_v56 = vld [vmem:[%s16661_s9 + $0x1480] ss:$8 sps:$4 sm:$0xff]  }
 0x42b   : > { %12444 = vmatpush1.bf16.msra.mxu0 %v14729_v57  ;;  %12475 = vmatprep.mubr.bf16.mxu0 %v14830_v58  ;;  %v14833_v57 = vld [vmem:[%s16661_s9 + $0x1674] ss:$8 sps:$4 sm:$0xff]   ;;  %v14825_v58 = vld [vmem:[%s16661_s9 + $0x1580] ss:$8 sps:$4 sm:$0xff]  }
 0x42c   : > { %12433 = vmatmul.mubr.bf16.vlgmr.msra.gmra.mxu1 %v14732_v59  ;;  %12445 = vmatprep.subr.bf16.mxu0 %v14740_v60  ;;  %v14828_v59 = vld [vmem:[%s17810_s0 + $0xa0] ss:$196 sps:$4 sm:$0xff]   ;;  %v14839_v60 = vld [vmem:[%s16661_s9 + $0x1774] ss:$8 sps:$4 sm:$0xff]  }
 0x42d   : > { %12487 = vmatpush1.bf16.msra.mxu1 %v14735_v61  ;;  %12518 = vmatprep.mubr.bf16.mxu1 %v14836_v62  ;;  %v14831_v61 = vld [vmem:[%s16661_s9 + $0x1670] ss:$8 sps:$4 sm:$0xff]  }
 0x42e   : > { %12488 = vmatprep.subr.bf16.mxu1 %v14743_v63  ;;  %v14932_v62 = vld [vmem:[%s17810_s0 + $0xb4] ss:$196 sps:$4 sm:$0xff]   ;;  %v14834_v63 = vld [vmem:[%s17810_s0 + $0xa8] ss:$196 sps:$4 sm:$0xff]  }
 0x42f   : > { %12446 = vmatpush1.bf16.msra.mxu0 %v14738_v0  ;;  %v14842_v0 = vld [vmem:[%s16661_s9 + $0x1664] ss:$8 sps:$4 sm:$0xff]  }
 0x430   : > { %12447 = vmatprep.subr.bf16.mxu0 %v14746_v1  ;;  %v14837_v1 = vld [vmem:[%s16661_s9 + $0x1770] ss:$8 sps:$4 sm:$0xff]  }
 0x431   : > { %12489 = vmatpush1.bf16.msra.mxu1 %v14741_v2  ;;  %v14938_v2 = vld [vmem:[%s17810_s0 + $0xbc] ss:$196 sps:$4 sm:$0xff]  }
 0x432   : > { %12490 = vmatprep.subr.bf16.mxu1 %v14749_v3  ;;  %v14845_v3 = vld [vmem:[%s16661_s9 + $0x1764] ss:$8 sps:$4 sm:$0xff]  }
 0x433   : > { %12448 = vmatpush1.bf16.msra.mxu0 %v14744_v4  ;;  %v14840_v4 = vld [vmem:[%s16661_s9 + $0x1660] ss:$8 sps:$4 sm:$0xff]  }
 0x434   : > { %12449 = vmatprep.subr.bf16.mxu0 %v14752_v5  ;;  %v14848_v5 = vld [vmem:[%s16661_s9 + $0x1654] ss:$8 sps:$4 sm:$0xff]  }
 0x435   : > { %12491 = vmatpush1.bf16.msra.mxu1 %v14747_v6  ;;  %v14843_v6 = vld [vmem:[%s16661_s9 + $0x1760] ss:$8 sps:$4 sm:$0xff]  }
 0x436   : > { %12492 = vmatprep.subr.bf16.mxu1 %v14755_v7  ;;  %v14851_v7 = vld [vmem:[%s16661_s9 + $0x1754] ss:$8 sps:$4 sm:$0xff]  }
 0x437   : > { %12450 = vmatpush1.bf16.msra.mxu0 %v14750_v8  ;;  %v14846_v8 = vld [vmem:[%s16661_s9 + $0x1650] ss:$8 sps:$4 sm:$0xff]  }
 0x438   : > { %12451 = vmatprep.subr.bf16.mxu0 %v14758_v9  ;;  %v14854_v9 = vld [vmem:[%s16661_s9 + $0x1644] ss:$8 sps:$4 sm:$0xff]  }
 0x439   : > { %12493 = vmatpush1.bf16.msra.mxu1 %v14753_v10  ;;  %v14849_v10 = vld [vmem:[%s16661_s9 + $0x1750] ss:$8 sps:$4 sm:$0xff]  }
 0x43a   : > { %12494 = vmatprep.subr.bf16.mxu1 %v14761_v11  ;;  %v14857_v11 = vld [vmem:[%s16661_s9 + $0x1744] ss:$8 sps:$4 sm:$0xff]  }
 0x43b   : > { %12452 = vmatpush1.bf16.msra.mxu0 %v14756_v12  ;;  %v14852_v12 = vld [vmem:[%s16661_s9 + $0x1640] ss:$8 sps:$4 sm:$0xff]  }
 0x43c   : > { %12453 = vmatprep.subr.bf16.mxu0 %v14764_v13  ;;  %v14860_v13 = vld [vmem:[%s16661_s9 + $0x1634] ss:$8 sps:$4 sm:$0xff]  }
 0x43d   : > { %12495 = vmatpush1.bf16.msra.mxu1 %v14759_v14  ;;  %v14855_v14 = vld [vmem:[%s16661_s9 + $0x1740] ss:$8 sps:$4 sm:$0xff]  }
 0x43e   : > { %12496 = vmatprep.subr.bf16.mxu1 %v14767_v15  ;;  %v14863_v15 = vld [vmem:[%s16661_s9 + $0x1734] ss:$8 sps:$4 sm:$0xff]  }
 0x43f   : > { %12454 = vmatpush1.bf16.msra.mxu0 %v14762_v16  ;;  %v14858_v16 = vld [vmem:[%s16661_s9 + $0x1630] ss:$8 sps:$4 sm:$0xff]  }
 0x440   : > { %12455 = vmatprep.subr.bf16.mxu0 %v14770_v17  ;;  %v14866_v17 = vld [vmem:[%s16661_s9 + $0x1624] ss:$8 sps:$4 sm:$0xff]  }
 0x441   : > { %12497 = vmatpush1.bf16.msra.mxu1 %v14765_v18  ;;  %v14861_v18 = vld [vmem:[%s16661_s9 + $0x1730] ss:$8 sps:$4 sm:$0xff]  }
 0x442   : > { %12498 = vmatprep.subr.bf16.mxu1 %v14773_v19  ;;  %v14869_v19 = vld [vmem:[%s16661_s9 + $0x1724] ss:$8 sps:$4 sm:$0xff]  }
 0x443   : > { %12456 = vmatpush1.bf16.msra.mxu0 %v14768_v20  ;;  %v14864_v20 = vld [vmem:[%s16661_s9 + $0x1620] ss:$8 sps:$4 sm:$0xff]  }
 0x444   : > { %12457 = vmatprep.subr.bf16.mxu0 %v14776_v21  ;;  %v14872_v21 = vld [vmem:[%s16661_s9 + $0x1614] ss:$8 sps:$4 sm:$0xff]  }
 0x445   : > { %12499 = vmatpush1.bf16.msra.mxu1 %v14771_v22  ;;  %v14867_v22 = vld [vmem:[%s16661_s9 + $0x1720] ss:$8 sps:$4 sm:$0xff]  }
 0x446   : > { %12500 = vmatprep.subr.bf16.mxu1 %v14779_v23  ;;  %v14875_v23 = vld [vmem:[%s16661_s9 + $0x1714] ss:$8 sps:$4 sm:$0xff]  }
 0x447   : > { %12458 = vmatpush1.bf16.msra.mxu0 %v14774_v24  ;;  %v14870_v24 = vld [vmem:[%s16661_s9 + $0x1610] ss:$8 sps:$4 sm:$0xff]  }
 0x448   : > { %12459 = vmatprep.subr.bf16.mxu0 %v14782_v25  ;;  %v14878_v25 = vld [vmem:[%s16661_s9 + $0x1604] ss:$8 sps:$4 sm:$0xff]  }
 0x449   : > { %12501 = vmatpush1.bf16.msra.mxu1 %v14777_v26  ;;  %v14873_v26 = vld [vmem:[%s16661_s9 + $0x1710] ss:$8 sps:$4 sm:$0xff]  }
 0x44a   : > { %12502 = vmatprep.subr.bf16.mxu1 %v14785_v27  ;;  %v14881_v27 = vld [vmem:[%s16661_s9 + $0x1704] ss:$8 sps:$4 sm:$0xff]  }
 0x44b   : > { %12460 = vmatpush2.bf16.msra.mxu0 %v14780_v28  ;;  %v14876_v28 = vld [vmem:[%s16661_s9 + $0x1600] ss:$8 sps:$4 sm:$0xff]  }
 0x44c   : > { %12461 = vmatprep.subr.bf16.mxu0 %v14788_v29  ;;  %v14884_v29 = vld [vmem:[%s16661_s9 + $0x16f4] ss:$8 sps:$4 sm:$0xff]  }
 0x44d   : > { %12503 = vmatpush2.bf16.msra.mxu1 %v14783_v30  ;;  %v14879_v30 = vld [vmem:[%s16661_s9 + $0x1700] ss:$8 sps:$4 sm:$0xff]  }
 0x44e   : > { %12504 = vmatprep.subr.bf16.mxu1 %v14791_v31  ;;  %v14887_v31 = vld [vmem:[%s16661_s9 + $0x17f4] ss:$8 sps:$4 sm:$0xff]  }
 0x44f   : > { %12462 = vmatpush2.bf16.msra.mxu0 %v14786_v32  ;;  %v14882_v32 = vld [vmem:[%s16661_s9 + $0x16f0] ss:$8 sps:$4 sm:$0xff]  }
 0x450   : > { %12463 = vmatprep.subr.bf16.mxu0 %v14794_v33  ;;  %v14890_v33 = vld [vmem:[%s16661_s9 + $0x16e4] ss:$8 sps:$4 sm:$0xff]  }
 0x451   : > { %12505 = vmatpush2.bf16.msra.mxu1 %v14789_v34  ;;  %v14885_v34 = vld [vmem:[%s16661_s9 + $0x17f0] ss:$8 sps:$4 sm:$0xff]  }
 0x452   : > { %12506 = vmatprep.subr.bf16.mxu1 %v14797_v35  ;;  %v14893_v35 = vld [vmem:[%s16661_s9 + $0x17e4] ss:$8 sps:$4 sm:$0xff]  }
 0x453   : > { %12464 = vmatpush2.bf16.msra.mxu0 %v14792_v36  ;;  %v14888_v36 = vld [vmem:[%s16661_s9 + $0x16e0] ss:$8 sps:$4 sm:$0xff]  }
 0x454   : > { %12465 = vmatprep.subr.bf16.mxu0 %v14800_v37  ;;  %v14896_v37 = vld [vmem:[%s16661_s9 + $0x16d4] ss:$8 sps:$4 sm:$0xff]  }
 0x455   : > { %12507 = vmatpush2.bf16.msra.mxu1 %v14795_v38  ;;  %v14891_v38 = vld [vmem:[%s16661_s9 + $0x17e0] ss:$8 sps:$4 sm:$0xff]  }
 0x456   : > { %12508 = vmatprep.subr.bf16.mxu1 %v14803_v39  ;;  %v14899_v39 = vld [vmem:[%s16661_s9 + $0x17d4] ss:$8 sps:$4 sm:$0xff]  }
 0x457   : > { %12466 = vmatpush2.bf16.msra.mxu0 %v14798_v40  ;;  %v14894_v40 = vld [vmem:[%s16661_s9 + $0x16d0] ss:$8 sps:$4 sm:$0xff]  }
 0x458   : > { %12467 = vmatprep.subr.bf16.mxu0 %v14806_v41  ;;  %v14902_v41 = vld [vmem:[%s16661_s9 + $0x16c4] ss:$8 sps:$4 sm:$0xff]  }
 0x459   : > { %12509 = vmatpush2.bf16.msra.mxu1 %v14801_v42  ;;  %v14897_v42 = vld [vmem:[%s16661_s9 + $0x17d0] ss:$8 sps:$4 sm:$0xff]  }
 0x45a   : > { %12510 = vmatprep.subr.bf16.mxu1 %v14809_v43  ;;  %v14905_v43 = vld [vmem:[%s16661_s9 + $0x17c4] ss:$8 sps:$4 sm:$0xff]  }
 0x45b   : > { %12468 = vmatpush2.bf16.msra.mxu0 %v14804_v44  ;;  %v14900_v44 = vld [vmem:[%s16661_s9 + $0x16c0] ss:$8 sps:$4 sm:$0xff]  }
 0x45c   : > { %12469 = vmatprep.subr.bf16.mxu0 %v14812_v45  ;;  %v14908_v45 = vld [vmem:[%s16661_s9 + $0x16b4] ss:$8 sps:$4 sm:$0xff]  }
 0x45d   : > { %12511 = vmatpush2.bf16.msra.mxu1 %v14807_v46  ;;  %v14903_v46 = vld [vmem:[%s16661_s9 + $0x17c0] ss:$8 sps:$4 sm:$0xff]  }
 0x45e   : > { %12512 = vmatprep.subr.bf16.mxu1 %v14815_v47  ;;  %v14911_v47 = vld [vmem:[%s16661_s9 + $0x17b4] ss:$8 sps:$4 sm:$0xff]  }
 0x45f   : > { %12470 = vmatpush2.bf16.msra.mxu0 %v14810_v48  ;;  %v14906_v48 = vld [vmem:[%s16661_s9 + $0x16b0] ss:$8 sps:$4 sm:$0xff]  }
 0x460   : > { %12471 = vmatprep.subr.bf16.mxu0 %v14818_v49  ;;  %v14914_v49 = vld [vmem:[%s16661_s9 + $0x16a4] ss:$8 sps:$4 sm:$0xff]  }
 0x461   : > { %12513 = vmatpush2.bf16.msra.mxu1 %v14813_v50  ;;  %v14909_v50 = vld [vmem:[%s16661_s9 + $0x17b0] ss:$8 sps:$4 sm:$0xff]  }
 0x462   : > { %12514 = vmatprep.subr.bf16.mxu1 %v14821_v51  ;;  %v14917_v51 = vld [vmem:[%s16661_s9 + $0x17a4] ss:$8 sps:$4 sm:$0xff]  }
 0x463   : > { %12472 = vmatpush2.bf16.msra.mxu0 %v14816_v52  ;;  %v14912_v52 = vld [vmem:[%s16661_s9 + $0x16a0] ss:$8 sps:$4 sm:$0xff]  }
 0x464   : > { %12473 = vmatprep.subr.bf16.mxu0 %v14824_v53  ;;  %v14920_v53 = vld [vmem:[%s16661_s9 + $0x1694] ss:$8 sps:$4 sm:$0xff]  }
 0x465   : > { %12515 = vmatpush2.bf16.msra.mxu1 %v14819_v54  ;;  %v14915_v54 = vld [vmem:[%s16661_s9 + $0x17a0] ss:$8 sps:$4 sm:$0xff]  }
 0x466   : > { %12516 = vmatprep.subr.bf16.mxu1 %v14827_v55  ;;  %v14923_v55 = vld [vmem:[%s16661_s9 + $0x1794] ss:$8 sps:$4 sm:$0xff]  }
 0x467   : > { %12474 = vmatpush2.bf16.msra.mxu0 %v14822_v56  ;;  %v14918_v56 = vld [vmem:[%s16661_s9 + $0x1690] ss:$8 sps:$4 sm:$0xff]  }
 0x468   : > { %12529 = vmatprep.subr.bf16.mxu0 %v14833_v57  ;;  %v14926_v57 = vld [vmem:[%s16661_s9 + $0x1684] ss:$8 sps:$4 sm:$0xff]  }
 0x469   : > { %12517 = vmatpush2.bf16.msra.mxu1 %v14825_v58  ;;  %v14921_v58 = vld [vmem:[%s16661_s9 + $0x1790] ss:$8 sps:$4 sm:$0xff]  }
 0x46a   : > { %12476 = vmatmul.mubr.bf16.vlgmr.msra.gmra.mxu0 %v14828_v59  ;;  %12572 = vmatprep.subr.bf16.mxu1 %v14839_v60  ;;  %v14929_v59 = vld [vmem:[%s16661_s9 + $0x1784] ss:$8 sps:$4 sm:$0xff]   ;;  %v14924_v60 = vld [vmem:[%s16661_s9 + $0x1680] ss:$8 sps:$4 sm:$0xff]  }
 0x46b   : > { %12530 = vmatpush1.bf16.msra.mxu0 %v14831_v61  ;;  %12561 = vmatprep.mubr.bf16.mxu0 %v14932_v62  ;;  %v14935_v61 = vld [vmem:[%s16661_s9 + $0x1874] ss:$8 sps:$4 sm:$0xff]   ;;  %v14927_v62 = vld [vmem:[%s16661_s9 + $0x1780] ss:$8 sps:$4 sm:$0xff]  }
 0x46c   : > { %12519 = vmatmul.mubr.bf16.vlgmr.msra.gmra.mxu1 %v14834_v63  ;;  %12531 = vmatprep.subr.bf16.mxu0 %v14842_v0  ;;  %v14930_v63 = vld [vmem:[%s17810_s0 + $0xb0] ss:$196 sps:$4 sm:$0xff]  }
 0x46d   : > { %12573 = vmatpush1.bf16.msra.mxu1 %v14837_v1  ;;  %12604 = vmatprep.mubr.bf16.mxu1 %v14938_v2  ;;  %v14933_v0 = vld [vmem:[%s16661_s9 + $0x1870] ss:$8 sps:$4 sm:$0xff]   ;;  %v14941_v2 = vld [vmem:[%s16661_s9 + $0x1864] ss:$8 sps:$4 sm:$0xff]  }
 0x46e   : > { %12574 = vmatprep.subr.bf16.mxu1 %v14845_v3  ;;  %v14936_v1 = vld [vmem:[%s17810_s0 + $0xb8] ss:$196 sps:$4 sm:$0xff]   ;;  %v14939_v3 = vld [vmem:[%s16661_s9 + $0x1860] ss:$8 sps:$4 sm:$0xff]  }
 0x46f   : > { %12532 = vmatpush1.bf16.msra.mxu0 %v14840_v4  ;;  %v15009_v4 = vmov 0  }
 0x470   : > { %12533 = vmatprep.subr.bf16.mxu0 %v14848_v5  ;;  %v14944_v5 = vld [vmem:[%s16661_s9 + $0x1854] ss:$8 sps:$4 sm:$0xff]  }
 0x471   : > { %12575 = vmatpush1.bf16.msra.mxu1 %v14843_v6  ;;  %v14942_v6 = vld [vmem:[%s16661_s9 + $0x1850] ss:$8 sps:$4 sm:$0xff]  }
 0x472   : > { %12576 = vmatprep.subr.bf16.mxu1 %v14851_v7  ;;  %v14947_v7 = vld [vmem:[%s16661_s9 + $0x1844] ss:$8 sps:$4 sm:$0xff]  }
 0x473   : > { %12534 = vmatpush1.bf16.msra.mxu0 %v14846_v8  ;;  %v14945_v8 = vld [vmem:[%s16661_s9 + $0x1840] ss:$8 sps:$4 sm:$0xff]  }
 0x474   : > { %12535 = vmatprep.subr.bf16.mxu0 %v14854_v9  ;;  %v14950_v9 = vld [vmem:[%s16661_s9 + $0x1834] ss:$8 sps:$4 sm:$0xff]  }
 0x475   : > { %12577 = vmatpush1.bf16.msra.mxu1 %v14849_v10  ;;  %v14948_v10 = vld [vmem:[%s16661_s9 + $0x1830] ss:$8 sps:$4 sm:$0xff]  }
 0x476   : > { %12578 = vmatprep.subr.bf16.mxu1 %v14857_v11  ;;  %v14953_v11 = vld [vmem:[%s16661_s9 + $0x1824] ss:$8 sps:$4 sm:$0xff]  }
 0x477   : > { %12536 = vmatpush1.bf16.msra.mxu0 %v14852_v12  ;;  %v14951_v12 = vld [vmem:[%s16661_s9 + $0x1820] ss:$8 sps:$4 sm:$0xff]  }
 0x478   : > { %12537 = vmatprep.subr.bf16.mxu0 %v14860_v13  ;;  %v14956_v13 = vld [vmem:[%s16661_s9 + $0x1814] ss:$8 sps:$4 sm:$0xff]  }
 0x479   : > { %12579 = vmatpush1.bf16.msra.mxu1 %v14855_v14  ;;  %v14954_v14 = vld [vmem:[%s16661_s9 + $0x1810] ss:$8 sps:$4 sm:$0xff]  }
 0x47a   : > { %12580 = vmatprep.subr.bf16.mxu1 %v14863_v15  ;;  %v14959_v15 = vld [vmem:[%s16661_s9 + $0x1804] ss:$8 sps:$4 sm:$0xff]  }
 0x47b   : > { %12538 = vmatpush1.bf16.msra.mxu0 %v14858_v16  ;;  %v14957_v16 = vld [vmem:[%s16661_s9 + $0x1800] ss:$8 sps:$4 sm:$0xff]   ;;  %s12828_s9 = sshll.u32 %s14999_s14, 1 }
 0x47c   : > { %12539 = vmatprep.subr.bf16.mxu0 %v14866_v17  ;;  %v14960_v17 = vld [vmem:[%s17810_s0 + $0xc0] ss:$196 sps:$4 sm:$0xff]   ;;  %p6564_p11 = scmp.lt.s32.totalorder %s12828_s9, 3 }
 0x47d   : > { %12581 = vmatpush1.bf16.msra.mxu1 %v14861_v18  ;;  %v17588_v18 = vpop.f32.mrf.mxu0 }
 0x47e   : > { %12582 = vmatprep.subr.bf16.mxu1 %v14869_v19  ;;  %s17834_s9 = smov (!%p6564_p11, %s12828_s9), 3 }
 0x47f   : > { %12540 = vmatpush1.bf16.msra.mxu0 %v14864_v20  ;;  %v17590_v19 = vpop.f32.mrf.mxu0  ;;  %v17592_v20 = vpop.f32.mrf.mxu1  ;;  %s6566_s29 = scalar_lea.vmem %s17812_s2, %s17834_s9 }
 0x480   : > { %12541 = vmatprep.subr.bf16.mxu0 %v14872_v21 }
 0x481   : > { %12583 = vmatpush1.bf16.msra.mxu1 %v14867_v22  ;;  %v17594_v21 = vpop.f32.mrf.mxu0  ;;  %v17596_v22 = vpop.f32.mrf.mxu1 }
 0x482   : > { %12584 = vmatprep.subr.bf16.mxu1 %v14875_v23 }
 0x483   : > { %12542 = vmatpush1.bf16.msra.mxu0 %v14870_v24  ;;  %v17598_v23 = vpop.f32.mrf.mxu0  ;;  %v17600_v24 = vpop.f32.mrf.mxu1 }
 0x484   : > { %12543 = vmatprep.subr.bf16.mxu0 %v14878_v25 }
 0x485   : > { %12585 = vmatpush1.bf16.msra.mxu1 %v14873_v26  ;;  %v17602_v25 = vpop.f32.mrf.mxu0  ;;  %v17604_v26 = vpop.f32.mrf.mxu1 }
 0x486   : > { %12586 = vmatprep.subr.bf16.mxu1 %v14881_v27 }
 0x487   : > { %12544 = vmatpush1.bf16.msra.mxu0 %v14876_v28  ;;  %v17606_v27 = vpop.f32.mrf.mxu0  ;;  %v17608_v28 = vpop.f32.mrf.mxu1 }
 0x488   : > { %12545 = vmatprep.subr.bf16.mxu0 %v14884_v29 }
 0x489   : > { %12587 = vmatpush1.bf16.msra.mxu1 %v14879_v30  ;;  %v17610_v29 = vpop.f32.mrf.mxu0  ;;  %v17612_v30 = vpop.f32.mrf.mxu1 }
 0x48a   : > { %12588 = vmatprep.subr.bf16.mxu1 %v14887_v31 }
 0x48b   : > { %12546 = vmatpush2.bf16.msra.mxu0 %v14882_v32  ;;  %v17614_v31 = vpop.f32.mrf.mxu0  ;;  %v17616_v32 = vpop.f32.mrf.mxu1 }
 0x48c   : > { %12547 = vmatprep.subr.bf16.mxu0 %v14890_v33 }
 0x48d   : > { %12589 = vmatpush2.bf16.msra.mxu1 %v14885_v34  ;;  %v17618_v33 = vpop.f32.mrf.mxu0  ;;  %v17620_v34 = vpop.f32.mrf.mxu1 }
 0x48e   : > { %12590 = vmatprep.subr.bf16.mxu1 %v14893_v35 }
 0x48f   : > { %12548 = vmatpush2.bf16.msra.mxu0 %v14888_v36  ;;  %v17622_v35 = vpop.f32.mrf.mxu0  ;;  %v17624_v36 = vpop.f32.mrf.mxu1 }
 0x490   : > { %12549 = vmatprep.subr.bf16.mxu0 %v14896_v37 }
 0x491   : > { %12591 = vmatpush2.bf16.msra.mxu1 %v14891_v38  ;;  %v17626_v37 = vpop.f32.mrf.mxu0  ;;  %v17628_v38 = vpop.f32.mrf.mxu1 }
 0x492   : > { %12592 = vmatprep.subr.bf16.mxu1 %v14899_v39 }
 0x493   : > { %12550 = vmatpush2.bf16.msra.mxu0 %v14894_v40  ;;  %v17630_v39 = vpop.f32.mrf.mxu0  ;;  %v17632_v40 = vpop.f32.mrf.mxu1 }
 0x494   : > { %12551 = vmatprep.subr.bf16.mxu0 %v14902_v41 }
 0x495   : > { %12593 = vmatpush2.bf16.msra.mxu1 %v14897_v42  ;;  %v17634_v41 = vpop.f32.mrf.mxu0  ;;  %v17636_v42 = vpop.f32.mrf.mxu1 }
 0x496   : > { %12594 = vmatprep.subr.bf16.mxu1 %v14905_v43 }
 0x497   : > { %12552 = vmatpush2.bf16.msra.mxu0 %v14900_v44  ;;  %v17638_v43 = vpop.f32.mrf.mxu0  ;;  %v17640_v44 = vpop.f32.mrf.mxu1 }
 0x498   : > { %12553 = vmatprep.subr.bf16.mxu0 %v14908_v45 }
 0x499   : > { %12595 = vmatpush2.bf16.msra.mxu1 %v14903_v46  ;;  %v17642_v45 = vpop.f32.mrf.mxu0  ;;  %v17644_v46 = vpop.f32.mrf.mxu1 }
 0x49a   : > { %12596 = vmatprep.subr.bf16.mxu1 %v14911_v47 }
 0x49b   : > { %12554 = vmatpush2.bf16.msra.mxu0 %v14906_v48  ;;  %v17646_v47 = vpop.f32.mrf.mxu0  ;;  %v17648_v48 = vpop.f32.mrf.mxu1 }
 0x49c   : > { %12555 = vmatprep.subr.bf16.mxu0 %v14914_v49 }
 0x49d   : > { %12597 = vmatpush2.bf16.msra.mxu1 %v14909_v50  ;;  %v17650_v49 = vpop.f32.mrf.mxu0  ;;  %v17652_v50 = vpop.f32.mrf.mxu1 }
 0x49e   : > { %12598 = vmatprep.subr.bf16.mxu1 %v14917_v51 }
 0x49f   : > { %12556 = vmatpush2.bf16.msra.mxu0 %v14912_v52  ;;  %v17654_v51 = vpop.f32.mrf.mxu0  ;;  %v17656_v52 = vpop.f32.mrf.mxu1 }
 0x4a0   : > { %12557 = vmatprep.subr.bf16.mxu0 %v14920_v53 }
 0x4a1   : > { %12599 = vmatpush2.bf16.msra.mxu1 %v14915_v54  ;;  %v17658_v53 = vpop.f32.mrf.mxu0  ;;  %v17660_v54 = vpop.f32.mrf.mxu1 }
 0x4a2   : > { %12600 = vmatprep.subr.bf16.mxu1 %v14923_v55 }
 0x4a3   : > { %12558 = vmatpush2.bf16.msra.mxu0 %v14918_v56  ;;  %v17662_v55 = vpop.f32.mrf.mxu0  ;;  %v17664_v56 = vpop.f32.mrf.mxu1 }
 0x4a4   : > { %12559 = vmatprep.subr.bf16.mxu0 %v14926_v57 }
 0x4a5   : > { %12601 = vmatpush2.bf16.msra.mxu1 %v14921_v58  ;;  %v17666_v57 = vpop.f32.mrf.mxu0  ;;  %v17668_v58 = vpop.f32.mrf.mxu1 }
 0x4a6   : > { %12602 = vmatprep.subr.bf16.mxu1 %v14929_v59 }
 0x4a7   : > { %12560 = vmatpush2.bf16.msra.mxu0 %v14924_v60  ;;  %v17670_v59 = vpop.f32.mrf.mxu0  ;;  %v17672_v60 = vpop.f32.mrf.mxu1 }
 0x4a8   : > { %12615 = vmatprep.subr.bf16.mxu0 %v14935_v61 }
 0x4a9   : > { %12603 = vmatpush2.bf16.msra.mxu1 %v14927_v62  ;;  %v17675_v61 = vpop.f32.mrf.mxu0  ;;  %v17677_v62 = vpop.f32.mrf.mxu1 }
 0x4aa   : > { %12562 = vmatmul.mubr.bf16.vlgmr.msra.gmra.mxu0 %v14930_v63  ;;  %v7407_v63 = vlaneseq }
 0x4ab   : > { %12616 = vmatpush1.bf16.msra.mxu0 %v14933_v0  ;;  %12647 = vmatprep.mubr.bf16.mxu0 %v15009_v4  ;;  %v17679_v0 = vpop.f32.mrf.mxu0 }
 0x4ac   : > { %12605 = vmatmul.mubr.bf16.vlgmr.msra.gmra.mxu1 %v14936_v1  ;;  %12617 = vmatprep.subr.bf16.mxu0 %v14941_v2  ;;  %v17681_v1 = vpop.f32.mrf.mxu1 }
 0x4ad   : > { %v17683_v2 = vpop.f32.mrf.mxu0 }
 0x4ae   : > { %v17685_v4 = vpop.f32.mrf.mxu1 }
 0x4af   : > { %12618 = vmatpush1.bf16.msra.mxu0 %v14939_v3  ;;  %v7408_v3 = vshrl.u32 %v7407_v63, 7  ;;  %17815 = vst [vmem:[#allocation4_spill] sm:$0xff] %v17685_v4 }
 0x4b0   : > { %12619 = vmatprep.subr.bf16.mxu0 %v14944_v5  ;;  %v17690_v5 = vpop.f32.mrf.mxu0 }
 0x4b3   : > { %12620 = vmatpush1.bf16.msra.mxu0 %v14942_v6  ;;  %v17692_v6 = vpop.f32.mrf.mxu1 }
 0x4b4   : > { %12621 = vmatprep.subr.bf16.mxu0 %v14947_v7  ;;  %17816 = vst [vmem:[#allocation5_spill] sm:$0xff] %v17692_v6  ;;  %v7409_v7 = vsub.s32 0, %v7408_v3 }
 0x4b7   : > { %12622 = vmatpush1.bf16.msra.mxu0 %v14945_v8  ;;  %v7405_v8 = vld [vmem:[%s6566_s29] sm:$0x3] }
 0x4b8   : > { %12623 = vmatprep.subr.bf16.mxu0 %v14950_v9  ;;  %v7413_v9 = vsub.s32 1, %v7408_v3 }
 0x4bb   : > { %12624 = vmatpush1.bf16.msra.mxu0 %v14948_v10  ;;  %v17694_v10 = vpop.f32.mrf.mxu0 }
 0x4bc   : > { %12625 = vmatprep.subr.bf16.mxu0 %v14953_v11  ;;  %17817 = vst [vmem:[#allocation6_spill] sm:$0xff] %v17694_v10  ;;  %v17696_v11 = vpop.f32.mrf.mxu1 }
 0x4bf   : > { %12626 = vmatpush1.bf16.msra.mxu0 %v14951_v12  ;;  %v7410_v12 = vrot.slane %v7405_v8, %v7409_v7 }
 0x4c0   : > { %12627 = vmatprep.subr.bf16.mxu0 %v14956_v13  ;;  %v7414_v13 = vrot.slane %v7405_v8, %v7413_v9 }
 0x4c1   : > { %v11622_v10 = vadd.f32 %v17594_v21, %v7410_v12 }
 0x4c2   : > { %v11620_v63 = vadd.f32 %v17590_v19, %v7414_v13  ;;  %v11624_v9 = vadd.f32 %v17598_v23, %v7414_v13 }
 0x4c3   : > { %12628 = vmatpush1.bf16.msra.mxu0 %v14954_v14  ;;  %v17698_v14 = vpop.f32.mrf.mxu0 }
 0x4c4   : > { %12629 = vmatprep.subr.bf16.mxu0 %v14959_v15  ;;  %v17700_v15 = vpop.f32.mrf.mxu1  ;;  %v11663_v8 = vadd.f32 %v17596_v22, %v11620_v63 }
 0x4c5   : > { %17818 = vst [vmem:[#allocation7_spill] sm:$0xff] %v17700_v15  ;;  %v11665_v15 = vadd.f32 %v17600_v24, %v11622_v10 }
 0x4c6   : > { %v17706_v6 = vpop.f32.mrf.mxu1  ;;  %v11706_v19 = vadd.f32 %v17606_v27, %v11663_v8 }
 0x4c7   : > { %12630 = vmatpush1.bf16.msra.mxu0 %v14957_v16  ;;  %v11618_v16 = vadd.f32 %v17588_v18, %v7410_v12  ;;  %17820 = vst [vmem:[#allocation9_spill] sm:$0xff] %v17706_v6  ;;  %v11708_v12 = vadd.f32 %v17610_v29, %v11665_v15 }
 0x4c8   : > { %v17712_v7 = vpop.f32.mrf.mxu1  ;;  %v11749_v22 = vadd.f32 %v17612_v30, %v11706_v19 }
 0x4c9   : > { %v11661_v3 = vadd.f32 %v17592_v20, %v11618_v16  ;;  %v11667_v20 = vadd.f32 %v17604_v26, %v11624_v9  ;;  %v11751_v27 = vadd.f32 %v17616_v32, %v11708_v12 }
 0x4ca   : > { %12648 = vmatmul.mubr.bf16.vlgmr.msra.gmra.mxu0 %v14960_v17  ;;  %v17703_v17 = vpop.f32.mrf.mxu0  ;;  %v17721_v6 = vpop.f32.mrf.mxu1  ;;  %v11792_v10 = vadd.f32 %v17622_v35, %v11749_v22 }
 0x4cb   : > { %17819 = vst [vmem:[#allocation8_spill] sm:$0xff] %v17703_v17  ;;  %v11704_v18 = vadd.f32 %v17602_v25, %v11661_v3  ;;  %v11710_v23 = vadd.f32 %v17614_v31, %v11667_v20  ;;  %v11794_v29 = vadd.f32 %v17626_v37, %v11751_v27  ;;  %v17821_v27 = vld [vmem:[#allocation4_spill] sm:$0xff] }
 0x4cc   : > { %v17710_v4 = vpop.f32.mrf.mxu0  ;;  %v17731_v24 = vpop.f32.mrf.mxu1  ;;  %v11835_v31 = vadd.f32 %v17628_v38, %v11792_v10 }
 0x4cd   : > { %v11747_v21 = vadd.f32 %v17608_v28, %v11704_v18  ;;  %v11753_v26 = vadd.f32 %v17620_v34, %v11710_v23  ;;  %v11837_v35 = vadd.f32 %v17632_v40, %v11794_v29 }
 0x4ce   : > { %v17719_v17 = vpop.f32.mrf.mxu0  ;;  %v17740_v30 = vpop.f32.mrf.mxu1  ;;  %v11878_v3 = vadd.f32 %v17638_v43, %v11835_v31 }
 0x4cf   : > { %v11790_v25 = vadd.f32 %v17618_v33, %v11747_v21  ;;  %v11796_v33 = vadd.f32 %v17630_v39, %v11753_v26  ;;  %v11880_v37 = vadd.f32 %v17642_v45, %v11837_v35  ;;  %v17822_v26 = vld [vmem:[#allocation5_spill] sm:$0xff] }
 0x4d0   : > { %v17729_v13 = vpop.f32.mrf.mxu0  ;;  %v12348_v32 = vpop.f32.mrf.mxu1  ;;  %v11921_v38 = vadd.f32 %v17644_v46, %v11878_v3  ;;  %v17826_v3 = vld [vmem:[#allocation9_spill] sm:$0xff] }
 0x4d1   : > { %v11833_v28 = vadd.f32 %v17624_v36, %v11790_v25  ;;  %v11839_v34 = vadd.f32 %v17636_v42, %v11796_v33  ;;  %v11923_v18 = vadd.f32 %v17648_v48, %v11880_v37 }
 0x4d2   : > { %v17735_v16 = vpop.f32.mrf.mxu0  ;;  %v12350_v9 = vpop.f32.mrf.mxu1  ;;  %v11964_v40 = vadd.f32 %v17654_v51, %v11921_v38  ;;  %v17824_v31 = vld [vmem:[#allocation8_spill] sm:$0xff] }
 0x4d3   : > { %v11876_v15 = vadd.f32 %v17634_v41, %v11833_v28  ;;  %v11882_v39 = vadd.f32 %v17646_v47, %v11839_v34  ;;  %v11966_v45 = vadd.f32 %v17658_v53, %v11923_v18  ;;  %v17823_v28 = vld [vmem:[#allocation6_spill] sm:$0xff] }
 0x4d4   : > { %v12307_v63 = vpop.f32.mrf.mxu0  ;;  %v12352_v43 = vpop.f32.mrf.mxu1  ;;  %v12007_v21 = vadd.f32 %v17660_v54, %v11964_v40 }
 0x4d5   : > { %v11919_v36 = vadd.f32 %v17640_v44, %v11876_v15  ;;  %v11925_v42 = vadd.f32 %v17652_v50, %v11882_v39  ;;  %v12009_v48 = vadd.f32 %v17664_v56, %v11966_v45  ;;  %v17825_v15 = vld [vmem:[#allocation7_spill] sm:$0xff] }
 0x4d6   : > { %v12309_v8 = vpop.f32.mrf.mxu0  ;;  %v12050_v51 = vadd.f32 %v17670_v59, %v12007_v21 }
 0x4d7   : > { %v11962_v41 = vadd.f32 %v17650_v49, %v11919_v36  ;;  %v11968_v46 = vadd.f32 %v17662_v55, %v11925_v42  ;;  %v12354_v49 = vpop.f32.mrf.mxu1  ;;  %v12052_v53 = vadd.f32 %v17675_v61, %v12009_v48 }
 0x4d8   : > { %v12311_v19 = vpop.f32.mrf.mxu0  ;;  %v12093_v23 = vadd.f32 %v17677_v62, %v12050_v51 }
 0x4d9   : > { %v12005_v44 = vadd.f32 %v17656_v52, %v11962_v41  ;;  %v12011_v50 = vadd.f32 %v17668_v58, %v11968_v46  ;;  %v12095_v56 = vadd.f32 %v17681_v1, %v12052_v53 }
 0x4da   : > { %v12136_v59 = vadd.f32 %v17690_v5, %v12093_v23 }
 0x4db   : > { %v12048_v47 = vadd.f32 %v17666_v57, %v12005_v44  ;;  %v12054_v54 = vadd.f32 %v17679_v0, %v12011_v50 }
 0x4dc   : > { %v12179_v62 = vadd.f32 %v17696_v11, %v12136_v59 }
 0x4dd   : > { %v12091_v52 = vadd.f32 %v17672_v60, %v12048_v47  ;;  %v12097_v10 = vadd.f32 %v17821_v27, %v12054_v54  ;;  %v12138_v60 = vadd.f32 %v17823_v28, %v12095_v56 }
 0x4de   : > { %v12222_v1 = vadd.f32 %v17710_v4, %v12179_v62 }
 0x4df   : > { %v12134_v55 = vadd.f32 %v17683_v2, %v12091_v52  ;;  %v12140_v0 = vadd.f32 %v17698_v14, %v12097_v10  ;;  %v12181_v35 = vadd.f32 %v17825_v15, %v12138_v60 }
 0x4e0   : > { %v12265_v11 = vadd.f32 %v17721_v6, %v12222_v1 }
 0x4e1   : > { %v12177_v58 = vadd.f32 %v17822_v26, %v12134_v55  ;;  %v12183_v34 = vadd.f32 %v17826_v3, %v12140_v0  ;;  %v12224_v37 = vadd.f32 %v17719_v17, %v12181_v35 }
 0x4e2   : > { %v12308_v40 = vadd.f32 %v12307_v63, %v12265_v11 }
 0x4e3   : > { %v12220_v2 = vadd.f32 %v17824_v31, %v12177_v58  ;;  %v12226_v14 = vadd.f32 %v17729_v13, %v12183_v34  ;;  %v12267_v18 = vadd.f32 %v17731_v24, %v12224_v37 }
 0x4e5   : > { %v12263_v36 = vadd.f32 %v17712_v7, %v12220_v2  ;;  %v12269_v44 = vadd.f32 %v17740_v30, %v12226_v14  ;;  %v12310_v21 = vadd.f32 %v12309_v8, %v12267_v18  ;;  %v12351_v7 = vadd.f32 %v12350_v9, %v12308_v40 }
 0x4e7   : > { %v12306_v41 = vadd.f32 %v17735_v16, %v12263_v36  ;;  %v12312_v46 = vadd.f32 %v12311_v19, %v12269_v44  ;;  %v12353_v51 = vadd.f32 %v12352_v43, %v12310_v21 }
 0x4e9   : > { %v12349_v45 = vadd.f32 %v12348_v32, %v12306_v41  ;;  %v12355_v13 = vadd.f32 %v12354_v49, %v12312_v46 }
 0x4ea   : > { %v12391_v20 = vpop.f32.mrf.mxu0 }
 0x4eb   : > { %v12392_v17 = vadd.f32 %v12391_v20, %v12349_v45 }
 0x4ec   : > { %v12393_v12 = vpop.f32.mrf.mxu0  ;;  %v12434_v22 = vpop.f32.mrf.mxu1 }
 0x4ed   : > { %v12394_v6 = vadd.f32 %v12393_v12, %v12351_v7  ;;  %v12435_v52 = vadd.f32 %v12434_v22, %v12392_v17 }
 0x4ee   : > { %v12395_v57 = vpop.f32.mrf.mxu0  ;;  %v12436_v25 = vpop.f32.mrf.mxu1 }
 0x4ef   : > { %v12396_v16 = vadd.f32 %v12395_v57, %v12353_v51  ;;  %v12437_v24 = vadd.f32 %v12436_v25, %v12394_v6 }
 0x4f0   : > { %v12397_v29 = vpop.f32.mrf.mxu0  ;;  %v12438_v61 = vpop.f32.mrf.mxu1 }
 0x4f1   : > { %v12398_v63 = vadd.f32 %v12397_v29, %v12355_v13  ;;  %v12439_v30 = vadd.f32 %v12438_v61, %v12396_v16 }
 0x4f2   : > { %v12440_v5 = vpop.f32.mrf.mxu1 }
 0x4f3   : > { %v12441_v8 = vadd.f32 %v12440_v5, %v12398_v63 }
 0x52a   : > { %v12477_v33 = vpop.f32.mrf.mxu0 }
 0x52b   : > { %v12478_v23 = vadd.f32 %v12477_v33, %v12435_v52 }
 0x52c   : > { %v12479_v38 = vpop.f32.mrf.mxu0  ;;  %v12520_v39 = vpop.f32.mrf.mxu1 }
 0x52d   : > { %v12480_v32 = vadd.f32 %v12479_v38, %v12437_v24  ;;  %v12521_v9 = vadd.f32 %v12520_v39, %v12478_v23 }
 0x52e   : > { %v12481_v42 = vpop.f32.mrf.mxu0  ;;  %v12522_v4 = vpop.f32.mrf.mxu1 }
 0x52f   : > { %v12482_v19 = vadd.f32 %v12481_v42, %v12439_v30  ;;  %v12523_v59 = vadd.f32 %v12522_v4, %v12480_v32 }
 0x530   : > { %v12483_v47 = vpop.f32.mrf.mxu0  ;;  %v12524_v48 = vpop.f32.mrf.mxu1 }
 0x531   : > { %v12484_v43 = vadd.f32 %v12483_v47, %v12441_v8  ;;  %v12525_v27 = vadd.f32 %v12524_v48, %v12482_v19 }
 0x532   : > { %v12526_v53 = vpop.f32.mrf.mxu1 }
 0x533   : > { %v12527_v10 = vadd.f32 %v12526_v53, %v12484_v43 }
 0x56a   : > { %v12563_v50 = vpop.f32.mrf.mxu0 }
 0x56b   : > { %v12564_v12 = vadd.f32 %v12563_v50, %v12521_v9 }
 0x56c   : > { %v12565_v54 = vpop.f32.mrf.mxu0  ;;  %v12606_v55 = vpop.f32.mrf.mxu1 }
 0x56d   : > { %v12566_v49 = vadd.f32 %v12565_v54, %v12523_v59  ;;  %v12607_v25 = vadd.f32 %v12606_v55, %v12564_v12 }
 0x56e   : > { %v12567_v20 = vpop.f32.mrf.mxu0  ;;  %v12608_v56 = vpop.f32.mrf.mxu1 }
 0x56f   : > { %v12568_v26 = vadd.f32 %v12567_v20, %v12525_v27  ;;  %v12609_v28 = vadd.f32 %v12608_v56, %v12566_v49 }
 0x570   : > { %v12569_v22 = vpop.f32.mrf.mxu0  ;;  %v12610_v57 = vpop.f32.mrf.mxu1 }
 0x571   : > { %v12570_v60 = vadd.f32 %v12569_v22, %v12527_v10  ;;  %v12611_v0 = vadd.f32 %v12610_v57, %v12568_v26 }
 0x572   : > { %v12612_v61 = vpop.f32.mrf.mxu1 }
 0x573   : > { %v12613_v15 = vadd.f32 %v12612_v61, %v12570_v60 }
 0x58a   : > { %v12649_v58 = vpop.f32.mrf.mxu0 }
 0x58b   : > { %v12650_v29 = vadd.f32 %v12649_v58, %v12607_v25 }
 0x58c   : > { %v12651_v62 = vpop.f32.mrf.mxu0 }
 0x58d   : > { %v12662_v31 = vmul.f32 0.70710677, %v12650_v29  ;;  %v12652_v2 = vadd.f32 %v12651_v62, %v12609_v28  ;;  %v12658_v38 = vmul.f32 0.5, %v12650_v29 }
 0x58e   : > { %v12653_v33 = vpop.f32.mrf.mxu0 }
 0x58f   : > { %14961 = verf.f32 %v12662_v31  ;;  %v12663_v35 = vmul.f32 0.70710677, %v12652_v2  ;;  %v12654_v1 = vadd.f32 %v12653_v33, %v12611_v0  ;;  %v12659_v41 = vmul.f32 0.5, %v12652_v2 }
 0x590   : > { %v12655_v5 = vpop.f32.mrf.mxu0 }
 0x591   : > { %14963 = verf.f32 %v12663_v35  ;;  %v12664_v3 = vmul.f32 0.70710677, %v12654_v1  ;;  %v12656_v34 = vadd.f32 %v12655_v5, %v12613_v15  ;;  %v12660_v4 = vmul.f32 0.5, %v12654_v1 }
 0x593   : > { %14965 = verf.f32 %v12664_v3  ;;  %v12665_v36 = vmul.f32 0.70710677, %v12656_v34  ;;  %v12661_v7 = vmul.f32 0.5, %v12656_v34 }
 0x595   : > { %14967 = verf.f32 %v12665_v36 }
 0x59c   : > { %v14962_v37 = vpop.eup %14961 }
 0x59d   : > { %v12670_v39 = vadd.f32 1.0, %v14962_v37 }
 0x59e   : > { %v14964_v11 = vpop.eup %14963 }
 0x59f   : > { %v12674_v14 = vmul.f32 %v12670_v39, %v12658_v38  ;;  %v12671_v18 = vadd.f32 1.0, %v14964_v11 }
 0x5a0   : > { %v14966_v40 = vpop.eup %14965 }
 0x5a1   : > { %12678 = vst [vmem:[%s6554_s5] sm:$0xff] %v12674_v14  ;;  %v12675_v42 = vmul.f32 %v12671_v18, %v12659_v41  ;;  %v12672_v44 = vadd.f32 1.0, %v14966_v40 }
 0x5a2   : > { %v14968_v45 = vpop.eup %14967 }
 0x5a3   : > { %12679 = vst [vmem:[%s6554_s5 + $0x8] sm:$0xff] %v12675_v42  ;;  %v12676_v21 = vmul.f32 %v12672_v44, %v12660_v4  ;;  %v12673_v46 = vadd.f32 1.0, %v14968_v45  ;;  %12688 = sbr.rel (!%p15065_p6) target bundleno = 1456 (0x5b0), region = 88 }
 0x5a5   : > { %12680 = vst [vmem:[%s6554_s5 + $0x10] sm:$0xff] %v12676_v21  ;;  %v12677_v17 = vmul.f32 %v12673_v46, %v12661_v7 }
 0x5a7   : > { %12681 = vst [vmem:[%s6554_s5 + $0x18] sm:$0xff] %v12677_v17 }
 0x5a8   : > { %v12707_v47 = vld [vmem:[%s6554_s5] sm:$0xff] }
 0x5a9   : > { %12708 = vst [vmem:[%s12694_s7] sm:$0xff] %v12707_v47 }
 0x5aa   : > { %v12709_v48 = vld [vmem:[%s6554_s5 + $0x8] sm:$0xff] }
 0x5ab   : > { %12710 = vst [vmem:[%s12694_s7 + $0x8] sm:$0xff] %v12709_v48 }
 0x5ac   : > { %v12711_v51 = vld [vmem:[%s6554_s5 + $0x10] sm:$0xff] }
 0x5ad   : > { %12712 = vst [vmem:[%s12694_s7 + $0x20] sm:$0xff] %v12711_v51 }
 0x5ae   : > { %v12713_v6 = vld [vmem:[%s6554_s5 + $0x18] sm:$0xff] }
 0x5af   : > { %12714 = vst [vmem:[%s12694_s7 + $0x28] sm:$0xff] %v12713_v6 }
 0x5b0 PF: > { %s13_s16 = sadd.s32 1, %s15007_s16   ;;  %s17827_s12 = smov %s14995_s13 }
 0x5b1   : > { %p10_p12 = scmp.ge.s32.totalorder %s13_s16, 4   ;;  %s17828_s13 = smov %s15070_s22 }
 0x5b2   : > { %s17829_s14 = smov %s15003_s15  ;;  %s17830_s15 = smov %s17832_s17 }
 0x5b3   :  { %12 = sbr.rel (!%p10_p12) target bundleno = 3 (0x3), region = 154 }

</bundles_post_ra>
